<compile_context>
chip_gen: v6e
topology: v6e:2x2x1
jax: 0.10.0
libtpu: 0.0.40
codegen_flags: <defaults>
</compile_context>

<pallas_src>
import jax
import jax.numpy as jnp
from jax.experimental import pallas as pl
from jax.experimental.pallas import tpu as pltpu

# ---- module hyper-parameters (from Gilmer.__init__ defaults) ----------------
NODE_OUT_FEATS = 64            # node_out_feats
EDGE_HIDDEN_FEATS = 128        # edge_hidden_feats
NUM_STEP_MESSAGE_PASSING = 3
NUM_STEP_SET2SET = 6
NUM_LAYER_SET2SET = 3
NUM_ATOM_FEATURES = 30
NUM_BOND_FEATURES = 11
N_TASKS = 1
H = NODE_OUT_FEATS


# ---------------------------- Pallas kernels ---------------------------------
def _edge_network_kernel(e_ref, w1_ref, b1_ref, w2_ref, b2_ref, o_ref):
    """NNConv edge_func: Linear(11,128) -> ReLU -> Linear(128, 64*64).

    we2 is stored in bf16; both MXU operands are bf16 with f32 accumulation."""
    hmid = jnp.maximum(
        jnp.dot(e_ref[...], w1_ref[...], preferred_element_type=jnp.float32)
        + b1_ref[...], 0.0)                                           # [E, 128]
    o_ref[...] = (jnp.dot(hmid.astype(w2_ref.dtype), w2_ref[...],
                          preferred_element_type=jnp.float32)
                  + b2_ref[...])                                      # [E, H*H]


def _gilmer_main_kernel(x_ref, src_ref, dst_ref, w3d_ref,
                        wp_ref, bp_ref, bconv_ref,
                        gru_wi_ref, gru_wh_ref, gru_bi_ref, gru_bh_ref,
                        wq0_ref, wr0_ref, wh0_ref, b0_ref,
                        wi1_ref, wh1_ref, b1_ref,
                        wi2_ref, wh2_ref, b2_ref,
                        pw1q_ref, pw1r_ref, pb1_ref, pw2_ref, pb2_ref,
                        o_ref):
    """project_node_feats + 3 MP steps + Set2Set + predict MLP, fully fused."""
    n_nodes = x_ref.shape[0]
    n_edges = w3d_ref.shape[0]

    # --- build one-hot gather/scatter operands on-chip from int32 indices ----
    src = src_ref[...]                                                # [E, 1]
    dst = dst_ref[...]                                                # [1, E]
    gather_src = jnp.where(
        jax.lax.broadcasted_iota(jnp.int32, (n_edges, n_nodes), 1) == src,
        1.0, 0.0)                                                     # [E, N]
    scatter_dst = jnp.where(
        jax.lax.broadcasted_iota(jnp.int32, (n_nodes, n_edges), 0) == dst,
        1.0, 0.0)                                                     # [N, E]

    # --- MPNNGNN.project_node_feats: ReLU(x @ Wp + bp) ------------------------
    h = jnp.maximum(
        jnp.dot(x_ref[...], wp_ref[...], preferred_element_type=jnp.float32)
        + bp_ref[...], 0.0)                                           # [N, H]

    # weights stay resident in VMEM across all message-passing steps
    w3d = w3d_ref[...]                                                # [E, H, H]
    bconv = bconv_ref[...]
    gru_wi = gru_wi_ref[...]; gru_wh = gru_wh_ref[...]
    gru_bi = gru_bi_ref[...]; gru_bh = gru_bh_ref[...]

    # --- NUM_STEP_MESSAGE_PASSING x (ReLU(NNConv-sum) + GRU), unrolled --------
    # TODO(synk): for large graphs, grid this over edge tiles ("parallel") and
    #             recompute w3d per tile instead of materializing [E, H, H].
    for _ in range(NUM_STEP_MESSAGE_PASSING):
        # gather source-node features (MXU matmul with one-hot gather matrix)
        h_src = jnp.dot(gather_src, h, preferred_element_type=jnp.float32)   # [E, H]
        # per-edge matvec through the MXU as a batched contraction
        msg = jnp.einsum('exh,eho->exo', h_src[:, None, :], w3d,
                         preferred_element_type=jnp.float32)[:, 0, :]         # [E, H]
        # scatter-add to destination nodes + NNConv bias, then ReLU
        m = jnp.maximum(
            jnp.dot(scatter_dst, msg, preferred_element_type=jnp.float32)
            + bconv, 0.0)                                                     # [N, H]
        # GRU cell (PyTorch gate order r|z|n), gates packed lane-dense [N, 3H]
        gi = jnp.dot(m, gru_wi, preferred_element_type=jnp.float32) + gru_bi
        gh = jnp.dot(h, gru_wh, preferred_element_type=jnp.float32) + gru_bh
        r = jax.nn.sigmoid(gi[:, 0:H] + gh[:, 0:H])
        z = jax.nn.sigmoid(gi[:, H:2 * H] + gh[:, H:2 * H])
        n = jnp.tanh(gi[:, 2 * H:3 * H] + r * gh[:, 2 * H:3 * H])
        h = (1.0 - z) * n + z * h                                             # [N, H]

    # --- Set2Set readout: 6 steps of 3-layer LSTM + node attention ------------
    feat = h
    wq0 = wq0_ref[...]; wr0 = wr0_ref[...]; wh0 = wh0_ref[...]; b0 = b0_ref[...]
    wi1 = wi1_ref[...]; wh1 = wh1_ref[...]; b1 = b1_ref[...]
    wi2 = wi2_ref[...]; wh2 = wh2_ref[...]; b2 = b2_ref[...]

    def lstm_cell(x_gates, h_prev, c_prev, wh, b):
        # PyTorch gate order i|f|g|o packed along 4H=256 lanes; b = b_ih + b_hh
        g = (x_gates
             + jnp.dot(h_prev, wh, preferred_element_type=jnp.float32) + b)   # [1, 4H]
        i_g = jax.nn.sigmoid(g[:, 0:H])
        f_g = jax.nn.sigmoid(g[:, H:2 * H])
        g_g = jnp.tanh(g[:, 2 * H:3 * H])
        o_g = jax.nn.sigmoid(g[:, 3 * H:4 * H])
        c_new = f_g * c_prev + i_g * g_g
        return o_g * jnp.tanh(c_new), c_new

    zero = jnp.zeros((1, H), jnp.float32)
    q, readout = zero, zero
    h0 = c0 = h1 = c1 = h2 = c2 = zero

    for _ in range(NUM_STEP_SET2SET):
        # layer-0 input is q_star = [q | readout]; weights pre-split -> two dots
        xg0 = (jnp.dot(q, wq0, preferred_element_type=jnp.float32)
               + jnp.dot(readout, wr0, preferred_element_type=jnp.float32))
        h0, c0 = lstm_cell(xg0, h0, c0, wh0, b0)
        xg1 = jnp.dot(h0, wi1, preferred_element_type=jnp.float32)
        h1, c1 = lstm_cell(xg1, h1, c1, wh1, b1)
        xg2 = jnp.dot(h1, wi2, preferred_element_type=jnp.float32)
        h2, c2 = lstm_cell(xg2, h2, c2, wh2, b2)
        q = h2                                                        # [1, H]
        # attention over all nodes (single graph => softmax over rows)
        e = jnp.sum(feat * q, axis=-1, keepdims=True)                 # [N, 1]
        e = e - jnp.max(e, axis=0, keepdims=True)
        a = jnp.exp(e)
        alpha = a * pl.reciprocal(jnp.sum(a, axis=0, keepdims=True), approx=True)
        readout = jnp.sum(feat * alpha, axis=0, keepdims=True)        # [1, H]

    # --- predict MLP fused as epilogue: Linear(2H,H)+ReLU -> Linear(H,n_tasks)
    hmid = jnp.maximum(
        jnp.dot(q, pw1q_ref[...], preferred_element_type=jnp.float32)
        + jnp.dot(readout, pw1r_ref[...], preferred_element_type=jnp.float32)
        + pb1_ref[...], 0.0)                                          # [1, H]
    o_ref[...] = (jnp.dot(hmid, pw2_ref[...], preferred_element_type=jnp.float32)
                  + pb2_ref[...])                                     # [1, n_tasks]


# ------------------------------ parameters -----------------------------------
def init_params(key):
    def nrm(k, shape, scale=0.1, dtype=jnp.float32):
        return (scale * jax.random.normal(k, shape, jnp.float32)).astype(dtype)

    keys = iter(jax.random.split(key, 32))
    p = {}
    # MPNNGNN.project_node_feats
    p['wp'] = nrm(next(keys), (NUM_ATOM_FEATURES, H))
    p['bp'] = nrm(next(keys), (1, H))
    # NNConv edge network (we2 kept bf16 for MXU / halved HBM traffic)
    p['we1'] = nrm(next(keys), (NUM_BOND_FEATURES, EDGE_HIDDEN_FEATS))
    p['be1'] = nrm(next(keys), (1, EDGE_HIDDEN_FEATS))
    p['we2'] = nrm(next(keys), (EDGE_HIDDEN_FEATS, H * H), scale=0.02,
                   dtype=jnp.bfloat16)
    p['be2'] = nrm(next(keys), (1, H * H), scale=0.02)
    p['bconv'] = nrm(next(keys), (1, H))           # NNConv bias
    # GRU, gates packed along lanes (order r|z|n), stored transposed (x @ W)
    p['gru_wi'] = nrm(next(keys), (H, 3 * H))
    p['gru_wh'] = nrm(next(keys), (H, 3 * H))
    p['gru_bi'] = nrm(next(keys), (1, 3 * H))
    p['gru_bh'] = nrm(next(keys), (1, 3 * H))
    # Set2Set 3-layer LSTM, gates packed (order i|f|g|o); layer-0 input split q/r
    p['s2s_wq0'] = nrm(next(keys), (H, 4 * H))
    p['s2s_wr0'] = nrm(next(keys), (H, 4 * H))
    p['s2s_wh0'] = nrm(next(keys), (H, 4 * H))
    p['s2s_b0'] = nrm(next(keys), (1, 4 * H))
    p['s2s_wi1'] = nrm(next(keys), (H, 4 * H))
    p['s2s_wh1'] = nrm(next(keys), (H, 4 * H))
    p['s2s_b1'] = nrm(next(keys), (1, 4 * H))
    p['s2s_wi2'] = nrm(next(keys), (H, 4 * H))
    p['s2s_wh2'] = nrm(next(keys), (H, 4 * H))
    p['s2s_b2'] = nrm(next(keys), (1, 4 * H))
    # prediction head (first layer split into q-half / readout-half)
    p['pw1q'] = nrm(next(keys), (H, H))
    p['pw1r'] = nrm(next(keys), (H, H))
    p['pb1'] = nrm(next(keys), (1, H))
    p['pw2'] = nrm(next(keys), (H, N_TASKS))
    p['pb2'] = nrm(next(keys), (1, N_TASKS))
    return p


# ------------------------------ forward pass ----------------------------------
def gilmer_forward(params, x, edge_attr, src, dst):
    """Gilmer.forward with mode='regression'  ->  [1, n_tasks]."""
    n_nodes = x.shape[0]
    n_edges = edge_attr.shape[0]
    vmem = pl.BlockSpec(memory_space=pltpu.MemorySpace.VMEM)
    cparams = pltpu.CompilerParams(vmem_limit_bytes=32 * 1024 * 1024)

    # --- call 1: NNConv edge network (edge features constant across MP steps)
    wflat = pl.pallas_call(
        _edge_network_kernel,
        out_shape=jax.ShapeDtypeStruct((n_edges, H * H), jnp.float32),
        in_specs=[vmem] * 5,
        out_specs=vmem,
        compiler_params=cparams,
    )(edge_attr, params['we1'], params['be1'], params['we2'], params['be2'])
    w3d = wflat.reshape(n_edges, H, H)             # [E, H_in, H_out]

    # int32 edge endpoints; one-hot matrices are built inside the kernel
    src_i = src.astype(jnp.int32).reshape(n_edges, 1)
    dst_i = dst.astype(jnp.int32).reshape(1, n_edges)

    args = (x, src_i, dst_i, w3d,
            params['wp'], params['bp'], params['bconv'],
            params['gru_wi'], params['gru_wh'], params['gru_bi'], params['gru_bh'],
            params['s2s_wq0'], params['s2s_wr0'], params['s2s_wh0'], params['s2s_b0'],
            params['s2s_wi1'], params['s2s_wh1'], params['s2s_b1'],
            params['s2s_wi2'], params['s2s_wh2'], params['s2s_b2'],
            params['pw1q'], params['pw1r'], params['pb1'],
            params['pw2'], params['pb2'])

    # advisory cost estimate for XLA's scheduler around the fused custom call
    mp_flops = NUM_STEP_MESSAGE_PASSING * 2 * (
        n_edges * n_nodes * H + n_edges * H * H + n_nodes * n_edges * H
        + 2 * n_nodes * H * 3 * H)
    s2s_flops = NUM_STEP_SET2SET * 2 * (
        2 * H * 4 * H + 2 * NUM_LAYER_SET2SET * H * 4 * H + 2 * n_nodes * H)
    flops = (2 * n_nodes * NUM_ATOM_FEATURES * H + mp_flops + s2s_flops
             + 2 * (2 * H * H + H * N_TASKS))
    transcendentals = (NUM_STEP_MESSAGE_PASSING * 3 * n_nodes * H
                       + NUM_STEP_SET2SET * (NUM_LAYER_SET2SET * 5 * H + 2 * n_nodes))
    bytes_accessed = int(sum(int(a.size) * jnp.dtype(a.dtype).itemsize for a in args)
                         + 4 * N_TASKS)

    # --- call 2: fully fused project + 3x MP + Set2Set + predict -------------
    out = pl.pallas_call(
        _gilmer_main_kernel,
        out_shape=jax.ShapeDtypeStruct((1, N_TASKS), jnp.float32),
        in_specs=[vmem] * len(args),
        out_specs=vmem,
        compiler_params=cparams,
        cost_estimate=pl.CostEstimate(flops=int(flops),
                                      transcendentals=int(transcendentals),
                                      bytes_accessed=bytes_accessed),
    )(*args)
    return out


# ---------------------------------- main --------------------------------------
if __name__ == "__main__":
    key = jax.random.PRNGKey(0)
    k_x, k_e, k_src, k_dst = jax.random.split(key, 4)
    n_nodes, n_edges = 8, 12

    x = jax.random.normal(k_x, (n_nodes, NUM_ATOM_FEATURES), jnp.float32)
    edge_attr = jax.random.normal(k_e, (n_edges, NUM_BOND_FEATURES), jnp.float32)
    src = jax.random.randint(k_src, (n_edges,), 0, n_nodes)
    dst = jax.random.randint(k_dst, (n_edges,), 0, n_nodes)

    params = init_params(jax.random.PRNGKey(1))
    out = jax.jit(gilmer_forward)(params, x, edge_attr, src, dst)
    out = jax.block_until_ready(out)

    assert out.shape == (1, N_TASKS), out.shape
    assert bool(jnp.all(jnp.isfinite(out)))
    print("KERNEL_OK")
</pallas_src>

<mosaic_0001>
module attributes {stable_mosaic.version = 11 : i64} {
  func.func @_edge_network_kernel(%arg0: memref<12x11xf32, #tpu.memory_space<vmem>>, %arg1: memref<11x128xf32, #tpu.memory_space<vmem>>, %arg2: memref<1x128xf32, #tpu.memory_space<vmem>>, %arg3: memref<128x4096xbf16, #tpu.memory_space<vmem>>, %arg4: memref<1x4096xf32, #tpu.memory_space<vmem>>, %arg5: memref<12x4096xf32, #tpu.memory_space<vmem>>) attributes {dimension_semantics = [], scalar_prefetch = 0 : i64, scratch_operands = 0 : i64, tpu.core_type = #tpu.core_type<tc>} {
    %c0 = arith.constant 0 : index
    %c0_0 = arith.constant 0 : index
    %0 = vector.load %arg0[%c0, %c0_0] : memref<12x11xf32, #tpu.memory_space<vmem>>, vector<12x11xf32>
    %c0_1 = arith.constant 0 : index
    %c0_2 = arith.constant 0 : index
    %1 = vector.load %arg1[%c0_1, %c0_2] : memref<11x128xf32, #tpu.memory_space<vmem>>, vector<11x128xf32>
    %cst = arith.constant dense<0.000000e+00> : vector<12x128xf32>
    %2 = tpu.matmul %0, %1, %cst {dimension_numbers = #tpu.dot_dimension_numbers<[1], [0], [0], [1], [0, 0, 1, 1], [], []>} : vector<12x11xf32>, vector<11x128xf32>, vector<12x128xf32> -> vector<12x128xf32>
    %c0_3 = arith.constant 0 : index
    %c0_4 = arith.constant 0 : index
    %3 = vector.load %arg2[%c0_3, %c0_4] : memref<1x128xf32, #tpu.memory_space<vmem>>, vector<1x128xf32>
    %4 = vector.broadcast %3 : vector<1x128xf32> to vector<12x128xf32>
    %5 = arith.addf %2, %4 : vector<12x128xf32>
    %cst_5 = arith.constant 0.000000e+00 : f32
    %6 = vector.broadcast %cst_5 : f32 to vector<12x128xf32>
    %7 = arith.maximumf %5, %6 : vector<12x128xf32>
    %8 = arith.truncf %7 : vector<12x128xf32> to vector<12x128xbf16>
    %c0_6 = arith.constant 0 : index
    %c0_7 = arith.constant 0 : index
    %9 = vector.load %arg3[%c0_6, %c0_7] : memref<128x4096xbf16, #tpu.memory_space<vmem>>, vector<128x4096xbf16>
    %cst_8 = arith.constant dense<0.000000e+00> : vector<12x4096xf32>
    %10 = tpu.matmul %8, %9, %cst_8 {dimension_numbers = #tpu.dot_dimension_numbers<[1], [0], [0], [1], [0, 0, 1, 1], [], []>} : vector<12x128xbf16>, vector<128x4096xbf16>, vector<12x4096xf32> -> vector<12x4096xf32>
    %c0_9 = arith.constant 0 : index
    %c0_10 = arith.constant 0 : index
    %11 = vector.load %arg4[%c0_9, %c0_10] : memref<1x4096xf32, #tpu.memory_space<vmem>>, vector<1x4096xf32>
    %12 = vector.broadcast %11 : vector<1x4096xf32> to vector<12x4096xf32>
    %13 = arith.addf %10, %12 : vector<12x4096xf32>
    %c0_11 = arith.constant 0 : index
    %c0_12 = arith.constant 0 : index
    %14 = vector.load %arg5[%c0_11, %c0_12] : memref<12x4096xf32, #tpu.memory_space<vmem>>, vector<12x4096xf32>
    tpu.vector_store %arg5[%c0_11, %c0_12], %13 {strides = array<i32>} : memref<12x4096xf32, #tpu.memory_space<vmem>>, vector<12x4096xf32>,
    return
  }
}

module attributes {stable_mosaic.version = 11 : i64} {
  func.func @_gilmer_main_kernel(%arg0: memref<8x30xf32, #tpu.memory_space<vmem>>, %arg1: memref<12x1xi32, #tpu.memory_space<vmem>>, %arg2: memref<1x12xi32, #tpu.memory_space<vmem>>, %arg3: memref<12x64x64xf32, #tpu.memory_space<vmem>>, %arg4: memref<30x64xf32, #tpu.memory_space<vmem>>, %arg5: memref<1x64xf32, #tpu.memory_space<vmem>>, %arg6: memref<1x64xf32, #tpu.memory_space<vmem>>, %arg7: memref<64x192xf32, #tpu.memory_space<vmem>>, %arg8: memref<64x192xf32, #tpu.memory_space<vmem>>, %arg9: memref<1x192xf32, #tpu.memory_space<vmem>>, %arg10: memref<1x192xf32, #tpu.memory_space<vmem>>, %arg11: memref<64x256xf32, #tpu.memory_space<vmem>>, %arg12: memref<64x256xf32, #tpu.memory_space<vmem>>, %arg13: memref<64x256xf32, #tpu.memory_space<vmem>>, %arg14: memref<1x256xf32, #tpu.memory_space<vmem>>, %arg15: memref<64x256xf32, #tpu.memory_space<vmem>>, %arg16: memref<64x256xf32, #tpu.memory_space<vmem>>, %arg17: memref<1x256xf32, #tpu.memory_space<vmem>>, %arg18: memref<64x256xf32, #tpu.memory_space<vmem>>, %arg19: memref<64x256xf32, #tpu.memory_space<vmem>>, %arg20: memref<1x256xf32, #tpu.memory_space<vmem>>, %arg21: memref<64x64xf32, #tpu.memory_space<vmem>>, %arg22: memref<64x64xf32, #tpu.memory_space<vmem>>, %arg23: memref<1x64xf32, #tpu.memory_space<vmem>>, %arg24: memref<64x1xf32, #tpu.memory_space<vmem>>, %arg25: memref<1x1xf32, #tpu.memory_space<vmem>>, %arg26: memref<1x1xf32, #tpu.memory_space<vmem>>) attributes {dimension_semantics = [], scalar_prefetch = 0 : i64, scratch_operands = 0 : i64, tpu.core_type = #tpu.core_type<tc>} {
    %c0 = arith.constant 0 : index
    %c0_0 = arith.constant 0 : index
    %0 = vector.load %arg1[%c0, %c0_0] : memref<12x1xi32, #tpu.memory_space<vmem>>, vector<12x1xi32>
    %c0_1 = arith.constant 0 : index
    %c0_2 = arith.constant 0 : index
    %1 = vector.load %arg2[%c0_1, %c0_2] : memref<1x12xi32, #tpu.memory_space<vmem>>, vector<1x12xi32>
    %2 = tpu.iota {dimensions = array<i32: 1>} : vector<12x8xi32>
    %3 = vector.broadcast %0 : vector<12x1xi32> to vector<12x8xi32>
    %4 = arith.cmpi eq, %2, %3 : vector<12x8xi32>
    %cst = arith.constant 1.000000e+00 : f32
    %cst_3 = arith.constant 0.000000e+00 : f32
    %5 = vector.broadcast %cst : f32 to vector<12x8xf32>
    %6 = vector.broadcast %cst_3 : f32 to vector<12x8xf32>
    %7 = arith.select %4, %5, %6 : vector<12x8xi1>, vector<12x8xf32>
    %8 = tpu.iota {dimensions = array<i32: 0>} : vector<8x12xi32>
    %9 = vector.broadcast %1 : vector<1x12xi32> to vector<8x12xi32>
    %10 = arith.cmpi eq, %8, %9 : vector<8x12xi32>
    %cst_4 = arith.constant 1.000000e+00 : f32
    %cst_5 = arith.constant 0.000000e+00 : f32
    %11 = vector.broadcast %cst_4 : f32 to vector<8x12xf32>
    %12 = vector.broadcast %cst_5 : f32 to vector<8x12xf32>
    %13 = arith.select %10, %11, %12 : vector<8x12xi1>, vector<8x12xf32>
    %c0_6 = arith.constant 0 : index
    %c0_7 = arith.constant 0 : index
    %14 = vector.load %arg0[%c0_6, %c0_7] : memref<8x30xf32, #tpu.memory_space<vmem>>, vector<8x30xf32>
    %c0_8 = arith.constant 0 : index
    %c0_9 = arith.constant 0 : index
    %15 = vector.load %arg4[%c0_8, %c0_9] : memref<30x64xf32, #tpu.memory_space<vmem>>, vector<30x64xf32>
    %cst_10 = arith.constant dense<0.000000e+00> : vector<8x64xf32>
    %16 = tpu.matmul %14, %15, %cst_10 {dimension_numbers = #tpu.dot_dimension_numbers<[1], [0], [0], [1], [0, 0, 1, 1], [], []>} : vector<8x30xf32>, vector<30x64xf32>, vector<8x64xf32> -> vector<8x64xf32>
    %c0_11 = arith.constant 0 : index
    %c0_12 = arith.constant 0 : index
    %17 = vector.load %arg5[%c0_11, %c0_12] : memref<1x64xf32, #tpu.memory_space<vmem>>, vector<1x64xf32>
    %18 = vector.broadcast %17 : vector<1x64xf32> to vector<8x64xf32>
    %19 = arith.addf %16, %18 : vector<8x64xf32>
    %cst_13 = arith.constant 0.000000e+00 : f32
    %20 = vector.broadcast %cst_13 : f32 to vector<8x64xf32>
    %21 = arith.maximumf %19, %20 : vector<8x64xf32>
    %c0_14 = arith.constant 0 : index
    %c0_15 = arith.constant 0 : index
    %c0_16 = arith.constant 0 : index
    %22 = vector.load %arg3[%c0_14, %c0_15, %c0_16] : memref<12x64x64xf32, #tpu.memory_space<vmem>>, vector<12x64x64xf32>
    %c0_17 = arith.constant 0 : index
    %c0_18 = arith.constant 0 : index
    %23 = vector.load %arg6[%c0_17, %c0_18] : memref<1x64xf32, #tpu.memory_space<vmem>>, vector<1x64xf32>
    %c0_19 = arith.constant 0 : index
    %c0_20 = arith.constant 0 : index
    %24 = vector.load %arg7[%c0_19, %c0_20] : memref<64x192xf32, #tpu.memory_space<vmem>>, vector<64x192xf32>
    %c0_21 = arith.constant 0 : index
    %c0_22 = arith.constant 0 : index
    %25 = vector.load %arg8[%c0_21, %c0_22] : memref<64x192xf32, #tpu.memory_space<vmem>>, vector<64x192xf32>
    %c0_23 = arith.constant 0 : index
    %c0_24 = arith.constant 0 : index
    %26 = vector.load %arg9[%c0_23, %c0_24] : memref<1x192xf32, #tpu.memory_space<vmem>>, vector<1x192xf32>
    %c0_25 = arith.constant 0 : index
    %c0_26 = arith.constant 0 : index
    %27 = vector.load %arg10[%c0_25, %c0_26] : memref<1x192xf32, #tpu.memory_space<vmem>>, vector<1x192xf32>
    %cst_27 = arith.constant dense<0.000000e+00> : vector<12x64xf32>
    %28 = tpu.matmul %7, %21, %cst_27 {dimension_numbers = #tpu.dot_dimension_numbers<[1], [0], [0], [1], [0, 0, 1, 1], [], []>} : vector<12x8xf32>, vector<8x64xf32>, vector<12x64xf32> -> vector<12x64xf32>
    %29 = vector.shape_cast %28 : vector<12x64xf32> to vector<12x1x64xf32>
    "tpu.trace_start"() <{level = 10 : i32, message = "exh,eho->exo"}> : () -> ()
    %cst_28 = arith.constant dense<0.000000e+00> : vector<12x1x64xf32>
    %30 = tpu.matmul %29, %22, %cst_28 {dimension_numbers = #tpu.dot_dimension_numbers<[2], [1], [1], [2], [0, 0, 0, 1, 1, 2], [0], [0]>} : vector<12x1x64xf32>, vector<12x64x64xf32>, vector<12x1x64xf32> -> vector<12x1x64xf32>
    "tpu.trace_stop"() : () -> ()
    %31 = vector.shape_cast %30 : vector<12x1x64xf32> to vector<12x64xf32>
    %cst_29 = arith.constant dense<0.000000e+00> : vector<8x64xf32>
    %32 = tpu.matmul %13, %31, %cst_29 {dimension_numbers = #tpu.dot_dimension_numbers<[1], [0], [0], [1], [0, 0, 1, 1], [], []>} : vector<8x12xf32>, vector<12x64xf32>, vector<8x64xf32> -> vector<8x64xf32>
    %33 = vector.broadcast %23 : vector<1x64xf32> to vector<8x64xf32>
    %34 = arith.addf %32, %33 : vector<8x64xf32>
    %cst_30 = arith.constant 0.000000e+00 : f32
    %35 = vector.broadcast %cst_30 : f32 to vector<8x64xf32>
    %36 = arith.maximumf %34, %35 : vector<8x64xf32>
    %cst_31 = arith.constant dense<0.000000e+00> : vector<8x192xf32>
    %37 = tpu.matmul %36, %24, %cst_31 {dimension_numbers = #tpu.dot_dimension_numbers<[1], [0], [0], [1], [0, 0, 1, 1], [], []>} : vector<8x64xf32>, vector<64x192xf32>, vector<8x192xf32> -> vector<8x192xf32>
    %38 = vector.broadcast %26 : vector<1x192xf32> to vector<8x192xf32>
    %39 = arith.addf %37, %38 : vector<8x192xf32>
    %cst_32 = arith.constant dense<0.000000e+00> : vector<8x192xf32>
    %40 = tpu.matmul %21, %25, %cst_32 {dimension_numbers = #tpu.dot_dimension_numbers<[1], [0], [0], [1], [0, 0, 1, 1], [], []>} : vector<8x64xf32>, vector<64x192xf32>, vector<8x192xf32> -> vector<8x192xf32>
    %41 = vector.broadcast %27 : vector<1x192xf32> to vector<8x192xf32>
    %42 = arith.addf %40, %41 : vector<8x192xf32>
    %43 = vector.extract_strided_slice %39 {offsets = [0, 0], sizes = [8, 64], strides = [1, 1]} : vector<8x192xf32> to vector<8x64xf32>
    %44 = vector.extract_strided_slice %42 {offsets = [0, 0], sizes = [8, 64], strides = [1, 1]} : vector<8x192xf32> to vector<8x64xf32>
    %45 = arith.addf %43, %44 : vector<8x64xf32>
    %46 = arith.negf %45 : vector<8x64xf32>
    %47 = math.exp %46 : vector<8x64xf32>
    %cst_33 = arith.constant 1.000000e+00 : f32
    %48 = vector.broadcast %cst_33 : f32 to vector<8x64xf32>
    %49 = arith.addf %48, %47 : vector<8x64xf32>
    %50 = arith.divf %48, %49 : vector<8x64xf32>
    %51 = vector.extract_strided_slice %39 {offsets = [0, 64], sizes = [8, 64], strides = [1, 1]} : vector<8x192xf32> to vector<8x64xf32>
    %52 = vector.extract_strided_slice %42 {offsets = [0, 64], sizes = [8, 64], strides = [1, 1]} : vector<8x192xf32> to vector<8x64xf32>
    %53 = arith.addf %51, %52 : vector<8x64xf32>
    %54 = arith.negf %53 : vector<8x64xf32>
    %55 = math.exp %54 : vector<8x64xf32>
    %cst_34 = arith.constant 1.000000e+00 : f32
    %56 = vector.broadcast %cst_34 : f32 to vector<8x64xf32>
    %57 = arith.addf %56, %55 : vector<8x64xf32>
    %58 = arith.divf %56, %57 : vector<8x64xf32>
    %59 = vector.extract_strided_slice %39 {offsets = [0, 128], sizes = [8, 64], strides = [1, 1]} : vector<8x192xf32> to vector<8x64xf32>
    %60 = vector.extract_strided_slice %42 {offsets = [0, 128], sizes = [8, 64], strides = [1, 1]} : vector<8x192xf32> to vector<8x64xf32>
    %61 = arith.mulf %50, %60 : vector<8x64xf32>
    %62 = arith.addf %59, %61 : vector<8x64xf32>
    %63 = math.tanh %62 : vector<8x64xf32>
    %cst_35 = arith.constant 1.000000e+00 : f32
    %64 = vector.broadcast %cst_35 : f32 to vector<8x64xf32>
    %65 = arith.subf %64, %58 : vector<8x64xf32>
    %66 = arith.mulf %65, %63 : vector<8x64xf32>
    %67 = arith.mulf %58, %21 : vector<8x64xf32>
    %68 = arith.addf %66, %67 : vector<8x64xf32>
    %cst_36 = arith.constant dense<0.000000e+00> : vector<12x64xf32>
    %69 = tpu.matmul %7, %68, %cst_36 {dimension_numbers = #tpu.dot_dimension_numbers<[1], [0], [0], [1], [0, 0, 1, 1], [], []>} : vector<12x8xf32>, vector<8x64xf32>, vector<12x64xf32> -> vector<12x64xf32>
    %70 = vector.shape_cast %69 : vector<12x64xf32> to vector<12x1x64xf32>
    "tpu.trace_start"() <{level = 10 : i32, message = "exh,eho->exo"}> : () -> ()
    %cst_37 = arith.constant dense<0.000000e+00> : vector<12x1x64xf32>
    %71 = tpu.matmul %70, %22, %cst_37 {dimension_numbers = #tpu.dot_dimension_numbers<[2], [1], [1], [2], [0, 0, 0, 1, 1, 2], [0], [0]>} : vector<12x1x64xf32>, vector<12x64x64xf32>, vector<12x1x64xf32> -> vector<12x1x64xf32>
    "tpu.trace_stop"() : () -> ()
    %72 = vector.shape_cast %71 : vector<12x1x64xf32> to vector<12x64xf32>
    %cst_38 = arith.constant dense<0.000000e+00> : vector<8x64xf32>
    %73 = tpu.matmul %13, %72, %cst_38 {dimension_numbers = #tpu.dot_dimension_numbers<[1], [0], [0], [1], [0, 0, 1, 1], [], []>} : vector<8x12xf32>, vector<12x64xf32>, vector<8x64xf32> -> vector<8x64xf32>
    %74 = vector.broadcast %23 : vector<1x64xf32> to vector<8x64xf32>
    %75 = arith.addf %73, %74 : vector<8x64xf32>
    %cst_39 = arith.constant 0.000000e+00 : f32
    %76 = vector.broadcast %cst_39 : f32 to vector<8x64xf32>
    %77 = arith.maximumf %75, %76 : vector<8x64xf32>
    %cst_40 = arith.constant dense<0.000000e+00> : vector<8x192xf32>
    %78 = tpu.matmul %77, %24, %cst_40 {dimension_numbers = #tpu.dot_dimension_numbers<[1], [0], [0], [1], [0, 0, 1, 1], [], []>} : vector<8x64xf32>, vector<64x192xf32>, vector<8x192xf32> -> vector<8x192xf32>
    %79 = vector.broadcast %26 : vector<1x192xf32> to vector<8x192xf32>
    %80 = arith.addf %78, %79 : vector<8x192xf32>
    %cst_41 = arith.constant dense<0.000000e+00> : vector<8x192xf32>
    %81 = tpu.matmul %68, %25, %cst_41 {dimension_numbers = #tpu.dot_dimension_numbers<[1], [0], [0], [1], [0, 0, 1, 1], [], []>} : vector<8x64xf32>, vector<64x192xf32>, vector<8x192xf32> -> vector<8x192xf32>
    %82 = vector.broadcast %27 : vector<1x192xf32> to vector<8x192xf32>
    %83 = arith.addf %81, %82 : vector<8x192xf32>
    %84 = vector.extract_strided_slice %80 {offsets = [0, 0], sizes = [8, 64], strides = [1, 1]} : vector<8x192xf32> to vector<8x64xf32>
    %85 = vector.extract_strided_slice %83 {offsets = [0, 0], sizes = [8, 64], strides = [1, 1]} : vector<8x192xf32> to vector<8x64xf32>
    %86 = arith.addf %84, %85 : vector<8x64xf32>
    %87 = arith.negf %86 : vector<8x64xf32>
    %88 = math.exp %87 : vector<8x64xf32>
    %cst_42 = arith.constant 1.000000e+00 : f32
    %89 = vector.broadcast %cst_42 : f32 to vector<8x64xf32>
    %90 = arith.addf %89, %88 : vector<8x64xf32>
    %91 = arith.divf %89, %90 : vector<8x64xf32>
    %92 = vector.extract_strided_slice %80 {offsets = [0, 64], sizes = [8, 64], strides = [1, 1]} : vector<8x192xf32> to vector<8x64xf32>
    %93 = vector.extract_strided_slice %83 {offsets = [0, 64], sizes = [8, 64], strides = [1, 1]} : vector<8x192xf32> to vector<8x64xf32>
    %94 = arith.addf %92, %93 : vector<8x64xf32>
    %95 = arith.negf %94 : vector<8x64xf32>
    %96 = math.exp %95 : vector<8x64xf32>
    %cst_43 = arith.constant 1.000000e+00 : f32
    %97 = vector.broadcast %cst_43 : f32 to vector<8x64xf32>
    %98 = arith.addf %97, %96 : vector<8x64xf32>
    %99 = arith.divf %97, %98 : vector<8x64xf32>
    %100 = vector.extract_strided_slice %80 {offsets = [0, 128], sizes = [8, 64], strides = [1, 1]} : vector<8x192xf32> to vector<8x64xf32>
    %101 = vector.extract_strided_slice %83 {offsets = [0, 128], sizes = [8, 64], strides = [1, 1]} : vector<8x192xf32> to vector<8x64xf32>
    %102 = arith.mulf %91, %101 : vector<8x64xf32>
    %103 = arith.addf %100, %102 : vector<8x64xf32>
    %104 = math.tanh %103 : vector<8x64xf32>
    %cst_44 = arith.constant 1.000000e+00 : f32
    %105 = vector.broadcast %cst_44 : f32 to vector<8x64xf32>
    %106 = arith.subf %105, %99 : vector<8x64xf32>
    %107 = arith.mulf %106, %104 : vector<8x64xf32>
    %108 = arith.mulf %99, %68 : vector<8x64xf32>
    %109 = arith.addf %107, %108 : vector<8x64xf32>
    %cst_45 = arith.constant dense<0.000000e+00> : vector<12x64xf32>
    %110 = tpu.matmul %7, %109, %cst_45 {dimension_numbers = #tpu.dot_dimension_numbers<[1], [0], [0], [1], [0, 0, 1, 1], [], []>} : vector<12x8xf32>, vector<8x64xf32>, vector<12x64xf32> -> vector<12x64xf32>
    %111 = vector.shape_cast %110 : vector<12x64xf32> to vector<12x1x64xf32>
    "tpu.trace_start"() <{level = 10 : i32, message = "exh,eho->exo"}> : () -> ()
    %cst_46 = arith.constant dense<0.000000e+00> : vector<12x1x64xf32>
    %112 = tpu.matmul %111, %22, %cst_46 {dimension_numbers = #tpu.dot_dimension_numbers<[2], [1], [1], [2], [0, 0, 0, 1, 1, 2], [0], [0]>} : vector<12x1x64xf32>, vector<12x64x64xf32>, vector<12x1x64xf32> -> vector<12x1x64xf32>
    "tpu.trace_stop"() : () -> ()
    %113 = vector.shape_cast %112 : vector<12x1x64xf32> to vector<12x64xf32>
    %cst_47 = arith.constant dense<0.000000e+00> : vector<8x64xf32>
    %114 = tpu.matmul %13, %113, %cst_47 {dimension_numbers = #tpu.dot_dimension_numbers<[1], [0], [0], [1], [0, 0, 1, 1], [], []>} : vector<8x12xf32>, vector<12x64xf32>, vector<8x64xf32> -> vector<8x64xf32>
    %115 = vector.broadcast %23 : vector<1x64xf32> to vector<8x64xf32>
    %116 = arith.addf %114, %115 : vector<8x64xf32>
    %cst_48 = arith.constant 0.000000e+00 : f32
    %117 = vector.broadcast %cst_48 : f32 to vector<8x64xf32>
    %118 = arith.maximumf %116, %117 : vector<8x64xf32>
    %cst_49 = arith.constant dense<0.000000e+00> : vector<8x192xf32>
    %119 = tpu.matmul %118, %24, %cst_49 {dimension_numbers = #tpu.dot_dimension_numbers<[1], [0], [0], [1], [0, 0, 1, 1], [], []>} : vector<8x64xf32>, vector<64x192xf32>, vector<8x192xf32> -> vector<8x192xf32>
    %120 = vector.broadcast %26 : vector<1x192xf32> to vector<8x192xf32>
    %121 = arith.addf %119, %120 : vector<8x192xf32>
    %cst_50 = arith.constant dense<0.000000e+00> : vector<8x192xf32>
    %122 = tpu.matmul %109, %25, %cst_50 {dimension_numbers = #tpu.dot_dimension_numbers<[1], [0], [0], [1], [0, 0, 1, 1], [], []>} : vector<8x64xf32>, vector<64x192xf32>, vector<8x192xf32> -> vector<8x192xf32>
    %123 = vector.broadcast %27 : vector<1x192xf32> to vector<8x192xf32>
    %124 = arith.addf %122, %123 : vector<8x192xf32>
    %125 = vector.extract_strided_slice %121 {offsets = [0, 0], sizes = [8, 64], strides = [1, 1]} : vector<8x192xf32> to vector<8x64xf32>
    %126 = vector.extract_strided_slice %124 {offsets = [0, 0], sizes = [8, 64], strides = [1, 1]} : vector<8x192xf32> to vector<8x64xf32>
    %127 = arith.addf %125, %126 : vector<8x64xf32>
    %128 = arith.negf %127 : vector<8x64xf32>
    %129 = math.exp %128 : vector<8x64xf32>
    %cst_51 = arith.constant 1.000000e+00 : f32
    %130 = vector.broadcast %cst_51 : f32 to vector<8x64xf32>
    %131 = arith.addf %130, %129 : vector<8x64xf32>
    %132 = arith.divf %130, %131 : vector<8x64xf32>
    %133 = vector.extract_strided_slice %121 {offsets = [0, 64], sizes = [8, 64], strides = [1, 1]} : vector<8x192xf32> to vector<8x64xf32>
    %134 = vector.extract_strided_slice %124 {offsets = [0, 64], sizes = [8, 64], strides = [1, 1]} : vector<8x192xf32> to vector<8x64xf32>
    %135 = arith.addf %133, %134 : vector<8x64xf32>
    %136 = arith.negf %135 : vector<8x64xf32>
    %137 = math.exp %136 : vector<8x64xf32>
    %cst_52 = arith.constant 1.000000e+00 : f32
    %138 = vector.broadcast %cst_52 : f32 to vector<8x64xf32>
    %139 = arith.addf %138, %137 : vector<8x64xf32>
    %140 = arith.divf %138, %139 : vector<8x64xf32>
    %141 = vector.extract_strided_slice %121 {offsets = [0, 128], sizes = [8, 64], strides = [1, 1]} : vector<8x192xf32> to vector<8x64xf32>
    %142 = vector.extract_strided_slice %124 {offsets = [0, 128], sizes = [8, 64], strides = [1, 1]} : vector<8x192xf32> to vector<8x64xf32>
    %143 = arith.mulf %132, %142 : vector<8x64xf32>
    %144 = arith.addf %141, %143 : vector<8x64xf32>
    %145 = math.tanh %144 : vector<8x64xf32>
    %cst_53 = arith.constant 1.000000e+00 : f32
    %146 = vector.broadcast %cst_53 : f32 to vector<8x64xf32>
    %147 = arith.subf %146, %140 : vector<8x64xf32>
    %148 = arith.mulf %147, %145 : vector<8x64xf32>
    %149 = arith.mulf %140, %109 : vector<8x64xf32>
    %150 = arith.addf %148, %149 : vector<8x64xf32>
    %c0_54 = arith.constant 0 : index
    %c0_55 = arith.constant 0 : index
    %151 = vector.load %arg11[%c0_54, %c0_55] : memref<64x256xf32, #tpu.memory_space<vmem>>, vector<64x256xf32>
    %c0_56 = arith.constant 0 : index
    %c0_57 = arith.constant 0 : index
    %152 = vector.load %arg12[%c0_56, %c0_57] : memref<64x256xf32, #tpu.memory_space<vmem>>, vector<64x256xf32>
    %c0_58 = arith.constant 0 : index
    %c0_59 = arith.constant 0 : index
    %153 = vector.load %arg13[%c0_58, %c0_59] : memref<64x256xf32, #tpu.memory_space<vmem>>, vector<64x256xf32>
    %c0_60 = arith.constant 0 : index
    %c0_61 = arith.constant 0 : index
    %154 = vector.load %arg14[%c0_60, %c0_61] : memref<1x256xf32, #tpu.memory_space<vmem>>, vector<1x256xf32>
    %c0_62 = arith.constant 0 : index
    %c0_63 = arith.constant 0 : index
    %155 = vector.load %arg15[%c0_62, %c0_63] : memref<64x256xf32, #tpu.memory_space<vmem>>, vector<64x256xf32>
    %c0_64 = arith.constant 0 : index
    %c0_65 = arith.constant 0 : index
    %156 = vector.load %arg16[%c0_64, %c0_65] : memref<64x256xf32, #tpu.memory_space<vmem>>, vector<64x256xf32>
    %c0_66 = arith.constant 0 : index
    %c0_67 = arith.constant 0 : index
    %157 = vector.load %arg17[%c0_66, %c0_67] : memref<1x256xf32, #tpu.memory_space<vmem>>, vector<1x256xf32>
    %c0_68 = arith.constant 0 : index
    %c0_69 = arith.constant 0 : index
    %158 = vector.load %arg18[%c0_68, %c0_69] : memref<64x256xf32, #tpu.memory_space<vmem>>, vector<64x256xf32>
    %c0_70 = arith.constant 0 : index
    %c0_71 = arith.constant 0 : index
    %159 = vector.load %arg19[%c0_70, %c0_71] : memref<64x256xf32, #tpu.memory_space<vmem>>, vector<64x256xf32>
    %c0_72 = arith.constant 0 : index
    %c0_73 = arith.constant 0 : index
    %160 = vector.load %arg20[%c0_72, %c0_73] : memref<1x256xf32, #tpu.memory_space<vmem>>, vector<1x256xf32>
    %cst_74 = arith.constant 0.000000e+00 : f32
    %161 = vector.broadcast %cst_74 : f32 to vector<1x64xf32>
    %cst_75 = arith.constant dense<0.000000e+00> : vector<1x256xf32>
    %162 = tpu.matmul %161, %151, %cst_75 {dimension_numbers = #tpu.dot_dimension_numbers<[1], [0], [0], [1], [0, 0, 1, 1], [], []>} : vector<1x64xf32>, vector<64x256xf32>, vector<1x256xf32> -> vector<1x256xf32>
    %cst_76 = arith.constant dense<0.000000e+00> : vector<1x256xf32>
    %163 = tpu.matmul %161, %152, %cst_76 {dimension_numbers = #tpu.dot_dimension_numbers<[1], [0], [0], [1], [0, 0, 1, 1], [], []>} : vector<1x64xf32>, vector<64x256xf32>, vector<1x256xf32> -> vector<1x256xf32>
    %164 = arith.addf %162, %163 : vector<1x256xf32>
    %cst_77 = arith.constant dense<0.000000e+00> : vector<1x256xf32>
    %165 = tpu.matmul %161, %153, %cst_77 {dimension_numbers = #tpu.dot_dimension_numbers<[1], [0], [0], [1], [0, 0, 1, 1], [], []>} : vector<1x64xf32>, vector<64x256xf32>, vector<1x256xf32> -> vector<1x256xf32>
    %166 = arith.addf %164, %165 : vector<1x256xf32>
    %167 = arith.addf %166, %154 : vector<1x256xf32>
    %168 = vector.extract_strided_slice %167 {offsets = [0, 0], sizes = [1, 64], strides = [1, 1]} : vector<1x256xf32> to vector<1x64xf32>
    %169 = arith.negf %168 : vector<1x64xf32>
    %170 = math.exp %169 : vector<1x64xf32>
    %cst_78 = arith.constant 1.000000e+00 : f32
    %171 = vector.broadcast %cst_78 : f32 to vector<1x64xf32>
    %172 = arith.addf %171, %170 : vector<1x64xf32>
    %173 = arith.divf %171, %172 : vector<1x64xf32>
    %174 = vector.extract_strided_slice %167 {offsets = [0, 64], sizes = [1, 64], strides = [1, 1]} : vector<1x256xf32> to vector<1x64xf32>
    %175 = arith.negf %174 : vector<1x64xf32>
    %176 = math.exp %175 : vector<1x64xf32>
    %cst_79 = arith.constant 1.000000e+00 : f32
    %177 = vector.broadcast %cst_79 : f32 to vector<1x64xf32>
    %178 = arith.addf %177, %176 : vector<1x64xf32>
    %179 = arith.divf %177, %178 : vector<1x64xf32>
    %180 = vector.extract_strided_slice %167 {offsets = [0, 128], sizes = [1, 64], strides = [1, 1]} : vector<1x256xf32> to vector<1x64xf32>
    %181 = math.tanh %180 : vector<1x64xf32>
    %182 = vector.extract_strided_slice %167 {offsets = [0, 192], sizes = [1, 64], strides = [1, 1]} : vector<1x256xf32> to vector<1x64xf32>
    %183 = arith.negf %182 : vector<1x64xf32>
    %184 = math.exp %183 : vector<1x64xf32>
    %cst_80 = arith.constant 1.000000e+00 : f32
    %185 = vector.broadcast %cst_80 : f32 to vector<1x64xf32>
    %186 = arith.addf %185, %184 : vector<1x64xf32>
    %187 = arith.divf %185, %186 : vector<1x64xf32>
    %188 = arith.mulf %179, %161 : vector<1x64xf32>
    %189 = arith.mulf %173, %181 : vector<1x64xf32>
    %190 = arith.addf %188, %189 : vector<1x64xf32>
    %191 = math.tanh %190 : vector<1x64xf32>
    %192 = arith.mulf %187, %191 : vector<1x64xf32>
    %cst_81 = arith.constant dense<0.000000e+00> : vector<1x256xf32>
    %193 = tpu.matmul %192, %155, %cst_81 {dimension_numbers = #tpu.dot_dimension_numbers<[1], [0], [0], [1], [0, 0, 1, 1], [], []>} : vector<1x64xf32>, vector<64x256xf32>, vector<1x256xf32> -> vector<1x256xf32>
    %cst_82 = arith.constant dense<0.000000e+00> : vector<1x256xf32>
    %194 = tpu.matmul %161, %156, %cst_82 {dimension_numbers = #tpu.dot_dimension_numbers<[1], [0], [0], [1], [0, 0, 1, 1], [], []>} : vector<1x64xf32>, vector<64x256xf32>, vector<1x256xf32> -> vector<1x256xf32>
    %195 = arith.addf %193, %194 : vector<1x256xf32>
    %196 = arith.addf %195, %157 : vector<1x256xf32>
    %197 = vector.extract_strided_slice %196 {offsets = [0, 0], sizes = [1, 64], strides = [1, 1]} : vector<1x256xf32> to vector<1x64xf32>
    %198 = arith.negf %197 : vector<1x64xf32>
    %199 = math.exp %198 : vector<1x64xf32>
    %cst_83 = arith.constant 1.000000e+00 : f32
    %200 = vector.broadcast %cst_83 : f32 to vector<1x64xf32>
    %201 = arith.addf %200, %199 : vector<1x64xf32>
    %202 = arith.divf %200, %201 : vector<1x64xf32>
    %203 = vector.extract_strided_slice %196 {offsets = [0, 64], sizes = [1, 64], strides = [1, 1]} : vector<1x256xf32> to vector<1x64xf32>
    %204 = arith.negf %203 : vector<1x64xf32>
    %205 = math.exp %204 : vector<1x64xf32>
    %cst_84 = arith.constant 1.000000e+00 : f32
    %206 = vector.broadcast %cst_84 : f32 to vector<1x64xf32>
    %207 = arith.addf %206, %205 : vector<1x64xf32>
    %208 = arith.divf %206, %207 : vector<1x64xf32>
    %209 = vector.extract_strided_slice %196 {offsets = [0, 128], sizes = [1, 64], strides = [1, 1]} : vector<1x256xf32> to vector<1x64xf32>
    %210 = math.tanh %209 : vector<1x64xf32>
    %211 = vector.extract_strided_slice %196 {offsets = [0, 192], sizes = [1, 64], strides = [1, 1]} : vector<1x256xf32> to vector<1x64xf32>
    %212 = arith.negf %211 : vector<1x64xf32>
    %213 = math.exp %212 : vector<1x64xf32>
    %cst_85 = arith.constant 1.000000e+00 : f32
    %214 = vector.broadcast %cst_85 : f32 to vector<1x64xf32>
    %215 = arith.addf %214, %213 : vector<1x64xf32>
    %216 = arith.divf %214, %215 : vector<1x64xf32>
    %217 = arith.mulf %208, %161 : vector<1x64xf32>
    %218 = arith.mulf %202, %210 : vector<1x64xf32>
    %219 = arith.addf %217, %218 : vector<1x64xf32>
    %220 = math.tanh %219 : vector<1x64xf32>
    %221 = arith.mulf %216, %220 : vector<1x64xf32>
    %cst_86 = arith.constant dense<0.000000e+00> : vector<1x256xf32>
    %222 = tpu.matmul %221, %158, %cst_86 {dimension_numbers = #tpu.dot_dimension_numbers<[1], [0], [0], [1], [0, 0, 1, 1], [], []>} : vector<1x64xf32>, vector<64x256xf32>, vector<1x256xf32> -> vector<1x256xf32>
    %cst_87 = arith.constant dense<0.000000e+00> : vector<1x256xf32>
    %223 = tpu.matmul %161, %159, %cst_87 {dimension_numbers = #tpu.dot_dimension_numbers<[1], [0], [0], [1], [0, 0, 1, 1], [], []>} : vector<1x64xf32>, vector<64x256xf32>, vector<1x256xf32> -> vector<1x256xf32>
    %224 = arith.addf %222, %223 : vector<1x256xf32>
    %225 = arith.addf %224, %160 : vector<1x256xf32>
    %226 = vector.extract_strided_slice %225 {offsets = [0, 0], sizes = [1, 64], strides = [1, 1]} : vector<1x256xf32> to vector<1x64xf32>
    %227 = arith.negf %226 : vector<1x64xf32>
    %228 = math.exp %227 : vector<1x64xf32>
    %cst_88 = arith.constant 1.000000e+00 : f32
    %229 = vector.broadcast %cst_88 : f32 to vector<1x64xf32>
    %230 = arith.addf %229, %228 : vector<1x64xf32>
    %231 = arith.divf %229, %230 : vector<1x64xf32>
    %232 = vector.extract_strided_slice %225 {offsets = [0, 64], sizes = [1, 64], strides = [1, 1]} : vector<1x256xf32> to vector<1x64xf32>
    %233 = arith.negf %232 : vector<1x64xf32>
    %234 = math.exp %233 : vector<1x64xf32>
    %cst_89 = arith.constant 1.000000e+00 : f32
    %235 = vector.broadcast %cst_89 : f32 to vector<1x64xf32>
    %236 = arith.addf %235, %234 : vector<1x64xf32>
    %237 = arith.divf %235, %236 : vector<1x64xf32>
    %238 = vector.extract_strided_slice %225 {offsets = [0, 128], sizes = [1, 64], strides = [1, 1]} : vector<1x256xf32> to vector<1x64xf32>
    %239 = math.tanh %238 : vector<1x64xf32>
    %240 = vector.extract_strided_slice %225 {offsets = [0, 192], sizes = [1, 64], strides = [1, 1]} : vector<1x256xf32> to vector<1x64xf32>
    %241 = arith.negf %240 : vector<1x64xf32>
    %242 = math.exp %241 : vector<1x64xf32>
    %cst_90 = arith.constant 1.000000e+00 : f32
    %243 = vector.broadcast %cst_90 : f32 to vector<1x64xf32>
    %244 = arith.addf %243, %242 : vector<1x64xf32>
    %245 = arith.divf %243, %244 : vector<1x64xf32>
    %246 = arith.mulf %237, %161 : vector<1x64xf32>
    %247 = arith.mulf %231, %239 : vector<1x64xf32>
    %248 = arith.addf %246, %247 : vector<1x64xf32>
    %249 = math.tanh %248 : vector<1x64xf32>
    %250 = arith.mulf %245, %249 : vector<1x64xf32>
    %251 = vector.broadcast %250 : vector<1x64xf32> to vector<8x64xf32>
    %252 = arith.mulf %150, %251 : vector<8x64xf32>
    %cst_91 = arith.constant dense<0.000000e+00> : vector<8xf32>
    %253 = vector.multi_reduction <add>, %252, %cst_91 [1] : vector<8x64xf32> to vector<8xf32>
    %254 = vector.shape_cast %253 : vector<8xf32> to vector<8x1xf32>
    %cst_92 = arith.constant dense<0xFF800000> : vector<1xf32>
    %255 = vector.multi_reduction <maximumf>, %254, %cst_92 [0] : vector<8x1xf32> to vector<1xf32>
    %256 = vector.shape_cast %255 : vector<1xf32> to vector<1x1xf32>
    %257 = vector.broadcast %256 : vector<1x1xf32> to vector<8x1xf32>
    %258 = arith.subf %254, %257 : vector<8x1xf32>
    %259 = math.exp %258 : vector<8x1xf32>
    %cst_93 = arith.constant dense<0.000000e+00> : vector<1xf32>
    %260 = vector.multi_reduction <add>, %259, %cst_93 [0] : vector<8x1xf32> to vector<1xf32>
    %261 = vector.shape_cast %260 : vector<1xf32> to vector<1x1xf32>
    %262 = tpu.reciprocal %261 {approx = true} : vector<1x1xf32> -> vector<1x1xf32>
    %263 = vector.broadcast %262 : vector<1x1xf32> to vector<8x1xf32>
    %264 = arith.mulf %259, %263 : vector<8x1xf32>
    %265 = vector.broadcast %264 : vector<8x1xf32> to vector<8x64xf32>
    %266 = arith.mulf %150, %265 : vector<8x64xf32>
    %cst_94 = arith.constant dense<0.000000e+00> : vector<64xf32>
    %267 = vector.multi_reduction <add>, %266, %cst_94 [0] : vector<8x64xf32> to vector<64xf32>
    %268 = vector.shape_cast %267 : vector<64xf32> to vector<1x64xf32>
    %cst_95 = arith.constant dense<0.000000e+00> : vector<1x256xf32>
    %269 = tpu.matmul %250, %151, %cst_95 {dimension_numbers = #tpu.dot_dimension_numbers<[1], [0], [0], [1], [0, 0, 1, 1], [], []>} : vector<1x64xf32>, vector<64x256xf32>, vector<1x256xf32> -> vector<1x256xf32>
    %cst_96 = arith.constant dense<0.000000e+00> : vector<1x256xf32>
    %270 = tpu.matmul %268, %152, %cst_96 {dimension_numbers = #tpu.dot_dimension_numbers<[1], [0], [0], [1], [0, 0, 1, 1], [], []>} : vector<1x64xf32>, vector<64x256xf32>, vector<1x256xf32> -> vector<1x256xf32>
    %271 = arith.addf %269, %270 : vector<1x256xf32>
    %cst_97 = arith.constant dense<0.000000e+00> : vector<1x256xf32>
    %272 = tpu.matmul %192, %153, %cst_97 {dimension_numbers = #tpu.dot_dimension_numbers<[1], [0], [0], [1], [0, 0, 1, 1], [], []>} : vector<1x64xf32>, vector<64x256xf32>, vector<1x256xf32> -> vector<1x256xf32>
    %273 = arith.addf %271, %272 : vector<1x256xf32>
    %274 = arith.addf %273, %154 : vector<1x256xf32>
    %275 = vector.extract_strided_slice %274 {offsets = [0, 0], sizes = [1, 64], strides = [1, 1]} : vector<1x256xf32> to vector<1x64xf32>
    %276 = arith.negf %275 : vector<1x64xf32>
    %277 = math.exp %276 : vector<1x64xf32>
    %cst_98 = arith.constant 1.000000e+00 : f32
    %278 = vector.broadcast %cst_98 : f32 to vector<1x64xf32>
    %279 = arith.addf %278, %277 : vector<1x64xf32>
    %280 = arith.divf %278, %279 : vector<1x64xf32>
    %281 = vector.extract_strided_slice %274 {offsets = [0, 64], sizes = [1, 64], strides = [1, 1]} : vector<1x256xf32> to vector<1x64xf32>
    %282 = arith.negf %281 : vector<1x64xf32>
    %283 = math.exp %282 : vector<1x64xf32>
    %cst_99 = arith.constant 1.000000e+00 : f32
    %284 = vector.broadcast %cst_99 : f32 to vector<1x64xf32>
    %285 = arith.addf %284, %283 : vector<1x64xf32>
    %286 = arith.divf %284, %285 : vector<1x64xf32>
    %287 = vector.extract_strided_slice %274 {offsets = [0, 128], sizes = [1, 64], strides = [1, 1]} : vector<1x256xf32> to vector<1x64xf32>
    %288 = math.tanh %287 : vector<1x64xf32>
    %289 = vector.extract_strided_slice %274 {offsets = [0, 192], sizes = [1, 64], strides = [1, 1]} : vector<1x256xf32> to vector<1x64xf32>
    %290 = arith.negf %289 : vector<1x64xf32>
    %291 = math.exp %290 : vector<1x64xf32>
    %cst_100 = arith.constant 1.000000e+00 : f32
    %292 = vector.broadcast %cst_100 : f32 to vector<1x64xf32>
    %293 = arith.addf %292, %291 : vector<1x64xf32>
    %294 = arith.divf %292, %293 : vector<1x64xf32>
    %295 = arith.mulf %286, %190 : vector<1x64xf32>
    %296 = arith.mulf %280, %288 : vector<1x64xf32>
    %297 = arith.addf %295, %296 : vector<1x64xf32>
    %298 = math.tanh %297 : vector<1x64xf32>
    %299 = arith.mulf %294, %298 : vector<1x64xf32>
    %cst_101 = arith.constant dense<0.000000e+00> : vector<1x256xf32>
    %300 = tpu.matmul %299, %155, %cst_101 {dimension_numbers = #tpu.dot_dimension_numbers<[1], [0], [0], [1], [0, 0, 1, 1], [], []>} : vector<1x64xf32>, vector<64x256xf32>, vector<1x256xf32> -> vector<1x256xf32>
    %cst_102 = arith.constant dense<0.000000e+00> : vector<1x256xf32>
    %301 = tpu.matmul %221, %156, %cst_102 {dimension_numbers = #tpu.dot_dimension_numbers<[1], [0], [0], [1], [0, 0, 1, 1], [], []>} : vector<1x64xf32>, vector<64x256xf32>, vector<1x256xf32> -> vector<1x256xf32>
    %302 = arith.addf %300, %301 : vector<1x256xf32>
    %303 = arith.addf %302, %157 : vector<1x256xf32>
    %304 = vector.extract_strided_slice %303 {offsets = [0, 0], sizes = [1, 64], strides = [1, 1]} : vector<1x256xf32> to vector<1x64xf32>
    %305 = arith.negf %304 : vector<1x64xf32>
    %306 = math.exp %305 : vector<1x64xf32>
    %cst_103 = arith.constant 1.000000e+00 : f32
    %307 = vector.broadcast %cst_103 : f32 to vector<1x64xf32>
    %308 = arith.addf %307, %306 : vector<1x64xf32>
    %309 = arith.divf %307, %308 : vector<1x64xf32>
    %310 = vector.extract_strided_slice %303 {offsets = [0, 64], sizes = [1, 64], strides = [1, 1]} : vector<1x256xf32> to vector<1x64xf32>
    %311 = arith.negf %310 : vector<1x64xf32>
    %312 = math.exp %311 : vector<1x64xf32>
    %cst_104 = arith.constant 1.000000e+00 : f32
    %313 = vector.broadcast %cst_104 : f32 to vector<1x64xf32>
    %314 = arith.addf %313, %312 : vector<1x64xf32>
    %315 = arith.divf %313, %314 : vector<1x64xf32>
    %316 = vector.extract_strided_slice %303 {offsets = [0, 128], sizes = [1, 64], strides = [1, 1]} : vector<1x256xf32> to vector<1x64xf32>
    %317 = math.tanh %316 : vector<1x64xf32>
    %318 = vector.extract_strided_slice %303 {offsets = [0, 192], sizes = [1, 64], strides = [1, 1]} : vector<1x256xf32> to vector<1x64xf32>
    %319 = arith.negf %318 : vector<1x64xf32>
    %320 = math.exp %319 : vector<1x64xf32>
    %cst_105 = arith.constant 1.000000e+00 : f32
    %321 = vector.broadcast %cst_105 : f32 to vector<1x64xf32>
    %322 = arith.addf %321, %320 : vector<1x64xf32>
    %323 = arith.divf %321, %322 : vector<1x64xf32>
    %324 = arith.mulf %315, %219 : vector<1x64xf32>
    %325 = arith.mulf %309, %317 : vector<1x64xf32>
    %326 = arith.addf %324, %325 : vector<1x64xf32>
    %327 = math.tanh %326 : vector<1x64xf32>
    %328 = arith.mulf %323, %327 : vector<1x64xf32>
    %cst_106 = arith.constant dense<0.000000e+00> : vector<1x256xf32>
    %329 = tpu.matmul %328, %158, %cst_106 {dimension_numbers = #tpu.dot_dimension_numbers<[1], [0], [0], [1], [0, 0, 1, 1], [], []>} : vector<1x64xf32>, vector<64x256xf32>, vector<1x256xf32> -> vector<1x256xf32>
    %cst_107 = arith.constant dense<0.000000e+00> : vector<1x256xf32>
    %330 = tpu.matmul %250, %159, %cst_107 {dimension_numbers = #tpu.dot_dimension_numbers<[1], [0], [0], [1], [0, 0, 1, 1], [], []>} : vector<1x64xf32>, vector<64x256xf32>, vector<1x256xf32> -> vector<1x256xf32>
    %331 = arith.addf %329, %330 : vector<1x256xf32>
    %332 = arith.addf %331, %160 : vector<1x256xf32>
    %333 = vector.extract_strided_slice %332 {offsets = [0, 0], sizes = [1, 64], strides = [1, 1]} : vector<1x256xf32> to vector<1x64xf32>
    %334 = arith.negf %333 : vector<1x64xf32>
    %335 = math.exp %334 : vector<1x64xf32>
    %cst_108 = arith.constant 1.000000e+00 : f32
    %336 = vector.broadcast %cst_108 : f32 to vector<1x64xf32>
    %337 = arith.addf %336, %335 : vector<1x64xf32>
    %338 = arith.divf %336, %337 : vector<1x64xf32>
    %339 = vector.extract_strided_slice %332 {offsets = [0, 64], sizes = [1, 64], strides = [1, 1]} : vector<1x256xf32> to vector<1x64xf32>
    %340 = arith.negf %339 : vector<1x64xf32>
    %341 = math.exp %340 : vector<1x64xf32>
    %cst_109 = arith.constant 1.000000e+00 : f32
    %342 = vector.broadcast %cst_109 : f32 to vector<1x64xf32>
    %343 = arith.addf %342, %341 : vector<1x64xf32>
    %344 = arith.divf %342, %343 : vector<1x64xf32>
    %345 = vector.extract_strided_slice %332 {offsets = [0, 128], sizes = [1, 64], strides = [1, 1]} : vector<1x256xf32> to vector<1x64xf32>
    %346 = math.tanh %345 : vector<1x64xf32>
    %347 = vector.extract_strided_slice %332 {offsets = [0, 192], sizes = [1, 64], strides = [1, 1]} : vector<1x256xf32> to vector<1x64xf32>
    %348 = arith.negf %347 : vector<1x64xf32>
    %349 = math.exp %348 : vector<1x64xf32>
    %cst_110 = arith.constant 1.000000e+00 : f32
    %350 = vector.broadcast %cst_110 : f32 to vector<1x64xf32>
    %351 = arith.addf %350, %349 : vector<1x64xf32>
    %352 = arith.divf %350, %351 : vector<1x64xf32>
    %353 = arith.mulf %344, %248 : vector<1x64xf32>
    %354 = arith.mulf %338, %346 : vector<1x64xf32>
    %355 = arith.addf %353, %354 : vector<1x64xf32>
    %356 = math.tanh %355 : vector<1x64xf32>
    %357 = arith.mulf %352, %356 : vector<1x64xf32>
    %358 = vector.broadcast %357 : vector<1x64xf32> to vector<8x64xf32>
    %359 = arith.mulf %150, %358 : vector<8x64xf32>
    %cst_111 = arith.constant dense<0.000000e+00> : vector<8xf32>
    %360 = vector.multi_reduction <add>, %359, %cst_111 [1] : vector<8x64xf32> to vector<8xf32>
    %361 = vector.shape_cast %360 : vector<8xf32> to vector<8x1xf32>
    %cst_112 = arith.constant dense<0xFF800000> : vector<1xf32>
    %362 = vector.multi_reduction <maximumf>, %361, %cst_112 [0] : vector<8x1xf32> to vector<1xf32>
    %363 = vector.shape_cast %362 : vector<1xf32> to vector<1x1xf32>
    %364 = vector.broadcast %363 : vector<1x1xf32> to vector<8x1xf32>
    %365 = arith.subf %361, %364 : vector<8x1xf32>
    %366 = math.exp %365 : vector<8x1xf32>
    %cst_113 = arith.constant dense<0.000000e+00> : vector<1xf32>
    %367 = vector.multi_reduction <add>, %366, %cst_113 [0] : vector<8x1xf32> to vector<1xf32>
    %368 = vector.shape_cast %367 : vector<1xf32> to vector<1x1xf32>
    %369 = tpu.reciprocal %368 {approx = true} : vector<1x1xf32> -> vector<1x1xf32>
    %370 = vector.broadcast %369 : vector<1x1xf32> to vector<8x1xf32>
    %371 = arith.mulf %366, %370 : vector<8x1xf32>
    %372 = vector.broadcast %371 : vector<8x1xf32> to vector<8x64xf32>
    %373 = arith.mulf %150, %372 : vector<8x64xf32>
    %cst_114 = arith.constant dense<0.000000e+00> : vector<64xf32>
    %374 = vector.multi_reduction <add>, %373, %cst_114 [0] : vector<8x64xf32> to vector<64xf32>
    %375 = vector.shape_cast %374 : vector<64xf32> to vector<1x64xf32>
    %cst_115 = arith.constant dense<0.000000e+00> : vector<1x256xf32>
    %376 = tpu.matmul %357, %151, %cst_115 {dimension_numbers = #tpu.dot_dimension_numbers<[1], [0], [0], [1], [0, 0, 1, 1], [], []>} : vector<1x64xf32>, vector<64x256xf32>, vector<1x256xf32> -> vector<1x256xf32>
    %cst_116 = arith.constant dense<0.000000e+00> : vector<1x256xf32>
    %377 = tpu.matmul %375, %152, %cst_116 {dimension_numbers = #tpu.dot_dimension_numbers<[1], [0], [0], [1], [0, 0, 1, 1], [], []>} : vector<1x64xf32>, vector<64x256xf32>, vector<1x256xf32> -> vector<1x256xf32>
    %378 = arith.addf %376, %377 : vector<1x256xf32>
    %cst_117 = arith.constant dense<0.000000e+00> : vector<1x256xf32>
    %379 = tpu.matmul %299, %153, %cst_117 {dimension_numbers = #tpu.dot_dimension_numbers<[1], [0], [0], [1], [0, 0, 1, 1], [], []>} : vector<1x64xf32>, vector<64x256xf32>, vector<1x256xf32> -> vector<1x256xf32>
    %380 = arith.addf %378, %379 : vector<1x256xf32>
    %381 = arith.addf %380, %154 : vector<1x256xf32>
    %382 = vector.extract_strided_slice %381 {offsets = [0, 0], sizes = [1, 64], strides = [1, 1]} : vector<1x256xf32> to vector<1x64xf32>
    %383 = arith.negf %382 : vector<1x64xf32>
    %384 = math.exp %383 : vector<1x64xf32>
    %cst_118 = arith.constant 1.000000e+00 : f32
    %385 = vector.broadcast %cst_118 : f32 to vector<1x64xf32>
    %386 = arith.addf %385, %384 : vector<1x64xf32>
    %387 = arith.divf %385, %386 : vector<1x64xf32>
    %388 = vector.extract_strided_slice %381 {offsets = [0, 64], sizes = [1, 64], strides = [1, 1]} : vector<1x256xf32> to vector<1x64xf32>
    %389 = arith.negf %388 : vector<1x64xf32>
    %390 = math.exp %389 : vector<1x64xf32>
    %cst_119 = arith.constant 1.000000e+00 : f32
    %391 = vector.broadcast %cst_119 : f32 to vector<1x64xf32>
    %392 = arith.addf %391, %390 : vector<1x64xf32>
    %393 = arith.divf %391, %392 : vector<1x64xf32>
    %394 = vector.extract_strided_slice %381 {offsets = [0, 128], sizes = [1, 64], strides = [1, 1]} : vector<1x256xf32> to vector<1x64xf32>
    %395 = math.tanh %394 : vector<1x64xf32>
    %396 = vector.extract_strided_slice %381 {offsets = [0, 192], sizes = [1, 64], strides = [1, 1]} : vector<1x256xf32> to vector<1x64xf32>
    %397 = arith.negf %396 : vector<1x64xf32>
    %398 = math.exp %397 : vector<1x64xf32>
    %cst_120 = arith.constant 1.000000e+00 : f32
    %399 = vector.broadcast %cst_120 : f32 to vector<1x64xf32>
    %400 = arith.addf %399, %398 : vector<1x64xf32>
    %401 = arith.divf %399, %400 : vector<1x64xf32>
    %402 = arith.mulf %393, %297 : vector<1x64xf32>
    %403 = arith.mulf %387, %395 : vector<1x64xf32>
    %404 = arith.addf %402, %403 : vector<1x64xf32>
    %405 = math.tanh %404 : vector<1x64xf32>
    %406 = arith.mulf %401, %405 : vector<1x64xf32>
    %cst_121 = arith.constant dense<0.000000e+00> : vector<1x256xf32>
    %407 = tpu.matmul %406, %155, %cst_121 {dimension_numbers = #tpu.dot_dimension_numbers<[1], [0], [0], [1], [0, 0, 1, 1], [], []>} : vector<1x64xf32>, vector<64x256xf32>, vector<1x256xf32> -> vector<1x256xf32>
    %cst_122 = arith.constant dense<0.000000e+00> : vector<1x256xf32>
    %408 = tpu.matmul %328, %156, %cst_122 {dimension_numbers = #tpu.dot_dimension_numbers<[1], [0], [0], [1], [0, 0, 1, 1], [], []>} : vector<1x64xf32>, vector<64x256xf32>, vector<1x256xf32> -> vector<1x256xf32>
    %409 = arith.addf %407, %408 : vector<1x256xf32>
    %410 = arith.addf %409, %157 : vector<1x256xf32>
    %411 = vector.extract_strided_slice %410 {offsets = [0, 0], sizes = [1, 64], strides = [1, 1]} : vector<1x256xf32> to vector<1x64xf32>
    %412 = arith.negf %411 : vector<1x64xf32>
    %413 = math.exp %412 : vector<1x64xf32>
    %cst_123 = arith.constant 1.000000e+00 : f32
    %414 = vector.broadcast %cst_123 : f32 to vector<1x64xf32>
    %415 = arith.addf %414, %413 : vector<1x64xf32>
    %416 = arith.divf %414, %415 : vector<1x64xf32>
    %417 = vector.extract_strided_slice %410 {offsets = [0, 64], sizes = [1, 64], strides = [1, 1]} : vector<1x256xf32> to vector<1x64xf32>
    %418 = arith.negf %417 : vector<1x64xf32>
    %419 = math.exp %418 : vector<1x64xf32>
    %cst_124 = arith.constant 1.000000e+00 : f32
    %420 = vector.broadcast %cst_124 : f32 to vector<1x64xf32>
    %421 = arith.addf %420, %419 : vector<1x64xf32>
    %422 = arith.divf %420, %421 : vector<1x64xf32>
    %423 = vector.extract_strided_slice %410 {offsets = [0, 128], sizes = [1, 64], strides = [1, 1]} : vector<1x256xf32> to vector<1x64xf32>
    %424 = math.tanh %423 : vector<1x64xf32>
    %425 = vector.extract_strided_slice %410 {offsets = [0, 192], sizes = [1, 64], strides = [1, 1]} : vector<1x256xf32> to vector<1x64xf32>
    %426 = arith.negf %425 : vector<1x64xf32>
    %427 = math.exp %426 : vector<1x64xf32>
    %cst_125 = arith.constant 1.000000e+00 : f32
    %428 = vector.broadcast %cst_125 : f32 to vector<1x64xf32>
    %429 = arith.addf %428, %427 : vector<1x64xf32>
    %430 = arith.divf %428, %429 : vector<1x64xf32>
    %431 = arith.mulf %422, %326 : vector<1x64xf32>
    %432 = arith.mulf %416, %424 : vector<1x64xf32>
    %433 = arith.addf %431, %432 : vector<1x64xf32>
    %434 = math.tanh %433 : vector<1x64xf32>
    %435 = arith.mulf %430, %434 : vector<1x64xf32>
    %cst_126 = arith.constant dense<0.000000e+00> : vector<1x256xf32>
    %436 = tpu.matmul %435, %158, %cst_126 {dimension_numbers = #tpu.dot_dimension_numbers<[1], [0], [0], [1], [0, 0, 1, 1], [], []>} : vector<1x64xf32>, vector<64x256xf32>, vector<1x256xf32> -> vector<1x256xf32>
    %cst_127 = arith.constant dense<0.000000e+00> : vector<1x256xf32>
    %437 = tpu.matmul %357, %159, %cst_127 {dimension_numbers = #tpu.dot_dimension_numbers<[1], [0], [0], [1], [0, 0, 1, 1], [], []>} : vector<1x64xf32>, vector<64x256xf32>, vector<1x256xf32> -> vector<1x256xf32>
    %438 = arith.addf %436, %437 : vector<1x256xf32>
    %439 = arith.addf %438, %160 : vector<1x256xf32>
    %440 = vector.extract_strided_slice %439 {offsets = [0, 0], sizes = [1, 64], strides = [1, 1]} : vector<1x256xf32> to vector<1x64xf32>
    %441 = arith.negf %440 : vector<1x64xf32>
    %442 = math.exp %441 : vector<1x64xf32>
    %cst_128 = arith.constant 1.000000e+00 : f32
    %443 = vector.broadcast %cst_128 : f32 to vector<1x64xf32>
    %444 = arith.addf %443, %442 : vector<1x64xf32>
    %445 = arith.divf %443, %444 : vector<1x64xf32>
    %446 = vector.extract_strided_slice %439 {offsets = [0, 64], sizes = [1, 64], strides = [1, 1]} : vector<1x256xf32> to vector<1x64xf32>
    %447 = arith.negf %446 : vector<1x64xf32>
    %448 = math.exp %447 : vector<1x64xf32>
    %cst_129 = arith.constant 1.000000e+00 : f32
    %449 = vector.broadcast %cst_129 : f32 to vector<1x64xf32>
    %450 = arith.addf %449, %448 : vector<1x64xf32>
    %451 = arith.divf %449, %450 : vector<1x64xf32>
    %452 = vector.extract_strided_slice %439 {offsets = [0, 128], sizes = [1, 64], strides = [1, 1]} : vector<1x256xf32> to vector<1x64xf32>
    %453 = math.tanh %452 : vector<1x64xf32>
    %454 = vector.extract_strided_slice %439 {offsets = [0, 192], sizes = [1, 64], strides = [1, 1]} : vector<1x256xf32> to vector<1x64xf32>
    %455 = arith.negf %454 : vector<1x64xf32>
    %456 = math.exp %455 : vector<1x64xf32>
    %cst_130 = arith.constant 1.000000e+00 : f32
    %457 = vector.broadcast %cst_130 : f32 to vector<1x64xf32>
    %458 = arith.addf %457, %456 : vector<1x64xf32>
    %459 = arith.divf %457, %458 : vector<1x64xf32>
    %460 = arith.mulf %451, %355 : vector<1x64xf32>
    %461 = arith.mulf %445, %453 : vector<1x64xf32>
    %462 = arith.addf %460, %461 : vector<1x64xf32>
    %463 = math.tanh %462 : vector<1x64xf32>
    %464 = arith.mulf %459, %463 : vector<1x64xf32>
    %465 = vector.broadcast %464 : vector<1x64xf32> to vector<8x64xf32>
    %466 = arith.mulf %150, %465 : vector<8x64xf32>
    %cst_131 = arith.constant dense<0.000000e+00> : vector<8xf32>
    %467 = vector.multi_reduction <add>, %466, %cst_131 [1] : vector<8x64xf32> to vector<8xf32>
    %468 = vector.shape_cast %467 : vector<8xf32> to vector<8x1xf32>
    %cst_132 = arith.constant dense<0xFF800000> : vector<1xf32>
    %469 = vector.multi_reduction <maximumf>, %468, %cst_132 [0] : vector<8x1xf32> to vector<1xf32>
    %470 = vector.shape_cast %469 : vector<1xf32> to vector<1x1xf32>
    %471 = vector.broadcast %470 : vector<1x1xf32> to vector<8x1xf32>
    %472 = arith.subf %468, %471 : vector<8x1xf32>
    %473 = math.exp %472 : vector<8x1xf32>
    %cst_133 = arith.constant dense<0.000000e+00> : vector<1xf32>
    %474 = vector.multi_reduction <add>, %473, %cst_133 [0] : vector<8x1xf32> to vector<1xf32>
    %475 = vector.shape_cast %474 : vector<1xf32> to vector<1x1xf32>
    %476 = tpu.reciprocal %475 {approx = true} : vector<1x1xf32> -> vector<1x1xf32>
    %477 = vector.broadcast %476 : vector<1x1xf32> to vector<8x1xf32>
    %478 = arith.mulf %473, %477 : vector<8x1xf32>
    %479 = vector.broadcast %478 : vector<8x1xf32> to vector<8x64xf32>
    %480 = arith.mulf %150, %479 : vector<8x64xf32>
    %cst_134 = arith.constant dense<0.000000e+00> : vector<64xf32>
    %481 = vector.multi_reduction <add>, %480, %cst_134 [0] : vector<8x64xf32> to vector<64xf32>
    %482 = vector.shape_cast %481 : vector<64xf32> to vector<1x64xf32>
    %cst_135 = arith.constant dense<0.000000e+00> : vector<1x256xf32>
    %483 = tpu.matmul %464, %151, %cst_135 {dimension_numbers = #tpu.dot_dimension_numbers<[1], [0], [0], [1], [0, 0, 1, 1], [], []>} : vector<1x64xf32>, vector<64x256xf32>, vector<1x256xf32> -> vector<1x256xf32>
    %cst_136 = arith.constant dense<0.000000e+00> : vector<1x256xf32>
    %484 = tpu.matmul %482, %152, %cst_136 {dimension_numbers = #tpu.dot_dimension_numbers<[1], [0], [0], [1], [0, 0, 1, 1], [], []>} : vector<1x64xf32>, vector<64x256xf32>, vector<1x256xf32> -> vector<1x256xf32>
    %485 = arith.addf %483, %484 : vector<1x256xf32>
    %cst_137 = arith.constant dense<0.000000e+00> : vector<1x256xf32>
    %486 = tpu.matmul %406, %153, %cst_137 {dimension_numbers = #tpu.dot_dimension_numbers<[1], [0], [0], [1], [0, 0, 1, 1], [], []>} : vector<1x64xf32>, vector<64x256xf32>, vector<1x256xf32> -> vector<1x256xf32>
    %487 = arith.addf %485, %486 : vector<1x256xf32>
    %488 = arith.addf %487, %154 : vector<1x256xf32>
    %489 = vector.extract_strided_slice %488 {offsets = [0, 0], sizes = [1, 64], strides = [1, 1]} : vector<1x256xf32> to vector<1x64xf32>
    %490 = arith.negf %489 : vector<1x64xf32>
    %491 = math.exp %490 : vector<1x64xf32>
    %cst_138 = arith.constant 1.000000e+00 : f32
    %492 = vector.broadcast %cst_138 : f32 to vector<1x64xf32>
    %493 = arith.addf %492, %491 : vector<1x64xf32>
    %494 = arith.divf %492, %493 : vector<1x64xf32>
    %495 = vector.extract_strided_slice %488 {offsets = [0, 64], sizes = [1, 64], strides = [1, 1]} : vector<1x256xf32> to vector<1x64xf32>
    %496 = arith.negf %495 : vector<1x64xf32>
    %497 = math.exp %496 : vector<1x64xf32>
    %cst_139 = arith.constant 1.000000e+00 : f32
    %498 = vector.broadcast %cst_139 : f32 to vector<1x64xf32>
    %499 = arith.addf %498, %497 : vector<1x64xf32>
    %500 = arith.divf %498, %499 : vector<1x64xf32>
    %501 = vector.extract_strided_slice %488 {offsets = [0, 128], sizes = [1, 64], strides = [1, 1]} : vector<1x256xf32> to vector<1x64xf32>
    %502 = math.tanh %501 : vector<1x64xf32>
    %503 = vector.extract_strided_slice %488 {offsets = [0, 192], sizes = [1, 64], strides = [1, 1]} : vector<1x256xf32> to vector<1x64xf32>
    %504 = arith.negf %503 : vector<1x64xf32>
    %505 = math.exp %504 : vector<1x64xf32>
    %cst_140 = arith.constant 1.000000e+00 : f32
    %506 = vector.broadcast %cst_140 : f32 to vector<1x64xf32>
    %507 = arith.addf %506, %505 : vector<1x64xf32>
    %508 = arith.divf %506, %507 : vector<1x64xf32>
    %509 = arith.mulf %500, %404 : vector<1x64xf32>
    %510 = arith.mulf %494, %502 : vector<1x64xf32>
    %511 = arith.addf %509, %510 : vector<1x64xf32>
    %512 = math.tanh %511 : vector<1x64xf32>
    %513 = arith.mulf %508, %512 : vector<1x64xf32>
    %cst_141 = arith.constant dense<0.000000e+00> : vector<1x256xf32>
    %514 = tpu.matmul %513, %155, %cst_141 {dimension_numbers = #tpu.dot_dimension_numbers<[1], [0], [0], [1], [0, 0, 1, 1], [], []>} : vector<1x64xf32>, vector<64x256xf32>, vector<1x256xf32> -> vector<1x256xf32>
    %cst_142 = arith.constant dense<0.000000e+00> : vector<1x256xf32>
    %515 = tpu.matmul %435, %156, %cst_142 {dimension_numbers = #tpu.dot_dimension_numbers<[1], [0], [0], [1], [0, 0, 1, 1], [], []>} : vector<1x64xf32>, vector<64x256xf32>, vector<1x256xf32> -> vector<1x256xf32>
    %516 = arith.addf %514, %515 : vector<1x256xf32>
    %517 = arith.addf %516, %157 : vector<1x256xf32>
    %518 = vector.extract_strided_slice %517 {offsets = [0, 0], sizes = [1, 64], strides = [1, 1]} : vector<1x256xf32> to vector<1x64xf32>
    %519 = arith.negf %518 : vector<1x64xf32>
    %520 = math.exp %519 : vector<1x64xf32>
    %cst_143 = arith.constant 1.000000e+00 : f32
    %521 = vector.broadcast %cst_143 : f32 to vector<1x64xf32>
    %522 = arith.addf %521, %520 : vector<1x64xf32>
    %523 = arith.divf %521, %522 : vector<1x64xf32>
    %524 = vector.extract_strided_slice %517 {offsets = [0, 64], sizes = [1, 64], strides = [1, 1]} : vector<1x256xf32> to vector<1x64xf32>
    %525 = arith.negf %524 : vector<1x64xf32>
    %526 = math.exp %525 : vector<1x64xf32>
    %cst_144 = arith.constant 1.000000e+00 : f32
    %527 = vector.broadcast %cst_144 : f32 to vector<1x64xf32>
    %528 = arith.addf %527, %526 : vector<1x64xf32>
    %529 = arith.divf %527, %528 : vector<1x64xf32>
    %530 = vector.extract_strided_slice %517 {offsets = [0, 128], sizes = [1, 64], strides = [1, 1]} : vector<1x256xf32> to vector<1x64xf32>
    %531 = math.tanh %530 : vector<1x64xf32>
    %532 = vector.extract_strided_slice %517 {offsets = [0, 192], sizes = [1, 64], strides = [1, 1]} : vector<1x256xf32> to vector<1x64xf32>
    %533 = arith.negf %532 : vector<1x64xf32>
    %534 = math.exp %533 : vector<1x64xf32>
    %cst_145 = arith.constant 1.000000e+00 : f32
    %535 = vector.broadcast %cst_145 : f32 to vector<1x64xf32>
    %536 = arith.addf %535, %534 : vector<1x64xf32>
    %537 = arith.divf %535, %536 : vector<1x64xf32>
    %538 = arith.mulf %529, %433 : vector<1x64xf32>
    %539 = arith.mulf %523, %531 : vector<1x64xf32>
    %540 = arith.addf %538, %539 : vector<1x64xf32>
    %541 = math.tanh %540 : vector<1x64xf32>
    %542 = arith.mulf %537, %541 : vector<1x64xf32>
    %cst_146 = arith.constant dense<0.000000e+00> : vector<1x256xf32>
    %543 = tpu.matmul %542, %158, %cst_146 {dimension_numbers = #tpu.dot_dimension_numbers<[1], [0], [0], [1], [0, 0, 1, 1], [], []>} : vector<1x64xf32>, vector<64x256xf32>, vector<1x256xf32> -> vector<1x256xf32>
    %cst_147 = arith.constant dense<0.000000e+00> : vector<1x256xf32>
    %544 = tpu.matmul %464, %159, %cst_147 {dimension_numbers = #tpu.dot_dimension_numbers<[1], [0], [0], [1], [0, 0, 1, 1], [], []>} : vector<1x64xf32>, vector<64x256xf32>, vector<1x256xf32> -> vector<1x256xf32>
    %545 = arith.addf %543, %544 : vector<1x256xf32>
    %546 = arith.addf %545, %160 : vector<1x256xf32>
    %547 = vector.extract_strided_slice %546 {offsets = [0, 0], sizes = [1, 64], strides = [1, 1]} : vector<1x256xf32> to vector<1x64xf32>
    %548 = arith.negf %547 : vector<1x64xf32>
    %549 = math.exp %548 : vector<1x64xf32>
    %cst_148 = arith.constant 1.000000e+00 : f32
    %550 = vector.broadcast %cst_148 : f32 to vector<1x64xf32>
    %551 = arith.addf %550, %549 : vector<1x64xf32>
    %552 = arith.divf %550, %551 : vector<1x64xf32>
    %553 = vector.extract_strided_slice %546 {offsets = [0, 64], sizes = [1, 64], strides = [1, 1]} : vector<1x256xf32> to vector<1x64xf32>
    %554 = arith.negf %553 : vector<1x64xf32>
    %555 = math.exp %554 : vector<1x64xf32>
    %cst_149 = arith.constant 1.000000e+00 : f32
    %556 = vector.broadcast %cst_149 : f32 to vector<1x64xf32>
    %557 = arith.addf %556, %555 : vector<1x64xf32>
    %558 = arith.divf %556, %557 : vector<1x64xf32>
    %559 = vector.extract_strided_slice %546 {offsets = [0, 128], sizes = [1, 64], strides = [1, 1]} : vector<1x256xf32> to vector<1x64xf32>
    %560 = math.tanh %559 : vector<1x64xf32>
    %561 = vector.extract_strided_slice %546 {offsets = [0, 192], sizes = [1, 64], strides = [1, 1]} : vector<1x256xf32> to vector<1x64xf32>
    %562 = arith.negf %561 : vector<1x64xf32>
    %563 = math.exp %562 : vector<1x64xf32>
    %cst_150 = arith.constant 1.000000e+00 : f32
    %564 = vector.broadcast %cst_150 : f32 to vector<1x64xf32>
    %565 = arith.addf %564, %563 : vector<1x64xf32>
    %566 = arith.divf %564, %565 : vector<1x64xf32>
    %567 = arith.mulf %558, %462 : vector<1x64xf32>
    %568 = arith.mulf %552, %560 : vector<1x64xf32>
    %569 = arith.addf %567, %568 : vector<1x64xf32>
    %570 = math.tanh %569 : vector<1x64xf32>
    %571 = arith.mulf %566, %570 : vector<1x64xf32>
    %572 = vector.broadcast %571 : vector<1x64xf32> to vector<8x64xf32>
    %573 = arith.mulf %150, %572 : vector<8x64xf32>
    %cst_151 = arith.constant dense<0.000000e+00> : vector<8xf32>
    %574 = vector.multi_reduction <add>, %573, %cst_151 [1] : vector<8x64xf32> to vector<8xf32>
    %575 = vector.shape_cast %574 : vector<8xf32> to vector<8x1xf32>
    %cst_152 = arith.constant dense<0xFF800000> : vector<1xf32>
    %576 = vector.multi_reduction <maximumf>, %575, %cst_152 [0] : vector<8x1xf32> to vector<1xf32>
    %577 = vector.shape_cast %576 : vector<1xf32> to vector<1x1xf32>
    %578 = vector.broadcast %577 : vector<1x1xf32> to vector<8x1xf32>
    %579 = arith.subf %575, %578 : vector<8x1xf32>
    %580 = math.exp %579 : vector<8x1xf32>
    %cst_153 = arith.constant dense<0.000000e+00> : vector<1xf32>
    %581 = vector.multi_reduction <add>, %580, %cst_153 [0] : vector<8x1xf32> to vector<1xf32>
    %582 = vector.shape_cast %581 : vector<1xf32> to vector<1x1xf32>
    %583 = tpu.reciprocal %582 {approx = true} : vector<1x1xf32> -> vector<1x1xf32>
    %584 = vector.broadcast %583 : vector<1x1xf32> to vector<8x1xf32>
    %585 = arith.mulf %580, %584 : vector<8x1xf32>
    %586 = vector.broadcast %585 : vector<8x1xf32> to vector<8x64xf32>
    %587 = arith.mulf %150, %586 : vector<8x64xf32>
    %cst_154 = arith.constant dense<0.000000e+00> : vector<64xf32>
    %588 = vector.multi_reduction <add>, %587, %cst_154 [0] : vector<8x64xf32> to vector<64xf32>
    %589 = vector.shape_cast %588 : vector<64xf32> to vector<1x64xf32>
    %cst_155 = arith.constant dense<0.000000e+00> : vector<1x256xf32>
    %590 = tpu.matmul %571, %151, %cst_155 {dimension_numbers = #tpu.dot_dimension_numbers<[1], [0], [0], [1], [0, 0, 1, 1], [], []>} : vector<1x64xf32>, vector<64x256xf32>, vector<1x256xf32> -> vector<1x256xf32>
    %cst_156 = arith.constant dense<0.000000e+00> : vector<1x256xf32>
    %591 = tpu.matmul %589, %152, %cst_156 {dimension_numbers = #tpu.dot_dimension_numbers<[1], [0], [0], [1], [0, 0, 1, 1], [], []>} : vector<1x64xf32>, vector<64x256xf32>, vector<1x256xf32> -> vector<1x256xf32>
    %592 = arith.addf %590, %591 : vector<1x256xf32>
    %cst_157 = arith.constant dense<0.000000e+00> : vector<1x256xf32>
    %593 = tpu.matmul %513, %153, %cst_157 {dimension_numbers = #tpu.dot_dimension_numbers<[1], [0], [0], [1], [0, 0, 1, 1], [], []>} : vector<1x64xf32>, vector<64x256xf32>, vector<1x256xf32> -> vector<1x256xf32>
    %594 = arith.addf %592, %593 : vector<1x256xf32>
    %595 = arith.addf %594, %154 : vector<1x256xf32>
    %596 = vector.extract_strided_slice %595 {offsets = [0, 0], sizes = [1, 64], strides = [1, 1]} : vector<1x256xf32> to vector<1x64xf32>
    %597 = arith.negf %596 : vector<1x64xf32>
    %598 = math.exp %597 : vector<1x64xf32>
    %cst_158 = arith.constant 1.000000e+00 : f32
    %599 = vector.broadcast %cst_158 : f32 to vector<1x64xf32>
    %600 = arith.addf %599, %598 : vector<1x64xf32>
    %601 = arith.divf %599, %600 : vector<1x64xf32>
    %602 = vector.extract_strided_slice %595 {offsets = [0, 64], sizes = [1, 64], strides = [1, 1]} : vector<1x256xf32> to vector<1x64xf32>
    %603 = arith.negf %602 : vector<1x64xf32>
    %604 = math.exp %603 : vector<1x64xf32>
    %cst_159 = arith.constant 1.000000e+00 : f32
    %605 = vector.broadcast %cst_159 : f32 to vector<1x64xf32>
    %606 = arith.addf %605, %604 : vector<1x64xf32>
    %607 = arith.divf %605, %606 : vector<1x64xf32>
    %608 = vector.extract_strided_slice %595 {offsets = [0, 128], sizes = [1, 64], strides = [1, 1]} : vector<1x256xf32> to vector<1x64xf32>
    %609 = math.tanh %608 : vector<1x64xf32>
    %610 = vector.extract_strided_slice %595 {offsets = [0, 192], sizes = [1, 64], strides = [1, 1]} : vector<1x256xf32> to vector<1x64xf32>
    %611 = arith.negf %610 : vector<1x64xf32>
    %612 = math.exp %611 : vector<1x64xf32>
    %cst_160 = arith.constant 1.000000e+00 : f32
    %613 = vector.broadcast %cst_160 : f32 to vector<1x64xf32>
    %614 = arith.addf %613, %612 : vector<1x64xf32>
    %615 = arith.divf %613, %614 : vector<1x64xf32>
    %616 = arith.mulf %607, %511 : vector<1x64xf32>
    %617 = arith.mulf %601, %609 : vector<1x64xf32>
    %618 = arith.addf %616, %617 : vector<1x64xf32>
    %619 = math.tanh %618 : vector<1x64xf32>
    %620 = arith.mulf %615, %619 : vector<1x64xf32>
    %cst_161 = arith.constant dense<0.000000e+00> : vector<1x256xf32>
    %621 = tpu.matmul %620, %155, %cst_161 {dimension_numbers = #tpu.dot_dimension_numbers<[1], [0], [0], [1], [0, 0, 1, 1], [], []>} : vector<1x64xf32>, vector<64x256xf32>, vector<1x256xf32> -> vector<1x256xf32>
    %cst_162 = arith.constant dense<0.000000e+00> : vector<1x256xf32>
    %622 = tpu.matmul %542, %156, %cst_162 {dimension_numbers = #tpu.dot_dimension_numbers<[1], [0], [0], [1], [0, 0, 1, 1], [], []>} : vector<1x64xf32>, vector<64x256xf32>, vector<1x256xf32> -> vector<1x256xf32>
    %623 = arith.addf %621, %622 : vector<1x256xf32>
    %624 = arith.addf %623, %157 : vector<1x256xf32>
    %625 = vector.extract_strided_slice %624 {offsets = [0, 0], sizes = [1, 64], strides = [1, 1]} : vector<1x256xf32> to vector<1x64xf32>
    %626 = arith.negf %625 : vector<1x64xf32>
    %627 = math.exp %626 : vector<1x64xf32>
    %cst_163 = arith.constant 1.000000e+00 : f32
    %628 = vector.broadcast %cst_163 : f32 to vector<1x64xf32>
    %629 = arith.addf %628, %627 : vector<1x64xf32>
    %630 = arith.divf %628, %629 : vector<1x64xf32>
    %631 = vector.extract_strided_slice %624 {offsets = [0, 64], sizes = [1, 64], strides = [1, 1]} : vector<1x256xf32> to vector<1x64xf32>
    %632 = arith.negf %631 : vector<1x64xf32>
    %633 = math.exp %632 : vector<1x64xf32>
    %cst_164 = arith.constant 1.000000e+00 : f32
    %634 = vector.broadcast %cst_164 : f32 to vector<1x64xf32>
    %635 = arith.addf %634, %633 : vector<1x64xf32>
    %636 = arith.divf %634, %635 : vector<1x64xf32>
    %637 = vector.extract_strided_slice %624 {offsets = [0, 128], sizes = [1, 64], strides = [1, 1]} : vector<1x256xf32> to vector<1x64xf32>
    %638 = math.tanh %637 : vector<1x64xf32>
    %639 = vector.extract_strided_slice %624 {offsets = [0, 192], sizes = [1, 64], strides = [1, 1]} : vector<1x256xf32> to vector<1x64xf32>
    %640 = arith.negf %639 : vector<1x64xf32>
    %641 = math.exp %640 : vector<1x64xf32>
    %cst_165 = arith.constant 1.000000e+00 : f32
    %642 = vector.broadcast %cst_165 : f32 to vector<1x64xf32>
    %643 = arith.addf %642, %641 : vector<1x64xf32>
    %644 = arith.divf %642, %643 : vector<1x64xf32>
    %645 = arith.mulf %636, %540 : vector<1x64xf32>
    %646 = arith.mulf %630, %638 : vector<1x64xf32>
    %647 = arith.addf %645, %646 : vector<1x64xf32>
    %648 = math.tanh %647 : vector<1x64xf32>
    %649 = arith.mulf %644, %648 : vector<1x64xf32>
    %cst_166 = arith.constant dense<0.000000e+00> : vector<1x256xf32>
    %650 = tpu.matmul %649, %158, %cst_166 {dimension_numbers = #tpu.dot_dimension_numbers<[1], [0], [0], [1], [0, 0, 1, 1], [], []>} : vector<1x64xf32>, vector<64x256xf32>, vector<1x256xf32> -> vector<1x256xf32>
    %cst_167 = arith.constant dense<0.000000e+00> : vector<1x256xf32>
    %651 = tpu.matmul %571, %159, %cst_167 {dimension_numbers = #tpu.dot_dimension_numbers<[1], [0], [0], [1], [0, 0, 1, 1], [], []>} : vector<1x64xf32>, vector<64x256xf32>, vector<1x256xf32> -> vector<1x256xf32>
    %652 = arith.addf %650, %651 : vector<1x256xf32>
    %653 = arith.addf %652, %160 : vector<1x256xf32>
    %654 = vector.extract_strided_slice %653 {offsets = [0, 0], sizes = [1, 64], strides = [1, 1]} : vector<1x256xf32> to vector<1x64xf32>
    %655 = arith.negf %654 : vector<1x64xf32>
    %656 = math.exp %655 : vector<1x64xf32>
    %cst_168 = arith.constant 1.000000e+00 : f32
    %657 = vector.broadcast %cst_168 : f32 to vector<1x64xf32>
    %658 = arith.addf %657, %656 : vector<1x64xf32>
    %659 = arith.divf %657, %658 : vector<1x64xf32>
    %660 = vector.extract_strided_slice %653 {offsets = [0, 64], sizes = [1, 64], strides = [1, 1]} : vector<1x256xf32> to vector<1x64xf32>
    %661 = arith.negf %660 : vector<1x64xf32>
    %662 = math.exp %661 : vector<1x64xf32>
    %cst_169 = arith.constant 1.000000e+00 : f32
    %663 = vector.broadcast %cst_169 : f32 to vector<1x64xf32>
    %664 = arith.addf %663, %662 : vector<1x64xf32>
    %665 = arith.divf %663, %664 : vector<1x64xf32>
    %666 = vector.extract_strided_slice %653 {offsets = [0, 128], sizes = [1, 64], strides = [1, 1]} : vector<1x256xf32> to vector<1x64xf32>
    %667 = math.tanh %666 : vector<1x64xf32>
    %668 = vector.extract_strided_slice %653 {offsets = [0, 192], sizes = [1, 64], strides = [1, 1]} : vector<1x256xf32> to vector<1x64xf32>
    %669 = arith.negf %668 : vector<1x64xf32>
    %670 = math.exp %669 : vector<1x64xf32>
    %cst_170 = arith.constant 1.000000e+00 : f32
    %671 = vector.broadcast %cst_170 : f32 to vector<1x64xf32>
    %672 = arith.addf %671, %670 : vector<1x64xf32>
    %673 = arith.divf %671, %672 : vector<1x64xf32>
    %674 = arith.mulf %665, %569 : vector<1x64xf32>
    %675 = arith.mulf %659, %667 : vector<1x64xf32>
    %676 = arith.addf %674, %675 : vector<1x64xf32>
    %677 = math.tanh %676 : vector<1x64xf32>
    %678 = arith.mulf %673, %677 : vector<1x64xf32>
    %679 = vector.broadcast %678 : vector<1x64xf32> to vector<8x64xf32>
    %680 = arith.mulf %150, %679 : vector<8x64xf32>
    %cst_171 = arith.constant dense<0.000000e+00> : vector<8xf32>
    %681 = vector.multi_reduction <add>, %680, %cst_171 [1] : vector<8x64xf32> to vector<8xf32>
    %682 = vector.shape_cast %681 : vector<8xf32> to vector<8x1xf32>
    %cst_172 = arith.constant dense<0xFF800000> : vector<1xf32>
    %683 = vector.multi_reduction <maximumf>, %682, %cst_172 [0] : vector<8x1xf32> to vector<1xf32>
    %684 = vector.shape_cast %683 : vector<1xf32> to vector<1x1xf32>
    %685 = vector.broadcast %684 : vector<1x1xf32> to vector<8x1xf32>
    %686 = arith.subf %682, %685 : vector<8x1xf32>
    %687 = math.exp %686 : vector<8x1xf32>
    %cst_173 = arith.constant dense<0.000000e+00> : vector<1xf32>
    %688 = vector.multi_reduction <add>, %687, %cst_173 [0] : vector<8x1xf32> to vector<1xf32>
    %689 = vector.shape_cast %688 : vector<1xf32> to vector<1x1xf32>
    %690 = tpu.reciprocal %689 {approx = true} : vector<1x1xf32> -> vector<1x1xf32>
    %691 = vector.broadcast %690 : vector<1x1xf32> to vector<8x1xf32>
    %692 = arith.mulf %687, %691 : vector<8x1xf32>
    %693 = vector.broadcast %692 : vector<8x1xf32> to vector<8x64xf32>
    %694 = arith.mulf %150, %693 : vector<8x64xf32>
    %cst_174 = arith.constant dense<0.000000e+00> : vector<64xf32>
    %695 = vector.multi_reduction <add>, %694, %cst_174 [0] : vector<8x64xf32> to vector<64xf32>
    %696 = vector.shape_cast %695 : vector<64xf32> to vector<1x64xf32>
    %cst_175 = arith.constant dense<0.000000e+00> : vector<1x256xf32>
    %697 = tpu.matmul %678, %151, %cst_175 {dimension_numbers = #tpu.dot_dimension_numbers<[1], [0], [0], [1], [0, 0, 1, 1], [], []>} : vector<1x64xf32>, vector<64x256xf32>, vector<1x256xf32> -> vector<1x256xf32>
    %cst_176 = arith.constant dense<0.000000e+00> : vector<1x256xf32>
    %698 = tpu.matmul %696, %152, %cst_176 {dimension_numbers = #tpu.dot_dimension_numbers<[1], [0], [0], [1], [0, 0, 1, 1], [], []>} : vector<1x64xf32>, vector<64x256xf32>, vector<1x256xf32> -> vector<1x256xf32>
    %699 = arith.addf %697, %698 : vector<1x256xf32>
    %cst_177 = arith.constant dense<0.000000e+00> : vector<1x256xf32>
    %700 = tpu.matmul %620, %153, %cst_177 {dimension_numbers = #tpu.dot_dimension_numbers<[1], [0], [0], [1], [0, 0, 1, 1], [], []>} : vector<1x64xf32>, vector<64x256xf32>, vector<1x256xf32> -> vector<1x256xf32>
    %701 = arith.addf %699, %700 : vector<1x256xf32>
    %702 = arith.addf %701, %154 : vector<1x256xf32>
    %703 = vector.extract_strided_slice %702 {offsets = [0, 0], sizes = [1, 64], strides = [1, 1]} : vector<1x256xf32> to vector<1x64xf32>
    %704 = arith.negf %703 : vector<1x64xf32>
    %705 = math.exp %704 : vector<1x64xf32>
    %cst_178 = arith.constant 1.000000e+00 : f32
    %706 = vector.broadcast %cst_178 : f32 to vector<1x64xf32>
    %707 = arith.addf %706, %705 : vector<1x64xf32>
    %708 = arith.divf %706, %707 : vector<1x64xf32>
    %709 = vector.extract_strided_slice %702 {offsets = [0, 64], sizes = [1, 64], strides = [1, 1]} : vector<1x256xf32> to vector<1x64xf32>
    %710 = arith.negf %709 : vector<1x64xf32>
    %711 = math.exp %710 : vector<1x64xf32>
    %cst_179 = arith.constant 1.000000e+00 : f32
    %712 = vector.broadcast %cst_179 : f32 to vector<1x64xf32>
    %713 = arith.addf %712, %711 : vector<1x64xf32>
    %714 = arith.divf %712, %713 : vector<1x64xf32>
    %715 = vector.extract_strided_slice %702 {offsets = [0, 128], sizes = [1, 64], strides = [1, 1]} : vector<1x256xf32> to vector<1x64xf32>
    %716 = math.tanh %715 : vector<1x64xf32>
    %717 = vector.extract_strided_slice %702 {offsets = [0, 192], sizes = [1, 64], strides = [1, 1]} : vector<1x256xf32> to vector<1x64xf32>
    %718 = arith.negf %717 : vector<1x64xf32>
    %719 = math.exp %718 : vector<1x64xf32>
    %cst_180 = arith.constant 1.000000e+00 : f32
    %720 = vector.broadcast %cst_180 : f32 to vector<1x64xf32>
    %721 = arith.addf %720, %719 : vector<1x64xf32>
    %722 = arith.divf %720, %721 : vector<1x64xf32>
    %723 = arith.mulf %714, %618 : vector<1x64xf32>
    %724 = arith.mulf %708, %716 : vector<1x64xf32>
    %725 = arith.addf %723, %724 : vector<1x64xf32>
    %726 = math.tanh %725 : vector<1x64xf32>
    %727 = arith.mulf %722, %726 : vector<1x64xf32>
    %cst_181 = arith.constant dense<0.000000e+00> : vector<1x256xf32>
    %728 = tpu.matmul %727, %155, %cst_181 {dimension_numbers = #tpu.dot_dimension_numbers<[1], [0], [0], [1], [0, 0, 1, 1], [], []>} : vector<1x64xf32>, vector<64x256xf32>, vector<1x256xf32> -> vector<1x256xf32>
    %cst_182 = arith.constant dense<0.000000e+00> : vector<1x256xf32>
    %729 = tpu.matmul %649, %156, %cst_182 {dimension_numbers = #tpu.dot_dimension_numbers<[1], [0], [0], [1], [0, 0, 1, 1], [], []>} : vector<1x64xf32>, vector<64x256xf32>, vector<1x256xf32> -> vector<1x256xf32>
    %730 = arith.addf %728, %729 : vector<1x256xf32>
    %731 = arith.addf %730, %157 : vector<1x256xf32>
    %732 = vector.extract_strided_slice %731 {offsets = [0, 0], sizes = [1, 64], strides = [1, 1]} : vector<1x256xf32> to vector<1x64xf32>
    %733 = arith.negf %732 : vector<1x64xf32>
    %734 = math.exp %733 : vector<1x64xf32>
    %cst_183 = arith.constant 1.000000e+00 : f32
    %735 = vector.broadcast %cst_183 : f32 to vector<1x64xf32>
    %736 = arith.addf %735, %734 : vector<1x64xf32>
    %737 = arith.divf %735, %736 : vector<1x64xf32>
    %738 = vector.extract_strided_slice %731 {offsets = [0, 64], sizes = [1, 64], strides = [1, 1]} : vector<1x256xf32> to vector<1x64xf32>
    %739 = arith.negf %738 : vector<1x64xf32>
    %740 = math.exp %739 : vector<1x64xf32>
    %cst_184 = arith.constant 1.000000e+00 : f32
    %741 = vector.broadcast %cst_184 : f32 to vector<1x64xf32>
    %742 = arith.addf %741, %740 : vector<1x64xf32>
    %743 = arith.divf %741, %742 : vector<1x64xf32>
    %744 = vector.extract_strided_slice %731 {offsets = [0, 128], sizes = [1, 64], strides = [1, 1]} : vector<1x256xf32> to vector<1x64xf32>
    %745 = math.tanh %744 : vector<1x64xf32>
    %746 = vector.extract_strided_slice %731 {offsets = [0, 192], sizes = [1, 64], strides = [1, 1]} : vector<1x256xf32> to vector<1x64xf32>
    %747 = arith.negf %746 : vector<1x64xf32>
    %748 = math.exp %747 : vector<1x64xf32>
    %cst_185 = arith.constant 1.000000e+00 : f32
    %749 = vector.broadcast %cst_185 : f32 to vector<1x64xf32>
    %750 = arith.addf %749, %748 : vector<1x64xf32>
    %751 = arith.divf %749, %750 : vector<1x64xf32>
    %752 = arith.mulf %743, %647 : vector<1x64xf32>
    %753 = arith.mulf %737, %745 : vector<1x64xf32>
    %754 = arith.addf %752, %753 : vector<1x64xf32>
    %755 = math.tanh %754 : vector<1x64xf32>
    %756 = arith.mulf %751, %755 : vector<1x64xf32>
    %cst_186 = arith.constant dense<0.000000e+00> : vector<1x256xf32>
    %757 = tpu.matmul %756, %158, %cst_186 {dimension_numbers = #tpu.dot_dimension_numbers<[1], [0], [0], [1], [0, 0, 1, 1], [], []>} : vector<1x64xf32>, vector<64x256xf32>, vector<1x256xf32> -> vector<1x256xf32>
    %cst_187 = arith.constant dense<0.000000e+00> : vector<1x256xf32>
    %758 = tpu.matmul %678, %159, %cst_187 {dimension_numbers = #tpu.dot_dimension_numbers<[1], [0], [0], [1], [0, 0, 1, 1], [], []>} : vector<1x64xf32>, vector<64x256xf32>, vector<1x256xf32> -> vector<1x256xf32>
    %759 = arith.addf %757, %758 : vector<1x256xf32>
    %760 = arith.addf %759, %160 : vector<1x256xf32>
    %761 = vector.extract_strided_slice %760 {offsets = [0, 0], sizes = [1, 64], strides = [1, 1]} : vector<1x256xf32> to vector<1x64xf32>
    %762 = arith.negf %761 : vector<1x64xf32>
    %763 = math.exp %762 : vector<1x64xf32>
    %cst_188 = arith.constant 1.000000e+00 : f32
    %764 = vector.broadcast %cst_188 : f32 to vector<1x64xf32>
    %765 = arith.addf %764, %763 : vector<1x64xf32>
    %766 = arith.divf %764, %765 : vector<1x64xf32>
    %767 = vector.extract_strided_slice %760 {offsets = [0, 64], sizes = [1, 64], strides = [1, 1]} : vector<1x256xf32> to vector<1x64xf32>
    %768 = arith.negf %767 : vector<1x64xf32>
    %769 = math.exp %768 : vector<1x64xf32>
    %cst_189 = arith.constant 1.000000e+00 : f32
    %770 = vector.broadcast %cst_189 : f32 to vector<1x64xf32>
    %771 = arith.addf %770, %769 : vector<1x64xf32>
    %772 = arith.divf %770, %771 : vector<1x64xf32>
    %773 = vector.extract_strided_slice %760 {offsets = [0, 128], sizes = [1, 64], strides = [1, 1]} : vector<1x256xf32> to vector<1x64xf32>
    %774 = math.tanh %773 : vector<1x64xf32>
    %775 = vector.extract_strided_slice %760 {offsets = [0, 192], sizes = [1, 64], strides = [1, 1]} : vector<1x256xf32> to vector<1x64xf32>
    %776 = arith.negf %775 : vector<1x64xf32>
    %777 = math.exp %776 : vector<1x64xf32>
    %cst_190 = arith.constant 1.000000e+00 : f32
    %778 = vector.broadcast %cst_190 : f32 to vector<1x64xf32>
    %779 = arith.addf %778, %777 : vector<1x64xf32>
    %780 = arith.divf %778, %779 : vector<1x64xf32>
    %781 = arith.mulf %772, %676 : vector<1x64xf32>
    %782 = arith.mulf %766, %774 : vector<1x64xf32>
    %783 = arith.addf %781, %782 : vector<1x64xf32>
    %784 = math.tanh %783 : vector<1x64xf32>
    %785 = arith.mulf %780, %784 : vector<1x64xf32>
    %786 = vector.broadcast %785 : vector<1x64xf32> to vector<8x64xf32>
    %787 = arith.mulf %150, %786 : vector<8x64xf32>
    %cst_191 = arith.constant dense<0.000000e+00> : vector<8xf32>
    %788 = vector.multi_reduction <add>, %787, %cst_191 [1] : vector<8x64xf32> to vector<8xf32>
    %789 = vector.shape_cast %788 : vector<8xf32> to vector<8x1xf32>
    %cst_192 = arith.constant dense<0xFF800000> : vector<1xf32>
    %790 = vector.multi_reduction <maximumf>, %789, %cst_192 [0] : vector<8x1xf32> to vector<1xf32>
    %791 = vector.shape_cast %790 : vector<1xf32> to vector<1x1xf32>
    %792 = vector.broadcast %791 : vector<1x1xf32> to vector<8x1xf32>
    %793 = arith.subf %789, %792 : vector<8x1xf32>
    %794 = math.exp %793 : vector<8x1xf32>
    %cst_193 = arith.constant dense<0.000000e+00> : vector<1xf32>
    %795 = vector.multi_reduction <add>, %794, %cst_193 [0] : vector<8x1xf32> to vector<1xf32>
    %796 = vector.shape_cast %795 : vector<1xf32> to vector<1x1xf32>
    %797 = tpu.reciprocal %796 {approx = true} : vector<1x1xf32> -> vector<1x1xf32>
    %798 = vector.broadcast %797 : vector<1x1xf32> to vector<8x1xf32>
    %799 = arith.mulf %794, %798 : vector<8x1xf32>
    %800 = vector.broadcast %799 : vector<8x1xf32> to vector<8x64xf32>
    %801 = arith.mulf %150, %800 : vector<8x64xf32>
    %cst_194 = arith.constant dense<0.000000e+00> : vector<64xf32>
    %802 = vector.multi_reduction <add>, %801, %cst_194 [0] : vector<8x64xf32> to vector<64xf32>
    %803 = vector.shape_cast %802 : vector<64xf32> to vector<1x64xf32>
    %c0_195 = arith.constant 0 : index
    %c0_196 = arith.constant 0 : index
    %804 = vector.load %arg21[%c0_195, %c0_196] : memref<64x64xf32, #tpu.memory_space<vmem>>, vector<64x64xf32>
    %cst_197 = arith.constant dense<0.000000e+00> : vector<1x64xf32>
    %805 = tpu.matmul %785, %804, %cst_197 {dimension_numbers = #tpu.dot_dimension_numbers<[1], [0], [0], [1], [0, 0, 1, 1], [], []>} : vector<1x64xf32>, vector<64x64xf32>, vector<1x64xf32> -> vector<1x64xf32>
    %c0_198 = arith.constant 0 : index
    %c0_199 = arith.constant 0 : index
    %806 = vector.load %arg22[%c0_198, %c0_199] : memref<64x64xf32, #tpu.memory_space<vmem>>, vector<64x64xf32>
    %cst_200 = arith.constant dense<0.000000e+00> : vector<1x64xf32>
    %807 = tpu.matmul %803, %806, %cst_200 {dimension_numbers = #tpu.dot_dimension_numbers<[1], [0], [0], [1], [0, 0, 1, 1], [], []>} : vector<1x64xf32>, vector<64x64xf32>, vector<1x64xf32> -> vector<1x64xf32>
    %808 = arith.addf %805, %807 : vector<1x64xf32>
    %c0_201 = arith.constant 0 : index
    %c0_202 = arith.constant 0 : index
    %809 = vector.load %arg23[%c0_201, %c0_202] : memref<1x64xf32, #tpu.memory_space<vmem>>, vector<1x64xf32>
    %810 = arith.addf %808, %809 : vector<1x64xf32>
    %cst_203 = arith.constant 0.000000e+00 : f32
    %811 = vector.broadcast %cst_203 : f32 to vector<1x64xf32>
    %812 = arith.maximumf %810, %811 : vector<1x64xf32>
    %c0_204 = arith.constant 0 : index
    %c0_205 = arith.constant 0 : index
    %813 = vector.load %arg24[%c0_204, %c0_205] : memref<64x1xf32, #tpu.memory_space<vmem>>, vector<64x1xf32>
    %cst_206 = arith.constant dense<0.000000e+00> : vector<1x1xf32>
    %814 = tpu.matmul %812, %813, %cst_206 {dimension_numbers = #tpu.dot_dimension_numbers<[1], [0], [0], [1], [0, 0, 1, 1], [], []>} : vector<1x64xf32>, vector<64x1xf32>, vector<1x1xf32> -> vector<1x1xf32>
    %c0_207 = arith.constant 0 : index
    %c0_208 = arith.constant 0 : index
    %815 = vector.load %arg25[%c0_207, %c0_208] : memref<1x1xf32, #tpu.memory_space<vmem>>, vector<1x1xf32>
    %816 = arith.addf %814, %815 : vector<1x1xf32>
    %c0_209 = arith.constant 0 : index
    %c0_210 = arith.constant 0 : index
    %817 = vector.load %arg26[%c0_209, %c0_210] : memref<1x1xf32, #tpu.memory_space<vmem>>, vector<1x1xf32>
    tpu.vector_store %arg26[%c0_209, %c0_210], %816 {strides = array<i32>} : memref<1x1xf32, #tpu.memory_space<vmem>>, vector<1x1xf32>,
    return
  }
}

</mosaic_0001>

<bundles_post_ra>
// kernel: gilmer_forward.2
= control target key start
LH: loop header
LB: loop body
LE: loop exit
PB: predicated region body
PF: predicated region fallthrough
CT: control target
= control target key end

     0   :  { %10 = vsyncpa [#allocation3], 0  ;;  %s3291_s0 = inlined_call_operand.vmem [shape: f32[12,11], index: 0, kind: input, shape index: {}]   ;;  %s3292_s1 = inlined_call_operand.hbm [shape: f32[11,128], index: 1, kind: input, shape index: {}]   ;;  %s3293_s2 = inlined_call_operand.vmem [shape: f32[1,128], index: 2, kind: input, shape index: {}]   ;;  %s3294_s3 = inlined_call_operand.hbm [shape: bf16[128,4096], index: 3, kind: input, shape index: {}]   ;;  %s3295_s4 = inlined_call_operand.vmem [shape: f32[1,4096], index: 4, kind: input, shape index: {}]   ;;  %s3296_s5 = inlined_call_operand.vmem [shape: f32[12,4096], index: 5, kind: output, shape index: {}]  }
   0x1   :  { %11 = vsyncpa [#allocation5], 0  ;;  %s2932_s18 = smov [#allocation2]  }
   0x2   :  { %s19_s19 = sshll.u32 %s2932_s18, 4  ;;  %s20_s19 = int_to_ptr.vmem [resolvable:$true] %s19_s19 }
   0x3   :  { %s2896_s20 = scalar_lea.vmem %s20_s19, 256  ;;  %p2901_p1 = scmp.lt.s32.totalorder %s20_s19, %s20_s19 }
   0x4   :  { %p2897_p0 = scmp.ne.s32.totalorder %s20_s19, %s2896_s20  ;;  %p2902_p2 = scmp.lt.s32.totalorder %s2896_s20, %s2896_s20 }
   0x6   :  { %p2903_p3 = por %p2902_p2, %p2901_p1 }
   0x8   :  { %p2904_p4 = pnand %p2903_p3, %p2897_p0 }
   0xa   :  { %2907 = shalt.err (!%p2904_p4)
}
   0xb   :  { %s2933_s21 = smov 128   ;;  %s2934_s22 = smov 8  }
   0xc   :  { %25 = dma.hbm_to_vmem [thread:$0]  %s3292_s1, 256, %s20_s19, [#allocation3], %s2933_s21, %s2933_s21, %s2934_s22  }
   0xd   :  { %s2935_s25 = smov [#allocation4]  }
   0xe   :  { %s33_s26 = sshll.u32 %s2935_s25, 4  ;;  %s34_s26 = int_to_ptr.vmem [resolvable:$true] %s33_s26 }
   0xf   :  { %s2916_s27 = scalar_lea.vmem %s34_s26, 32768  ;;  %p2921_p6 = scmp.lt.s32.totalorder %s34_s26, %s34_s26 }
  0x10   :  { %p2917_p5 = scmp.ne.s32.totalorder %s34_s26, %s2916_s27  ;;  %p2922_p7 = scmp.lt.s32.totalorder %s2916_s27, %s2916_s27 }
  0x12   :  { %p2923_p8 = por %p2922_p7, %p2921_p6 }
  0x14   :  { %p2924_p9 = pnand %p2923_p8, %p2917_p5 }
  0x16   :  { %2927 = shalt.err (!%p2924_p9)
}
  0x17   :  { %s2936_s28 = smov 2048  }
  0x18   :  { %39 = dma.hbm_to_vmem [thread:$0]  %s3294_s3, 32768, %s34_s26, [#allocation5], %s2936_s28, %s2936_s28, %s2933_s21  }
  0x19   :  { %2928 = dma.done.wait [#allocation3], 256  }
  0x1a   :  { %2929 = vsyncadd [#allocation3], 4294967040 }
  0x1b   :  { %2930 = dma.done.wait [#allocation5], 32768  }
  0x1c   :  { %2931 = vsyncadd [#allocation5], 4294934528  ;;  %vm67_vm0 = vcmask 1042432   ;;  %vm60_vm1 = vcmask 89088   ;;  %v52_v0 = vld [vmem:[#allocation2 + $0x8] sm:$0x7] }
  0x1d   :  { %v51_v1 = vld [vmem:[#allocation2] sm:$0xff]  ;;  %2875 = vmatprep.subr.msk.mxu0 %vm67_vm0, %v52_v0  ;;  %v50_v3 = vld [vmem:[%s3291_s0 + $0x8] sm:$0xf]  ;;  %v373_v4 = vld [vmem:[#allocation4 + $0x700] sm:$0xff] }
  0x1e   :  { %v49_v2 = vld [vmem:[%s3291_s0] sm:$0xff]  ;;  %v389_v5 = vld [vmem:[#allocation4 + $0x780] sm:$0xff]  ;;  %2876 = vmatpush3.msk.msra.mxu0 %vm67_vm0, %v52_v0  ;;  %v374_v7 = vld [vmem:[#allocation4 + $0x708] sm:$0xff] }
  0x1f   :  { %2879 = vmatprep.mubr.msk.f32.mxu0 %vm60_vm1, %v49_v2  ;;  %v2840_v6 = vcombine.high %v373_v4, %v389_v5  ;;  %v390_v8 = vld [vmem:[#allocation4 + $0x788] sm:$0xff]  ;;  %v2839_v9 = vcombine.low %v373_v4, %v389_v5  ;;  %v341_v10 = vld [vmem:[#allocation4 + $0x600] sm:$0xff]  ;;  %2877 = vmatprep.subr.mxu0 %v51_v1  ;;  %v375_v4 = vld [vmem:[#allocation4 + $0x710] sm:$0xff] }
  0x20   :  { %v2841_v11 = vcombine.low %v374_v7, %v390_v8  ;;  %v2842_v12 = vcombine.high %v374_v7, %v390_v8  ;;  %v357_v13 = vld [vmem:[#allocation4 + $0x680] sm:$0xff]  ;;  %v342_v14 = vld [vmem:[#allocation4 + $0x608] sm:$0xff]  ;;  %2878 = vmatpush3.msra.mxu0 %v51_v1  ;;  %v391_v5 = vld [vmem:[#allocation4 + $0x790] sm:$0xff] }
  0x21   :  { %v358_v15 = vld [vmem:[#allocation4 + $0x688] sm:$0xff]  ;;  %1853 = vmatprep.subr.bf16.mxu1 %v2840_v6  ;;  %v2808_v16 = vcombine.high %v341_v10, %v357_v13  ;;  %v309_v18 = vld [vmem:[#allocation4 + $0x500] sm:$0xff]  ;;  %2880 = vmatmul.mubr.msk.f32.vlgmr.msra.gmra.mxu0 %vm60_vm1, %v50_v3  ;;  %v2807_v23 = vcombine.low %v341_v10, %v357_v13  ;;  %v376_v6 = vld [vmem:[#allocation4 + $0x718] sm:$0xff]  ;;  %v2844_v7 = vcombine.high %v375_v4, %v391_v5 }
  0x22   :  { %v2810_v17 = vcombine.high %v342_v14, %v358_v15  ;;  %v325_v19 = vld [vmem:[#allocation4 + $0x580] sm:$0xff]  ;;  %v310_v20 = vld [vmem:[#allocation4 + $0x508] sm:$0xff]  ;;  %1896 = vmatprep.subr.bf16.mxu0 %v2842_v12  ;;  %1854 = vmatpush1.bf16.msra.mxu1 %v2839_v9  ;;  %v2809_v22 = vcombine.low %v342_v14, %v358_v15  ;;  %v392_v8 = vld [vmem:[#allocation4 + $0x798] sm:$0xff]  ;;  %v2843_v9 = vcombine.low %v375_v4, %v391_v5  ;;  %v2937_v12 = vmov 0  }
  0x23   :  { %v326_v21 = vld [vmem:[#allocation4 + $0x588] sm:$0xff]  ;;  %1897 = vmatpush1.bf16.msra.mxu0 %v2841_v11  ;;  %1855 = vmatprep.subr.bf16.mxu1 %v2808_v16  ;;  %v2776_v24 = vcombine.high %v309_v18, %v325_v19  ;;  %v277_v26 = vld [vmem:[#allocation4 + $0x400] sm:$0xff]  ;;  %v2775_v31 = vcombine.low %v309_v18, %v325_v19  ;;  %v2845_v10 = vcombine.low %v376_v6, %v392_v8  ;;  %v2611_v13 = vld [vmem:[%s3293_s2] ss:$0 sm:$0xff] }
  0x24   :  { %1898 = vmatprep.subr.bf16.mxu0 %v2810_v17  ;;  %v2778_v25 = vcombine.high %v310_v20, %v326_v21  ;;  %v293_v27 = vld [vmem:[#allocation4 + $0x480] sm:$0xff]  ;;  %v278_v28 = vld [vmem:[#allocation4 + $0x408] sm:$0xff]  ;;  %v2777_v30 = vcombine.low %v310_v20, %v326_v21  ;;  %v2846_v11 = vcombine.high %v376_v6, %v392_v8  ;;  %1885 = vmatprep.mubr.bf16.mxu1 %v2937_v12  ;;  %v343_v18 = vld [vmem:[#allocation4 + $0x610] sm:$0xff] }
  0x25   :  { %v294_v29 = vld [vmem:[#allocation4 + $0x488] sm:$0xff]  ;;  %v2744_v32 = vcombine.high %v277_v26, %v293_v27  ;;  %v245_v34 = vld [vmem:[#allocation4 + $0x300] sm:$0xff]  ;;  %v2743_v39 = vcombine.low %v277_v26, %v293_v27  ;;  %1928 = vmatprep.mubr.bf16.mxu0 %v2937_v12  ;;  %v359_v19 = vld [vmem:[#allocation4 + $0x690] sm:$0xff] }
  0x26   :  { %1856 = vmatpush1.bf16.msra.mxu1 %v2807_v23  ;;  %v2746_v33 = vcombine.high %v278_v28, %v294_v29  ;;  %v261_v35 = vld [vmem:[#allocation4 + $0x380] sm:$0xff]  ;;  %v246_v36 = vld [vmem:[#allocation4 + $0x308] sm:$0xff]  ;;  %v2745_v38 = vcombine.low %v278_v28, %v294_v29  ;;  %v344_v20 = vld [vmem:[#allocation4 + $0x618] sm:$0xff] }
  0x27   :  { %1899 = vmatpush1.bf16.msra.mxu0 %v2809_v22  ;;  %1857 = vmatprep.subr.bf16.mxu1 %v2776_v24  ;;  %v262_v37 = vld [vmem:[#allocation4 + $0x388] sm:$0xff]  ;;  %v2712_v40 = vcombine.high %v245_v34, %v261_v35  ;;  %v213_v42 = vld [vmem:[#allocation4 + $0x200] sm:$0xff]  ;;  %v2711_v47 = vcombine.low %v245_v34, %v261_v35  ;;  %v360_v21 = vld [vmem:[#allocation4 + $0x698] sm:$0xff] }
  0x28   :  { %1900 = vmatprep.subr.bf16.mxu0 %v2778_v25  ;;  %v2714_v41 = vcombine.high %v246_v36, %v262_v37  ;;  %v229_v43 = vld [vmem:[#allocation4 + $0x280] sm:$0xff]  ;;  %v214_v44 = vld [vmem:[#allocation4 + $0x208] sm:$0xff]  ;;  %v2713_v46 = vcombine.low %v246_v36, %v262_v37  ;;  %v2812_v25 = vcombine.high %v343_v18, %v359_v19  ;;  %v2814_v26 = vcombine.high %v344_v20, %v360_v21  ;;  %v311_v27 = vld [vmem:[#allocation4 + $0x510] sm:$0xff] }
  0x29   :  { %v230_v45 = vld [vmem:[#allocation4 + $0x288] sm:$0xff]  ;;  %v2680_v48 = vcombine.high %v213_v42, %v229_v43  ;;  %v2679_v51 = vcombine.low %v213_v42, %v229_v43  ;;  %v181_v52 = vld [vmem:[#allocation4 + $0x100] sm:$0xff]  ;;  %v327_v28 = vld [vmem:[#allocation4 + $0x590] sm:$0xff] }
  0x2a   :  { %1858 = vmatpush1.bf16.msra.mxu1 %v2775_v31  ;;  %v2682_v49 = vcombine.high %v214_v44, %v230_v45  ;;  %v2681_v50 = vcombine.low %v214_v44, %v230_v45  ;;  %v197_v53 = vld [vmem:[#allocation4 + $0x180] sm:$0xff]  ;;  %v182_v54 = vld [vmem:[#allocation4 + $0x108] sm:$0xff]  ;;  %v312_v29 = vld [vmem:[#allocation4 + $0x518] sm:$0xff]  ;;  %v2811_v31 = vcombine.low %v343_v18, %v359_v19 }
  0x2b   :  { %1901 = vmatpush1.bf16.msra.mxu0 %v2777_v30  ;;  %1859 = vmatprep.subr.bf16.mxu1 %v2744_v32  ;;  %v2648_v55 = vcombine.high %v181_v52, %v197_v53  ;;  %v198_v56 = vld [vmem:[#allocation4 + $0x188] sm:$0xff]  ;;  %v2647_v59 = vcombine.low %v181_v52, %v197_v53  ;;  %v149_v60 = vld [vmem:[#allocation4] sm:$0xff]  ;;  %v328_v30 = vld [vmem:[#allocation4 + $0x598] sm:$0xff]  ;;  %v2813_v32 = vcombine.low %v344_v20, %v360_v21 }
  0x2c   :  { %1902 = vmatprep.subr.bf16.mxu0 %v2746_v33  ;;  %v2649_v57 = vcombine.low %v182_v54, %v198_v56  ;;  %v2650_v58 = vcombine.high %v182_v54, %v198_v56  ;;  %v165_v61 = vld [vmem:[#allocation4 + $0x80] sm:$0xff]  ;;  %v150_v62 = vld [vmem:[#allocation4 + $0x8] sm:$0xff]  ;;  %v2780_v33 = vcombine.high %v311_v27, %v327_v28  ;;  %v2782_v34 = vcombine.high %v312_v29, %v328_v30  ;;  %v279_v35 = vld [vmem:[#allocation4 + $0x410] sm:$0xff] }
  0x2d   :  { %v2616_v63 = vcombine.high %v149_v60, %v165_v61  ;;  %v166_v0 = vld [vmem:[#allocation4 + $0x88] sm:$0xff]  ;;  %v2615_v3 = vcombine.low %v149_v60, %v165_v61  ;;  %v295_v36 = vld [vmem:[#allocation4 + $0x490] sm:$0xff]  ;;  %v280_v37 = vld [vmem:[#allocation4 + $0x418] sm:$0xff] }
  0x2e   :  { %1860 = vmatpush1.bf16.msra.mxu1 %v2743_v39  ;;  %v2617_v1 = vcombine.low %v150_v62, %v166_v0  ;;  %v2618_v2 = vcombine.high %v150_v62, %v166_v0  ;;  %v2779_v39 = vcombine.low %v311_v27, %v327_v28  ;;  %v247_v43 = vld [vmem:[#allocation4 + $0x310] sm:$0xff]  ;;  %v248_v45 = vld [vmem:[#allocation4 + $0x318] sm:$0xff]  ;;  %v345_v20 = vld [vmem:[#allocation4 + $0x620] sm:$0xff] }
  0x2f   :  { %1903 = vmatpush1.bf16.msra.mxu0 %v2745_v38  ;;  %1861 = vmatprep.subr.bf16.mxu1 %v2712_v40  ;;  %v296_v38 = vld [vmem:[#allocation4 + $0x498] sm:$0xff]  ;;  %v2781_v40 = vcombine.low %v312_v29, %v328_v30  ;;  %v263_v44 = vld [vmem:[#allocation4 + $0x390] sm:$0xff]  ;;  %v361_v21 = vld [vmem:[#allocation4 + $0x6a0] sm:$0xff] }
  0x30   :  { %1904 = vmatprep.subr.bf16.mxu0 %v2714_v41  ;;  %v2748_v41 = vcombine.high %v279_v35, %v295_v36  ;;  %v2750_v42 = vcombine.high %v280_v37, %v296_v38  ;;  %v231_v52 = vld [vmem:[#allocation4 + $0x290] sm:$0xff]  ;;  %v216_v53 = vld [vmem:[#allocation4 + $0x218] sm:$0xff]  ;;  %v2816_v27 = vcombine.high %v345_v20, %v361_v21  ;;  %v313_v29 = vld [vmem:[#allocation4 + $0x520] sm:$0xff] }
  0x31   :  { %v232_v54 = vld [vmem:[#allocation4 + $0x298] sm:$0xff]  ;;  %v199_v60 = vld [vmem:[#allocation4 + $0x190] sm:$0xff]  ;;  %v329_v30 = vld [vmem:[#allocation4 + $0x5a0] sm:$0xff] }
  0x32   :  { %1862 = vmatpush1.bf16.msra.mxu1 %v2711_v47  ;;  %v2747_v47 = vcombine.low %v279_v35, %v295_v36  ;;  %v184_v61 = vld [vmem:[#allocation4 + $0x118] sm:$0xff]  ;;  %v2685_v0 = vcombine.low %v216_v53, %v232_v54  ;;  %v167_v4 = vld [vmem:[#allocation4 + $0x90] sm:$0xff]  ;;  %v2784_v35 = vcombine.high %v313_v29, %v329_v30 }
  0x33   :  { %1905 = vmatpush1.bf16.msra.mxu0 %v2713_v46  ;;  %1863 = vmatprep.subr.bf16.mxu1 %v2680_v48  ;;  %v264_v46 = vld [vmem:[#allocation4 + $0x398] sm:$0xff]  ;;  %v2749_v48 = vcombine.low %v280_v37, %v296_v38  ;;  %v281_v37 = vld [vmem:[#allocation4 + $0x420] sm:$0xff] }
  0x34   :  { %1906 = vmatprep.subr.bf16.mxu0 %v2682_v49  ;;  %v2716_v49 = vcombine.high %v247_v43, %v263_v44  ;;  %v2717_v56 = vcombine.low %v248_v45, %v264_v46  ;;  %v200_v62 = vld [vmem:[#allocation4 + $0x198] sm:$0xff]  ;;  %v297_v38 = vld [vmem:[#allocation4 + $0x4a0] sm:$0xff] }
  0x35   :  { %v152_v5 = vld [vmem:[#allocation4 + $0x18] sm:$0xff]  ;;  %v2653_v8 = vcombine.low %v184_v61, %v200_v62 }
  0x36   :  { %1864 = vmatpush1.bf16.msra.mxu1 %v2679_v51  ;;  %v215_v51 = vld [vmem:[#allocation4 + $0x210] sm:$0xff]  ;;  %v168_v6 = vld [vmem:[#allocation4 + $0x98] sm:$0xff] }
  0x37   :  { %1907 = vmatpush1.bf16.msra.mxu0 %v2681_v50  ;;  %1865 = vmatprep.subr.bf16.mxu1 %v2648_v55  ;;  %v2718_v50 = vcombine.high %v248_v45, %v264_v46  ;;  %v2715_v55 = vcombine.low %v247_v43, %v263_v44  ;;  %v2752_v43 = vcombine.high %v281_v37, %v297_v38  ;;  %v249_v45 = vld [vmem:[#allocation4 + $0x320] sm:$0xff] }
  0x38   :  { %1908 = vmatprep.subr.bf16.mxu0 %v2650_v58  ;;  %v2686_v58 = vcombine.high %v216_v53, %v232_v54  ;;  %v265_v46 = vld [vmem:[#allocation4 + $0x3a0] sm:$0xff] }
  0x39   :  { %v217_v53 = vld [vmem:[#allocation4 + $0x220] sm:$0xff] }
  0x3a   :  { %1866 = vmatpush1.bf16.msra.mxu1 %v2647_v59  ;;  %v183_v59 = vld [vmem:[#allocation4 + $0x110] sm:$0xff]  ;;  %v233_v54 = vld [vmem:[#allocation4 + $0x2a0] sm:$0xff] }
  0x3b   :  { %1909 = vmatpush1.bf16.msra.mxu0 %v2649_v57  ;;  %1867 = vmatprep.subr.bf16.mxu1 %v2616_v63  ;;  %v2684_v57 = vcombine.high %v215_v51, %v231_v52  ;;  %v2683_v63 = vcombine.low %v215_v51, %v231_v52  ;;  %v2720_v51 = vcombine.high %v249_v45, %v265_v46 }
  0x3c   :  { %1910 = vmatprep.subr.bf16.mxu0 %v2618_v2  ;;  %v2654_v2 = vcombine.high %v184_v61, %v200_v62  ;;  %v185_v61 = vld [vmem:[#allocation4 + $0x120] sm:$0xff] }
  0x3d   :  { %v201_v62 = vld [vmem:[#allocation4 + $0x1a0] sm:$0xff] }
  0x3e   :  { %1868 = vmatpush1.bf16.msra.mxu1 %v2615_v3  ;;  %v151_v3 = vld [vmem:[#allocation4 + $0x10] sm:$0xff] }
  0x3f   :  { %1911 = vmatpush1.bf16.msra.mxu0 %v2617_v1  ;;  %1939 = vmatprep.subr.bf16.mxu1 %v2844_v7  ;;  %v2652_v1 = vcombine.high %v183_v59, %v199_v60  ;;  %v2651_v7 = vcombine.low %v183_v59, %v199_v60  ;;  %v2688_v59 = vcombine.high %v217_v53, %v233_v54 }
  0x40   :  { %1982 = vmatprep.subr.bf16.mxu0 %v2846_v11  ;;  %v377_v11 = vld [vmem:[#allocation4 + $0x720] sm:$0xff] }
  0xe1   :  { %v2881_v14 = vpop.f32.mrf.mxu0 }
  0xe2   :  { %v143_v15 = vadd.f32 %v2881_v14, %v2611_v13  ;;  %v378_v14 = vld [vmem:[#allocation4 + $0x728] sm:$0xff] }
  0xe3   :  { %v137_v16 = vpop.f32.mrf.mxu0 }
  0xe4   :  { %v138_v17 = vadd.f32 %v2611_v13, %v137_v16  ;;  %v147_v22 = vmax.f32 %v143_v15, 0.0  ;;  %v393_v13 = vld [vmem:[#allocation4 + $0x7a0] sm:$0xff]  ;;  %v394_v15 = vld [vmem:[#allocation4 + $0x7a8] sm:$0xff]  ;;  %v2619_v16 = vcombine.low %v151_v3, %v167_v4 }
  0xe5   :  { %v2848_v18 = vcombine.high %v377_v11, %v393_v13  ;;  %v2850_v19 = vcombine.high %v378_v14, %v394_v15 }
  0xe6   :  { %v146_v23 = vmax.f32 %v138_v17, 0.0  ;;  %v2621_v17 = vcombine.low %v152_v5, %v168_v6 }
  0xe8   :  { %v2987_v24 = vpack.c.bf16 %v147_v22, %v146_v23  ;;  %v346_v22 = vld [vmem:[#allocation4 + $0x628] sm:$0xff] }
  0xe9   :  { %v362_v23 = vld [vmem:[#allocation4 + $0x6a8] sm:$0xff] }
  0xea   :  { %1886 = vmatmul.mubr.bf16.vlgmr.msra.gmra.mxu1 %v2987_v24  ;;  %1929 = vmatmul.mubr.bf16.vlgmr.msra.gmra.mxu0 %v2987_v24  ;;  %v2818_v28 = vcombine.high %v346_v22, %v362_v23 }
  0xeb   :  { %1940 = vmatpush1.bf16.msra.mxu1 %v2843_v9  ;;  %1983 = vmatpush1.bf16.msra.mxu0 %v2845_v10  ;;  %v2620_v9 = vcombine.high %v151_v3, %v167_v4  ;;  %v2622_v10 = vcombine.high %v152_v5, %v168_v6  ;;  %v2656_v3 = vcombine.high %v185_v61, %v201_v62  ;;  %v153_v5 = vld [vmem:[#allocation4 + $0x20] sm:$0xff] }
  0xec   :  { %1941 = vmatprep.subr.bf16.mxu1 %v2812_v25  ;;  %1984 = vmatprep.subr.bf16.mxu0 %v2814_v26  ;;  %v2847_v25 = vcombine.low %v377_v11, %v393_v13  ;;  %v2849_v26 = vcombine.low %v378_v14, %v394_v15  ;;  %v169_v6 = vld [vmem:[#allocation4 + $0xa0] sm:$0xff]  ;;  %v379_v14 = vld [vmem:[#allocation4 + $0x730] sm:$0xff] }
  0xed   :  { %1971 = vmatprep.mubr.bf16.mxu1 %v2937_v12  ;;  %2014 = vmatprep.mubr.bf16.mxu0 %v2937_v12  ;;  %v2624_v11 = vcombine.high %v153_v5, %v169_v6  ;;  %v395_v15 = vld [vmem:[#allocation4 + $0x7b0] sm:$0xff] }
  0xef   :  { %1942 = vmatpush1.bf16.msra.mxu1 %v2811_v31  ;;  %1985 = vmatpush1.bf16.msra.mxu0 %v2813_v32  ;;  %v314_v31 = vld [vmem:[#allocation4 + $0x528] sm:$0xff] }
  0xf0   :  { %1943 = vmatprep.subr.bf16.mxu1 %v2780_v33  ;;  %1986 = vmatprep.subr.bf16.mxu0 %v2782_v34  ;;  %v330_v32 = vld [vmem:[#allocation4 + $0x5a8] sm:$0xff]  ;;  %v2815_v33 = vcombine.low %v345_v20, %v361_v21  ;;  %v2817_v34 = vcombine.low %v346_v22, %v362_v23  ;;  %v2852_v20 = vcombine.high %v379_v14, %v395_v15  ;;  %v347_v22 = vld [vmem:[#allocation4 + $0x630] sm:$0xff] }
  0xf1   :  { %v2786_v36 = vcombine.high %v314_v31, %v330_v32  ;;  %v363_v23 = vld [vmem:[#allocation4 + $0x6b0] sm:$0xff] }
  0xf3   :  { %1944 = vmatpush1.bf16.msra.mxu1 %v2779_v39  ;;  %1987 = vmatpush1.bf16.msra.mxu0 %v2781_v40  ;;  %v282_v39 = vld [vmem:[#allocation4 + $0x428] sm:$0xff] }
  0xf4   :  { %1945 = vmatprep.subr.bf16.mxu1 %v2748_v41  ;;  %1988 = vmatprep.subr.bf16.mxu0 %v2750_v42  ;;  %v298_v40 = vld [vmem:[#allocation4 + $0x4a8] sm:$0xff]  ;;  %v2783_v41 = vcombine.low %v313_v29, %v329_v30  ;;  %v2785_v42 = vcombine.low %v314_v31, %v330_v32  ;;  %v2820_v29 = vcombine.high %v347_v22, %v363_v23  ;;  %v315_v31 = vld [vmem:[#allocation4 + $0x530] sm:$0xff] }
  0xf5   :  { %v2754_v44 = vcombine.high %v282_v39, %v298_v40  ;;  %v331_v32 = vld [vmem:[#allocation4 + $0x5b0] sm:$0xff] }
  0xf7   :  { %1946 = vmatpush1.bf16.msra.mxu1 %v2747_v47  ;;  %1989 = vmatpush1.bf16.msra.mxu0 %v2749_v48  ;;  %v250_v47 = vld [vmem:[#allocation4 + $0x328] sm:$0xff] }
  0xf8   :  { %1947 = vmatprep.subr.bf16.mxu1 %v2716_v49  ;;  %1990 = vmatprep.subr.bf16.mxu0 %v2718_v50  ;;  %v266_v48 = vld [vmem:[#allocation4 + $0x3a8] sm:$0xff]  ;;  %v2751_v49 = vcombine.low %v281_v37, %v297_v38  ;;  %v2753_v50 = vcombine.low %v282_v39, %v298_v40  ;;  %v2788_v37 = vcombine.high %v315_v31, %v331_v32  ;;  %v283_v39 = vld [vmem:[#allocation4 + $0x430] sm:$0xff] }
  0xf9   :  { %v2722_v52 = vcombine.high %v250_v47, %v266_v48  ;;  %v299_v40 = vld [vmem:[#allocation4 + $0x4b0] sm:$0xff] }
  0xfb   :  { %1948 = vmatpush1.bf16.msra.mxu1 %v2715_v55  ;;  %1991 = vmatpush1.bf16.msra.mxu0 %v2717_v56  ;;  %v218_v55 = vld [vmem:[#allocation4 + $0x228] sm:$0xff] }
  0xfc   :  { %1949 = vmatprep.subr.bf16.mxu1 %v2684_v57  ;;  %1992 = vmatprep.subr.bf16.mxu0 %v2686_v58  ;;  %v234_v56 = vld [vmem:[#allocation4 + $0x2a8] sm:$0xff]  ;;  %v2719_v57 = vcombine.low %v249_v45, %v265_v46  ;;  %v2721_v58 = vcombine.low %v250_v47, %v266_v48  ;;  %v2756_v45 = vcombine.high %v283_v39, %v299_v40  ;;  %v251_v47 = vld [vmem:[#allocation4 + $0x330] sm:$0xff] }
  0xfd   :  { %v2690_v60 = vcombine.high %v218_v55, %v234_v56  ;;  %v267_v48 = vld [vmem:[#allocation4 + $0x3b0] sm:$0xff] }
  0xff   :  { %1950 = vmatpush1.bf16.msra.mxu1 %v2683_v63  ;;  %1993 = vmatpush1.bf16.msra.mxu0 %v2685_v0  ;;  %v186_v63 = vld [vmem:[#allocation4 + $0x128] sm:$0xff] }
 0x100   :  { %1951 = vmatprep.subr.bf16.mxu1 %v2652_v1  ;;  %1994 = vmatprep.subr.bf16.mxu0 %v2654_v2  ;;  %v202_v0 = vld [vmem:[#allocation4 + $0x1a8] sm:$0xff]  ;;  %v2687_v1 = vcombine.low %v217_v53, %v233_v54  ;;  %v2689_v2 = vcombine.low %v218_v55, %v234_v56  ;;  %v2724_v53 = vcombine.high %v251_v47, %v267_v48  ;;  %v219_v55 = vld [vmem:[#allocation4 + $0x230] sm:$0xff] }
 0x101   :  { %v2658_v4 = vcombine.high %v186_v63, %v202_v0  ;;  %v235_v56 = vld [vmem:[#allocation4 + $0x2b0] sm:$0xff] }
 0x103   :  { %1952 = vmatpush1.bf16.msra.mxu1 %v2651_v7  ;;  %1995 = vmatpush1.bf16.msra.mxu0 %v2653_v8  ;;  %v154_v7 = vld [vmem:[#allocation4 + $0x28] sm:$0xff] }
 0x104   :  { %1953 = vmatprep.subr.bf16.mxu1 %v2620_v9  ;;  %1996 = vmatprep.subr.bf16.mxu0 %v2622_v10  ;;  %v170_v8 = vld [vmem:[#allocation4 + $0xa8] sm:$0xff]  ;;  %v2655_v9 = vcombine.low %v185_v61, %v201_v62  ;;  %v2657_v10 = vcombine.low %v186_v63, %v202_v0  ;;  %v2692_v61 = vcombine.high %v219_v55, %v235_v56  ;;  %v187_v63 = vld [vmem:[#allocation4 + $0x130] sm:$0xff] }
 0x105   :  { %v2626_v13 = vcombine.high %v154_v7, %v170_v8  ;;  %v203_v0 = vld [vmem:[#allocation4 + $0x1b0] sm:$0xff] }
 0x107   :  { %1954 = vmatpush1.bf16.msra.mxu1 %v2619_v16  ;;  %1997 = vmatpush1.bf16.msra.mxu0 %v2621_v17  ;;  %v380_v16 = vld [vmem:[#allocation4 + $0x738] sm:$0xff] }
 0x108   :  { %2025 = vmatprep.subr.bf16.mxu1 %v2848_v18  ;;  %2068 = vmatprep.subr.bf16.mxu0 %v2850_v19  ;;  %v396_v17 = vld [vmem:[#allocation4 + $0x7b8] sm:$0xff]  ;;  %v2623_v18 = vcombine.low %v153_v5, %v169_v6  ;;  %v2625_v19 = vcombine.low %v154_v7, %v170_v8  ;;  %v2660_v5 = vcombine.high %v187_v63, %v203_v0  ;;  %v155_v7 = vld [vmem:[#allocation4 + $0x30] sm:$0xff] }
 0x109   :  { %v2854_v21 = vcombine.high %v380_v16, %v396_v17  ;;  %v171_v8 = vld [vmem:[#allocation4 + $0xb0] sm:$0xff] }
 0x10a   :  { %1972 = vmatmul.mubr.bf16.vlgmr.msra.gmra.mxu1 %v2987_v24  ;;  %2015 = vmatmul.mubr.bf16.vlgmr.msra.gmra.mxu0 %v2987_v24 }
 0x10b   :  { %2026 = vmatpush1.bf16.msra.mxu1 %v2847_v25  ;;  %2069 = vmatpush1.bf16.msra.mxu0 %v2849_v26  ;;  %v348_v25 = vld [vmem:[#allocation4 + $0x638] sm:$0xff] }
 0x10c   :  { %2027 = vmatprep.subr.bf16.mxu1 %v2816_v27  ;;  %2070 = vmatprep.subr.bf16.mxu0 %v2818_v28  ;;  %v364_v26 = vld [vmem:[#allocation4 + $0x6b8] sm:$0xff]  ;;  %v2851_v27 = vcombine.low %v379_v14, %v395_v15  ;;  %v2853_v28 = vcombine.low %v380_v16, %v396_v17  ;;  %v2628_v14 = vcombine.high %v155_v7, %v171_v8  ;;  %v381_v16 = vld [vmem:[#allocation4 + $0x740] sm:$0xff] }
 0x10d   :  { %2057 = vmatprep.mubr.bf16.mxu1 %v2937_v12  ;;  %2100 = vmatprep.mubr.bf16.mxu0 %v2937_v12  ;;  %v2822_v30 = vcombine.high %v348_v25, %v364_v26  ;;  %v397_v17 = vld [vmem:[#allocation4 + $0x7c0] sm:$0xff] }
 0x10f   :  { %2028 = vmatpush1.bf16.msra.mxu1 %v2815_v33  ;;  %2071 = vmatpush1.bf16.msra.mxu0 %v2817_v34  ;;  %v316_v33 = vld [vmem:[#allocation4 + $0x538] sm:$0xff] }
 0x110   :  { %2029 = vmatprep.subr.bf16.mxu1 %v2784_v35  ;;  %2072 = vmatprep.subr.bf16.mxu0 %v2786_v36  ;;  %v332_v34 = vld [vmem:[#allocation4 + $0x5b8] sm:$0xff]  ;;  %v2819_v35 = vcombine.low %v347_v22, %v363_v23  ;;  %v2821_v36 = vcombine.low %v348_v25, %v364_v26  ;;  %v2856_v22 = vcombine.high %v381_v16, %v397_v17  ;;  %v349_v25 = vld [vmem:[#allocation4 + $0x640] sm:$0xff] }
 0x111   :  { %v2790_v38 = vcombine.high %v316_v33, %v332_v34  ;;  %v365_v26 = vld [vmem:[#allocation4 + $0x6c0] sm:$0xff] }
 0x113   :  { %2030 = vmatpush1.bf16.msra.mxu1 %v2783_v41  ;;  %2073 = vmatpush1.bf16.msra.mxu0 %v2785_v42  ;;  %v284_v41 = vld [vmem:[#allocation4 + $0x438] sm:$0xff] }
 0x114   :  { %2031 = vmatprep.subr.bf16.mxu1 %v2752_v43  ;;  %2074 = vmatprep.subr.bf16.mxu0 %v2754_v44  ;;  %v300_v42 = vld [vmem:[#allocation4 + $0x4b8] sm:$0xff]  ;;  %v2787_v43 = vcombine.low %v315_v31, %v331_v32  ;;  %v2789_v44 = vcombine.low %v316_v33, %v332_v34  ;;  %v2824_v31 = vcombine.high %v349_v25, %v365_v26  ;;  %v317_v33 = vld [vmem:[#allocation4 + $0x540] sm:$0xff] }
 0x115   :  { %v2758_v46 = vcombine.high %v284_v41, %v300_v42  ;;  %v333_v34 = vld [vmem:[#allocation4 + $0x5c0] sm:$0xff] }
 0x117   :  { %2032 = vmatpush1.bf16.msra.mxu1 %v2751_v49  ;;  %2075 = vmatpush1.bf16.msra.mxu0 %v2753_v50  ;;  %v252_v49 = vld [vmem:[#allocation4 + $0x338] sm:$0xff] }
 0x118   :  { %2033 = vmatprep.subr.bf16.mxu1 %v2720_v51  ;;  %2076 = vmatprep.subr.bf16.mxu0 %v2722_v52  ;;  %v268_v50 = vld [vmem:[#allocation4 + $0x3b8] sm:$0xff]  ;;  %v2755_v51 = vcombine.low %v283_v39, %v299_v40  ;;  %v2757_v52 = vcombine.low %v284_v41, %v300_v42  ;;  %v2792_v39 = vcombine.high %v317_v33, %v333_v34  ;;  %v285_v41 = vld [vmem:[#allocation4 + $0x440] sm:$0xff] }
 0x119   :  { %v2726_v54 = vcombine.high %v252_v49, %v268_v50  ;;  %v301_v42 = vld [vmem:[#allocation4 + $0x4c0] sm:$0xff] }
 0x11b   :  { %2034 = vmatpush1.bf16.msra.mxu1 %v2719_v57  ;;  %2077 = vmatpush1.bf16.msra.mxu0 %v2721_v58  ;;  %v220_v57 = vld [vmem:[#allocation4 + $0x238] sm:$0xff] }
 0x11c   :  { %2035 = vmatprep.subr.bf16.mxu1 %v2688_v59  ;;  %2078 = vmatprep.subr.bf16.mxu0 %v2690_v60  ;;  %v236_v58 = vld [vmem:[#allocation4 + $0x2b8] sm:$0xff]  ;;  %v2723_v59 = vcombine.low %v251_v47, %v267_v48  ;;  %v2725_v60 = vcombine.low %v252_v49, %v268_v50  ;;  %v2760_v47 = vcombine.high %v285_v41, %v301_v42  ;;  %v253_v49 = vld [vmem:[#allocation4 + $0x340] sm:$0xff] }
 0x11d   :  { %v2694_v62 = vcombine.high %v220_v57, %v236_v58  ;;  %v269_v50 = vld [vmem:[#allocation4 + $0x3c0] sm:$0xff] }
 0x11f   :  { %2036 = vmatpush1.bf16.msra.mxu1 %v2687_v1  ;;  %2079 = vmatpush1.bf16.msra.mxu0 %v2689_v2  ;;  %v188_v1 = vld [vmem:[#allocation4 + $0x138] sm:$0xff] }
 0x120   :  { %2037 = vmatprep.subr.bf16.mxu1 %v2656_v3  ;;  %2080 = vmatprep.subr.bf16.mxu0 %v2658_v4  ;;  %v204_v2 = vld [vmem:[#allocation4 + $0x1b8] sm:$0xff]  ;;  %v2691_v3 = vcombine.low %v219_v55, %v235_v56  ;;  %v2693_v4 = vcombine.low %v220_v57, %v236_v58  ;;  %v2728_v55 = vcombine.high %v253_v49, %v269_v50  ;;  %v221_v57 = vld [vmem:[#allocation4 + $0x240] sm:$0xff] }
 0x121   :  { %v2662_v6 = vcombine.high %v188_v1, %v204_v2  ;;  %v237_v58 = vld [vmem:[#allocation4 + $0x2c0] sm:$0xff] }
 0x123   :  { %2038 = vmatpush1.bf16.msra.mxu1 %v2655_v9  ;;  %2081 = vmatpush1.bf16.msra.mxu0 %v2657_v10  ;;  %v156_v9 = vld [vmem:[#allocation4 + $0x38] sm:$0xff] }
 0x124   :  { %2039 = vmatprep.subr.bf16.mxu1 %v2624_v11  ;;  %2082 = vmatprep.subr.bf16.mxu0 %v2626_v13  ;;  %v172_v10 = vld [vmem:[#allocation4 + $0xb8] sm:$0xff]  ;;  %v2659_v11 = vcombine.low %v187_v63, %v203_v0  ;;  %v2661_v13 = vcombine.low %v188_v1, %v204_v2  ;;  %v2696_v63 = vcombine.high %v221_v57, %v237_v58  ;;  %v189_v1 = vld [vmem:[#allocation4 + $0x140] sm:$0xff] }
 0x125   :  { %v2630_v15 = vcombine.high %v156_v9, %v172_v10  ;;  %v205_v2 = vld [vmem:[#allocation4 + $0x1c0] sm:$0xff] }
 0x127   :  { %2040 = vmatpush1.bf16.msra.mxu1 %v2623_v18  ;;  %2083 = vmatpush1.bf16.msra.mxu0 %v2625_v19  ;;  %v382_v18 = vld [vmem:[#allocation4 + $0x748] sm:$0xff] }
 0x128   :  { %2111 = vmatprep.subr.bf16.mxu1 %v2852_v20  ;;  %2154 = vmatprep.subr.bf16.mxu0 %v2854_v21  ;;  %v398_v19 = vld [vmem:[#allocation4 + $0x7c8] sm:$0xff]  ;;  %v2627_v20 = vcombine.low %v155_v7, %v171_v8  ;;  %v2629_v21 = vcombine.low %v156_v9, %v172_v10  ;;  %v2664_v7 = vcombine.high %v189_v1, %v205_v2  ;;  %v157_v9 = vld [vmem:[#allocation4 + $0x40] sm:$0xff] }
 0x129   :  { %v2858_v23 = vcombine.high %v382_v18, %v398_v19  ;;  %v173_v10 = vld [vmem:[#allocation4 + $0xc0] sm:$0xff] }
 0x12a   :  { %2058 = vmatmul.mubr.bf16.vlgmr.msra.gmra.mxu1 %v2987_v24  ;;  %2101 = vmatmul.mubr.bf16.vlgmr.msra.gmra.mxu0 %v2987_v24 }
 0x12b   :  { %2112 = vmatpush1.bf16.msra.mxu1 %v2851_v27  ;;  %2155 = vmatpush1.bf16.msra.mxu0 %v2853_v28  ;;  %v350_v27 = vld [vmem:[#allocation4 + $0x648] sm:$0xff] }
 0x12c   :  { %2113 = vmatprep.subr.bf16.mxu1 %v2820_v29  ;;  %2156 = vmatprep.subr.bf16.mxu0 %v2822_v30  ;;  %v366_v28 = vld [vmem:[#allocation4 + $0x6c8] sm:$0xff]  ;;  %v2855_v29 = vcombine.low %v381_v16, %v397_v17  ;;  %v2857_v30 = vcombine.low %v382_v18, %v398_v19  ;;  %v2632_v16 = vcombine.high %v157_v9, %v173_v10  ;;  %v383_v18 = vld [vmem:[#allocation4 + $0x750] sm:$0xff] }
 0x12d   :  { %2143 = vmatprep.mubr.bf16.mxu1 %v2937_v12  ;;  %2186 = vmatprep.mubr.bf16.mxu0 %v2937_v12  ;;  %v2826_v32 = vcombine.high %v350_v27, %v366_v28  ;;  %v399_v19 = vld [vmem:[#allocation4 + $0x7d0] sm:$0xff] }
 0x12f   :  { %2114 = vmatpush1.bf16.msra.mxu1 %v2819_v35  ;;  %2157 = vmatpush1.bf16.msra.mxu0 %v2821_v36  ;;  %v318_v35 = vld [vmem:[#allocation4 + $0x548] sm:$0xff] }
 0x130   :  { %2115 = vmatprep.subr.bf16.mxu1 %v2788_v37  ;;  %2158 = vmatprep.subr.bf16.mxu0 %v2790_v38  ;;  %v334_v36 = vld [vmem:[#allocation4 + $0x5c8] sm:$0xff]  ;;  %v2823_v37 = vcombine.low %v349_v25, %v365_v26  ;;  %v2825_v38 = vcombine.low %v350_v27, %v366_v28  ;;  %v2860_v25 = vcombine.high %v383_v18, %v399_v19  ;;  %v351_v27 = vld [vmem:[#allocation4 + $0x650] sm:$0xff] }
 0x131   :  { %v2794_v40 = vcombine.high %v318_v35, %v334_v36  ;;  %v367_v28 = vld [vmem:[#allocation4 + $0x6d0] sm:$0xff] }
 0x133   :  { %2116 = vmatpush1.bf16.msra.mxu1 %v2787_v43  ;;  %2159 = vmatpush1.bf16.msra.mxu0 %v2789_v44  ;;  %v286_v43 = vld [vmem:[#allocation4 + $0x448] sm:$0xff] }
 0x134   :  { %2117 = vmatprep.subr.bf16.mxu1 %v2756_v45  ;;  %2160 = vmatprep.subr.bf16.mxu0 %v2758_v46  ;;  %v302_v44 = vld [vmem:[#allocation4 + $0x4c8] sm:$0xff]  ;;  %v2791_v45 = vcombine.low %v317_v33, %v333_v34  ;;  %v2793_v46 = vcombine.low %v318_v35, %v334_v36  ;;  %v2828_v33 = vcombine.high %v351_v27, %v367_v28  ;;  %v319_v35 = vld [vmem:[#allocation4 + $0x550] sm:$0xff] }
 0x135   :  { %v2762_v48 = vcombine.high %v286_v43, %v302_v44  ;;  %v335_v36 = vld [vmem:[#allocation4 + $0x5d0] sm:$0xff] }
 0x137   :  { %2118 = vmatpush1.bf16.msra.mxu1 %v2755_v51  ;;  %2161 = vmatpush1.bf16.msra.mxu0 %v2757_v52  ;;  %v254_v51 = vld [vmem:[#allocation4 + $0x348] sm:$0xff] }
 0x138   :  { %2119 = vmatprep.subr.bf16.mxu1 %v2724_v53  ;;  %2162 = vmatprep.subr.bf16.mxu0 %v2726_v54  ;;  %v270_v52 = vld [vmem:[#allocation4 + $0x3c8] sm:$0xff]  ;;  %v2759_v53 = vcombine.low %v285_v41, %v301_v42  ;;  %v2761_v54 = vcombine.low %v286_v43, %v302_v44  ;;  %v2796_v41 = vcombine.high %v319_v35, %v335_v36  ;;  %v287_v43 = vld [vmem:[#allocation4 + $0x450] sm:$0xff] }
 0x139   :  { %v2730_v56 = vcombine.high %v254_v51, %v270_v52  ;;  %v303_v44 = vld [vmem:[#allocation4 + $0x4d0] sm:$0xff] }
 0x13b   :  { %2120 = vmatpush1.bf16.msra.mxu1 %v2723_v59  ;;  %2163 = vmatpush1.bf16.msra.mxu0 %v2725_v60  ;;  %v222_v59 = vld [vmem:[#allocation4 + $0x248] sm:$0xff] }
 0x13c   :  { %2121 = vmatprep.subr.bf16.mxu1 %v2692_v61  ;;  %2164 = vmatprep.subr.bf16.mxu0 %v2694_v62  ;;  %v238_v60 = vld [vmem:[#allocation4 + $0x2c8] sm:$0xff]  ;;  %v2727_v61 = vcombine.low %v253_v49, %v269_v50  ;;  %v2729_v62 = vcombine.low %v254_v51, %v270_v52  ;;  %v2764_v49 = vcombine.high %v287_v43, %v303_v44  ;;  %v255_v51 = vld [vmem:[#allocation4 + $0x350] sm:$0xff] }
 0x13d   :  { %v2698_v0 = vcombine.high %v222_v59, %v238_v60  ;;  %v271_v52 = vld [vmem:[#allocation4 + $0x3d0] sm:$0xff] }
 0x13f   :  { %2122 = vmatpush1.bf16.msra.mxu1 %v2691_v3  ;;  %2165 = vmatpush1.bf16.msra.mxu0 %v2693_v4  ;;  %v190_v3 = vld [vmem:[#allocation4 + $0x148] sm:$0xff] }
 0x140   :  { %2123 = vmatprep.subr.bf16.mxu1 %v2660_v5  ;;  %2166 = vmatprep.subr.bf16.mxu0 %v2662_v6  ;;  %v206_v4 = vld [vmem:[#allocation4 + $0x1c8] sm:$0xff]  ;;  %v2695_v5 = vcombine.low %v221_v57, %v237_v58  ;;  %v2697_v6 = vcombine.low %v222_v59, %v238_v60  ;;  %v2732_v57 = vcombine.high %v255_v51, %v271_v52  ;;  %v223_v59 = vld [vmem:[#allocation4 + $0x250] sm:$0xff] }
 0x141   :  { %v2666_v8 = vcombine.high %v190_v3, %v206_v4  ;;  %v239_v60 = vld [vmem:[#allocation4 + $0x2d0] sm:$0xff] }
 0x143   :  { %2124 = vmatpush1.bf16.msra.mxu1 %v2659_v11  ;;  %2167 = vmatpush1.bf16.msra.mxu0 %v2661_v13  ;;  %v158_v11 = vld [vmem:[#allocation4 + $0x48] sm:$0xff] }
 0x144   :  { %2125 = vmatprep.subr.bf16.mxu1 %v2628_v14  ;;  %2168 = vmatprep.subr.bf16.mxu0 %v2630_v15  ;;  %v174_v13 = vld [vmem:[#allocation4 + $0xc8] sm:$0xff]  ;;  %v2663_v14 = vcombine.low %v189_v1, %v205_v2  ;;  %v2665_v15 = vcombine.low %v190_v3, %v206_v4  ;;  %v2700_v1 = vcombine.high %v223_v59, %v239_v60  ;;  %v191_v3 = vld [vmem:[#allocation4 + $0x150] sm:$0xff] }
 0x145   :  { %v2634_v17 = vcombine.high %v158_v11, %v174_v13  ;;  %v207_v4 = vld [vmem:[#allocation4 + $0x1d0] sm:$0xff] }
 0x147   :  { %2126 = vmatpush1.bf16.msra.mxu1 %v2627_v20  ;;  %2169 = vmatpush1.bf16.msra.mxu0 %v2629_v21  ;;  %v384_v20 = vld [vmem:[#allocation4 + $0x758] sm:$0xff] }
 0x148   :  { %2197 = vmatprep.subr.bf16.mxu1 %v2856_v22  ;;  %2240 = vmatprep.subr.bf16.mxu0 %v2858_v23  ;;  %v400_v21 = vld [vmem:[#allocation4 + $0x7d8] sm:$0xff]  ;;  %v2631_v22 = vcombine.low %v157_v9, %v173_v10  ;;  %v2633_v23 = vcombine.low %v158_v11, %v174_v13  ;;  %v2668_v9 = vcombine.high %v191_v3, %v207_v4  ;;  %v159_v11 = vld [vmem:[#allocation4 + $0x50] sm:$0xff] }
 0x149   :  { %v2862_v26 = vcombine.high %v384_v20, %v400_v21  ;;  %v175_v13 = vld [vmem:[#allocation4 + $0xd0] sm:$0xff] }
 0x14a   :  { %2144 = vmatmul.mubr.bf16.vlgmr.msra.gmra.mxu1 %v2987_v24  ;;  %2187 = vmatmul.mubr.bf16.vlgmr.msra.gmra.mxu0 %v2987_v24 }
 0x14b   :  { %2198 = vmatpush1.bf16.msra.mxu1 %v2855_v29  ;;  %2241 = vmatpush1.bf16.msra.mxu0 %v2857_v30  ;;  %v352_v29 = vld [vmem:[#allocation4 + $0x658] sm:$0xff] }
 0x14c   :  { %2199 = vmatprep.subr.bf16.mxu1 %v2824_v31  ;;  %2242 = vmatprep.subr.bf16.mxu0 %v2826_v32  ;;  %v368_v30 = vld [vmem:[#allocation4 + $0x6d8] sm:$0xff]  ;;  %v2859_v31 = vcombine.low %v383_v18, %v399_v19  ;;  %v2861_v32 = vcombine.low %v384_v20, %v400_v21  ;;  %v2636_v18 = vcombine.high %v159_v11, %v175_v13  ;;  %v385_v20 = vld [vmem:[#allocation4 + $0x760] sm:$0xff] }
 0x14d   :  { %2229 = vmatprep.mubr.bf16.mxu1 %v2937_v12  ;;  %2272 = vmatprep.mubr.bf16.mxu0 %v2937_v12  ;;  %v2830_v34 = vcombine.high %v352_v29, %v368_v30  ;;  %v401_v21 = vld [vmem:[#allocation4 + $0x7e0] sm:$0xff] }
 0x14f   :  { %2200 = vmatpush1.bf16.msra.mxu1 %v2823_v37  ;;  %2243 = vmatpush1.bf16.msra.mxu0 %v2825_v38  ;;  %v320_v37 = vld [vmem:[#allocation4 + $0x558] sm:$0xff] }
 0x150   :  { %2201 = vmatprep.subr.bf16.mxu1 %v2792_v39  ;;  %2244 = vmatprep.subr.bf16.mxu0 %v2794_v40  ;;  %v336_v38 = vld [vmem:[#allocation4 + $0x5d8] sm:$0xff]  ;;  %v2827_v39 = vcombine.low %v351_v27, %v367_v28  ;;  %v2829_v40 = vcombine.low %v352_v29, %v368_v30  ;;  %v2864_v27 = vcombine.high %v385_v20, %v401_v21  ;;  %v353_v29 = vld [vmem:[#allocation4 + $0x660] sm:$0xff] }
 0x151   :  { %v2798_v42 = vcombine.high %v320_v37, %v336_v38  ;;  %v369_v30 = vld [vmem:[#allocation4 + $0x6e0] sm:$0xff] }
 0x153   :  { %2202 = vmatpush1.bf16.msra.mxu1 %v2791_v45  ;;  %2245 = vmatpush1.bf16.msra.mxu0 %v2793_v46  ;;  %v288_v45 = vld [vmem:[#allocation4 + $0x458] sm:$0xff] }
 0x154   :  { %2203 = vmatprep.subr.bf16.mxu1 %v2760_v47  ;;  %2246 = vmatprep.subr.bf16.mxu0 %v2762_v48  ;;  %v304_v46 = vld [vmem:[#allocation4 + $0x4d8] sm:$0xff]  ;;  %v2795_v47 = vcombine.low %v319_v35, %v335_v36  ;;  %v2797_v48 = vcombine.low %v320_v37, %v336_v38  ;;  %v2832_v35 = vcombine.high %v353_v29, %v369_v30  ;;  %v321_v37 = vld [vmem:[#allocation4 + $0x560] sm:$0xff] }
 0x155   :  { %v2766_v50 = vcombine.high %v288_v45, %v304_v46  ;;  %v337_v38 = vld [vmem:[#allocation4 + $0x5e0] sm:$0xff] }
 0x157   :  { %2204 = vmatpush1.bf16.msra.mxu1 %v2759_v53  ;;  %2247 = vmatpush1.bf16.msra.mxu0 %v2761_v54  ;;  %v256_v53 = vld [vmem:[#allocation4 + $0x358] sm:$0xff] }
 0x158   :  { %2205 = vmatprep.subr.bf16.mxu1 %v2728_v55  ;;  %2248 = vmatprep.subr.bf16.mxu0 %v2730_v56  ;;  %v272_v54 = vld [vmem:[#allocation4 + $0x3d8] sm:$0xff]  ;;  %v2763_v55 = vcombine.low %v287_v43, %v303_v44  ;;  %v2765_v56 = vcombine.low %v288_v45, %v304_v46  ;;  %v2800_v43 = vcombine.high %v321_v37, %v337_v38  ;;  %v289_v45 = vld [vmem:[#allocation4 + $0x460] sm:$0xff] }
 0x159   :  { %v2734_v58 = vcombine.high %v256_v53, %v272_v54  ;;  %v305_v46 = vld [vmem:[#allocation4 + $0x4e0] sm:$0xff] }
 0x15b   :  { %2206 = vmatpush1.bf16.msra.mxu1 %v2727_v61  ;;  %2249 = vmatpush1.bf16.msra.mxu0 %v2729_v62  ;;  %v224_v61 = vld [vmem:[#allocation4 + $0x258] sm:$0xff] }
 0x15c   :  { %2207 = vmatprep.subr.bf16.mxu1 %v2696_v63  ;;  %2250 = vmatprep.subr.bf16.mxu0 %v2698_v0  ;;  %v240_v62 = vld [vmem:[#allocation4 + $0x2d8] sm:$0xff]  ;;  %v2731_v63 = vcombine.low %v255_v51, %v271_v52  ;;  %v2733_v0 = vcombine.low %v256_v53, %v272_v54  ;;  %v2768_v51 = vcombine.high %v289_v45, %v305_v46  ;;  %v257_v53 = vld [vmem:[#allocation4 + $0x360] sm:$0xff] }
 0x15d   :  { %v2702_v2 = vcombine.high %v224_v61, %v240_v62  ;;  %v273_v54 = vld [vmem:[#allocation4 + $0x3e0] sm:$0xff] }
 0x15f   :  { %2208 = vmatpush1.bf16.msra.mxu1 %v2695_v5  ;;  %2251 = vmatpush1.bf16.msra.mxu0 %v2697_v6  ;;  %v192_v5 = vld [vmem:[#allocation4 + $0x158] sm:$0xff] }
 0x160   :  { %2209 = vmatprep.subr.bf16.mxu1 %v2664_v7  ;;  %2252 = vmatprep.subr.bf16.mxu0 %v2666_v8  ;;  %v208_v6 = vld [vmem:[#allocation4 + $0x1d8] sm:$0xff]  ;;  %v2699_v7 = vcombine.low %v223_v59, %v239_v60  ;;  %v2701_v8 = vcombine.low %v224_v61, %v240_v62  ;;  %v2736_v59 = vcombine.high %v257_v53, %v273_v54  ;;  %v225_v61 = vld [vmem:[#allocation4 + $0x260] sm:$0xff] }
 0x161   :  { %v2670_v10 = vcombine.high %v192_v5, %v208_v6  ;;  %v241_v62 = vld [vmem:[#allocation4 + $0x2e0] sm:$0xff] }
 0x163   :  { %2210 = vmatpush1.bf16.msra.mxu1 %v2663_v14  ;;  %2253 = vmatpush1.bf16.msra.mxu0 %v2665_v15  ;;  %v160_v14 = vld [vmem:[#allocation4 + $0x58] sm:$0xff] }
 0x164   :  { %2211 = vmatprep.subr.bf16.mxu1 %v2632_v16  ;;  %2254 = vmatprep.subr.bf16.mxu0 %v2634_v17  ;;  %v176_v15 = vld [vmem:[#allocation4 + $0xd8] sm:$0xff]  ;;  %v2667_v16 = vcombine.low %v191_v3, %v207_v4  ;;  %v2669_v17 = vcombine.low %v192_v5, %v208_v6  ;;  %v2704_v3 = vcombine.high %v225_v61, %v241_v62  ;;  %v193_v5 = vld [vmem:[#allocation4 + $0x160] sm:$0xff] }
 0x165   :  { %v2638_v19 = vcombine.high %v160_v14, %v176_v15  ;;  %v209_v6 = vld [vmem:[#allocation4 + $0x1e0] sm:$0xff] }
 0x167   :  { %2212 = vmatpush1.bf16.msra.mxu1 %v2631_v22  ;;  %2255 = vmatpush1.bf16.msra.mxu0 %v2633_v23  ;;  %v386_v22 = vld [vmem:[#allocation4 + $0x768] sm:$0xff] }
 0x168   :  { %2283 = vmatprep.subr.bf16.mxu1 %v2860_v25  ;;  %2326 = vmatprep.subr.bf16.mxu0 %v2862_v26  ;;  %v402_v23 = vld [vmem:[#allocation4 + $0x7e8] sm:$0xff]  ;;  %v2635_v25 = vcombine.low %v159_v11, %v175_v13  ;;  %v2637_v26 = vcombine.low %v160_v14, %v176_v15  ;;  %v413_v11 = vlaneseq  ;;  %v2672_v13 = vcombine.high %v193_v5, %v209_v6  ;;  %v161_v15 = vld [vmem:[#allocation4 + $0x60] sm:$0xff] }
 0x169   :  { %v2866_v28 = vcombine.high %v386_v22, %v402_v23 }
 0x16a   :  { %2230 = vmatmul.mubr.bf16.vlgmr.msra.gmra.mxu1 %v2987_v24  ;;  %2273 = vmatmul.mubr.bf16.vlgmr.msra.gmra.mxu0 %v2987_v24 }
 0x16b   :  { %2284 = vmatpush1.bf16.msra.mxu1 %v2859_v31  ;;  %2327 = vmatpush1.bf16.msra.mxu0 %v2861_v32  ;;  %v354_v31 = vld [vmem:[#allocation4 + $0x668] sm:$0xff] }
 0x16c   :  { %2285 = vmatprep.subr.bf16.mxu1 %v2828_v33  ;;  %2328 = vmatprep.subr.bf16.mxu0 %v2830_v34  ;;  %v370_v32 = vld [vmem:[#allocation4 + $0x6e8] sm:$0xff]  ;;  %v2863_v33 = vcombine.low %v385_v20, %v401_v21  ;;  %v2865_v34 = vcombine.low %v386_v22, %v402_v23  ;;  %v3013_v21 = vshrl.u32 %v413_v11, 7 }
 0x16d   :  { %2315 = vmatprep.mubr.bf16.mxu1 %v2937_v12  ;;  %2358 = vmatprep.mubr.bf16.mxu0 %v2937_v12  ;;  %v2834_v36 = vcombine.high %v354_v31, %v370_v32 }
 0x16f   :  { %2286 = vmatpush1.bf16.msra.mxu1 %v2827_v39  ;;  %2329 = vmatpush1.bf16.msra.mxu0 %v2829_v40  ;;  %v322_v39 = vld [vmem:[#allocation4 + $0x568] sm:$0xff] }
 0x170   :  { %2287 = vmatprep.subr.bf16.mxu1 %v2796_v41  ;;  %2330 = vmatprep.subr.bf16.mxu0 %v2798_v42  ;;  %v338_v40 = vld [vmem:[#allocation4 + $0x5e8] sm:$0xff]  ;;  %v2831_v41 = vcombine.low %v353_v29, %v369_v30  ;;  %v2833_v42 = vcombine.low %v354_v31, %v370_v32  ;;  %v3016_v31 = vsub.s32 0, %v3013_v21  ;;  %v3019_v32 = vsub.s32 2, %v3013_v21 }
 0x171   :  { %v2802_v44 = vcombine.high %v322_v39, %v338_v40 }
 0x173   :  { %2288 = vmatpush1.bf16.msra.mxu1 %v2795_v47  ;;  %2331 = vmatpush1.bf16.msra.mxu0 %v2797_v48  ;;  %v290_v47 = vld [vmem:[#allocation4 + $0x468] sm:$0xff] }
 0x174   :  { %2289 = vmatprep.subr.bf16.mxu1 %v2764_v49  ;;  %2332 = vmatprep.subr.bf16.mxu0 %v2766_v50  ;;  %v306_v48 = vld [vmem:[#allocation4 + $0x4e8] sm:$0xff]  ;;  %v2799_v49 = vcombine.low %v321_v37, %v337_v38  ;;  %v2801_v50 = vcombine.low %v322_v39, %v338_v40  ;;  %v3027_v37 = vsub.s32 1, %v3013_v21  ;;  %v3030_v38 = vsub.s32 3, %v3013_v21  ;;  %v371_v39 = vld [vmem:[#allocation4 + $0x6f0] sm:$0xff]  ;;  %v356_v40 = vld [vmem:[#allocation4 + $0x678] sm:$0xff] }
 0x175   :  { %v2770_v52 = vcombine.high %v290_v47, %v306_v48 }
 0x177   :  { %2290 = vmatpush1.bf16.msra.mxu1 %v2763_v55  ;;  %2333 = vmatpush1.bf16.msra.mxu0 %v2765_v56  ;;  %v258_v55 = vld [vmem:[#allocation4 + $0x368] sm:$0xff] }
 0x178   :  { %2291 = vmatprep.subr.bf16.mxu1 %v2732_v57  ;;  %2334 = vmatprep.subr.bf16.mxu0 %v2734_v58  ;;  %v274_v56 = vld [vmem:[#allocation4 + $0x3e8] sm:$0xff]  ;;  %v2767_v57 = vcombine.low %v289_v45, %v305_v46  ;;  %v2769_v58 = vcombine.low %v290_v47, %v306_v48  ;;  %v323_v48 = vld [vmem:[#allocation4 + $0x570] sm:$0xff] }
 0x179   :  { %v2738_v60 = vcombine.high %v258_v55, %v274_v56 }
 0x17b   :  { %2292 = vmatpush1.bf16.msra.mxu1 %v2731_v63  ;;  %2335 = vmatpush1.bf16.msra.mxu0 %v2733_v0  ;;  %v226_v63 = vld [vmem:[#allocation4 + $0x268] sm:$0xff] }
 0x17c   :  { %2293 = vmatprep.subr.bf16.mxu1 %v2700_v1  ;;  %2336 = vmatprep.subr.bf16.mxu0 %v2702_v2  ;;  %v242_v0 = vld [vmem:[#allocation4 + $0x2e8] sm:$0xff]  ;;  %v2735_v1 = vcombine.low %v257_v53, %v273_v54  ;;  %v2737_v2 = vcombine.low %v258_v55, %v274_v56  ;;  %v340_v53 = vld [vmem:[#allocation4 + $0x5f8] sm:$0xff] }
 0x17d   :  { %v2706_v4 = vcombine.high %v226_v63, %v242_v0 }
 0x17f   :  { %2294 = vmatpush1.bf16.msra.mxu1 %v2699_v7  ;;  %2337 = vmatpush1.bf16.msra.mxu0 %v2701_v8  ;;  %v194_v7 = vld [vmem:[#allocation4 + $0x168] sm:$0xff] }
 0x180   :  { %2295 = vmatprep.subr.bf16.mxu1 %v2668_v9  ;;  %2338 = vmatprep.subr.bf16.mxu0 %v2670_v10  ;;  %v210_v8 = vld [vmem:[#allocation4 + $0x1e8] sm:$0xff]  ;;  %v2703_v9 = vcombine.low %v225_v61, %v241_v62  ;;  %v2705_v10 = vcombine.low %v226_v63, %v242_v0  ;;  %v291_v0 = vld [vmem:[#allocation4 + $0x470] sm:$0xff] }
 0x181   :  { %v2674_v14 = vcombine.high %v194_v7, %v210_v8  ;;  %v2673_v20 = vcombine.low %v194_v7, %v210_v8 }
 0x183   :  { %2296 = vmatpush1.bf16.msra.mxu1 %v2667_v16  ;;  %2339 = vmatpush1.bf16.msra.mxu0 %v2669_v17  ;;  %v177_v16 = vld [vmem:[#allocation4 + $0xe0] sm:$0xff]  ;;  %v162_v17 = vld [vmem:[#allocation4 + $0x68] sm:$0xff] }
 0x184   :  { %2297 = vmatprep.subr.bf16.mxu1 %v2636_v18  ;;  %2340 = vmatprep.subr.bf16.mxu0 %v2638_v19  ;;  %v178_v18 = vld [vmem:[#allocation4 + $0xe8] sm:$0xff]  ;;  %v2671_v19 = vcombine.low %v193_v5, %v209_v6  ;;  %v2640_v22 = vcombine.high %v161_v15, %v177_v16  ;;  %v2639_v29 = vcombine.low %v161_v15, %v177_v16  ;;  %v308_v5 = vld [vmem:[#allocation4 + $0x4f8] sm:$0xff]  ;;  %v259_v16 = vld [vmem:[#allocation4 + $0x370] sm:$0xff] }
 0x185   :  { %v2642_v23 = vcombine.high %v162_v17, %v178_v18  ;;  %v2641_v30 = vcombine.low %v162_v17, %v178_v18 }
 0x187   :  { %2298 = vmatpush1.bf16.msra.mxu1 %v2635_v25  ;;  %2341 = vmatpush1.bf16.msra.mxu0 %v2637_v26  ;;  %v387_v25 = vld [vmem:[#allocation4 + $0x770] sm:$0xff] }
 0x188   :  { %2369 = vmatprep.subr.bf16.mxu1 %v2864_v27  ;;  %2412 = vmatprep.subr.bf16.mxu0 %v2866_v28  ;;  %v403_v26 = vld [vmem:[#allocation4 + $0x7f0] sm:$0xff]  ;;  %v388_v27 = vld [vmem:[#allocation4 + $0x778] sm:$0xff] }
 0x189   :  { %v404_v28 = vld [vmem:[#allocation4 + $0x7f8] sm:$0xff] }
 0x18a   :  { %2316 = vmatmul.mubr.bf16.vlgmr.msra.gmra.mxu1 %v2987_v24  ;;  %2359 = vmatmul.mubr.bf16.vlgmr.msra.gmra.mxu0 %v2987_v24 }
 0x18b   :  { %2370 = vmatpush1.bf16.msra.mxu1 %v2863_v33  ;;  %2413 = vmatpush1.bf16.msra.mxu0 %v2865_v34  ;;  %v2868_v33 = vcombine.high %v387_v25, %v403_v26  ;;  %v2870_v34 = vcombine.high %v388_v27, %v404_v28 }
 0x18c   :  { %2371 = vmatprep.subr.bf16.mxu1 %v2832_v35  ;;  %2414 = vmatprep.subr.bf16.mxu0 %v2834_v36  ;;  %v3024_v35 = vld [vmem:[%s3295_s4] sm:$0xff] }
 0x18d   :  { %2401 = vmatprep.mubr.bf16.mxu1 %v2937_v12  ;;  %2444 = vmatprep.mubr.bf16.mxu0 %v2937_v12  ;;  %v355_v36 = vld [vmem:[#allocation4 + $0x670] sm:$0xff]  ;;  %v424_v45 = vrot.slane %v3024_v35, %v3019_v32 }
 0x18e   :  { %v2836_v46 = vcombine.high %v355_v36, %v371_v39  ;;  %v2835_v56 = vcombine.low %v355_v36, %v371_v39 }
 0x18f   :  { %2372 = vmatpush1.bf16.msra.mxu1 %v2831_v41  ;;  %2415 = vmatpush1.bf16.msra.mxu0 %v2833_v42  ;;  %v372_v41 = vld [vmem:[#allocation4 + $0x6f8] sm:$0xff]  ;;  %v2867_v42 = vcombine.low %v387_v25, %v403_v26 }
 0x190   :  { %2373 = vmatprep.subr.bf16.mxu1 %v2800_v43  ;;  %2416 = vmatprep.subr.bf16.mxu0 %v2802_v44  ;;  %v2869_v43 = vcombine.low %v388_v27, %v404_v28  ;;  %v416_v44 = vrot.slane %v3024_v35, %v3016_v31  ;;  %v2838_v47 = vcombine.high %v356_v40, %v372_v41  ;;  %v227_v28 = vld [vmem:[#allocation4 + $0x270] sm:$0xff] }
 0x193   :  { %2374 = vmatpush1.bf16.msra.mxu1 %v2799_v49  ;;  %2417 = vmatpush1.bf16.msra.mxu0 %v2801_v50  ;;  %v420_v49 = vrot.slane %v3024_v35, %v3027_v37  ;;  %v428_v50 = vrot.slane %v3024_v35, %v3030_v38 }
 0x194   :  { %2375 = vmatprep.subr.bf16.mxu1 %v2768_v51  ;;  %2418 = vmatprep.subr.bf16.mxu0 %v2770_v52  ;;  %v339_v51 = vld [vmem:[#allocation4 + $0x5f0] sm:$0xff]  ;;  %v324_v52 = vld [vmem:[#allocation4 + $0x578] sm:$0xff] }
 0x195   :  { %v2804_v62 = vcombine.high %v323_v48, %v339_v51  ;;  %v2806_v63 = vcombine.high %v324_v52, %v340_v53  ;;  %v2803_v8 = vcombine.low %v323_v48, %v339_v51  ;;  %v2805_v11 = vcombine.low %v324_v52, %v340_v53  ;;  %v164_v51 = vld [vmem:[#allocation4 + $0x78] sm:$0xff] }
 0x196   :  { %v180_v52 = vld [vmem:[#allocation4 + $0xf8] sm:$0xff] }
 0x197   :  { %2376 = vmatpush1.bf16.msra.mxu1 %v2767_v57  ;;  %2419 = vmatpush1.bf16.msra.mxu0 %v2769_v58 }
 0x198   :  { %2377 = vmatprep.subr.bf16.mxu1 %v2736_v59  ;;  %2420 = vmatprep.subr.bf16.mxu0 %v2738_v60  ;;  %v2837_v59 = vcombine.low %v356_v40, %v372_v41  ;;  %v195_v41 = vld [vmem:[#allocation4 + $0x170] sm:$0xff] }
 0x19b   :  { %2378 = vmatpush1.bf16.msra.mxu1 %v2735_v1  ;;  %2421 = vmatpush1.bf16.msra.mxu0 %v2737_v2 }
 0x19c   :  { %2379 = vmatprep.subr.bf16.mxu1 %v2704_v3  ;;  %2422 = vmatprep.subr.bf16.mxu0 %v2706_v4  ;;  %v307_v3 = vld [vmem:[#allocation4 + $0x4f0] sm:$0xff]  ;;  %v292_v4 = vld [vmem:[#allocation4 + $0x478] sm:$0xff] }
 0x19d   :  { %v2774_v15 = vcombine.high %v292_v4, %v308_v5  ;;  %v2773_v25 = vcombine.low %v292_v4, %v308_v5 }
 0x19f   :  { %2380 = vmatpush1.bf16.msra.mxu1 %v2703_v9  ;;  %2423 = vmatpush1.bf16.msra.mxu0 %v2705_v10 }
 0x1a0   :  { %2381 = vmatprep.subr.bf16.mxu1 %v2672_v13  ;;  %2424 = vmatprep.subr.bf16.mxu0 %v2674_v14 }
 0x1a3   :  { %2382 = vmatpush1.bf16.msra.mxu1 %v2671_v19  ;;  %2425 = vmatpush1.bf16.msra.mxu0 %v2673_v20  ;;  %v275_v19 = vld [vmem:[#allocation4 + $0x3f0] sm:$0xff]  ;;  %v260_v20 = vld [vmem:[#allocation4 + $0x378] sm:$0xff] }
 0x1a4   :  { %2383 = vmatprep.subr.bf16.mxu1 %v2640_v22  ;;  %2426 = vmatprep.subr.bf16.mxu0 %v2642_v23  ;;  %v276_v22 = vld [vmem:[#allocation4 + $0x3f8] sm:$0xff]  ;;  %v2771_v23 = vcombine.low %v291_v0, %v307_v3  ;;  %v2740_v26 = vcombine.high %v259_v16, %v275_v19 }
 0x1a5   :  { %v2742_v27 = vcombine.high %v260_v20, %v276_v22  ;;  %v2741_v36 = vcombine.low %v260_v20, %v276_v22 }
 0x1a7   :  { %2384 = vmatpush1.bf16.msra.mxu1 %v2639_v29  ;;  %2427 = vmatpush1.bf16.msra.mxu0 %v2641_v30  ;;  %v243_v29 = vld [vmem:[#allocation4 + $0x2f0] sm:$0xff]  ;;  %v228_v30 = vld [vmem:[#allocation4 + $0x278] sm:$0xff] }
 0x1a8   :  { %2455 = vmatprep.subr.bf16.mxu1 %v2868_v33  ;;  %2498 = vmatprep.subr.bf16.mxu0 %v2870_v34  ;;  %v244_v33 = vld [vmem:[#allocation4 + $0x2f8] sm:$0xff]  ;;  %v2739_v34 = vcombine.low %v259_v16, %v275_v19  ;;  %v2708_v39 = vcombine.high %v227_v28, %v243_v29 }
 0x1a9   :  { %v2710_v40 = vcombine.high %v228_v30, %v244_v33  ;;  %v406_v16 = vld [vmem:[%s3295_s4 + $0x8] sm:$0xff] }
 0x1aa   :  { %2402 = vmatmul.mubr.bf16.vlgmr.msra.gmra.mxu1 %v2987_v24  ;;  %2445 = vmatmul.mubr.bf16.vlgmr.msra.gmra.mxu0 %v2987_v24  ;;  %v1887_v54 = vpop.f32.mrf.mxu1  ;;  %v1930_v55 = vpop.f32.mrf.mxu0  ;;  %v452_v19 = vrot.slane %v406_v16, %v3027_v37  ;;  %v460_v20 = vrot.slane %v406_v16, %v3030_v38 }
 0x1ab   :  { %v1888_v57 = vadd.f32 %v1887_v54, %v416_v44  ;;  %v1931_v58 = vadd.f32 %v1930_v55, %v424_v45  ;;  %2456 = vmatpush1.bf16.msra.mxu1 %v2867_v42  ;;  %2499 = vmatpush1.bf16.msra.mxu0 %v2869_v43  ;;  %v211_v42 = vld [vmem:[#allocation4 + $0x1f0] sm:$0xff]  ;;  %v196_v43 = vld [vmem:[#allocation4 + $0x178] sm:$0xff] }
 0x1ac   :  { %v1889_v60 = vpop.f32.mrf.mxu1  ;;  %v1932_v61 = vpop.f32.mrf.mxu0  ;;  %2457 = vmatprep.subr.bf16.mxu1 %v2836_v46  ;;  %2500 = vmatprep.subr.bf16.mxu0 %v2838_v47  ;;  %v2709_v46 = vcombine.low %v228_v30, %v244_v33  ;;  %v2676_v47 = vcombine.high %v195_v41, %v211_v42  ;;  %v2675_v53 = vcombine.low %v195_v41, %v211_v42 }
 0x1ad   :  { %2541 = vst [vmem:[%s3296_s5] sm:$0xff] %v1888_v57  ;;  %2543 = vst [vmem:[%s3296_s5 + $0x10] sm:$0xff] %v1931_v58  ;;  %v1890_v1 = vadd.f32 %v1889_v60, %v420_v49  ;;  %v1933_v2 = vadd.f32 %v1932_v61, %v428_v50  ;;  %2487 = vmatprep.mubr.bf16.mxu1 %v2937_v12  ;;  %2530 = vmatprep.mubr.bf16.mxu0 %v2937_v12  ;;  %v3072_v60 = vsub.s32 6, %v3013_v21 }
 0x1ae   :  { %v1891_v6 = vpop.f32.mrf.mxu1  ;;  %v1934_v7 = vpop.f32.mrf.mxu0  ;;  %v2772_v12 = vcombine.high %v291_v0, %v307_v3  ;;  %v2645_v58 = vcombine.low %v164_v51, %v180_v52  ;;  %v3075_v61 = vsub.s32 5, %v3013_v21 }
 0x1af   :  { %2542 = vst [vmem:[%s3296_s5 + $0x8] sm:$0xff] %v1890_v1  ;;  %2544 = vst [vmem:[%s3296_s5 + $0x18] sm:$0xff] %v1933_v2  ;;  %v1892_v9 = vadd.f32 %v1891_v6, %v416_v44  ;;  %v1935_v10 = vadd.f32 %v1934_v7, %v424_v45  ;;  %2458 = vmatpush1.bf16.msra.mxu1 %v2835_v56  ;;  %2501 = vmatpush1.bf16.msra.mxu0 %v2837_v59  ;;  %v212_v44 = vld [vmem:[#allocation4 + $0x1f8] sm:$0xff]  ;;  %v3069_v59 = vsub.s32 4, %v3013_v21 }
 0x1b0   :  { %v1893_v13 = vpop.f32.mrf.mxu1  ;;  %v1936_v14 = vpop.f32.mrf.mxu0  ;;  %2459 = vmatprep.subr.bf16.mxu1 %v2804_v62  ;;  %2502 = vmatprep.subr.bf16.mxu0 %v2806_v63  ;;  %v2707_v45 = vcombine.low %v227_v28, %v243_v29  ;;  %v2678_v48 = vcombine.high %v196_v43, %v212_v44  ;;  %v2677_v54 = vcombine.low %v196_v43, %v212_v44  ;;  %v3078_v62 = vsub.s32 7, %v3013_v21 }
 0x1b1   :  { %2573 = vst [vmem:[%s3296_s5 + $0x100] sm:$0xf] %v1892_v9  ;;  %2575 = vst [vmem:[%s3296_s5 + $0x110] sm:$0xf] %v1935_v10  ;;  %v1894_v17 = vadd.f32 %v1893_v13, %v420_v49  ;;  %v1937_v18 = vadd.f32 %v1936_v14, %v428_v50  ;;  %v163_v49 = vld [vmem:[#allocation4 + $0x70] sm:$0xff]  ;;  %v2646_v56 = vcombine.high %v164_v51, %v180_v52 }
 0x1b2   :  { %v179_v50 = vld [vmem:[#allocation4 + $0xf0] sm:$0xff]  ;;  %v432_v63 = vrot.slane %v3024_v35, %v3069_v59  ;;  %v440_v0 = vrot.slane %v3024_v35, %v3072_v60  ;;  %v436_v1 = vrot.slane %v3024_v35, %v3075_v61  ;;  %v444_v2 = vrot.slane %v3024_v35, %v3078_v62 }
 0x1b3   :  { %2574 = vst [vmem:[%s3296_s5 + $0x108] sm:$0xf] %v1894_v17  ;;  %2576 = vst [vmem:[%s3296_s5 + $0x118] sm:$0xf] %v1937_v18  ;;  %2460 = vmatpush1.bf16.msra.mxu1 %v2803_v8  ;;  %2503 = vmatpush1.bf16.msra.mxu0 %v2805_v11  ;;  %v2644_v55 = vcombine.high %v163_v49, %v179_v50  ;;  %v2643_v57 = vcombine.low %v163_v49, %v179_v50 }
 0x1b4   :  { %2461 = vmatprep.subr.bf16.mxu1 %v2772_v12  ;;  %2504 = vmatprep.subr.bf16.mxu0 %v2774_v15  ;;  %v448_v17 = vrot.slane %v406_v16, %v3016_v31  ;;  %v456_v18 = vrot.slane %v406_v16, %v3019_v32  ;;  %v464_v44 = vrot.slane %v406_v16, %v3069_v59 }
 0x1b7   :  { %2462 = vmatpush1.bf16.msra.mxu1 %v2771_v23  ;;  %2505 = vmatpush1.bf16.msra.mxu0 %v2773_v25 }
 0x1b8   :  { %2463 = vmatprep.subr.bf16.mxu1 %v2740_v26  ;;  %2506 = vmatprep.subr.bf16.mxu0 %v2742_v27 }
 0x1bb   :  { %2464 = vmatpush1.bf16.msra.mxu1 %v2739_v34  ;;  %2507 = vmatpush1.bf16.msra.mxu0 %v2741_v36 }
 0x1bc   :  { %2465 = vmatprep.subr.bf16.mxu1 %v2708_v39  ;;  %2508 = vmatprep.subr.bf16.mxu0 %v2710_v40 }
 0x1bf   :  { %2466 = vmatpush1.bf16.msra.mxu1 %v2707_v45  ;;  %2509 = vmatpush1.bf16.msra.mxu0 %v2709_v46  ;;  %v472_v45 = vrot.slane %v406_v16, %v3072_v60  ;;  %v468_v46 = vrot.slane %v406_v16, %v3075_v61 }
 0x1c0   :  { %2467 = vmatprep.subr.bf16.mxu1 %v2676_v47  ;;  %2510 = vmatprep.subr.bf16.mxu0 %v2678_v48  ;;  %v476_v47 = vrot.slane %v406_v16, %v3078_v62 }
 0x1c3   :  { %2468 = vmatpush1.bf16.msra.mxu1 %v2675_v53  ;;  %2511 = vmatpush1.bf16.msra.mxu0 %v2677_v54 }
 0x1c4   :  { %2469 = vmatprep.subr.bf16.mxu1 %v2644_v55  ;;  %2512 = vmatprep.subr.bf16.mxu0 %v2646_v56 }
 0x1c7   :  { %2470 = vmatpush1.bf16.msra.mxu1 %v2643_v57  ;;  %2513 = vmatpush1.bf16.msra.mxu0 %v2645_v58 }
 0x1ca   :  { %v1973_v3 = vpop.f32.mrf.mxu1  ;;  %v2016_v4 = vpop.f32.mrf.mxu0  ;;  %2488 = vmatmul.mubr.bf16.vlgmr.msra.gmra.mxu1 %v2987_v24  ;;  %2531 = vmatmul.mubr.bf16.vlgmr.msra.gmra.mxu0 %v2987_v24 }
 0x1cb   :  { %v1974_v21 = vadd.f32 %v1973_v3, %v432_v63  ;;  %v2017_v5 = vadd.f32 %v2016_v4, %v440_v0  ;;  %v407_v4 = vld [vmem:[%s3295_s4 + $0x10] sm:$0xff] }
 0x1cc   :  { %v1975_v6 = vpop.f32.mrf.mxu1  ;;  %v2018_v7 = vpop.f32.mrf.mxu0 }
 0x1cd   :  { %2545 = vst [vmem:[%s3296_s5 + $0x20] sm:$0xff] %v1974_v21  ;;  %2547 = vst [vmem:[%s3296_s5 + $0x30] sm:$0xff] %v2017_v5  ;;  %v1976_v8 = vadd.f32 %v1975_v6, %v436_v1  ;;  %v2019_v35 = vadd.f32 %v2018_v7, %v444_v2  ;;  %v480_v21 = vrot.slane %v407_v4, %v3016_v31 }
 0x1ce   :  { %v1977_v9 = vpop.f32.mrf.mxu1  ;;  %v2020_v10 = vpop.f32.mrf.mxu0  ;;  %v488_v5 = vrot.slane %v407_v4, %v3019_v32  ;;  %v484_v6 = vrot.slane %v407_v4, %v3027_v37  ;;  %v492_v7 = vrot.slane %v407_v4, %v3030_v38 }
 0x1cf   :  { %2546 = vst [vmem:[%s3296_s5 + $0x28] sm:$0xff] %v1976_v8  ;;  %2548 = vst [vmem:[%s3296_s5 + $0x38] sm:$0xff] %v2019_v35  ;;  %v1978_v24 = vadd.f32 %v1977_v9, %v432_v63  ;;  %v2021_v11 = vadd.f32 %v2020_v10, %v440_v0 }
 0x1d0   :  { %v1979_v13 = vpop.f32.mrf.mxu1  ;;  %v2022_v14 = vpop.f32.mrf.mxu0 }
 0x1d1   :  { %2577 = vst [vmem:[%s3296_s5 + $0x120] sm:$0xf] %v1978_v24  ;;  %2579 = vst [vmem:[%s3296_s5 + $0x130] sm:$0xf] %v2021_v11  ;;  %v1980_v12 = vadd.f32 %v1979_v13, %v436_v1  ;;  %v2023_v15 = vadd.f32 %v2022_v14, %v444_v2 }
 0x1d3   :  { %2578 = vst [vmem:[%s3296_s5 + $0x128] sm:$0xf] %v1980_v12  ;;  %2580 = vst [vmem:[%s3296_s5 + $0x138] sm:$0xf] %v2023_v15 }
 0x1ea   :  { %v2059_v22 = vpop.f32.mrf.mxu1  ;;  %v2102_v23 = vpop.f32.mrf.mxu0 }
 0x1eb   :  { %v2060_v25 = vadd.f32 %v2059_v22, %v448_v17  ;;  %v2103_v26 = vadd.f32 %v2102_v23, %v456_v18  ;;  %v496_v23 = vrot.slane %v407_v4, %v3069_v59 }
 0x1ec   :  { %v2061_v27 = vpop.f32.mrf.mxu1  ;;  %v2104_v28 = vpop.f32.mrf.mxu0 }
 0x1ed   :  { %2549 = vst [vmem:[%s3296_s5 + $0x40] sm:$0xff] %v2060_v25  ;;  %2551 = vst [vmem:[%s3296_s5 + $0x50] sm:$0xff] %v2103_v26  ;;  %v2062_v29 = vadd.f32 %v2061_v27, %v452_v19  ;;  %v2105_v30 = vadd.f32 %v2104_v28, %v460_v20  ;;  %v504_v25 = vrot.slane %v407_v4, %v3072_v60 }
 0x1ee   :  { %v2063_v33 = vpop.f32.mrf.mxu1  ;;  %v2106_v34 = vpop.f32.mrf.mxu0  ;;  %v500_v26 = vrot.slane %v407_v4, %v3075_v61  ;;  %v508_v27 = vrot.slane %v407_v4, %v3078_v62 }
 0x1ef   :  { %2550 = vst [vmem:[%s3296_s5 + $0x48] sm:$0xff] %v2062_v29  ;;  %2552 = vst [vmem:[%s3296_s5 + $0x58] sm:$0xff] %v2105_v30  ;;  %v2064_v36 = vadd.f32 %v2063_v33, %v448_v17  ;;  %v2107_v39 = vadd.f32 %v2106_v34, %v456_v18 }
 0x1f0   :  { %v2065_v40 = vpop.f32.mrf.mxu1  ;;  %v2108_v41 = vpop.f32.mrf.mxu0 }
 0x1f1   :  { %2581 = vst [vmem:[%s3296_s5 + $0x140] sm:$0xf] %v2064_v36  ;;  %2583 = vst [vmem:[%s3296_s5 + $0x150] sm:$0xf] %v2107_v39  ;;  %v2066_v42 = vadd.f32 %v2065_v40, %v452_v19  ;;  %v2109_v43 = vadd.f32 %v2108_v41, %v460_v20 }
 0x1f3   :  { %2582 = vst [vmem:[%s3296_s5 + $0x148] sm:$0xf] %v2066_v42  ;;  %2584 = vst [vmem:[%s3296_s5 + $0x158] sm:$0xf] %v2109_v43 }
 0x20a   :  { %v2145_v48 = vpop.f32.mrf.mxu1  ;;  %v2188_v49 = vpop.f32.mrf.mxu0 }
 0x20b   :  { %v2146_v50 = vadd.f32 %v2145_v48, %v464_v44  ;;  %v2189_v51 = vadd.f32 %v2188_v49, %v472_v45  ;;  %v408_v49 = vld [vmem:[%s3295_s4 + $0x18] sm:$0xff] }
 0x20c   :  { %v2147_v52 = vpop.f32.mrf.mxu1  ;;  %v2190_v53 = vpop.f32.mrf.mxu0 }
 0x20d   :  { %2553 = vst [vmem:[%s3296_s5 + $0x60] sm:$0xff] %v2146_v50  ;;  %2555 = vst [vmem:[%s3296_s5 + $0x70] sm:$0xff] %v2189_v51  ;;  %v2148_v54 = vadd.f32 %v2147_v52, %v468_v46  ;;  %v2191_v55 = vadd.f32 %v2190_v53, %v476_v47  ;;  %v512_v50 = vrot.slane %v408_v49, %v3016_v31 }
 0x20e   :  { %v2149_v56 = vpop.f32.mrf.mxu1  ;;  %v2192_v57 = vpop.f32.mrf.mxu0  ;;  %v520_v51 = vrot.slane %v408_v49, %v3019_v32  ;;  %v516_v52 = vrot.slane %v408_v49, %v3027_v37  ;;  %v524_v53 = vrot.slane %v408_v49, %v3030_v38 }
 0x20f   :  { %2554 = vst [vmem:[%s3296_s5 + $0x68] sm:$0xff] %v2148_v54  ;;  %2556 = vst [vmem:[%s3296_s5 + $0x78] sm:$0xff] %v2191_v55  ;;  %v2150_v58 = vadd.f32 %v2149_v56, %v464_v44  ;;  %v2193_v63 = vadd.f32 %v2192_v57, %v472_v45 }
 0x210   :  { %v2151_v0 = vpop.f32.mrf.mxu1  ;;  %v2194_v1 = vpop.f32.mrf.mxu0 }
 0x211   :  { %2585 = vst [vmem:[%s3296_s5 + $0x160] sm:$0xf] %v2150_v58  ;;  %2587 = vst [vmem:[%s3296_s5 + $0x170] sm:$0xf] %v2193_v63  ;;  %v2152_v2 = vadd.f32 %v2151_v0, %v468_v46  ;;  %v2195_v3 = vadd.f32 %v2194_v1, %v476_v47 }
 0x213   :  { %2586 = vst [vmem:[%s3296_s5 + $0x168] sm:$0xf] %v2152_v2  ;;  %2588 = vst [vmem:[%s3296_s5 + $0x178] sm:$0xf] %v2195_v3 }
 0x22a   :  { %v2231_v8 = vpop.f32.mrf.mxu1  ;;  %v2274_v35 = vpop.f32.mrf.mxu0 }
 0x22b   :  { %v2232_v9 = vadd.f32 %v2231_v8, %v480_v21  ;;  %v2275_v10 = vadd.f32 %v2274_v35, %v488_v5  ;;  %v540_v8 = vrot.slane %v408_v49, %v3078_v62 }
 0x22c   :  { %v2233_v24 = vpop.f32.mrf.mxu1  ;;  %v2276_v11 = vpop.f32.mrf.mxu0 }
 0x22d   :  { %2557 = vst [vmem:[%s3296_s5 + $0x80] sm:$0xff] %v2232_v9  ;;  %2559 = vst [vmem:[%s3296_s5 + $0x90] sm:$0xff] %v2275_v10  ;;  %v2234_v13 = vadd.f32 %v2233_v24, %v484_v6  ;;  %v2277_v14 = vadd.f32 %v2276_v11, %v492_v7 }
 0x22e   :  { %v2235_v12 = vpop.f32.mrf.mxu1  ;;  %v2278_v15 = vpop.f32.mrf.mxu0 }
 0x22f   :  { %2558 = vst [vmem:[%s3296_s5 + $0x88] sm:$0xff] %v2234_v13  ;;  %2560 = vst [vmem:[%s3296_s5 + $0x98] sm:$0xff] %v2277_v14  ;;  %v2236_v16 = vadd.f32 %v2235_v12, %v480_v21  ;;  %v2279_v17 = vadd.f32 %v2278_v15, %v488_v5  ;;  %v528_v5 = vrot.slane %v408_v49, %v3069_v59 }
 0x230   :  { %v2237_v18 = vpop.f32.mrf.mxu1  ;;  %v2280_v19 = vpop.f32.mrf.mxu0 }
 0x231   :  { %2589 = vst [vmem:[%s3296_s5 + $0x180] sm:$0xf] %v2236_v16  ;;  %2591 = vst [vmem:[%s3296_s5 + $0x190] sm:$0xf] %v2279_v17  ;;  %v2238_v20 = vadd.f32 %v2237_v18, %v484_v6  ;;  %v2281_v22 = vadd.f32 %v2280_v19, %v492_v7  ;;  %v536_v6 = vrot.slane %v408_v49, %v3072_v60 }
 0x232   :  { %v532_v7 = vrot.slane %v408_v49, %v3075_v61 }
 0x233   :  { %2590 = vst [vmem:[%s3296_s5 + $0x188] sm:$0xf] %v2238_v20  ;;  %2592 = vst [vmem:[%s3296_s5 + $0x198] sm:$0xf] %v2281_v22 }
 0x24a   :  { %v2317_v28 = vpop.f32.mrf.mxu1  ;;  %v2360_v29 = vpop.f32.mrf.mxu0 }
 0x24b   :  { %v2318_v30 = vadd.f32 %v2317_v28, %v496_v23  ;;  %v2361_v33 = vadd.f32 %v2360_v29, %v504_v25 }
 0x24c   :  { %v2319_v34 = vpop.f32.mrf.mxu1  ;;  %v2362_v36 = vpop.f32.mrf.mxu0 }
 0x24d   :  { %2561 = vst [vmem:[%s3296_s5 + $0xa0] sm:$0xff] %v2318_v30  ;;  %2563 = vst [vmem:[%s3296_s5 + $0xb0] sm:$0xff] %v2361_v33  ;;  %v2320_v39 = vadd.f32 %v2319_v34, %v500_v26  ;;  %v2363_v40 = vadd.f32 %v2362_v36, %v508_v27 }
 0x24e   :  { %v2321_v41 = vpop.f32.mrf.mxu1  ;;  %v2364_v42 = vpop.f32.mrf.mxu0 }
 0x24f   :  { %2562 = vst [vmem:[%s3296_s5 + $0xa8] sm:$0xff] %v2320_v39  ;;  %2564 = vst [vmem:[%s3296_s5 + $0xb8] sm:$0xff] %v2363_v40  ;;  %v2322_v43 = vadd.f32 %v2321_v41, %v496_v23  ;;  %v2365_v44 = vadd.f32 %v2364_v42, %v504_v25 }
 0x250   :  { %v2323_v45 = vpop.f32.mrf.mxu1  ;;  %v2366_v46 = vpop.f32.mrf.mxu0 }
 0x251   :  { %2593 = vst [vmem:[%s3296_s5 + $0x1a0] sm:$0xf] %v2322_v43  ;;  %2595 = vst [vmem:[%s3296_s5 + $0x1b0] sm:$0xf] %v2365_v44  ;;  %v2324_v47 = vadd.f32 %v2323_v45, %v500_v26  ;;  %v2367_v48 = vadd.f32 %v2366_v46, %v508_v27 }
 0x253   :  { %2594 = vst [vmem:[%s3296_s5 + $0x1a8] sm:$0xf] %v2324_v47  ;;  %2596 = vst [vmem:[%s3296_s5 + $0x1b8] sm:$0xf] %v2367_v48 }
 0x26a   :  { %v2403_v54 = vpop.f32.mrf.mxu1  ;;  %v2446_v55 = vpop.f32.mrf.mxu0 }
 0x26b   :  { %v2404_v56 = vadd.f32 %v2403_v54, %v512_v50  ;;  %v2447_v57 = vadd.f32 %v2446_v55, %v520_v51 }
 0x26c   :  { %v2405_v58 = vpop.f32.mrf.mxu1  ;;  %v2448_v63 = vpop.f32.mrf.mxu0 }
 0x26d   :  { %2565 = vst [vmem:[%s3296_s5 + $0xc0] sm:$0xff] %v2404_v56  ;;  %2567 = vst [vmem:[%s3296_s5 + $0xd0] sm:$0xff] %v2447_v57  ;;  %v2406_v31 = vadd.f32 %v2405_v58, %v516_v52  ;;  %v2449_v32 = vadd.f32 %v2448_v63, %v524_v53 }
 0x26e   :  { %v2407_v0 = vpop.f32.mrf.mxu1  ;;  %v2450_v37 = vpop.f32.mrf.mxu0 }
 0x26f   :  { %2566 = vst [vmem:[%s3296_s5 + $0xc8] sm:$0xff] %v2406_v31  ;;  %2568 = vst [vmem:[%s3296_s5 + $0xd8] sm:$0xff] %v2449_v32  ;;  %v2408_v38 = vadd.f32 %v2407_v0, %v512_v50  ;;  %v2451_v1 = vadd.f32 %v2450_v37, %v520_v51 }
 0x270   :  { %v2409_v2 = vpop.f32.mrf.mxu1  ;;  %v2452_v3 = vpop.f32.mrf.mxu0 }
 0x271   :  { %2597 = vst [vmem:[%s3296_s5 + $0x1c0] sm:$0xf] %v2408_v38  ;;  %2599 = vst [vmem:[%s3296_s5 + $0x1d0] sm:$0xf] %v2451_v1  ;;  %v2410_v4 = vadd.f32 %v2409_v2, %v516_v52  ;;  %v2453_v21 = vadd.f32 %v2452_v3, %v524_v53 }
 0x273   :  { %2598 = vst [vmem:[%s3296_s5 + $0x1c8] sm:$0xf] %v2410_v4  ;;  %2600 = vst [vmem:[%s3296_s5 + $0x1d8] sm:$0xf] %v2453_v21 }
 0x28a   :  { %v2489_v35 = vpop.f32.mrf.mxu1  ;;  %v2532_v9 = vpop.f32.mrf.mxu0 }
 0x28b   :  { %v2490_v10 = vadd.f32 %v2489_v35, %v528_v5  ;;  %v2533_v24 = vadd.f32 %v2532_v9, %v536_v6 }
 0x28c   :  { %v2491_v11 = vpop.f32.mrf.mxu1  ;;  %v2534_v13 = vpop.f32.mrf.mxu0 }
 0x28d   :  { %2569 = vst [vmem:[%s3296_s5 + $0xe0] sm:$0xff] %v2490_v10  ;;  %2571 = vst [vmem:[%s3296_s5 + $0xf0] sm:$0xff] %v2533_v24  ;;  %v2492_v59 = vadd.f32 %v2491_v11, %v532_v7  ;;  %v2535_v60 = vadd.f32 %v2534_v13, %v540_v8 }
 0x28e   :  { %v2493_v14 = vpop.f32.mrf.mxu1  ;;  %v2536_v61 = vpop.f32.mrf.mxu0 }
 0x28f   :  { %2570 = vst [vmem:[%s3296_s5 + $0xe8] sm:$0xff] %v2492_v59  ;;  %2572 = vst [vmem:[%s3296_s5 + $0xf8] sm:$0xff] %v2535_v60  ;;  %v2494_v62 = vadd.f32 %v2493_v14, %v528_v5  ;;  %v2537_v12 = vadd.f32 %v2536_v61, %v536_v6 }
 0x290   :  { %v2495_v15 = vpop.f32.mrf.mxu1  ;;  %v2538_v16 = vpop.f32.mrf.mxu0 }
 0x291   :  { %2601 = vst [vmem:[%s3296_s5 + $0x1e0] sm:$0xf] %v2494_v62  ;;  %2603 = vst [vmem:[%s3296_s5 + $0x1f0] sm:$0xf] %v2537_v12  ;;  %v2496_v17 = vadd.f32 %v2495_v15, %v532_v7  ;;  %v2539_v18 = vadd.f32 %v2538_v16, %v540_v8 }
 0x293   :  { %2602 = vst [vmem:[%s3296_s5 + $0x1e8] sm:$0xf] %v2496_v17  ;;  %2604 = vst [vmem:[%s3296_s5 + $0x1f8] sm:$0xf] %v2539_v18 }
 0x294   :  { %2609 = vsyncpa [#allocation3], 1 }
 0x295   :  { %2610 = vsyncpa [#allocation5], 1 }

// kernel: gilmer_forward.3
= control target key start
LH: loop header
LB: loop body
LE: loop exit
PB: predicated region body
PF: predicated region fallthrough
CT: control target
= control target key end

     0   :  { %s15060_s0 = inlined_call_operand.vmem [shape: f32[8,30], index: 0, kind: input, shape index: {}]   ;;  %s15061_s1 = inlined_call_operand.vmem [shape: s32[12,1], index: 1, kind: input, shape index: {}]   ;;  %s15062_s2 = inlined_call_operand.vmem [shape: s32[1,12], index: 2, kind: input, shape index: {}]   ;;  %s15063_s3 = inlined_call_operand.vmem [shape: f32[12,64,64], index: 3, kind: input, shape index: {}]   ;;  %s15064_s4 = inlined_call_operand.vmem [shape: f32[30,64], index: 4, kind: input, shape index: {}]   ;;  %s15065_s5 = inlined_call_operand.vmem [shape: f32[1,64], index: 5, kind: input, shape index: {}]   ;;  %s15066_s6 = inlined_call_operand.vmem [shape: f32[1,64], index: 6, kind: input, shape index: {}]   ;;  %s15067_s7 = inlined_call_operand.vmem [shape: f32[64,192], index: 7, kind: input, shape index: {}]   ;;  %s15068_s8 = inlined_call_operand.vmem [shape: f32[64,192], index: 8, kind: input, shape index: {}]   ;;  %s15069_s9 = inlined_call_operand.vmem [shape: f32[1,192], index: 9, kind: input, shape index: {}]   ;;  %s15070_s10 = inlined_call_operand.vmem [shape: f32[1,192], index: 10, kind: input, shape index: {}]   ;;  %s15071_s11 = inlined_call_operand.vmem [shape: f32[64,256], index: 11, kind: input, shape index: {}]   ;;  %s15072_s12 = inlined_call_operand.vmem [shape: f32[64,256], index: 12, kind: input, shape index: {}]   ;;  %s15073_s13 = inlined_call_operand.vmem [shape: f32[64,256], index: 13, kind: input, shape index: {}]   ;;  %s15074_s14 = inlined_call_operand.vmem [shape: f32[1,256], index: 14, kind: input, shape index: {}]   ;;  %s15075_s15 = inlined_call_operand.vmem [shape: f32[64,256], index: 15, kind: input, shape index: {}]   ;;  %s15076_s16 = inlined_call_operand.vmem [shape: f32[64,256], index: 16, kind: input, shape index: {}]   ;;  %s15077_s17 = inlined_call_operand.vmem [shape: f32[1,256], index: 17, kind: input, shape index: {}]   ;;  %s15078_s18 = inlined_call_operand.vmem [shape: f32[64,256], index: 18, kind: input, shape index: {}]   ;;  %s15079_s19 = inlined_call_operand.vmem [shape: f32[64,256], index: 19, kind: input, shape index: {}]   ;;  %s15080_s20 = inlined_call_operand.vmem [shape: f32[1,256], index: 20, kind: input, shape index: {}]   ;;  %s15081_s21 = inlined_call_operand.vmem [shape: f32[64,64], index: 21, kind: input, shape index: {}]   ;;  %s15082_s22 = inlined_call_operand.vmem [shape: f32[64,64], index: 22, kind: input, shape index: {}]   ;;  %s15083_s23 = inlined_call_operand.vmem [shape: f32[1,64], index: 23, kind: input, shape index: {}]   ;;  %s15084_s24 = inlined_call_operand.vmem [shape: f32[64,1], index: 24, kind: input, shape index: {}]   ;;  %s15085_s25 = inlined_call_operand.<no memory space> [shape: f32[1,1], index: 25, kind: input, shape index: {}]   ;;  %s15086_s26 = inlined_call_operand.hbm [shape: f32[1,1], index: 26, kind: output, shape index: {}]  }
   0x1   :  { %15362 = sst [smem:[#allocation84_spill]] %s15060_s0  ;;  %v31_v0 = vstv %s15085_s25 }
   0x2   :  { %15363 = sst [smem:[#allocation85_spill]] %s15061_s1  ;;  %32 = vst [vmem:[#allocation2] sm:$0x1] %v31_v0 }
   0x3   :  { %15364 = sst [smem:[#allocation86_spill]] %s15062_s2 }
   0x4   :  { %15365 = sst [smem:[#allocation87_spill]] %s15063_s3 }
   0x5   :  { %15366 = sst [smem:[#allocation88_spill]] %s15064_s4 }
   0x6   :  { %15367 = sst [smem:[#allocation89_spill]] %s15065_s5 }
   0x7   :  { %15368 = sst [smem:[#allocation90_spill]] %s15066_s6 }
   0x8   :  { %15369 = sst [smem:[#allocation91_spill]] %s15067_s7 }
   0x9   :  { %15370 = sst [smem:[#allocation92_spill]] %s15068_s8 }
   0xa   :  { %15371 = sst [smem:[#allocation93_spill]] %s15069_s9 }
   0xb   :  { %15372 = sst [smem:[#allocation94_spill]] %s15070_s10 }
   0xc   :  { %s15373_s8 = sld [smem:[#allocation88_spill]]  ;;  %vm125_vm0 = vcmask 1045504   ;;  %v15130_v2 = vmov 0.0   ;;  %vm10364_vm1 = vmmov 0   ;;  %v10365_v6 = vmov 0  }
   0xd   :  { %8935 = vmatprep.subr.mxu0 %v15130_v2  ;;  %s15374_s30 = sld [smem:[#allocation85_spill]]  ;;  %8951 = vmatprep.subr.mxu1 %v15130_v2 }
   0xe   :  { %8943 = vmatprep.mubr.msk.f32.mxu0 %vm10364_vm1, %v15130_v2  ;;  %9729 = vset.pattern.permute.xlu0 %v10365_v6 }
  0x12   :  { %v113_v1 = vld [vmem:[%s15373_s8 + $0x18] sm:$0x3f]  ;;  %v112_v3 = vld [vmem:[%s15373_s8 + $0x10] sm:$0xff]  ;;  %v111_v5 = vld [vmem:[%s15373_s8 + $0x8] sm:$0xff] }
  0x13   :  { %v86_v4 = vld [vmem:[%s15374_s30] sm:$0xff]  ;;  %8936 = vmatpush3.msk.msra.mxu0 %vm125_vm0, %v113_v1 }
  0x14   :  { %8937 = vmatprep.subr.mxu0 %v15130_v2 }
  0x15   :  { %33 = vsyncpa [#allocation4], 0  ;;  %8938 = vmatpush3.msra.mxu0 %v112_v3  ;;  %92 = vperm.xlu0 %9729, %v86_v4   ;;  %v110_v7 = vld [vmem:[%s15373_s8] sm:$0xff]  ;;  %v87_v8 = vld [vmem:[%s15374_s30 + $0x8] sm:$0xf]  ;;  %s15375_s7 = sld [smem:[#allocation84_spill]]  ;;  %v89_v15 = vlaneseq }
  0x16   :  { %8939 = vmatprep.subr.mxu0 %v15130_v2  ;;  %8967 = vmatprep.mubr.msk.f32.mxu1 %vm10364_vm1, %v15130_v2  ;;  %vm121_vm2 = vcmask 244736   ;;  %s15376_s4 = sld [smem:[#allocation87_spill]]  ;;  %vm331_vm3 = vcmask 64512   ;;  %v10366_v37 = vmov 1966171168   ;;  %vm488_vm6 = vcmask 523264  }
  0x17   :  { %8940 = vmatpush3.msra.mxu0 %v111_v5  ;;  %v90_v16 = vand.u32 127, %v89_v15  ;;  %s15378_s27 = sld [smem:[#allocation89_spill]]  ;;  %v417_v38 = vunpack.c.l.s4 %v10366_v37  ;;  %v10654_v39 = vshrl.u32 %v89_v15, 7  ;;  %vm1372_vm7 = vcmask 1041409  }
  0x18   :  { %8941 = vmatprep.subr.mxu0 %v15130_v2  ;;  %s15431_s29 = sld [smem:[#allocation91_spill]]  ;;  %vm1375_vm8 = vcmask 1042434   ;;  %vm1378_vm9 = vcmask 1043459   ;;  %vm1381_vm10 = vcmask 1044484   ;;  %vm1384_vm11 = vcmask 1045509  }
  0x19   :  { %8942 = vmatpush3.msra.mxu0 %v110_v7  ;;  %95 = vperm.xlu0 %9729, %v87_v8   ;;  %v418_v40 = vunpack.c.0.s8 %v417_v38  ;;  %s15443_s1 = sld [smem:[#allocation86_spill]]  ;;  %vm1387_vm12 = vcmask 1046534   ;;  %vm1403_vm13 = vcmask 1043456   ;;  %vm1390_vm15 = vcmask 1047559  }
  0x1a   :  { %vm1399_vm0 = vcmask 97280   ;;  %s15457_s9 = sld [smem:[#allocation90_spill]] }
  0x1b   :  { %v109_v9 = vld [vmem:[%s15375_s7] sm:$0xff]  ;;  %v10659_v42 = vsub.s32 %v418_v40, %v10654_v39  ;;  %s15445_s7 = sld [smem:[#allocation92_spill]] }
  0x1c   :  { %8944 = vmatmul.mubr.msk.f32.vlgmr.msra.gmra.mxu0 %vm121_vm2, %v109_v9  ;;  %v10540_v10 = vld [vmem:[%s15376_s4 + $0x38] sm:$0xff]  ;;  %v10545_v11 = vld [vmem:[%s15376_s4 + $0x30] sm:$0xff]  ;;  %v10552_v12 = vld [vmem:[%s15376_s4 + $0x28] sm:$0xff]  ;;  %s15460_s2 = sld [smem:[#allocation94_spill]]  ;;  %vm5008_vm2 = vcmask 1048064  }
  0x1d   :  { %8952 = vmatpush3.msra.mxu1 %v10540_v10  ;;  %v10559_v13 = vld [vmem:[%s15376_s4 + $0x20] sm:$0xff]  ;;  %v10566_v14 = vld [vmem:[%s15376_s4 + $0x18] sm:$0xff]  ;;  %v214_v27 = vld [vmem:[%s15376_s4 + $0x70] sm:$0xff]  ;;  %s15461_s6 = sld [smem:[#allocation93_spill]] }
  0x1e   :  { %8953 = vmatprep.subr.mxu1 %v15130_v2  ;;  %v8424_v19 = vld [vmem:[%s15378_s27] ss:$0 sm:$0xff]  ;;  %v215_v25 = vld [vmem:[%s15376_s4 + $0x78] sm:$0xff]  ;;  %v213_v28 = vld [vmem:[%s15376_s4 + $0x68] sm:$0xff] }
  0x1f   :  { %8954 = vmatpush3.msra.mxu1 %v10545_v11  ;;  %v212_v29 = vld [vmem:[%s15376_s4 + $0x60] sm:$0xff]  ;;  %v10611_v30 = vld [vmem:[%s15376_s4 + $0x10] sm:$0xff]  ;;  %v211_v31 = vld [vmem:[%s15376_s4 + $0x58] sm:$0xff] }
  0x20   :  { %8955 = vmatprep.subr.mxu1 %v15130_v2  ;;  %v10622_v32 = vld [vmem:[%s15376_s4 + $0x8] sm:$0xff]  ;;  %v10627_v33 = vld [vmem:[%s15376_s4 + $0x50] sm:$0xff]  ;;  %v10636_v34 = vld [vmem:[%s15376_s4] sm:$0xff] }
  0x21   :  { %8956 = vmatpush3.msra.mxu1 %v10552_v12  ;;  %v10641_v35 = vld [vmem:[%s15376_s4 + $0x48] sm:$0xff]  ;;  %v10650_v36 = vld [vmem:[%s15376_s4 + $0x40] sm:$0xff]  ;;  %v10669_v47 = vld [vmem:[%s15376_s4 + $0xb8] sm:$0xff] }
  0x22   :  { %8957 = vmatprep.subr.mxu1 %v15130_v2  ;;  %v10675_v49 = vld [vmem:[%s15376_s4 + $0xf8] sm:$0xff]  ;;  %v10681_v50 = vld [vmem:[%s15376_s4 + $0xb0] sm:$0xff]  ;;  %v10695_v52 = vld [vmem:[%s15376_s4 + $0xa8] sm:$0xff] }
  0x23   :  { %8958 = vmatpush3.msra.mxu1 %v10559_v13  ;;  %v10688_v51 = vld [vmem:[%s15376_s4 + $0xf0] sm:$0xff]  ;;  %v10702_v53 = vld [vmem:[%s15376_s4 + $0xe8] sm:$0xff]  ;;  %v10709_v54 = vld [vmem:[%s15376_s4 + $0xa0] sm:$0xff] }
  0x24   :  { %8959 = vmatprep.subr.mxu1 %v15130_v2  ;;  %v10716_v55 = vld [vmem:[%s15376_s4 + $0xe0] sm:$0xff]  ;;  %v10723_v56 = vld [vmem:[%s15376_s4 + $0x98] sm:$0xff]  ;;  %v10737_v58 = vld [vmem:[%s15376_s4 + $0x90] sm:$0xff] }
  0x25   :  { %8960 = vmatpush3.msra.mxu1 %v10566_v14  ;;  %v10730_v57 = vld [vmem:[%s15376_s4 + $0xd8] sm:$0xff]  ;;  %v10744_v59 = vld [vmem:[%s15376_s4 + $0xd0] sm:$0xff]  ;;  %v10751_v60 = vld [vmem:[%s15376_s4 + $0x88] sm:$0xff] }
  0x26   :  { %8961 = vmatprep.subr.mxu1 %v15130_v2  ;;  %v10760_v61 = vld [vmem:[%s15376_s4 + $0x80] sm:$0xff]  ;;  %v10765_v62 = vld [vmem:[%s15376_s4 + $0xc8] sm:$0xff]  ;;  %v10782_v1 = vld [vmem:[%s15376_s4 + $0x138] sm:$0xff] }
  0x27   :  { %8962 = vmatpush3.msra.mxu1 %v10611_v30  ;;  %v10775_v0 = vld [vmem:[%s15376_s4 + $0xc0] sm:$0xff]  ;;  %v10791_v4 = vld [vmem:[%s15376_s4 + $0x130] sm:$0xff]  ;;  %v10799_v5 = vld [vmem:[%s15376_s4 + $0x178] sm:$0xff] }
  0x28   :  { %8963 = vmatprep.subr.mxu1 %v15130_v2  ;;  %v10806_v6 = vld [vmem:[%s15376_s4 + $0x128] sm:$0xff]  ;;  %v10813_v7 = vld [vmem:[%s15376_s4 + $0x170] sm:$0xff]  ;;  %v10820_v8 = vld [vmem:[%s15376_s4 + $0x120] sm:$0xff] }
  0x29   :  { %8964 = vmatpush3.msra.mxu1 %v10622_v32  ;;  %v10827_v9 = vld [vmem:[%s15376_s4 + $0x168] sm:$0xff]  ;;  %v10904_v37 = vld [vmem:[%s15376_s4 + $0x1b8] sm:$0xff]  ;;  %v10914_v40 = vld [vmem:[%s15376_s4 + $0x1b0] sm:$0xff] }
  0x2a   :  { %8965 = vmatprep.subr.mxu1 %v15130_v2  ;;  %15383 = vst [vmem:[#allocation11_spill] sm:$0xff] %v10904_v37  ;;  %15384 = vst [vmem:[#allocation12_spill] sm:$0xff] %v10914_v40 }
  0x2b   :  { %8966 = vmatpush3.msra.mxu1 %v10636_v34 }
  0x2c   :  { %8989 = vmatprep.subr.mxu1 %v15130_v2 }
  0x90   :  { %v93_v17 = vpop.permute.xlu0 %92 }
  0x91   :  { %vm97_vm4 = vcmp.eq.s32.totalorder %v90_v16, %v93_v17  ;;  %v10843_v17 = vld [vmem:[%s15376_s4 + $0x160] sm:$0xff] }
  0x92   :  { %v10573_v18 = vsel %vm97_vm4, 1.0, %v15130_v2 }
  0x93   :  { %15377 = vst [vmem:[#allocation6_spill] sm:$0xff] %v10573_v18  ;;  %8948 = vmatprep.mubr.msk.f32.mxu0 %vm331_vm3, %v10573_v18 }
  0x94   :  { %v96_v21 = vpop.permute.xlu0 %95 }
  0x95   :  { %vm98_vm5 = vcmp.eq.s32.totalorder %v90_v16, %v96_v21  ;;  %v10836_v16 = vld [vmem:[%s15376_s4 + $0x118] sm:$0xff] }
  0x96   :  { %v10587_v26 = vsel %vm98_vm5, 1.0, %v15130_v2 }
  0xdc   :  { %v195_v20 = vpop.f32.mrf.mxu0 }
  0xdd   :  { %v196_v22 = vadd.f32 %v8424_v19, %v195_v20  ;;  %v10850_v19 = vld [vmem:[%s15376_s4 + $0x110] sm:$0xff]  ;;  %v10857_v20 = vld [vmem:[%s15376_s4 + $0x158] sm:$0xff] }
  0xde   :  { %v8945_v23 = vpop.f32.mrf.mxu0 }
  0xdf   :  { %v10580_v24 = vmax.f32 %v196_v22, 0.0  ;;  %v10865_v22 = vld [vmem:[%s15376_s4 + $0x108] sm:$0xff]  ;;  %v10872_v23 = vld [vmem:[%s15376_s4 + $0x150] sm:$0xff] }
  0xe0   :  { %15379 = vst [vmem:[#allocation7_spill] sm:$0xff] %v10872_v23 }
  0xe1   :  { %8946 = vmatprep.subr.mxu0 %v10580_v24 }
  0xe2   :  { %8947 = vmatpush3.msra.mxu0 %v10580_v24 }
  0xe3   :  { %8949 = vmatmul.mubr.msk.f32.vlgmr.msra.gmra.mxu0 %vm331_vm3, %v10587_v26  ;;  %8970 = vmatprep.subr.mxu0 %v15130_v2 }
  0xe4   :  { %8971 = vmatpush3.msra.mxu0 %v215_v25  ;;  %8986 = vmatprep.mubr.msk.f32.mxu0 %vm10364_vm1, %v15130_v2  ;;  %v10879_v25 = vld [vmem:[%s15376_s4 + $0x100] sm:$0xff] }
  0xe5   :  { %8972 = vmatprep.subr.mxu0 %v15130_v2  ;;  %15380 = vst [vmem:[#allocation8_spill] sm:$0xff] %v10879_v25 }
  0xe6   :  { %8973 = vmatpush3.msra.mxu0 %v214_v27  ;;  %v10886_v27 = vld [vmem:[%s15376_s4 + $0x148] sm:$0xff] }
  0xe7   :  { %8974 = vmatprep.subr.mxu0 %v15130_v2  ;;  %15381 = vst [vmem:[#allocation9_spill] sm:$0xff] %v10886_v27 }
  0xe8   :  { %8975 = vmatpush3.msra.mxu0 %v213_v28 }
  0xe9   :  { %8976 = vmatprep.subr.mxu0 %v15130_v2 }
  0xea   :  { %8977 = vmatpush3.msra.mxu0 %v212_v29 }
  0xeb   :  { %8978 = vmatprep.subr.mxu0 %v15130_v2 }
  0xec   :  { %8979 = vmatpush3.msra.mxu0 %v211_v31  ;;  %v10896_v31 = vld [vmem:[%s15376_s4 + $0x140] sm:$0xff] }
  0xed   :  { %8980 = vmatprep.subr.mxu0 %v15130_v2  ;;  %15382 = vst [vmem:[#allocation10_spill] sm:$0xff] %v10896_v31 }
  0xee   :  { %8981 = vmatpush3.msra.mxu0 %v10627_v33 }
  0xef   :  { %8982 = vmatprep.subr.mxu0 %v15130_v2 }
  0xf0   :  { %8983 = vmatpush3.msra.mxu0 %v10641_v35 }
  0xf1   :  { %8984 = vmatprep.subr.mxu0 %v15130_v2 }
  0xf2   :  { %8985 = vmatpush3.msra.mxu0 %v10650_v36 }
  0xf3   :  { %9008 = vmatprep.subr.mxu0 %v15130_v2 }
 0x1a3   :  { %v10656_v41 = vpop.f32.mrf.mxu0 }
 0x1a5   :  { %v10661_v43 = vpop.f32.mrf.mxu0 }
 0x1a6   :  { %v422_v44 = vrot.slane %v10661_v43, %v10659_v42  ;;  %v415_v15 = vcombine.high %v10661_v43, %v10661_v43  ;;  %v10922_v43 = vld [vmem:[%s15376_s4 + $0x1f8] sm:$0xff] }
 0x1a7   :  { %15385 = vst [vmem:[#allocation13_spill] sm:$0xff] %v10922_v43 }
 0x1a8   :  { %v430_v45 = vcombine.high %v422_v44, %v422_v44  ;;  %v438_v46 = vrot.slane %v422_v44, %v10659_v42  ;;  %v429_v21 = vrot.slane %v415_v15, %v10659_v42  ;;  %v10929_v44 = vld [vmem:[%s15376_s4 + $0x1a8] sm:$0xff]  ;;  %v10971_v15 = vld [vmem:[%s15376_s4 + $0x190] sm:$0xff] }
 0x1a9   :  { %15386 = vst [vmem:[#allocation14_spill] sm:$0xff] %v10929_v44  ;;  %15392 = vst [vmem:[#allocation20_spill] sm:$0xff] %v10971_v15 }
 0x1aa   :  { %v452_v48 = vrot.slane %v430_v45, %v10659_v42  ;;  %8968 = vmatmul.mubr.msk.f32.vlgmr.msra.gmra.mxu1 %vm488_vm6, %v438_v46  ;;  %v460_v63 = vcombine.high %v438_v46, %v438_v46  ;;  %v431_v28 = vcombine.high %v429_v21, %v429_v21  ;;  %v445_v29 = vrot.slane %v429_v21, %v10659_v42  ;;  %v10936_v45 = vld [vmem:[%s15376_s4 + $0x1f0] sm:$0xff]  ;;  %v10943_v46 = vld [vmem:[%s15376_s4 + $0x1a0] sm:$0xff]  ;;  %v10978_v21 = vld [vmem:[%s15376_s4 + $0x1d8] sm:$0xff] }
 0x1ab   :  { %8990 = vmatpush3.msra.mxu1 %v10669_v47  ;;  %9005 = vmatprep.mubr.msk.f32.mxu1 %vm10364_vm1, %v15130_v2  ;;  %15387 = vst [vmem:[#allocation15_spill] sm:$0xff] %v10936_v45  ;;  %15388 = vst [vmem:[#allocation16_spill] sm:$0xff] %v10943_v46 }
 0x1ac   :  { %8987 = vmatmul.mubr.msk.f32.vlgmr.msra.gmra.mxu0 %vm488_vm6, %v452_v48  ;;  %8991 = vmatprep.subr.mxu1 %v15130_v2  ;;  %v462_v3 = vcombine.high %v452_v48, %v452_v48  ;;  %v459_v38 = vrot.slane %v431_v28, %v10659_v42  ;;  %v10950_v48 = vld [vmem:[%s15376_s4 + $0x1e8] sm:$0xff]  ;;  %15393 = vst [vmem:[#allocation21_spill] sm:$0xff] %v10978_v21 }
 0x1ad   :  { %9009 = vmatpush3.msra.mxu0 %v10675_v49  ;;  %8992 = vmatpush3.msra.mxu1 %v10681_v50  ;;  %15389 = vst [vmem:[#allocation17_spill] sm:$0xff] %v10950_v48  ;;  %v10985_v28 = vld [vmem:[%s15376_s4 + $0x188] sm:$0xff] }
 0x1ae   :  { %9010 = vmatprep.subr.mxu0 %v15130_v2  ;;  %8993 = vmatprep.subr.mxu1 %v15130_v2  ;;  %15394 = vst [vmem:[#allocation22_spill] sm:$0xff] %v10985_v28 }
 0x1af   :  { %9011 = vmatpush3.msra.mxu0 %v10688_v51  ;;  %8994 = vmatpush3.msra.mxu1 %v10695_v52 }
 0x1b0   :  { %9012 = vmatprep.subr.mxu0 %v15130_v2  ;;  %8995 = vmatprep.subr.mxu1 %v15130_v2 }
 0x1b1   :  { %9013 = vmatpush3.msra.mxu0 %v10702_v53  ;;  %8996 = vmatpush3.msra.mxu1 %v10709_v54 }
 0x1b2   :  { %9014 = vmatprep.subr.mxu0 %v15130_v2  ;;  %8997 = vmatprep.subr.mxu1 %v15130_v2 }
 0x1b3   :  { %9015 = vmatpush3.msra.mxu0 %v10716_v55  ;;  %8998 = vmatpush3.msra.mxu1 %v10723_v56 }
 0x1b4   :  { %9016 = vmatprep.subr.mxu0 %v15130_v2  ;;  %8999 = vmatprep.subr.mxu1 %v15130_v2 }
 0x1b5   :  { %9017 = vmatpush3.msra.mxu0 %v10730_v57  ;;  %9000 = vmatpush3.msra.mxu1 %v10737_v58 }
 0x1b6   :  { %9018 = vmatprep.subr.mxu0 %v15130_v2  ;;  %9001 = vmatprep.subr.mxu1 %v15130_v2 }
 0x1b7   :  { %9019 = vmatpush3.msra.mxu0 %v10744_v59  ;;  %9002 = vmatpush3.msra.mxu1 %v10751_v60 }
 0x1b8   :  { %9020 = vmatprep.subr.mxu0 %v15130_v2  ;;  %9003 = vmatprep.subr.mxu1 %v15130_v2 }
 0x1b9   :  { %9004 = vmatpush3.msra.mxu1 %v10760_v61  ;;  %9021 = vmatpush3.msra.mxu0 %v10765_v62 }
 0x1ba   :  { %9006 = vmatmul.mubr.msk.f32.vlgmr.msra.gmra.mxu1 %vm488_vm6, %v460_v63  ;;  %9022 = vmatprep.subr.mxu0 %v15130_v2  ;;  %v10957_v63 = vld [vmem:[%s15376_s4 + $0x198] sm:$0xff] }
 0x1bb   :  { %9027 = vmatprep.subr.mxu1 %v15130_v2  ;;  %9023 = vmatpush3.msra.mxu0 %v10775_v0  ;;  %15390 = vst [vmem:[#allocation18_spill] sm:$0xff] %v10957_v63 }
 0x1bc   :  { %9024 = vmatprep.mubr.msk.f32.mxu0 %vm10364_vm1, %v15130_v2  ;;  %9028 = vmatpush3.msra.mxu1 %v10782_v1 }
 0x1bd   :  { %9025 = vmatmul.mubr.msk.f32.vlgmr.msra.gmra.mxu0 %vm488_vm6, %v462_v3  ;;  %9029 = vmatprep.subr.mxu1 %v15130_v2  ;;  %v10964_v3 = vld [vmem:[%s15376_s4 + $0x1e0] sm:$0xff] }
 0x1be   :  { %9046 = vmatprep.subr.mxu0 %v15130_v2  ;;  %9030 = vmatpush3.msra.mxu1 %v10791_v4  ;;  %15391 = vst [vmem:[#allocation19_spill] sm:$0xff] %v10964_v3 }
 0x1bf   :  { %9047 = vmatpush3.msra.mxu0 %v10799_v5  ;;  %9031 = vmatprep.subr.mxu1 %v15130_v2 }
 0x1c0   :  { %9048 = vmatprep.subr.mxu0 %v15130_v2  ;;  %9032 = vmatpush3.msra.mxu1 %v10806_v6 }
 0x1c1   :  { %9049 = vmatpush3.msra.mxu0 %v10813_v7  ;;  %9033 = vmatprep.subr.mxu1 %v15130_v2 }
 0x1c2   :  { %9050 = vmatprep.subr.mxu0 %v15130_v2  ;;  %9034 = vmatpush3.msra.mxu1 %v10820_v8 }
 0x1c3   :  { %9051 = vmatpush3.msra.mxu0 %v10827_v9  ;;  %9035 = vmatprep.subr.mxu1 %v15130_v2 }
 0x1c4   :  { %9052 = vmatprep.subr.mxu0 %v15130_v2  ;;  %9036 = vmatpush3.msra.mxu1 %v10836_v16 }
 0x1c5   :  { %9053 = vmatpush3.msra.mxu0 %v10843_v17  ;;  %9037 = vmatprep.subr.mxu1 %v15130_v2 }
 0x1c6   :  { %9054 = vmatprep.subr.mxu0 %v15130_v2  ;;  %9038 = vmatpush3.msra.mxu1 %v10850_v19 }
 0x1c7   :  { %9055 = vmatpush3.msra.mxu0 %v10857_v20  ;;  %9039 = vmatprep.subr.mxu1 %v15130_v2 }
 0x1c8   :  { %9056 = vmatprep.subr.mxu0 %v15130_v2  ;;  %9040 = vmatpush3.msra.mxu1 %v10865_v22 }
 0x1c9   :  { %9057 = vmatpush3.msra.mxu0 %v10872_v23  ;;  %9041 = vmatprep.subr.mxu1 %v15130_v2 }
 0x1ca   :  { %9058 = vmatprep.subr.mxu0 %v15130_v2  ;;  %9042 = vmatpush3.msra.mxu1 %v10879_v25 }
 0x1cb   :  { %9043 = vmatprep.mubr.msk.f32.mxu1 %vm10364_vm1, %v15130_v2  ;;  %9059 = vmatpush3.msra.mxu0 %v10886_v27 }
 0x1cc   :  { %9044 = vmatmul.mubr.msk.f32.vlgmr.msra.gmra.mxu1 %vm488_vm6, %v445_v29  ;;  %9060 = vmatprep.subr.mxu0 %v15130_v2 }
 0x1cd   :  { %9065 = vmatprep.subr.mxu1 %v15130_v2  ;;  %9061 = vmatpush3.msra.mxu0 %v10896_v31 }
 0x1ce   :  { %9062 = vmatprep.mubr.msk.f32.mxu0 %vm10364_vm1, %v15130_v2  ;;  %9066 = vmatpush3.msra.mxu1 %v10904_v37 }
 0x1cf   :  { %9063 = vmatmul.mubr.msk.f32.vlgmr.msra.gmra.mxu0 %vm488_vm6, %v459_v38  ;;  %9067 = vmatprep.subr.mxu1 %v15130_v2 }
 0x1d0   :  { %9084 = vmatprep.subr.mxu0 %v15130_v2  ;;  %9068 = vmatpush3.msra.mxu1 %v10914_v40 }
 0x1d1   :  { %9085 = vmatpush3.msra.mxu0 %v10922_v43  ;;  %9069 = vmatprep.subr.mxu1 %v15130_v2 }
 0x1d2   :  { %9086 = vmatprep.subr.mxu0 %v15130_v2  ;;  %9070 = vmatpush3.msra.mxu1 %v10929_v44 }
 0x1d3   :  { %9087 = vmatpush3.msra.mxu0 %v10936_v45  ;;  %9071 = vmatprep.subr.mxu1 %v15130_v2 }
 0x1d4   :  { %9088 = vmatprep.subr.mxu0 %v15130_v2  ;;  %9072 = vmatpush3.msra.mxu1 %v10943_v46 }
 0x1d5   :  { %9089 = vmatpush3.msra.mxu0 %v10950_v48  ;;  %9073 = vmatprep.subr.mxu1 %v15130_v2  ;;  %v11015_v48 = vld [vmem:[%s15376_s4 + $0x1c0] sm:$0xff] }
 0x1d6   :  { %9090 = vmatprep.subr.mxu0 %v15130_v2  ;;  %9074 = vmatpush3.msra.mxu1 %v10957_v63  ;;  %v10992_v63 = vld [vmem:[%s15376_s4 + $0x1d0] sm:$0xff]  ;;  %15398 = vst [vmem:[#allocation26_spill] sm:$0xff] %v11015_v48 }
 0x1d7   :  { %9091 = vmatpush3.msra.mxu0 %v10964_v3  ;;  %9075 = vmatprep.subr.mxu1 %v15130_v2  ;;  %15395 = vst [vmem:[#allocation23_spill] sm:$0xff] %v10992_v63  ;;  %v10999_v3 = vld [vmem:[%s15376_s4 + $0x180] sm:$0xff] }
 0x1d8   :  { %9092 = vmatprep.subr.mxu0 %v15130_v2  ;;  %9076 = vmatpush3.msra.mxu1 %v10971_v15  ;;  %15396 = vst [vmem:[#allocation24_spill] sm:$0xff] %v10999_v3  ;;  %v11006_v15 = vld [vmem:[%s15376_s4 + $0x1c8] sm:$0xff] }
 0x1d9   :  { %9093 = vmatpush3.msra.mxu0 %v10978_v21  ;;  %9077 = vmatprep.subr.mxu1 %v15130_v2  ;;  %15397 = vst [vmem:[#allocation25_spill] sm:$0xff] %v11006_v15  ;;  %v461_v21 = vcombine.high %v445_v29, %v445_v29  ;;  %v463_v29 = vcombine.high %v459_v38, %v459_v38  ;;  %v11047_v38 = vld [vmem:[%s15376_s4 + $0x228] sm:$0xff] }
 0x1da   :  { %9094 = vmatprep.subr.mxu0 %v15130_v2  ;;  %9078 = vmatpush3.msra.mxu1 %v10985_v28  ;;  %15402 = vst [vmem:[#allocation30_spill] sm:$0xff] %v11047_v38 }
 0x1db   :  { %9095 = vmatpush3.msra.mxu0 %v10992_v63  ;;  %9079 = vmatprep.subr.mxu1 %v15130_v2  ;;  %v11023_v63 = vld [vmem:[%s15376_s4 + $0x238] sm:$0xff] }
 0x1dc   :  { %9096 = vmatprep.subr.mxu0 %v15130_v2  ;;  %9080 = vmatpush3.msra.mxu1 %v10999_v3  ;;  %15399 = vst [vmem:[#allocation27_spill] sm:$0xff] %v11023_v63  ;;  %v11032_v3 = vld [vmem:[%s15376_s4 + $0x230] sm:$0xff] }
 0x1dd   :  { %9081 = vmatprep.mubr.msk.f32.mxu1 %vm10364_vm1, %v15130_v2  ;;  %9097 = vmatpush3.msra.mxu0 %v11006_v15  ;;  %15400 = vst [vmem:[#allocation28_spill] sm:$0xff] %v11032_v3  ;;  %v11255_v15 = vld [vmem:[%s15376_s4 + $0x2c0] sm:$0xff] }
 0x1de   :  { %9082 = vmatmul.mubr.msk.f32.vlgmr.msra.gmra.mxu1 %vm488_vm6, %v461_v21  ;;  %9098 = vmatprep.subr.mxu0 %v15130_v2  ;;  %v11040_v21 = vld [vmem:[%s15376_s4 + $0x278] sm:$0xff]  ;;  %15430 = vst [vmem:[#allocation58_spill] sm:$0xff] %v11255_v15 }
 0x1df   :  { %9103 = vmatprep.subr.mxu1 %v15130_v2  ;;  %9099 = vmatpush3.msra.mxu0 %v11015_v48  ;;  %15401 = vst [vmem:[#allocation29_spill] sm:$0xff] %v11040_v21  ;;  %v470_v48 = vrot.slane %v10656_v41, %v10659_v42  ;;  %v11119_v41 = vld [vmem:[%s15376_s4 + $0x200] sm:$0xff] }
 0x1e0   :  { %9100 = vmatprep.mubr.msk.f32.mxu0 %vm10364_vm1, %v15130_v2  ;;  %9104 = vmatpush3.msra.mxu1 %v11023_v63  ;;  %v11054_v63 = vld [vmem:[%s15376_s4 + $0x270] sm:$0xff]  ;;  %15412 = vst [vmem:[#allocation40_spill] sm:$0xff] %v11119_v41 }
 0x1e1   :  { %9101 = vmatmul.mubr.msk.f32.vlgmr.msra.gmra.mxu0 %vm488_vm6, %v463_v29  ;;  %9105 = vmatprep.subr.mxu1 %v15130_v2  ;;  %15403 = vst [vmem:[#allocation31_spill] sm:$0xff] %v11054_v63  ;;  %v11061_v29 = vld [vmem:[%s15376_s4 + $0x220] sm:$0xff] }
 0x1e2   :  { %9122 = vmatprep.subr.mxu0 %v15130_v2  ;;  %9106 = vmatpush3.msra.mxu1 %v11032_v3  ;;  %15404 = vst [vmem:[#allocation32_spill] sm:$0xff] %v11061_v29  ;;  %v11068_v3 = vld [vmem:[%s15376_s4 + $0x268] sm:$0xff] }
 0x1e3   :  { %9123 = vmatpush3.msra.mxu0 %v11040_v21  ;;  %9107 = vmatprep.subr.mxu1 %v15130_v2  ;;  %15405 = vst [vmem:[#allocation33_spill] sm:$0xff] %v11068_v3  ;;  %v11075_v21 = vld [vmem:[%s15376_s4 + $0x218] sm:$0xff] }
 0x1e4   :  { %9124 = vmatprep.subr.mxu0 %v15130_v2  ;;  %9108 = vmatpush3.msra.mxu1 %v11047_v38  ;;  %15406 = vst [vmem:[#allocation34_spill] sm:$0xff] %v11075_v21  ;;  %v11082_v38 = vld [vmem:[%s15376_s4 + $0x260] sm:$0xff] }
 0x1e5   :  { %9125 = vmatpush3.msra.mxu0 %v11054_v63  ;;  %9109 = vmatprep.subr.mxu1 %v15130_v2  ;;  %15407 = vst [vmem:[#allocation35_spill] sm:$0xff] %v11082_v38  ;;  %v11089_v63 = vld [vmem:[%s15376_s4 + $0x210] sm:$0xff] }
 0x1e6   :  { %9126 = vmatprep.subr.mxu0 %v15130_v2  ;;  %9110 = vmatpush3.msra.mxu1 %v11061_v29  ;;  %15408 = vst [vmem:[#allocation36_spill] sm:$0xff] %v11089_v63  ;;  %v11096_v29 = vld [vmem:[%s15376_s4 + $0x258] sm:$0xff] }
 0x1e7   :  { %9127 = vmatpush3.msra.mxu0 %v11068_v3  ;;  %9111 = vmatprep.subr.mxu1 %v15130_v2  ;;  %15409 = vst [vmem:[#allocation37_spill] sm:$0xff] %v11096_v29  ;;  %v11105_v3 = vld [vmem:[%s15376_s4 + $0x208] sm:$0xff] }
 0x1e8   :  { %9128 = vmatprep.subr.mxu0 %v15130_v2  ;;  %9112 = vmatpush3.msra.mxu1 %v11075_v21  ;;  %15410 = vst [vmem:[#allocation38_spill] sm:$0xff] %v11105_v3  ;;  %v11112_v21 = vld [vmem:[%s15376_s4 + $0x250] sm:$0xff] }
 0x1e9   :  { %9129 = vmatpush3.msra.mxu0 %v11082_v38  ;;  %9113 = vmatprep.subr.mxu1 %v15130_v2  ;;  %15411 = vst [vmem:[#allocation39_spill] sm:$0xff] %v11112_v21  ;;  %v471_v38 = vcombine.high %v470_v48, %v470_v48 }
 0x1ea   :  { %9130 = vmatprep.subr.mxu0 %v15130_v2  ;;  %9114 = vmatpush3.msra.mxu1 %v11089_v63  ;;  %v11126_v63 = vld [vmem:[%s15376_s4 + $0x248] sm:$0xff] }
 0x1eb   :  { %9131 = vmatpush3.msra.mxu0 %v11096_v29  ;;  %9115 = vmatprep.subr.mxu1 %v15130_v2  ;;  %15413 = vst [vmem:[#allocation41_spill] sm:$0xff] %v11126_v63  ;;  %v478_v29 = vrot.slane %v470_v48, %v10659_v42  ;;  %v485_v48 = vrot.slane %v471_v38, %v10659_v42  ;;  %v11169_v38 = vld [vmem:[%s15376_s4 + $0x2a8] sm:$0xff] }
 0x1ec   :  { %9132 = vmatprep.subr.mxu0 %v15130_v2  ;;  %9116 = vmatpush3.msra.mxu1 %v11105_v3  ;;  %v11136_v3 = vld [vmem:[%s15376_s4 + $0x240] sm:$0xff]  ;;  %15418 = vst [vmem:[#allocation46_spill] sm:$0xff] %v11169_v38 }
 0x1ed   :  { %9133 = vmatpush3.msra.mxu0 %v11112_v21  ;;  %9117 = vmatprep.subr.mxu1 %v15130_v2  ;;  %15414 = vst [vmem:[#allocation42_spill] sm:$0xff] %v11136_v3  ;;  %v11144_v21 = vld [vmem:[%s15376_s4 + $0x2b8] sm:$0xff] }
 0x1ee   :  { %9134 = vmatprep.subr.mxu0 %v15130_v2  ;;  %9118 = vmatpush3.msra.mxu1 %v11119_v41  ;;  %15415 = vst [vmem:[#allocation43_spill] sm:$0xff] %v11144_v21  ;;  %v11154_v41 = vld [vmem:[%s15376_s4 + $0x2b0] sm:$0xff] }
 0x1ef   :  { %9119 = vmatprep.mubr.msk.f32.mxu1 %vm10364_vm1, %v15130_v2  ;;  %9135 = vmatpush3.msra.mxu0 %v11126_v63  ;;  %15416 = vst [vmem:[#allocation44_spill] sm:$0xff] %v11154_v41  ;;  %v11162_v63 = vld [vmem:[%s15376_s4 + $0x2f8] sm:$0xff] }
 0x1f0   :  { %9120 = vmatmul.mubr.msk.f32.vlgmr.msra.gmra.mxu1 %vm488_vm6, %v478_v29  ;;  %9136 = vmatprep.subr.mxu0 %v15130_v2  ;;  %15417 = vst [vmem:[#allocation45_spill] sm:$0xff] %v11162_v63 }
 0x1f1   :  { %9141 = vmatprep.subr.mxu1 %v15130_v2  ;;  %9137 = vmatpush3.msra.mxu0 %v11136_v3  ;;  %v11183_v3 = vld [vmem:[%s15376_s4 + $0x2a0] sm:$0xff] }
 0x1f2   :  { %9138 = vmatprep.mubr.msk.f32.mxu0 %vm10364_vm1, %v15130_v2  ;;  %9142 = vmatpush3.msra.mxu1 %v11144_v21  ;;  %v11176_v21 = vld [vmem:[%s15376_s4 + $0x2f0] sm:$0xff]  ;;  %15420 = vst [vmem:[#allocation48_spill] sm:$0xff] %v11183_v3 }
 0x1f3   :  { %9139 = vmatmul.mubr.msk.f32.vlgmr.msra.gmra.mxu0 %vm488_vm6, %v485_v48  ;;  %9143 = vmatprep.subr.mxu1 %v15130_v2  ;;  %15419 = vst [vmem:[#allocation47_spill] sm:$0xff] %v11176_v21 }
 0x1f4   :  { %9160 = vmatprep.subr.mxu0 %v15130_v2  ;;  %9144 = vmatpush3.msra.mxu1 %v11154_v41  ;;  %v11190_v41 = vld [vmem:[%s15376_s4 + $0x2e8] sm:$0xff] }
 0x1f5   :  { %9161 = vmatpush3.msra.mxu0 %v11162_v63  ;;  %9145 = vmatprep.subr.mxu1 %v15130_v2  ;;  %15421 = vst [vmem:[#allocation49_spill] sm:$0xff] %v11190_v41  ;;  %v11197_v63 = vld [vmem:[%s15376_s4 + $0x298] sm:$0xff] }
 0x1f6   :  { %9162 = vmatprep.subr.mxu0 %v15130_v2  ;;  %9146 = vmatpush3.msra.mxu1 %v11169_v38  ;;  %15422 = vst [vmem:[#allocation50_spill] sm:$0xff] %v11197_v63  ;;  %v11204_v38 = vld [vmem:[%s15376_s4 + $0x2e0] sm:$0xff] }
 0x1f7   :  { %9163 = vmatpush3.msra.mxu0 %v11176_v21  ;;  %9147 = vmatprep.subr.mxu1 %v15130_v2  ;;  %15423 = vst [vmem:[#allocation51_spill] sm:$0xff] %v11204_v38  ;;  %v11211_v21 = vld [vmem:[%s15376_s4 + $0x290] sm:$0xff] }
 0x1f8   :  { %9164 = vmatprep.subr.mxu0 %v15130_v2  ;;  %9148 = vmatpush3.msra.mxu1 %v11183_v3  ;;  %15424 = vst [vmem:[#allocation52_spill] sm:$0xff] %v11211_v21  ;;  %v11218_v3 = vld [vmem:[%s15376_s4 + $0x2d8] sm:$0xff] }
 0x1f9   :  { %9165 = vmatpush3.msra.mxu0 %v11190_v41  ;;  %9149 = vmatprep.subr.mxu1 %v15130_v2  ;;  %15425 = vst [vmem:[#allocation53_spill] sm:$0xff] %v11218_v3  ;;  %v11225_v41 = vld [vmem:[%s15376_s4 + $0x288] sm:$0xff] }
 0x1fa   :  { %9166 = vmatprep.subr.mxu0 %v15130_v2  ;;  %9150 = vmatpush3.msra.mxu1 %v11197_v63  ;;  %15426 = vst [vmem:[#allocation54_spill] sm:$0xff] %v11225_v41  ;;  %v11232_v63 = vld [vmem:[%s15376_s4 + $0x2d0] sm:$0xff] }
 0x1fb   :  { %9167 = vmatpush3.msra.mxu0 %v11204_v38  ;;  %9151 = vmatprep.subr.mxu1 %v15130_v2  ;;  %15427 = vst [vmem:[#allocation55_spill] sm:$0xff] %v11232_v63  ;;  %v11239_v38 = vld [vmem:[%s15376_s4 + $0x280] sm:$0xff] }
 0x1fc   :  { %9168 = vmatprep.subr.mxu0 %v15130_v2  ;;  %9152 = vmatpush3.msra.mxu1 %v11211_v21  ;;  %15428 = vst [vmem:[#allocation56_spill] sm:$0xff] %v11239_v38  ;;  %v11246_v21 = vld [vmem:[%s15376_s4 + $0x2c8] sm:$0xff] }
 0x1fd   :  { %9169 = vmatpush3.msra.mxu0 %v11218_v3  ;;  %9153 = vmatprep.subr.mxu1 %v15130_v2  ;;  %15429 = vst [vmem:[#allocation57_spill] sm:$0xff] %v11246_v21  ;;  %v486_v3 = vcombine.high %v478_v29, %v478_v29  ;;  %v11278_v29 = vld [vmem:[%s15431_s29 + $0x70] sm:$0xff] }
 0x1fe   :  { %9170 = vmatprep.subr.mxu0 %v15130_v2  ;;  %9154 = vmatpush3.msra.mxu1 %v11225_v41  ;;  %v487_v41 = vcombine.high %v485_v48, %v485_v48  ;;  %15433 = vst [vmem:[#allocation60_spill] sm:$0xff] %v11278_v29  ;;  %v11289_v48 = vld [vmem:[%s15431_s29 + $0x60] sm:$0xff] }
 0x1ff   :  { %9171 = vmatpush3.msra.mxu0 %v11232_v63  ;;  %9155 = vmatprep.subr.mxu1 %v15130_v2  ;;  %15435 = vst [vmem:[#allocation62_spill] sm:$0xff] %v11289_v48 }
 0x200   :  { %9172 = vmatprep.subr.mxu0 %v15130_v2  ;;  %9156 = vmatpush3.msra.mxu1 %v11239_v38 }
 0x201   :  { %9157 = vmatprep.mubr.msk.f32.mxu1 %vm10364_vm1, %v15130_v2  ;;  %9173 = vmatpush3.msra.mxu0 %v11246_v21 }
 0x202   :  { %9158 = vmatmul.mubr.msk.f32.vlgmr.msra.gmra.mxu1 %vm488_vm6, %v486_v3  ;;  %9174 = vmatprep.subr.mxu0 %v15130_v2  ;;  %v11273_v3 = vld [vmem:[%s15431_s29 + $0x78] sm:$0xff] }
 0x203   :  { %9175 = vmatpush3.msra.mxu0 %v11255_v15  ;;  %9176 = vmatprep.mubr.msk.f32.mxu0 %vm10364_vm1, %v15130_v2  ;;  %15432 = vst [vmem:[#allocation59_spill] sm:$0xff] %v11273_v3  ;;  %v11301_v15 = vld [vmem:[%s15431_s29 + $0x50] sm:$0xff] }
 0x204   :  { %9177 = vmatmul.mubr.msk.f32.vlgmr.msra.gmra.mxu0 %vm488_vm6, %v487_v41  ;;  %9179 = vmatprep.subr.mxu0 %v15130_v2  ;;  %v11283_v41 = vld [vmem:[%s15431_s29 + $0x68] sm:$0xff]  ;;  %15437 = vst [vmem:[#allocation64_spill] sm:$0xff] %v11301_v15 }
 0x205   :  { %9183 = vmatprep.mubr.msk.f32.mxu0 %vm10364_vm1, %v15130_v2  ;;  %1555 = vmatprep.mubr.f32.mxu1 %v15130_v2  ;;  %15434 = vst [vmem:[#allocation61_spill] sm:$0xff] %v11283_v41  ;;  %v11295_v2 = vld [vmem:[%s15431_s29 + $0x58] sm:$0xff] }
 0x206   :  { %1507 = vmatprep.subr.mxu1 %v11273_v3  ;;  %15436 = vst [vmem:[#allocation63_spill] sm:$0xff] %v11295_v2  ;;  %v11307_v3 = vld [vmem:[%s15431_s29 + $0x48] sm:$0xff] }
 0x207   :  { %1508 = vmatpush1.msra.mxu1 %v11278_v29  ;;  %15438 = vst [vmem:[#allocation65_spill] sm:$0xff] %v11307_v3  ;;  %v11313_v29 = vld [vmem:[%s15431_s29 + $0x40] sm:$0xff] }
 0x208   :  { %1509 = vmatprep.subr.mxu1 %v11283_v41  ;;  %15439 = vst [vmem:[#allocation66_spill] sm:$0xff] %v11313_v29  ;;  %v11319_v41 = vld [vmem:[%s15431_s29 + $0x38] sm:$0xff] }
 0x209   :  { %1510 = vmatpush1.msra.mxu1 %v11289_v48  ;;  %15440 = vst [vmem:[#allocation67_spill] sm:$0xff] %v11319_v41  ;;  %v11325_v48 = vld [vmem:[%s15431_s29 + $0x30] sm:$0xff] }
 0x20a   :  { %1511 = vmatprep.subr.mxu1 %v11295_v2  ;;  %15441 = vst [vmem:[#allocation68_spill] sm:$0xff] %v11325_v48  ;;  %v11331_v2 = vld [vmem:[%s15431_s29 + $0x28] sm:$0xff] }
 0x20b   :  { %1512 = vmatpush1.msra.mxu1 %v11301_v15  ;;  %15442 = vst [vmem:[#allocation69_spill] sm:$0xff] %v11331_v2 }
 0x20c   :  { %1513 = vmatprep.subr.mxu1 %v11307_v3 }
 0x20d   :  { %1514 = vmatpush1.msra.mxu1 %v11313_v29 }
 0x20e   :  { %1515 = vmatprep.subr.mxu1 %v11319_v41 }
 0x20f   :  { %1516 = vmatpush1.msra.mxu1 %v11325_v48 }
 0x210   :  { %1517 = vmatprep.subr.mxu1 %v11331_v2 }
 0x26a   :  { %v557_v15 = vpop.f32.mrf.mxu1 }
 0x26c   :  { %v629_v3 = vpop.f32.mrf.mxu0  ;;  %v8969_v21 = vpop.f32.mrf.mxu1 }
 0x26d   :  { %v1371_v38 = vrot.slane %v629_v3, 7 }
 0x26e   :  { %v8988_v63 = vpop.f32.mrf.mxu0 }
 0x26f   :  { %v1373_v28 = vsel %vm1372_vm7, %v1371_v38, %v557_v15 }
 0x27a   :  { %v701_v29 = vpop.f32.mrf.mxu1 }
 0x27b   :  { %v1374_v46 = vrot.slane %v701_v29, 6 }
 0x27c   :  { %v9007_v45 = vpop.f32.mrf.mxu1 }
 0x27d   :  { %v1376_v44 = vsel %vm1375_vm8, %v1374_v46, %v1373_v28  ;;  %v773_v43 = vpop.f32.mrf.mxu0 }
 0x27e   :  { %v1377_v41 = vrot.slane %v773_v43, 5  ;;  %v8423_v43 = vld [vmem:[%s15443_s1] ss:$0 sm:$0xff]  ;;  %s10367_s1 = smov 64  }
 0x27f   :  { %v9026_v48 = vpop.f32.mrf.mxu0  ;;  %vm107_vm14 = vcmp.eq.s32.totalorder %v10654_v39, %v8423_v43  ;;  %v11368_v43 = vld [vmem:[%s15445_s7 + $0x68] sm:$0xff] }
 0x280   :  { %v1379_v2 = vsel %vm1378_vm9, %v1377_v41, %v1376_v44 }
 0x28c   :  { %v845_v40 = vpop.f32.mrf.mxu1 }
 0x28d   :  { %v1380_v23 = vrot.slane %v845_v40, 4 }
 0x28e   :  { %v9045_v37 = vpop.f32.mrf.mxu1 }
 0x28f   :  { %v917_v31 = vpop.f32.mrf.mxu0  ;;  %v1382_v37 = vsel %vm1381_vm10, %v1380_v23, %v1379_v2 }
 0x290   :  { %v1383_v28 = vrot.slane %v917_v31, 3 }
 0x291   :  { %v9064_v21 = vpop.f32.mrf.mxu0 }
 0x292   :  { %v1385_v31 = vsel %vm1384_vm11, %v1383_v28, %v1382_v37  ;;  %v11363_v28 = vld [vmem:[%s15445_s7 + $0x70] sm:$0xff]  ;;  %v11376_v37 = vld [vmem:[%s15445_s7 + $0x60] sm:$0xff] }
 0x29e   :  { %v989_v3 = vpop.f32.mrf.mxu1 }
 0x29f   :  { %v1386_v44 = vrot.slane %v989_v3, 2 }
 0x2a0   :  { %v9083_v63 = vpop.f32.mrf.mxu1 }
 0x2a1   :  { %v1061_v27 = vpop.f32.mrf.mxu0  ;;  %v1388_v2 = vsel %vm1387_vm12, %v1386_v44, %v1385_v31  ;;  %v11382_v44 = vld [vmem:[%s15445_s7 + $0x58] sm:$0xff]  ;;  %v11419_v31 = vld [vmem:[%s15445_s7 + $0x28] sm:$0xff] }
 0x2a2   :  { %v1389_v40 = vrot.slane %v1061_v27, 1  ;;  %15451 = vst [vmem:[#allocation75_spill] sm:$0xff] %v11419_v31 }
 0x2a3   :  { %v9102_v15 = vpop.f32.mrf.mxu0 }
 0x2a4   :  { %v1391_v27 = vsel %vm1390_vm15, %v1389_v40, %v1388_v2  ;;  %v11425_v40 = vld [vmem:[%s15445_s7 + $0x20] sm:$0xff]  ;;  %v11443_v2 = vld [vmem:[%s15445_s7 + $0x8] sm:$0xff] }
 0x2a5   :  { %15452 = vst [vmem:[#allocation76_spill] sm:$0xff] %v11425_v40  ;;  %15455 = vst [vmem:[#allocation79_spill] sm:$0xff] %v11443_v2 }
 0x2b0   :  { %v1133_v38 = vpop.f32.mrf.mxu1 }
 0x2b2   :  { %v9121_v25 = vpop.f32.mrf.mxu1 }
 0x2b3   :  { %v1205_v29 = vpop.f32.mrf.mxu0 }
 0x2b4   :  { %v1392_v46 = vrot.slane %v1205_v29, 7 }
 0x2b5   :  { %v9140_v45 = vpop.f32.mrf.mxu0 }
 0x2b6   :  { %v1393_v21 = vsel %vm1372_vm7, %v1392_v46, %v1133_v38  ;;  %v15444_v38 = vmov 0.0   ;;  %v11356_v46 = vld [vmem:[%s15445_s7 + $0x78] sm:$0xff] }
 0x2b7   :  { %v11351_v45 = vsel %vm107_vm14, 1.0, %v15444_v38 }
 0x2c2   :  { %v1277_v41 = vpop.f32.mrf.mxu1 }
 0x2c3   :  { %v1394_v48 = vrot.slane %v1277_v41, 6  ;;  %v11389_v41 = vld [vmem:[%s15445_s7 + $0x50] sm:$0xff] }
 0x2c4   :  { %v9159_v25 = vpop.f32.mrf.mxu1  ;;  %v1349_v63 = vpop.f32.mrf.mxu0  ;;  %15446 = vst [vmem:[#allocation70_spill] sm:$0xff] %v11389_v41 }
 0x2c5   :  { %v1395_v15 = vsel %vm1375_vm8, %v1394_v48, %v1393_v21  ;;  %v1396_v29 = vrot.slane %v1349_v63, 5  ;;  %v11395_v48 = vld [vmem:[%s15445_s7 + $0x48] sm:$0xff]  ;;  %v11401_v21 = vld [vmem:[%s15445_s7 + $0x40] sm:$0xff]  ;;  %v11407_v25 = vld [vmem:[%s15445_s7 + $0x38] sm:$0xff] }
 0x2c6   :  { %v9178_v23 = vpop.f32.mrf.mxu0  ;;  %15447 = vst [vmem:[#allocation71_spill] sm:$0xff] %v11395_v48  ;;  %15448 = vst [vmem:[#allocation72_spill] sm:$0xff] %v11401_v21  ;;  %v11413_v63 = vld [vmem:[%s15445_s7 + $0x30] sm:$0xff] }
 0x2c7   :  { %v1397_v3 = vsel %vm1378_vm9, %v1396_v29, %v1395_v15  ;;  %15449 = vst [vmem:[#allocation73_spill] sm:$0xff] %v11407_v25  ;;  %15450 = vst [vmem:[#allocation74_spill] sm:$0xff] %v11413_v63  ;;  %v11431_v15 = vld [vmem:[%s15445_s7 + $0x18] sm:$0xff]  ;;  %v11437_v29 = vld [vmem:[%s15445_s7 + $0x10] sm:$0xff] }
 0x2c8   :  { %9180 = vmatpush3.msk.msra.mxu0 %vm1403_vm13, %v1397_v3  ;;  %15453 = vst [vmem:[#allocation77_spill] sm:$0xff] %v11431_v15  ;;  %15454 = vst [vmem:[#allocation78_spill] sm:$0xff] %v11437_v29  ;;  %v11449_v23 = vld [vmem:[%s15445_s7] sm:$0xff] }
 0x2c9   :  { %9181 = vmatprep.subr.mxu0 %v15444_v38  ;;  %15456 = vst [vmem:[#allocation80_spill] sm:$0xff] %v11449_v23 }
 0x2ca   :  { %9182 = vmatpush3.msra.mxu0 %v1391_v27 }
 0x2cb   :  { %9184 = vmatmul.mubr.msk.f32.vlgmr.msra.gmra.mxu0 %vm1399_vm0, %v11351_v45  ;;  %1592 = vmatprep.subr.mxu0 %v11356_v46 }
 0x2cc   :  { %1593 = vmatpush1.msra.mxu0 %v11363_v28  ;;  %1640 = vmatprep.mubr.f32.mxu0 %v15444_v38 }
 0x2cd   :  { %1594 = vmatprep.subr.mxu0 %v11368_v43 }
 0x2ce   :  { %1595 = vmatpush1.msra.mxu0 %v11376_v37 }
 0x2cf   :  { %1596 = vmatprep.subr.mxu0 %v11382_v44 }
 0x2d0   :  { %1597 = vmatpush1.msra.mxu0 %v11389_v41 }
 0x2d1   :  { %1598 = vmatprep.subr.mxu0 %v11395_v48 }
 0x2d2   :  { %1599 = vmatpush1.msra.mxu0 %v11401_v21 }
 0x2d3   :  { %1600 = vmatprep.subr.mxu0 %v11407_v25  ;;  %v11532_v25 = vsub.s32 1, %v10654_v39 }
 0x2d4   :  { %1601 = vmatpush1.msra.mxu0 %v11413_v63 }
 0x2d5   :  { %1602 = vmatprep.subr.mxu0 %v11419_v31  ;;  %15462 = vst [vmem:[#allocation83_spill] sm:$0xff] %v11532_v25 }
 0x2d6   :  { %1603 = vmatpush1.msra.mxu0 %v11425_v40 }
 0x2d7   :  { %1604 = vmatprep.subr.mxu0 %v11431_v15 }
 0x2d8   :  { %1605 = vmatpush1.msra.mxu0 %v11437_v29  ;;  %v329_v29 = vld [vmem:[%s15461_s6] sm:$0x3] }
 0x2d9   :  { %1606 = vmatprep.subr.mxu0 %v11443_v2  ;;  %v330_v2 = vld [vmem:[%s15460_s2] sm:$0x3]  ;;  %v11538_v48 = vrot.slane %v329_v29, %v11532_v25 }
 0x2da   :  { %1607 = vmatpush1.msra.mxu0 %v11449_v23  ;;  %v11515_v23 = vsub.s32 0, %v10654_v39  ;;  %v11535_v21 = vrot.slane %v330_v2, %v11532_v25 }
 0x2db   :  { %8445 = vmatmul.mubr.msk.f32.vlgmr.msra.gmra.mxu0 %vm488_vm6, %v10580_v24  ;;  %9191 = vmatprep.subr.mxu0 %v15444_v38 }
 0x2dc   :  { %9192 = vmatpush3.msra.mxu0 %v10540_v10  ;;  %9207 = vmatprep.mubr.msk.f32.mxu0 %vm10364_vm1, %v15444_v38  ;;  %v11478_v10 = vld [vmem:[%s15431_s29 + $0x20] sm:$0xff]  ;;  %15459 = vst [vmem:[#allocation82_spill] sm:$0xff] %v11515_v23 }
 0x2dd   :  { %9193 = vmatprep.subr.mxu0 %v15444_v38  ;;  %1518 = vmatpush1.msra.mxu1 %v11478_v10 }
 0x2de   :  { %9194 = vmatpush3.msra.mxu0 %v10545_v11  ;;  %v11484_v11 = vld [vmem:[%s15431_s29 + $0x18] sm:$0xff] }
 0x2df   :  { %9195 = vmatprep.subr.mxu0 %v15444_v38  ;;  %1519 = vmatprep.subr.mxu1 %v11484_v11 }
 0x2e0   :  { %9196 = vmatpush3.msra.mxu0 %v10552_v12  ;;  %v11490_v12 = vld [vmem:[%s15431_s29 + $0x10] sm:$0xff] }
 0x2e1   :  { %9197 = vmatprep.subr.mxu0 %v15444_v38  ;;  %1520 = vmatpush1.msra.mxu1 %v11490_v12 }
 0x2e2   :  { %9198 = vmatpush3.msra.mxu0 %v10559_v13  ;;  %v11496_v13 = vld [vmem:[%s15431_s29 + $0x8] sm:$0xff] }
 0x2e3   :  { %9199 = vmatprep.subr.mxu0 %v15444_v38  ;;  %1521 = vmatprep.subr.mxu1 %v11496_v13 }
 0x2e4   :  { %9200 = vmatpush3.msra.mxu0 %v10566_v14  ;;  %v11502_v14 = vld [vmem:[%s15431_s29] sm:$0xff] }
 0x2e5   :  { %9201 = vmatprep.subr.mxu0 %v15444_v38  ;;  %1522 = vmatpush1.msra.mxu1 %v11502_v14 }
 0x2e6   :  { %9202 = vmatpush3.msra.mxu0 %v10611_v30  ;;  %v11508_v30 = vld [vmem:[%s15457_s9] ss:$0 sm:$0xff] }
 0x2e7   :  { %9203 = vmatprep.subr.mxu0 %v15444_v38  ;;  %15458 = vst [vmem:[#allocation81_spill] sm:$0xff] %v11508_v30 }
 0x2e8   :  { %9204 = vmatpush3.msra.mxu0 %v10622_v32 }
 0x2e9   :  { %9205 = vmatprep.subr.mxu0 %v15444_v38 }
 0x2ea   :  { %9206 = vmatpush3.msra.mxu0 %v10636_v34 }
 0x2eb   :  { %9229 = vmatprep.subr.mxu0 %v15444_v38 }
 0x38b   :  { %v1472_v32 = vpop.f32.mrf.mxu0 }
 0x38c   :  { %v1473_v34 = vadd.f32 %v11508_v30, %v1472_v32  ;;  %v11524_v32 = vrot.slane %v330_v2, %v11515_v23 }
 0x38d   :  { %v9185_v3 = vpop.f32.mrf.mxu0 }
 0x38e   :  { %v1476_v27 = vmax.f32 %v1473_v34, 0.0  ;;  %v11527_v34 = vrot.slane %v329_v29, %v11515_v23 }
 0x390   :  { %8444 = vmatmul.mubr.msk.f32.vlgmr.msra.gmra.mxu1 %vm488_vm6, %v1476_v27 }
 0x391   :  { %9188 = vmatprep.mubr.msk.f32.mxu1 %vm331_vm3, %v10573_v18 }
 0x39b   :  { %v1642_v3 = vpop.f32.mrf.mxu0 }
 0x39c   :  { %v1643_v18 = vadd.f32 %v1642_v3, %v11524_v32 }
 0x39d   :  { %v1644_v23 = vpop.f32.mrf.mxu0 }
 0x39e   :  { %v1645_v3 = vadd.f32 %v1644_v23, %v11535_v21  ;;  %v11568_v23 = vld [vmem:[%s15376_s4 + $0x70] sm:$0xff] }
 0x450   :  { %v1557_v27 = vpop.f32.mrf.mxu1 }
 0x451   :  { %v1558_v30 = vadd.f32 %v1557_v27, %v11527_v34 }
 0x452   :  { %v1559_v41 = vpop.f32.mrf.mxu1 }
 0x453   :  { %v1647_v15 = vadd.f32 %v1643_v18, %v1558_v30  ;;  %v1560_v18 = vadd.f32 %v1559_v41, %v11538_v48 }
 0x455   :  { %v8446_v40 = vmul.f32 -1.442695, %v1647_v15 }
 0x457   :  { %9730 = vpow2.f32 %v8446_v40 }
 0x464   :  { %v9731_v31 = vpop.eup %9730 }
 0x465   :  { %v1651_v63 = vadd.f32 1.0, %v9731_v31 }
 0x467   :  { %9732 = vrcp.f32 %v1651_v63 }
 0x474   :  { %v9733_v27 = vpop.eup %9732 }
 0x475   :  { %v1654_v40 = vmul.f32 %v9733_v27, %v1645_v3  ;;  %v1657_v31 = vsub.f32 1.0, %v9733_v27  ;;  %v11575_v3 = vld [vmem:[%s15376_s4 + $0x68] sm:$0xff] }
 0x477   :  { %v1655_v15 = vadd.f32 %v1654_v40, %v1560_v18  ;;  %v11589_v18 = vld [vmem:[%s15376_s4 + $0x58] sm:$0xff] }
 0x479   :  { %9734 = vtanh.f32 %v1655_v15 }
 0x486   :  { %v9735_v63 = vpop.eup %9734 }
 0x487   :  { %1659 = vrot.lane.b32.xlu1 %v9735_v63, %s10367_s1 }
 0x48b   :  { %1663 = vrot.lane.b32.xlu1 %v10580_v24, %s10367_s1  ;;  %v11559_v24 = vld [vmem:[%s15376_s4 + $0x78] sm:$0xff] }
 0x4f9   :  { %v1660_v39 = vpop.permute.xlu1 %1659 }
 0x4fa   :  { %v1662_v2 = vmul.f32 %v1660_v39, %v1657_v31 }
 0x4fd   :  { %v1664_v29 = vpop.permute.xlu1 %1663 }
 0x4fe   :  { %v1666_v30 = vmul.f32 %v9733_v27, %v1664_v29  ;;  %v11582_v27 = vld [vmem:[%s15376_s4 + $0x60] sm:$0xff]  ;;  %v15484_v29 = vld [vmem:[#allocation28_spill] sm:$0xff] }
 0x500   :  { %v11545_v25 = vadd.f32 %v1666_v30, %v1662_v2  ;;  %v15485_v2 = vld [vmem:[#allocation29_spill] sm:$0xff]  ;;  %v15486_v30 = vld [vmem:[#allocation30_spill] sm:$0xff] }
 0x502   :  { %1669 = vrot.lane.b32.xlu0 %v11545_v25, %s10367_s1 }
 0x574   :  { %v11549_v41 = vpop.permute.xlu0 %1669 }
 0x575   :  { %9186 = vmatprep.subr.mxu1 %v11549_v41 }
 0x576   :  { %9187 = vmatpush3.msra.mxu1 %v11549_v41 }
 0x577   :  { %9189 = vmatmul.mubr.msk.f32.vlgmr.msra.gmra.mxu1 %vm331_vm3, %v10587_v26  ;;  %9210 = vmatprep.subr.mxu1 %v15444_v38 }
 0x578   :  { %9211 = vmatpush3.msra.mxu1 %v11559_v24  ;;  %9226 = vmatprep.mubr.msk.f32.mxu1 %vm10364_vm1, %v15444_v38 }
 0x579   :  { %9212 = vmatprep.subr.mxu1 %v15444_v38 }
 0x57a   :  { %9213 = vmatpush3.msra.mxu1 %v11568_v23 }
 0x57b   :  { %9214 = vmatprep.subr.mxu1 %v15444_v38 }
 0x57c   :  { %9215 = vmatpush3.msra.mxu1 %v11575_v3 }
 0x57d   :  { %9216 = vmatprep.subr.mxu1 %v15444_v38 }
 0x57e   :  { %9217 = vmatpush3.msra.mxu1 %v11582_v27 }
 0x57f   :  { %9218 = vmatprep.subr.mxu1 %v15444_v38 }
 0x580   :  { %9219 = vmatpush3.msra.mxu1 %v11589_v18 }
 0x581   :  { %9220 = vmatprep.subr.mxu1 %v15444_v38 }
 0x582   :  { %9221 = vmatpush3.msra.mxu1 %v10627_v33 }
 0x583   :  { %9222 = vmatprep.subr.mxu1 %v15444_v38 }
 0x584   :  { %9223 = vmatpush3.msra.mxu1 %v10641_v35 }
 0x585   :  { %9224 = vmatprep.subr.mxu1 %v15444_v38 }
 0x586   :  { %9225 = vmatpush3.msra.mxu1 %v10650_v36 }
 0x587   :  { %9248 = vmatprep.subr.mxu1 %v15444_v38 }
 0x637   :  { %v11599_v40 = vpop.f32.mrf.mxu1 }
 0x639   :  { %v1738_v15 = vpop.f32.mrf.mxu1 }
 0x63a   :  { %v1756_v63 = vrot.slane %v1738_v15, %v10659_v42 }
 0x63c   :  { %v1764_v39 = vcombine.high %v1756_v63, %v1756_v63  ;;  %v1772_v31 = vrot.slane %v1756_v63, %v10659_v42  ;;  %v15488_v63 = vld [vmem:[#allocation32_spill] sm:$0xff] }
 0x63e   :  { %v1786_v33 = vrot.slane %v1764_v39, %v10659_v42  ;;  %9208 = vmatmul.mubr.msk.f32.vlgmr.msra.gmra.mxu0 %vm488_vm6, %v1772_v31  ;;  %v1794_v35 = vcombine.high %v1772_v31, %v1772_v31  ;;  %v15489_v39 = vld [vmem:[#allocation33_spill] sm:$0xff]  ;;  %v15490_v31 = vld [vmem:[#allocation34_spill] sm:$0xff] }
 0x63f   :  { %9230 = vmatpush3.msra.mxu0 %v10669_v47  ;;  %9245 = vmatprep.mubr.msk.f32.mxu0 %vm10364_vm1, %v15444_v38  ;;  %v1749_v47 = vcombine.high %v1738_v15, %v1738_v15  ;;  %v15487_v15 = vld [vmem:[#allocation31_spill] sm:$0xff] }
 0x640   :  { %9227 = vmatmul.mubr.msk.f32.vlgmr.msra.gmra.mxu1 %vm488_vm6, %v1786_v33  ;;  %9231 = vmatprep.subr.mxu0 %v15444_v38  ;;  %v1796_v36 = vcombine.high %v1786_v33, %v1786_v33  ;;  %v1804_v33 = vrot.slane %v11599_v40, %v10659_v42 }
 0x641   :  { %9249 = vmatpush3.msra.mxu1 %v10675_v49  ;;  %9232 = vmatpush3.msra.mxu0 %v10681_v50  ;;  %v1763_v49 = vrot.slane %v1749_v47, %v10659_v42  ;;  %v15493_v47 = vld [vmem:[#allocation37_spill] sm:$0xff] }
 0x642   :  { %9250 = vmatprep.subr.mxu1 %v15444_v38  ;;  %9233 = vmatprep.subr.mxu0 %v15444_v38  ;;  %v1812_v40 = vrot.slane %v1804_v33, %v10659_v42 }
 0x643   :  { %9251 = vmatpush3.msra.mxu1 %v10688_v51  ;;  %9234 = vmatpush3.msra.mxu0 %v10695_v52  ;;  %v1765_v50 = vcombine.high %v1763_v49, %v1763_v49  ;;  %v15463_v51 = vld [vmem:[#allocation7_spill] sm:$0xff]  ;;  %v1779_v52 = vrot.slane %v1763_v49, %v10659_v42  ;;  %v15494_v49 = vld [vmem:[#allocation38_spill] sm:$0xff] }
 0x644   :  { %9252 = vmatprep.subr.mxu1 %v15444_v38  ;;  %9235 = vmatprep.subr.mxu0 %v15444_v38 }
 0x645   :  { %9253 = vmatpush3.msra.mxu1 %v10702_v53  ;;  %9236 = vmatpush3.msra.mxu0 %v10709_v54  ;;  %v15464_v53 = vld [vmem:[#allocation8_spill] sm:$0xff]  ;;  %v15465_v54 = vld [vmem:[#allocation9_spill] sm:$0xff] }
 0x646   :  { %9254 = vmatprep.subr.mxu1 %v15444_v38  ;;  %9237 = vmatprep.subr.mxu0 %v15444_v38 }
 0x647   :  { %9255 = vmatpush3.msra.mxu1 %v10716_v55  ;;  %9238 = vmatpush3.msra.mxu0 %v10723_v56  ;;  %v1793_v55 = vrot.slane %v1765_v50, %v10659_v42  ;;  %v15466_v56 = vld [vmem:[#allocation10_spill] sm:$0xff]  ;;  %v1805_v50 = vcombine.high %v1804_v33, %v1804_v33  ;;  %v15524_v33 = vld [vmem:[#allocation68_spill] sm:$0xff] }
 0x648   :  { %9256 = vmatprep.subr.mxu1 %v15444_v38  ;;  %9239 = vmatprep.subr.mxu0 %v15444_v38 }
 0x649   :  { %9257 = vmatpush3.msra.mxu1 %v10730_v57  ;;  %9240 = vmatpush3.msra.mxu0 %v10737_v58  ;;  %v15467_v57 = vld [vmem:[#allocation11_spill] sm:$0xff]  ;;  %v15468_v58 = vld [vmem:[#allocation12_spill] sm:$0xff] }
 0x64a   :  { %9258 = vmatprep.subr.mxu1 %v15444_v38  ;;  %9241 = vmatprep.subr.mxu0 %v15444_v38 }
 0x64b   :  { %9259 = vmatpush3.msra.mxu1 %v10744_v59  ;;  %9242 = vmatpush3.msra.mxu0 %v10751_v60  ;;  %v15469_v59 = vld [vmem:[#allocation13_spill] sm:$0xff]  ;;  %v15470_v60 = vld [vmem:[#allocation14_spill] sm:$0xff] }
 0x64c   :  { %9260 = vmatprep.subr.mxu1 %v15444_v38  ;;  %9243 = vmatprep.subr.mxu0 %v15444_v38 }
 0x64d   :  { %9244 = vmatpush3.msra.mxu0 %v10760_v61  ;;  %9261 = vmatpush3.msra.mxu1 %v10765_v62  ;;  %v15471_v61 = vld [vmem:[#allocation15_spill] sm:$0xff]  ;;  %v15472_v62 = vld [vmem:[#allocation16_spill] sm:$0xff] }
 0x64e   :  { %9246 = vmatmul.mubr.msk.f32.vlgmr.msra.gmra.mxu0 %vm488_vm6, %v1794_v35  ;;  %9262 = vmatprep.subr.mxu1 %v15444_v38  ;;  %v15491_v35 = vld [vmem:[#allocation35_spill] sm:$0xff] }
 0x64f   :  { %9267 = vmatprep.subr.mxu0 %v15444_v38  ;;  %9263 = vmatpush3.msra.mxu1 %v10775_v0  ;;  %v15473_v0 = vld [vmem:[#allocation17_spill] sm:$0xff] }
 0x650   :  { %9264 = vmatprep.mubr.msk.f32.mxu1 %vm10364_vm1, %v15444_v38  ;;  %9268 = vmatpush3.msra.mxu0 %v10782_v1  ;;  %v15474_v1 = vld [vmem:[#allocation18_spill] sm:$0xff] }
 0x651   :  { %9265 = vmatmul.mubr.msk.f32.vlgmr.msra.gmra.mxu1 %vm488_vm6, %v1796_v36  ;;  %9269 = vmatprep.subr.mxu0 %v15444_v38  ;;  %v15492_v36 = vld [vmem:[#allocation36_spill] sm:$0xff] }
 0x652   :  { %9286 = vmatprep.subr.mxu1 %v15444_v38  ;;  %9270 = vmatpush3.msra.mxu0 %v10791_v4  ;;  %v15475_v4 = vld [vmem:[#allocation19_spill] sm:$0xff] }
 0x653   :  { %9287 = vmatpush3.msra.mxu1 %v10799_v5  ;;  %9271 = vmatprep.subr.mxu0 %v15444_v38  ;;  %v15476_v5 = vld [vmem:[#allocation20_spill] sm:$0xff] }
 0x654   :  { %9288 = vmatprep.subr.mxu1 %v15444_v38  ;;  %9272 = vmatpush3.msra.mxu0 %v10806_v6  ;;  %v15477_v6 = vld [vmem:[#allocation21_spill] sm:$0xff] }
 0x655   :  { %9289 = vmatpush3.msra.mxu1 %v10813_v7  ;;  %9273 = vmatprep.subr.mxu0 %v15444_v38  ;;  %v15478_v7 = vld [vmem:[#allocation22_spill] sm:$0xff] }
 0x656   :  { %9290 = vmatprep.subr.mxu1 %v15444_v38  ;;  %9274 = vmatpush3.msra.mxu0 %v10820_v8  ;;  %v15479_v8 = vld [vmem:[#allocation23_spill] sm:$0xff] }
 0x657   :  { %9291 = vmatpush3.msra.mxu1 %v10827_v9  ;;  %9275 = vmatprep.subr.mxu0 %v15444_v38  ;;  %v1795_v9 = vcombine.high %v1779_v52, %v1779_v52 }
 0x658   :  { %9292 = vmatprep.subr.mxu1 %v15444_v38  ;;  %9276 = vmatpush3.msra.mxu0 %v10836_v16  ;;  %v15480_v16 = vld [vmem:[#allocation24_spill] sm:$0xff] }
 0x659   :  { %9293 = vmatpush3.msra.mxu1 %v10843_v17  ;;  %9277 = vmatprep.subr.mxu0 %v15444_v38  ;;  %v15481_v17 = vld [vmem:[#allocation25_spill] sm:$0xff] }
 0x65a   :  { %9294 = vmatprep.subr.mxu1 %v15444_v38  ;;  %9278 = vmatpush3.msra.mxu0 %v10850_v19  ;;  %v1797_v19 = vcombine.high %v1793_v55, %v1793_v55 }
 0x65b   :  { %9295 = vmatpush3.msra.mxu1 %v10857_v20  ;;  %9279 = vmatprep.subr.mxu0 %v15444_v38  ;;  %v15482_v20 = vld [vmem:[#allocation26_spill] sm:$0xff] }
 0x65c   :  { %9296 = vmatprep.subr.mxu1 %v15444_v38  ;;  %9280 = vmatpush3.msra.mxu0 %v10865_v22  ;;  %v15483_v22 = vld [vmem:[#allocation27_spill] sm:$0xff] }
 0x65d   :  { %9297 = vmatpush3.msra.mxu1 %v15463_v51  ;;  %9281 = vmatprep.subr.mxu0 %v15444_v38  ;;  %v15495_v51 = vld [vmem:[#allocation39_spill] sm:$0xff] }
 0x65e   :  { %9298 = vmatprep.subr.mxu1 %v15444_v38  ;;  %9282 = vmatpush3.msra.mxu0 %v15464_v53  ;;  %v15497_v53 = vld [vmem:[#allocation41_spill] sm:$0xff] }
 0x65f   :  { %9283 = vmatprep.mubr.msk.f32.mxu0 %vm10364_vm1, %v15444_v38  ;;  %9299 = vmatpush3.msra.mxu1 %v15465_v54  ;;  %v1819_v54 = vrot.slane %v1805_v50, %v10659_v42 }
 0x660   :  { %9284 = vmatmul.mubr.msk.f32.vlgmr.msra.gmra.mxu0 %vm488_vm6, %v1779_v52  ;;  %9300 = vmatprep.subr.mxu1 %v15444_v38  ;;  %v15496_v52 = vld [vmem:[#allocation40_spill] sm:$0xff] }
 0x661   :  { %9305 = vmatprep.subr.mxu0 %v15444_v38  ;;  %9301 = vmatpush3.msra.mxu1 %v15466_v56  ;;  %v15499_v56 = vld [vmem:[#allocation43_spill] sm:$0xff] }
 0x662   :  { %9302 = vmatprep.mubr.msk.f32.mxu1 %vm10364_vm1, %v15444_v38  ;;  %9306 = vmatpush3.msra.mxu0 %v15467_v57  ;;  %v15500_v57 = vld [vmem:[#allocation44_spill] sm:$0xff] }
 0x663   :  { %9303 = vmatmul.mubr.msk.f32.vlgmr.msra.gmra.mxu1 %vm488_vm6, %v1793_v55  ;;  %9307 = vmatprep.subr.mxu0 %v15444_v38  ;;  %v15498_v55 = vld [vmem:[#allocation42_spill] sm:$0xff] }
 0x664   :  { %9324 = vmatprep.subr.mxu1 %v15444_v38  ;;  %9308 = vmatpush3.msra.mxu0 %v15468_v58  ;;  %v15501_v58 = vld [vmem:[#allocation45_spill] sm:$0xff] }
 0x665   :  { %9325 = vmatpush3.msra.mxu1 %v15469_v59  ;;  %9309 = vmatprep.subr.mxu0 %v15444_v38  ;;  %v15502_v59 = vld [vmem:[#allocation46_spill] sm:$0xff] }
 0x666   :  { %9326 = vmatprep.subr.mxu1 %v15444_v38  ;;  %9310 = vmatpush3.msra.mxu0 %v15470_v60  ;;  %v15503_v60 = vld [vmem:[#allocation47_spill] sm:$0xff] }
 0x667   :  { %9327 = vmatpush3.msra.mxu1 %v15471_v61  ;;  %9311 = vmatprep.subr.mxu0 %v15444_v38  ;;  %v15504_v61 = vld [vmem:[#allocation48_spill] sm:$0xff] }
 0x668   :  { %9328 = vmatprep.subr.mxu1 %v15444_v38  ;;  %9312 = vmatpush3.msra.mxu0 %v15472_v62  ;;  %v15505_v62 = vld [vmem:[#allocation49_spill] sm:$0xff] }
 0x669   :  { %9329 = vmatpush3.msra.mxu1 %v15473_v0  ;;  %9313 = vmatprep.subr.mxu0 %v15444_v38  ;;  %v15506_v0 = vld [vmem:[#allocation50_spill] sm:$0xff] }
 0x66a   :  { %9330 = vmatprep.subr.mxu1 %v15444_v38  ;;  %9314 = vmatpush3.msra.mxu0 %v15474_v1  ;;  %v15507_v1 = vld [vmem:[#allocation51_spill] sm:$0xff] }
 0x66b   :  { %9331 = vmatpush3.msra.mxu1 %v15475_v4  ;;  %9315 = vmatprep.subr.mxu0 %v15444_v38  ;;  %v15508_v4 = vld [vmem:[#allocation52_spill] sm:$0xff] }
 0x66c   :  { %9332 = vmatprep.subr.mxu1 %v15444_v38  ;;  %9316 = vmatpush3.msra.mxu0 %v15476_v5  ;;  %v15509_v5 = vld [vmem:[#allocation53_spill] sm:$0xff] }
 0x66d   :  { %9333 = vmatpush3.msra.mxu1 %v15477_v6  ;;  %9317 = vmatprep.subr.mxu0 %v15444_v38  ;;  %v15510_v6 = vld [vmem:[#allocation54_spill] sm:$0xff] }
 0x66e   :  { %9334 = vmatprep.subr.mxu1 %v15444_v38  ;;  %9318 = vmatpush3.msra.mxu0 %v15478_v7  ;;  %v15511_v7 = vld [vmem:[#allocation55_spill] sm:$0xff] }
 0x66f   :  { %9335 = vmatpush3.msra.mxu1 %v15479_v8  ;;  %9319 = vmatprep.subr.mxu0 %v15444_v38  ;;  %v1820_v8 = vcombine.high %v1812_v40, %v1812_v40 }
 0x670   :  { %9336 = vmatprep.subr.mxu1 %v15444_v38  ;;  %9320 = vmatpush3.msra.mxu0 %v15480_v16  ;;  %v15513_v16 = vld [vmem:[#allocation57_spill] sm:$0xff] }
 0x671   :  { %9321 = vmatprep.mubr.msk.f32.mxu0 %vm10364_vm1, %v15444_v38  ;;  %9337 = vmatpush3.msra.mxu1 %v15481_v17  ;;  %v1821_v17 = vcombine.high %v1819_v54, %v1819_v54 }
 0x672   :  { %9322 = vmatmul.mubr.msk.f32.vlgmr.msra.gmra.mxu0 %vm488_vm6, %v1795_v9  ;;  %9338 = vmatprep.subr.mxu1 %v15444_v38  ;;  %v15512_v9 = vld [vmem:[#allocation56_spill] sm:$0xff] }
 0x673   :  { %9343 = vmatprep.subr.mxu0 %v15444_v38  ;;  %9339 = vmatpush3.msra.mxu1 %v15482_v20  ;;  %v15515_v20 = vld [vmem:[#allocation59_spill] sm:$0xff] }
 0x674   :  { %9340 = vmatprep.mubr.msk.f32.mxu1 %vm10364_vm1, %v15444_v38  ;;  %9344 = vmatpush3.msra.mxu0 %v15483_v22  ;;  %v15516_v22 = vld [vmem:[#allocation60_spill] sm:$0xff] }
 0x675   :  { %9341 = vmatmul.mubr.msk.f32.vlgmr.msra.gmra.mxu1 %vm488_vm6, %v1797_v19  ;;  %9345 = vmatprep.subr.mxu0 %v15444_v38  ;;  %v15514_v19 = vld [vmem:[#allocation58_spill] sm:$0xff] }
 0x676   :  { %9362 = vmatprep.subr.mxu1 %v15444_v38  ;;  %9346 = vmatpush3.msra.mxu0 %v15484_v29  ;;  %v15517_v29 = vld [vmem:[#allocation61_spill] sm:$0xff] }
 0x677   :  { %9363 = vmatpush3.msra.mxu1 %v15485_v2  ;;  %9347 = vmatprep.subr.mxu0 %v15444_v38  ;;  %v15518_v2 = vld [vmem:[#allocation62_spill] sm:$0xff] }
 0x678   :  { %9364 = vmatprep.subr.mxu1 %v15444_v38  ;;  %9348 = vmatpush3.msra.mxu0 %v15486_v30  ;;  %v15519_v30 = vld [vmem:[#allocation63_spill] sm:$0xff] }
 0x679   :  { %9365 = vmatpush3.msra.mxu1 %v15487_v15  ;;  %9349 = vmatprep.subr.mxu0 %v15444_v38  ;;  %v15520_v15 = vld [vmem:[#allocation64_spill] sm:$0xff] }
 0x67a   :  { %9366 = vmatprep.subr.mxu1 %v15444_v38  ;;  %9350 = vmatpush3.msra.mxu0 %v15488_v63  ;;  %v15521_v63 = vld [vmem:[#allocation65_spill] sm:$0xff] }
 0x67b   :  { %9367 = vmatpush3.msra.mxu1 %v15489_v39  ;;  %9351 = vmatprep.subr.mxu0 %v15444_v38  ;;  %v15522_v39 = vld [vmem:[#allocation66_spill] sm:$0xff] }
 0x67c   :  { %9368 = vmatprep.subr.mxu1 %v15444_v38  ;;  %9352 = vmatpush3.msra.mxu0 %v15490_v31  ;;  %v15523_v31 = vld [vmem:[#allocation67_spill] sm:$0xff] }
 0x67d   :  { %9369 = vmatpush3.msra.mxu1 %v15491_v35  ;;  %9353 = vmatprep.subr.mxu0 %v15444_v38  ;;  %v15525_v35 = vld [vmem:[#allocation69_spill] sm:$0xff] }
 0x67e   :  { %9370 = vmatprep.subr.mxu1 %v15444_v38  ;;  %9354 = vmatpush3.msra.mxu0 %v15492_v36 }
 0x67f   :  { %9371 = vmatpush3.msra.mxu1 %v15493_v47  ;;  %9355 = vmatprep.subr.mxu0 %v15444_v38 }
 0x680   :  { %9372 = vmatprep.subr.mxu1 %v15444_v38  ;;  %9356 = vmatpush3.msra.mxu0 %v15494_v49 }
 0x681   :  { %9373 = vmatpush3.msra.mxu1 %v15495_v51  ;;  %9357 = vmatprep.subr.mxu0 %v15444_v38 }
 0x682   :  { %9374 = vmatprep.subr.mxu1 %v15444_v38  ;;  %9358 = vmatpush3.msra.mxu0 %v15496_v52 }
 0x683   :  { %9359 = vmatprep.mubr.msk.f32.mxu0 %vm10364_vm1, %v15444_v38  ;;  %9375 = vmatpush3.msra.mxu1 %v15497_v53 }
 0x684   :  { %9360 = vmatmul.mubr.msk.f32.vlgmr.msra.gmra.mxu0 %vm488_vm6, %v1812_v40  ;;  %9376 = vmatprep.subr.mxu1 %v15444_v38 }
 0x685   :  { %9381 = vmatprep.subr.mxu0 %v15444_v38  ;;  %9377 = vmatpush3.msra.mxu1 %v15498_v55 }
 0x686   :  { %9378 = vmatprep.mubr.msk.f32.mxu1 %vm10364_vm1, %v15444_v38  ;;  %9382 = vmatpush3.msra.mxu0 %v15499_v56 }
 0x687   :  { %9379 = vmatmul.mubr.msk.f32.vlgmr.msra.gmra.mxu1 %vm488_vm6, %v1819_v54  ;;  %9383 = vmatprep.subr.mxu0 %v15444_v38 }
 0x688   :  { %9400 = vmatprep.subr.mxu1 %v15444_v38  ;;  %9384 = vmatpush3.msra.mxu0 %v15500_v57 }
 0x689   :  { %9401 = vmatpush3.msra.mxu1 %v15501_v58  ;;  %9385 = vmatprep.subr.mxu0 %v15444_v38 }
 0x68a   :  { %9402 = vmatprep.subr.mxu1 %v15444_v38  ;;  %9386 = vmatpush3.msra.mxu0 %v15502_v59 }
 0x68b   :  { %9403 = vmatpush3.msra.mxu1 %v15503_v60  ;;  %9387 = vmatprep.subr.mxu0 %v15444_v38 }
 0x68c   :  { %9404 = vmatprep.subr.mxu1 %v15444_v38  ;;  %9388 = vmatpush3.msra.mxu0 %v15504_v61 }
 0x68d   :  { %9405 = vmatpush3.msra.mxu1 %v15505_v62  ;;  %9389 = vmatprep.subr.mxu0 %v15444_v38 }
 0x68e   :  { %9406 = vmatprep.subr.mxu1 %v15444_v38  ;;  %9390 = vmatpush3.msra.mxu0 %v15506_v0 }
 0x68f   :  { %9407 = vmatpush3.msra.mxu1 %v15507_v1  ;;  %9391 = vmatprep.subr.mxu0 %v15444_v38 }
 0x690   :  { %9408 = vmatprep.subr.mxu1 %v15444_v38  ;;  %9392 = vmatpush3.msra.mxu0 %v15508_v4 }
 0x691   :  { %9409 = vmatpush3.msra.mxu1 %v15509_v5  ;;  %9393 = vmatprep.subr.mxu0 %v15444_v38 }
 0x692   :  { %9410 = vmatprep.subr.mxu1 %v15444_v38  ;;  %9394 = vmatpush3.msra.mxu0 %v15510_v6 }
 0x693   :  { %9411 = vmatpush3.msra.mxu1 %v15511_v7  ;;  %9395 = vmatprep.subr.mxu0 %v15444_v38 }
 0x694   :  { %9412 = vmatprep.subr.mxu1 %v15444_v38  ;;  %9396 = vmatpush3.msra.mxu0 %v15512_v9 }
 0x695   :  { %9397 = vmatprep.mubr.msk.f32.mxu0 %vm10364_vm1, %v15444_v38  ;;  %9413 = vmatpush3.msra.mxu1 %v15513_v16 }
 0x696   :  { %9398 = vmatmul.mubr.msk.f32.vlgmr.msra.gmra.mxu0 %vm488_vm6, %v1820_v8  ;;  %9414 = vmatprep.subr.mxu1 %v15444_v38 }
 0x697   :  { %9415 = vmatpush3.msra.mxu1 %v15514_v19  ;;  %9416 = vmatprep.mubr.msk.f32.mxu1 %vm10364_vm1, %v15444_v38 }
 0x698   :  { %9417 = vmatmul.mubr.msk.f32.vlgmr.msra.gmra.mxu1 %vm488_vm6, %v1821_v17  ;;  %9419 = vmatprep.subr.mxu0 %v15444_v38 }
 0x699   :  { %9423 = vmatprep.mubr.msk.f32.mxu0 %vm10364_vm1, %v15444_v38  ;;  %2811 = vmatprep.subr.mxu1 %v15515_v20 }
 0x69a   :  { %2812 = vmatpush1.msra.mxu1 %v15516_v22  ;;  %2859 = vmatprep.mubr.f32.mxu1 %v15444_v38 }
 0x69b   :  { %2813 = vmatprep.subr.mxu1 %v15517_v29 }
 0x69c   :  { %2814 = vmatpush1.msra.mxu1 %v15518_v2 }
 0x69d   :  { %2815 = vmatprep.subr.mxu1 %v15519_v30 }
 0x69e   :  { %2816 = vmatpush1.msra.mxu1 %v15520_v15 }
 0x69f   :  { %2817 = vmatprep.subr.mxu1 %v15521_v63 }
 0x6a0   :  { %2818 = vmatpush1.msra.mxu1 %v15522_v39 }
 0x6a1   :  { %2819 = vmatprep.subr.mxu1 %v15523_v31 }
 0x6a2   :  { %2820 = vmatpush1.msra.mxu1 %v15524_v33 }
 0x6a3   :  { %2821 = vmatprep.subr.mxu1 %v15525_v35 }
 0x6a4   :  { %2822 = vmatpush1.msra.mxu1 %v11478_v10 }
 0x6a5   :  { %2823 = vmatprep.subr.mxu1 %v11484_v11 }
 0x6a6   :  { %2824 = vmatpush1.msra.mxu1 %v11490_v12 }
 0x6a7   :  { %2825 = vmatprep.subr.mxu1 %v11496_v13 }
 0x6a8   :  { %2826 = vmatpush1.msra.mxu1 %v11502_v14 }
 0x6fe   :  { %v1890_v36 = vpop.f32.mrf.mxu0 }
 0x700   :  { %v1962_v47 = vpop.f32.mrf.mxu1  ;;  %v9209_v49 = vpop.f32.mrf.mxu0 }
 0x701   :  { %v2698_v50 = vrot.slane %v1962_v47, 7  ;;  %v15527_v47 = vld [vmem:[#allocation71_spill] sm:$0xff]  ;;  %v15528_v49 = vld [vmem:[#allocation72_spill] sm:$0xff] }
 0x702   :  { %v9228_v51 = vpop.f32.mrf.mxu1 }
 0x703   :  { %v2699_v40 = vsel %vm1372_vm7, %v2698_v50, %v1890_v36  ;;  %v15526_v36 = vld [vmem:[#allocation70_spill] sm:$0xff]  ;;  %v15529_v50 = vld [vmem:[#allocation73_spill] sm:$0xff] }
 0x704   :  { %v15530_v51 = vld [vmem:[#allocation74_spill] sm:$0xff] }
 0x70e   :  { %v2034_v52 = vpop.f32.mrf.mxu0 }
 0x70f   :  { %v2700_v53 = vrot.slane %v2034_v52, 6  ;;  %v9993_v52 = vld [vmem:[%s15376_s4 + $0x38] sm:$0xff] }
 0x710   :  { %v9247_v54 = vpop.f32.mrf.mxu0 }
 0x711   :  { %v2701_v10 = vsel %vm1375_vm8, %v2700_v53, %v2699_v40  ;;  %v2106_v55 = vpop.f32.mrf.mxu1  ;;  %v15533_v40 = vld [vmem:[#allocation77_spill] sm:$0xff]  ;;  %v9994_v53 = vld [vmem:[%s15376_s4 + $0x30] sm:$0xff] }
 0x712   :  { %v2702_v11 = vrot.slane %v2106_v55, 5  ;;  %v9996_v54 = vld [vmem:[%s15376_s4 + $0x20] sm:$0xff]  ;;  %v9998_v55 = vld [vmem:[%s15376_s4 + $0x10] sm:$0xff] }
 0x713   :  { %v9266_v56 = vpop.f32.mrf.mxu1 }
 0x714   :  { %v2703_v12 = vsel %vm1378_vm9, %v2702_v11, %v2701_v10  ;;  %v9997_v10 = vld [vmem:[%s15376_s4 + $0x18] sm:$0xff]  ;;  %v9999_v11 = vld [vmem:[%s15376_s4 + $0x8] sm:$0xff]  ;;  %v10000_v56 = vld [vmem:[%s15376_s4] sm:$0xff] }
 0x720   :  { %v2178_v13 = vpop.f32.mrf.mxu0 }
 0x721   :  { %v2704_v6 = vrot.slane %v2178_v13, 4  ;;  %v15537_v13 = vld [vmem:[#allocation81_spill] sm:$0xff] }
 0x722   :  { %v9285_v57 = vpop.f32.mrf.mxu0 }
 0x723   :  { %v2250_v14 = vpop.f32.mrf.mxu1  ;;  %v2705_v9 = vsel %vm1381_vm10, %v2704_v6, %v2703_v12 }
 0x724   :  { %v2706_v8 = vrot.slane %v2250_v14, 3 }
 0x725   :  { %v9304_v58 = vpop.f32.mrf.mxu1 }
 0x726   :  { %v2707_v2 = vsel %vm1384_vm11, %v2706_v8, %v2705_v9 }
 0x732   :  { %v2322_v59 = vpop.f32.mrf.mxu0 }
 0x733   :  { %v2708_v16 = vrot.slane %v2322_v59, 2  ;;  %v15538_v59 = vld [vmem:[#allocation6_spill] sm:$0xff] }
 0x734   :  { %v9323_v60 = vpop.f32.mrf.mxu0 }
 0x735   :  { %v2394_v61 = vpop.f32.mrf.mxu1  ;;  %v2709_v39 = vsel %vm1387_vm12, %v2708_v16, %v2707_v2 }
 0x736   :  { %v2710_v30 = vrot.slane %v2394_v61, 1 }
 0x737   :  { %v9342_v62 = vpop.f32.mrf.mxu1 }
 0x738   :  { %v2711_v35 = vsel %vm1390_vm15, %v2710_v30, %v2709_v39 }
 0x744   :  { %v2466_v0 = vpop.f32.mrf.mxu0 }
 0x746   :  { %v9361_v1 = vpop.f32.mrf.mxu0 }
 0x747   :  { %v2538_v4 = vpop.f32.mrf.mxu1 }
 0x748   :  { %v2712_v7 = vrot.slane %v2538_v4, 7 }
 0x749   :  { %v9380_v5 = vpop.f32.mrf.mxu1 }
 0x74a   :  { %v2713_v20 = vsel %vm1372_vm7, %v2712_v7, %v2466_v0 }
 0x756   :  { %v2610_v17 = vpop.f32.mrf.mxu0 }
 0x757   :  { %v2714_v19 = vrot.slane %v2610_v17, 6 }
 0x758   :  { %v9399_v22 = vpop.f32.mrf.mxu0  ;;  %v2682_v29 = vpop.f32.mrf.mxu1 }
 0x759   :  { %v2715_v15 = vsel %vm1375_vm8, %v2714_v19, %v2713_v20  ;;  %v2716_v63 = vrot.slane %v2682_v29, 5 }
 0x75a   :  { %v9418_v31 = vpop.f32.mrf.mxu1 }
 0x75b   :  { %v2717_v33 = vsel %vm1378_vm9, %v2716_v63, %v2715_v15 }
 0x75c   :  { %9420 = vmatpush3.msk.msra.mxu0 %vm1403_vm13, %v2717_v33 }
 0x75d   :  { %9421 = vmatprep.subr.mxu0 %v15444_v38 }
 0x75e   :  { %9422 = vmatpush3.msra.mxu0 %v2711_v35  ;;  %v10004_v35 = vld [vmem:[%s15376_s4 + $0xb8] sm:$0xff] }
 0x75f   :  { %9424 = vmatmul.mubr.msk.f32.vlgmr.msra.gmra.mxu0 %vm1399_vm0, %v11351_v45  ;;  %2884 = vmatprep.subr.mxu0 %v11356_v46  ;;  %v15531_v46 = vld [vmem:[#allocation75_spill] sm:$0xff] }
 0x760   :  { %2885 = vmatpush1.msra.mxu0 %v11363_v28  ;;  %2932 = vmatprep.mubr.f32.mxu0 %v15444_v38  ;;  %v15532_v28 = vld [vmem:[#allocation76_spill] sm:$0xff] }
 0x761   :  { %2886 = vmatprep.subr.mxu0 %v11368_v43  ;;  %v15534_v43 = vld [vmem:[#allocation78_spill] sm:$0xff] }
 0x762   :  { %2887 = vmatpush1.msra.mxu0 %v11376_v37  ;;  %v15535_v37 = vld [vmem:[#allocation79_spill] sm:$0xff] }
 0x763   :  { %2888 = vmatprep.subr.mxu0 %v11382_v44  ;;  %v15536_v44 = vld [vmem:[#allocation80_spill] sm:$0xff] }
 0x764   :  { %2889 = vmatpush1.msra.mxu0 %v15526_v36  ;;  %v10005_v36 = vld [vmem:[%s15376_s4 + $0xf8] sm:$0xff] }
 0x765   :  { %2890 = vmatprep.subr.mxu0 %v15527_v47  ;;  %v10006_v47 = vld [vmem:[%s15376_s4 + $0xb0] sm:$0xff] }
 0x766   :  { %2891 = vmatpush1.msra.mxu0 %v15528_v49  ;;  %v10007_v49 = vld [vmem:[%s15376_s4 + $0xf0] sm:$0xff] }
 0x767   :  { %2892 = vmatprep.subr.mxu0 %v15529_v50  ;;  %v10008_v50 = vld [vmem:[%s15376_s4 + $0xa8] sm:$0xff] }
 0x768   :  { %2893 = vmatpush1.msra.mxu0 %v15530_v51  ;;  %v10009_v51 = vld [vmem:[%s15376_s4 + $0xe8] sm:$0xff] }
 0x769   :  { %2894 = vmatprep.subr.mxu0 %v15531_v46  ;;  %v10010_v46 = vld [vmem:[%s15376_s4 + $0xa0] sm:$0xff] }
 0x76a   :  { %2895 = vmatpush1.msra.mxu0 %v15532_v28  ;;  %v10011_v28 = vld [vmem:[%s15376_s4 + $0xe0] sm:$0xff] }
 0x76b   :  { %2896 = vmatprep.subr.mxu0 %v15533_v40  ;;  %v10012_v40 = vld [vmem:[%s15376_s4 + $0x98] sm:$0xff] }
 0x76c   :  { %2897 = vmatpush1.msra.mxu0 %v15534_v43  ;;  %v10013_v43 = vld [vmem:[%s15376_s4 + $0xd8] sm:$0xff] }
 0x76d   :  { %2898 = vmatprep.subr.mxu0 %v15535_v37  ;;  %v10014_v37 = vld [vmem:[%s15376_s4 + $0x90] sm:$0xff] }
 0x76e   :  { %2899 = vmatpush1.msra.mxu0 %v15536_v44  ;;  %v10015_v44 = vld [vmem:[%s15376_s4 + $0xd0] sm:$0xff] }
 0x76f   :  { %8464 = vmatmul.mubr.msk.f32.vlgmr.msra.gmra.mxu0 %vm488_vm6, %v11549_v41  ;;  %9431 = vmatprep.subr.mxu0 %v15444_v38  ;;  %v9995_v41 = vld [vmem:[%s15376_s4 + $0x28] sm:$0xff] }
 0x770   :  { %9432 = vmatpush3.msra.mxu0 %v9993_v52  ;;  %9447 = vmatprep.mubr.msk.f32.mxu0 %vm10364_vm1, %v15444_v38  ;;  %v10016_v52 = vld [vmem:[%s15376_s4 + $0x88] sm:$0xff] }
 0x771   :  { %9433 = vmatprep.subr.mxu0 %v15444_v38 }
 0x772   :  { %9434 = vmatpush3.msra.mxu0 %v9994_v53 }
 0x773   :  { %9435 = vmatprep.subr.mxu0 %v15444_v38 }
 0x774   :  { %9436 = vmatpush3.msra.mxu0 %v9995_v41  ;;  %v10017_v41 = vld [vmem:[%s15376_s4 + $0x80] sm:$0xff] }
 0x775   :  { %9437 = vmatprep.subr.mxu0 %v15444_v38 }
 0x776   :  { %9438 = vmatpush3.msra.mxu0 %v9996_v54  ;;  %v10018_v54 = vld [vmem:[%s15376_s4 + $0xc8] sm:$0xff] }
 0x777   :  { %9439 = vmatprep.subr.mxu0 %v15444_v38 }
 0x778   :  { %9440 = vmatpush3.msra.mxu0 %v9997_v10 }
 0x779   :  { %9441 = vmatprep.subr.mxu0 %v15444_v38 }
 0x77a   :  { %9442 = vmatpush3.msra.mxu0 %v9998_v55  ;;  %v10019_v55 = vld [vmem:[%s15376_s4 + $0xc0] sm:$0xff] }
 0x77b   :  { %9443 = vmatprep.subr.mxu0 %v15444_v38 }
 0x77c   :  { %9444 = vmatpush3.msra.mxu0 %v9999_v11  ;;  %v10020_v11 = vld [vmem:[%s15376_s4 + $0x138] sm:$0xff] }
 0x77d   :  { %9445 = vmatprep.subr.mxu0 %v15444_v38 }
 0x77e   :  { %9446 = vmatpush3.msra.mxu0 %v10000_v56  ;;  %v10021_v56 = vld [vmem:[%s15376_s4 + $0x130] sm:$0xff] }
 0x77f   :  { %9469 = vmatprep.subr.mxu0 %v15444_v38 }
 0x81f   :  { %v2787_v12 = vpop.f32.mrf.mxu0 }
 0x820   :  { %v2788_v57 = vadd.f32 %v15537_v13, %v2787_v12  ;;  %v10022_v12 = vld [vmem:[%s15376_s4 + $0x178] sm:$0xff]  ;;  %v10023_v13 = vld [vmem:[%s15376_s4 + $0x128] sm:$0xff] }
 0x821   :  { %v9425_v14 = vpop.f32.mrf.mxu0 }
 0x822   :  { %v2791_v58 = vmax.f32 %v2788_v57, 0.0  ;;  %v10024_v14 = vld [vmem:[%s15376_s4 + $0x170] sm:$0xff] }
 0x824   :  { %8463 = vmatmul.mubr.msk.f32.vlgmr.msra.gmra.mxu1 %vm488_vm6, %v2791_v58  ;;  %v10025_v58 = vld [vmem:[%s15376_s4 + $0x120] sm:$0xff] }
 0x825   :  { %9428 = vmatprep.mubr.msk.f32.mxu1 %vm331_vm3, %v15538_v59  ;;  %v10026_v59 = vld [vmem:[%s15376_s4 + $0x168] sm:$0xff] }
 0x82f   :  { %v2934_v60 = vpop.f32.mrf.mxu0 }
 0x830   :  { %v2935_v62 = vadd.f32 %v2934_v60, %v11524_v32  ;;  %v10027_v60 = vld [vmem:[%s15376_s4 + $0x118] sm:$0xff] }
 0x831   :  { %v2936_v7 = vpop.f32.mrf.mxu0 }
 0x832   :  { %v2937_v9 = vadd.f32 %v2936_v7, %v11535_v21 }
 0x8e4   :  { %v2861_v61 = vpop.f32.mrf.mxu1 }
 0x8e5   :  { %v2862_v0 = vadd.f32 %v2861_v61, %v11527_v34 }
 0x8e6   :  { %v2863_v8 = vpop.f32.mrf.mxu1 }
 0x8e7   :  { %v2939_v1 = vadd.f32 %v2935_v62, %v2862_v0  ;;  %v2864_v17 = vadd.f32 %v2863_v8, %v11538_v48  ;;  %v10028_v62 = vld [vmem:[%s15376_s4 + $0x160] sm:$0xff]  ;;  %v10029_v0 = vld [vmem:[%s15376_s4 + $0x110] sm:$0xff] }
 0x8e8   :  { %v10033_v8 = vld [vmem:[%s15376_s4 + $0x100] sm:$0xff] }
 0x8e9   :  { %v8465_v4 = vmul.f32 -1.442695, %v2939_v1  ;;  %v10030_v1 = vld [vmem:[%s15376_s4 + $0x158] sm:$0xff] }
 0x8eb   :  { %9736 = vpow2.f32 %v8465_v4  ;;  %v10031_v4 = vld [vmem:[%s15376_s4 + $0x108] sm:$0xff] }
 0x8f8   :  { %v9737_v5 = vpop.eup %9736 }
 0x8f9   :  { %v2943_v6 = vadd.f32 1.0, %v9737_v5 }
 0x8fb   :  { %9738 = vrcp.f32 %v2943_v6  ;;  %v10032_v6 = vld [vmem:[%s15376_s4 + $0x150] sm:$0xff] }
 0x908   :  { %v9739_v16 = vpop.eup %9738 }
 0x909   :  { %v2946_v19 = vmul.f32 %v9739_v16, %v2937_v9  ;;  %v2949_v29 = vsub.f32 1.0, %v9739_v16  ;;  %v2955_v30 = vmul.f32 %v9739_v16, %v11545_v25  ;;  %v10002_v25 = vld [vmem:[%s15376_s4 + $0x48] sm:$0xff] }
 0x90a   :  { %v10034_v9 = vld [vmem:[%s15376_s4 + $0x148] sm:$0xff] }
 0x90b   :  { %v2947_v20 = vadd.f32 %v2946_v19, %v2864_v17  ;;  %v10035_v17 = vld [vmem:[%s15376_s4 + $0x140] sm:$0xff]  ;;  %v10036_v19 = vld [vmem:[%s15376_s4 + $0x1b8] sm:$0xff] }
 0x90d   :  { %9740 = vtanh.f32 %v2947_v20  ;;  %v10037_v20 = vld [vmem:[%s15376_s4 + $0x1b0] sm:$0xff] }
 0x91a   :  { %v9741_v22 = vpop.eup %9740 }
 0x91b   :  { %2951 = vrot.lane.b32.xlu1 %v9741_v22, %s10367_s1  ;;  %v10038_v22 = vld [vmem:[%s15376_s4 + $0x1f8] sm:$0xff] }
 0x98d   :  { %v2952_v2 = vpop.permute.xlu1 %2951 }
 0x98e   :  { %v2954_v15 = vmul.f32 %v2952_v2, %v2949_v29  ;;  %v10039_v29 = vld [vmem:[%s15376_s4 + $0x1a8] sm:$0xff]  ;;  %v10040_v2 = vld [vmem:[%s15376_s4 + $0x1f0] sm:$0xff] }
 0x990   :  { %v11899_v63 = vadd.f32 %v2955_v30, %v2954_v15  ;;  %v10041_v30 = vld [vmem:[%s15376_s4 + $0x1a0] sm:$0xff]  ;;  %v10042_v15 = vld [vmem:[%s15376_s4 + $0x1e8] sm:$0xff] }
 0x992   :  { %2958 = vrot.lane.b32.xlu0 %v11899_v63, %s10367_s1 }
 0xa04   :  { %v11903_v39 = vpop.permute.xlu0 %2958 }
 0xa05   :  { %9426 = vmatprep.subr.mxu1 %v11903_v39 }
 0xa06   :  { %9427 = vmatpush3.msra.mxu1 %v11903_v39 }
 0xa07   :  { %9429 = vmatmul.mubr.msk.f32.vlgmr.msra.gmra.mxu1 %vm331_vm3, %v10587_v26  ;;  %9450 = vmatprep.subr.mxu1 %v15444_v38  ;;  %v10001_v26 = vld [vmem:[%s15376_s4 + $0x50] sm:$0xff] }
 0xa08   :  { %9451 = vmatpush3.msra.mxu1 %v11559_v24  ;;  %9466 = vmatprep.mubr.msk.f32.mxu1 %vm10364_vm1, %v15444_v38  ;;  %v10003_v24 = vld [vmem:[%s15376_s4 + $0x40] sm:$0xff] }
 0xa09   :  { %9452 = vmatprep.subr.mxu1 %v15444_v38 }
 0xa0a   :  { %9453 = vmatpush3.msra.mxu1 %v11568_v23 }
 0xa0b   :  { %9454 = vmatprep.subr.mxu1 %v15444_v38 }
 0xa0c   :  { %9455 = vmatpush3.msra.mxu1 %v11575_v3 }
 0xa0d   :  { %9456 = vmatprep.subr.mxu1 %v15444_v38 }
 0xa0e   :  { %9457 = vmatpush3.msra.mxu1 %v11582_v27 }
 0xa0f   :  { %9458 = vmatprep.subr.mxu1 %v15444_v38 }
 0xa10   :  { %9459 = vmatpush3.msra.mxu1 %v11589_v18 }
 0xa11   :  { %9460 = vmatprep.subr.mxu1 %v15444_v38 }
 0xa12   :  { %9461 = vmatpush3.msra.mxu1 %v10001_v26  ;;  %v10043_v26 = vld [vmem:[%s15376_s4 + $0x198] sm:$0xff] }
 0xa13   :  { %9462 = vmatprep.subr.mxu1 %v15444_v38 }
 0xa14   :  { %9463 = vmatpush3.msra.mxu1 %v10002_v25  ;;  %v10044_v25 = vld [vmem:[%s15376_s4 + $0x1e0] sm:$0xff] }
 0xa15   :  { %9464 = vmatprep.subr.mxu1 %v15444_v38 }
 0xa16   :  { %9465 = vmatpush3.msra.mxu1 %v10003_v24  ;;  %v10045_v24 = vld [vmem:[%s15376_s4 + $0x190] sm:$0xff] }
 0xa17   :  { %9488 = vmatprep.subr.mxu1 %v15444_v38 }
 0xac7   :  { %v11934_v23 = vpop.f32.mrf.mxu1 }
 0xac9   :  { %v11936_v3 = vpop.f32.mrf.mxu1 }
 0xaca   :  { %v3045_v27 = vrot.slane %v11936_v3, %v10659_v42  ;;  %v3038_v57 = vcombine.high %v11936_v3, %v11936_v3  ;;  %v10046_v3 = vld [vmem:[%s15376_s4 + $0x1d8] sm:$0xff] }
 0xacc   :  { %v3053_v18 = vcombine.high %v3045_v27, %v3045_v27  ;;  %v3061_v31 = vrot.slane %v3045_v27, %v10659_v42  ;;  %v3052_v61 = vrot.slane %v3038_v57, %v10659_v42  ;;  %v10047_v27 = vld [vmem:[%s15376_s4 + $0x188] sm:$0xff]  ;;  %v10068_v57 = vld [vmem:[%s15376_s4 + $0x2b8] sm:$0xff] }
 0xace   :  { %v3075_v33 = vrot.slane %v3053_v18, %v10659_v42  ;;  %9448 = vmatmul.mubr.msk.f32.vlgmr.msra.gmra.mxu0 %vm488_vm6, %v3061_v31  ;;  %v3083_v53 = vcombine.high %v3061_v31, %v3061_v31  ;;  %v3054_v5 = vcombine.high %v3052_v61, %v3052_v61  ;;  %v3068_v7 = vrot.slane %v3052_v61, %v10659_v42  ;;  %v10048_v18 = vld [vmem:[%s15376_s4 + $0x1d0] sm:$0xff]  ;;  %v10074_v61 = vld [vmem:[%s15376_s4 + $0x2e8] sm:$0xff] }
 0xacf   :  { %9470 = vmatpush3.msra.mxu0 %v10004_v35  ;;  %9485 = vmatprep.mubr.msk.f32.mxu0 %vm10364_vm1, %v15444_v38  ;;  %v10050_v35 = vld [vmem:[%s15376_s4 + $0x1c8] sm:$0xff] }
 0xad0   :  { %9467 = vmatmul.mubr.msk.f32.vlgmr.msra.gmra.mxu1 %vm488_vm6, %v3075_v33  ;;  %9471 = vmatprep.subr.mxu0 %v15444_v38  ;;  %v3085_v10 = vcombine.high %v3075_v33, %v3075_v33  ;;  %v3082_v16 = vrot.slane %v3054_v5, %v10659_v42  ;;  %v3084_v31 = vcombine.high %v3068_v7, %v3068_v7  ;;  %v10049_v33 = vld [vmem:[%s15376_s4 + $0x180] sm:$0xff]  ;;  %v10079_v5 = vld [vmem:[%s15376_s4 + $0x288] sm:$0xff] }
 0xad1   :  { %9489 = vmatpush3.msra.mxu1 %v10005_v36  ;;  %9472 = vmatpush3.msra.mxu0 %v10006_v47  ;;  %v10051_v47 = vld [vmem:[%s15376_s4 + $0x1c0] sm:$0xff] }
 0xad2   :  { %9490 = vmatprep.subr.mxu1 %v15444_v38  ;;  %9473 = vmatprep.subr.mxu0 %v15444_v38  ;;  %v3086_v36 = vcombine.high %v3082_v16, %v3082_v16 }
 0xad3   :  { %9491 = vmatpush3.msra.mxu1 %v10007_v49  ;;  %9474 = vmatpush3.msra.mxu0 %v10008_v50  ;;  %v10052_v49 = vld [vmem:[%s15376_s4 + $0x238] sm:$0xff]  ;;  %v10053_v50 = vld [vmem:[%s15376_s4 + $0x230] sm:$0xff] }
 0xad4   :  { %9492 = vmatprep.subr.mxu1 %v15444_v38  ;;  %9475 = vmatprep.subr.mxu0 %v15444_v38 }
 0xad5   :  { %9493 = vmatpush3.msra.mxu1 %v10009_v51  ;;  %9476 = vmatpush3.msra.mxu0 %v10010_v46  ;;  %v10054_v51 = vld [vmem:[%s15376_s4 + $0x278] sm:$0xff]  ;;  %v10055_v46 = vld [vmem:[%s15376_s4 + $0x228] sm:$0xff] }
 0xad6   :  { %9494 = vmatprep.subr.mxu1 %v15444_v38  ;;  %9477 = vmatprep.subr.mxu0 %v15444_v38 }
 0xad7   :  { %9495 = vmatpush3.msra.mxu1 %v10011_v28  ;;  %9478 = vmatpush3.msra.mxu0 %v10012_v40  ;;  %v10056_v28 = vld [vmem:[%s15376_s4 + $0x270] sm:$0xff]  ;;  %v10057_v40 = vld [vmem:[%s15376_s4 + $0x220] sm:$0xff] }
 0xad8   :  { %9496 = vmatprep.subr.mxu1 %v15444_v38  ;;  %9479 = vmatprep.subr.mxu0 %v15444_v38 }
 0xad9   :  { %9497 = vmatpush3.msra.mxu1 %v10013_v43  ;;  %9480 = vmatpush3.msra.mxu0 %v10014_v37  ;;  %v10058_v43 = vld [vmem:[%s15376_s4 + $0x268] sm:$0xff]  ;;  %v10059_v37 = vld [vmem:[%s15376_s4 + $0x218] sm:$0xff] }
 0xada   :  { %9498 = vmatprep.subr.mxu1 %v15444_v38  ;;  %9481 = vmatprep.subr.mxu0 %v15444_v38 }
 0xadb   :  { %9499 = vmatpush3.msra.mxu1 %v10015_v44  ;;  %9482 = vmatpush3.msra.mxu0 %v10016_v52  ;;  %v3093_v44 = vrot.slane %v11934_v23, %v10659_v42  ;;  %v10060_v52 = vld [vmem:[%s15376_s4 + $0x260] sm:$0xff]  ;;  %v10063_v23 = vld [vmem:[%s15376_s4 + $0x208] sm:$0xff] }
 0xadc   :  { %9500 = vmatprep.subr.mxu1 %v15444_v38  ;;  %9483 = vmatprep.subr.mxu0 %v15444_v38 }
 0xadd   :  { %9484 = vmatpush3.msra.mxu0 %v10017_v41  ;;  %9501 = vmatpush3.msra.mxu1 %v10018_v54  ;;  %v10062_v41 = vld [vmem:[%s15376_s4 + $0x258] sm:$0xff]  ;;  %v3094_v54 = vcombine.high %v3093_v44, %v3093_v44 }
 0xade   :  { %9486 = vmatmul.mubr.msk.f32.vlgmr.msra.gmra.mxu0 %vm488_vm6, %v3083_v53  ;;  %9502 = vmatprep.subr.mxu1 %v15444_v38  ;;  %v10061_v53 = vld [vmem:[%s15376_s4 + $0x210] sm:$0xff] }
 0xadf   :  { %9507 = vmatprep.subr.mxu0 %v15444_v38  ;;  %9503 = vmatpush3.msra.mxu1 %v10019_v55  ;;  %v12213_v55 = vrot.slane %v3093_v44, %v10659_v42 }
 0xae0   :  { %9504 = vmatprep.mubr.msk.f32.mxu1 %vm10364_vm1, %v15444_v38  ;;  %9508 = vmatpush3.msra.mxu0 %v10020_v11  ;;  %v10065_v11 = vld [vmem:[%s15376_s4 + $0x200] sm:$0xff] }
 0xae1   :  { %9505 = vmatmul.mubr.msk.f32.vlgmr.msra.gmra.mxu1 %vm488_vm6, %v3085_v10  ;;  %9509 = vmatprep.subr.mxu0 %v15444_v38  ;;  %v10064_v10 = vld [vmem:[%s15376_s4 + $0x250] sm:$0xff] }
 0xae2   :  { %9526 = vmatprep.subr.mxu1 %v15444_v38  ;;  %9510 = vmatpush3.msra.mxu0 %v10021_v56  ;;  %v10066_v56 = vld [vmem:[%s15376_s4 + $0x248] sm:$0xff] }
 0xae3   :  { %9527 = vmatpush3.msra.mxu1 %v10022_v12  ;;  %9511 = vmatprep.subr.mxu0 %v15444_v38  ;;  %v3108_v12 = vrot.slane %v3094_v54, %v10659_v42  ;;  %v10069_v42 = vld [vmem:[%s15376_s4 + $0x2b0] sm:$0xff] }
 0xae4   :  { %9528 = vmatprep.subr.mxu1 %v15444_v38  ;;  %9512 = vmatpush3.msra.mxu0 %v10023_v13  ;;  %v10067_v13 = vld [vmem:[%s15376_s4 + $0x240] sm:$0xff] }
 0xae5   :  { %9529 = vmatpush3.msra.mxu1 %v10024_v14  ;;  %9513 = vmatprep.subr.mxu0 %v15444_v38  ;;  %v10070_v14 = vld [vmem:[%s15376_s4 + $0x2f8] sm:$0xff] }
 0xae6   :  { %9530 = vmatprep.subr.mxu1 %v15444_v38  ;;  %9514 = vmatpush3.msra.mxu0 %v10025_v58  ;;  %v10071_v58 = vld [vmem:[%s15376_s4 + $0x2a8] sm:$0xff] }
 0xae7   :  { %9531 = vmatpush3.msra.mxu1 %v10026_v59  ;;  %9515 = vmatprep.subr.mxu0 %v15444_v38  ;;  %v10072_v59 = vld [vmem:[%s15376_s4 + $0x2f0] sm:$0xff] }
 0xae8   :  { %9532 = vmatprep.subr.mxu1 %v15444_v38  ;;  %9516 = vmatpush3.msra.mxu0 %v10027_v60  ;;  %v10073_v60 = vld [vmem:[%s15376_s4 + $0x2a0] sm:$0xff] }
 0xae9   :  { %9533 = vmatpush3.msra.mxu1 %v10028_v62  ;;  %9517 = vmatprep.subr.mxu0 %v15444_v38  ;;  %v10075_v62 = vld [vmem:[%s15376_s4 + $0x298] sm:$0xff] }
 0xaea   :  { %9534 = vmatprep.subr.mxu1 %v15444_v38  ;;  %9518 = vmatpush3.msra.mxu0 %v10029_v0  ;;  %v10076_v0 = vld [vmem:[%s15376_s4 + $0x2e0] sm:$0xff] }
 0xaeb   :  { %9535 = vmatpush3.msra.mxu1 %v10030_v1  ;;  %9519 = vmatprep.subr.mxu0 %v15444_v38  ;;  %v10077_v1 = vld [vmem:[%s15376_s4 + $0x290] sm:$0xff] }
 0xaec   :  { %9536 = vmatprep.subr.mxu1 %v15444_v38  ;;  %9520 = vmatpush3.msra.mxu0 %v10031_v4  ;;  %v10078_v4 = vld [vmem:[%s15376_s4 + $0x2d8] sm:$0xff] }
 0xaed   :  { %9537 = vmatpush3.msra.mxu1 %v10032_v6  ;;  %9521 = vmatprep.subr.mxu0 %v15444_v38  ;;  %v10080_v6 = vld [vmem:[%s15376_s4 + $0x2d0] sm:$0xff] }
 0xaee   :  { %9538 = vmatprep.subr.mxu1 %v15444_v38  ;;  %9522 = vmatpush3.msra.mxu0 %v10033_v8  ;;  %v10081_v8 = vld [vmem:[%s15376_s4 + $0x280] sm:$0xff] }
 0xaef   :  { %9523 = vmatprep.mubr.msk.f32.mxu0 %vm10364_vm1, %v15444_v38  ;;  %9539 = vmatpush3.msra.mxu1 %v10034_v9  ;;  %v10082_v9 = vld [vmem:[%s15376_s4 + $0x2c8] sm:$0xff] }
 0xaf0   :  { %9524 = vmatmul.mubr.msk.f32.vlgmr.msra.gmra.mxu0 %vm488_vm6, %v3068_v7  ;;  %9540 = vmatprep.subr.mxu1 %v15444_v38  ;;  %v3109_v7 = vcombine.high %v12213_v55, %v12213_v55 }
 0xaf1   :  { %9545 = vmatprep.subr.mxu0 %v15444_v38  ;;  %9541 = vmatpush3.msra.mxu1 %v10035_v17  ;;  %v10083_v17 = vld [vmem:[%s15376_s4 + $0x2c0] sm:$0xff] }
 0xaf2   :  { %9542 = vmatprep.mubr.msk.f32.mxu1 %vm10364_vm1, %v15444_v38  ;;  %9546 = vmatpush3.msra.mxu0 %v10036_v19  ;;  %v10084_v19 = vld [vmem:[%s15431_s29 + $0x78] sm:$0xff] }
 0xaf3   :  { %9543 = vmatmul.mubr.msk.f32.vlgmr.msra.gmra.mxu1 %vm488_vm6, %v3082_v16  ;;  %9547 = vmatprep.subr.mxu0 %v15444_v38  ;;  %v3110_v16 = vcombine.high %v3108_v12, %v3108_v12 }
 0xaf4   :  { %9564 = vmatprep.subr.mxu1 %v15444_v38  ;;  %9548 = vmatpush3.msra.mxu0 %v10037_v20  ;;  %v10085_v20 = vld [vmem:[%s15431_s29 + $0x70] sm:$0xff] }
 0xaf5   :  { %9565 = vmatpush3.msra.mxu1 %v10038_v22  ;;  %9549 = vmatprep.subr.mxu0 %v15444_v38  ;;  %v10086_v22 = vld [vmem:[%s15431_s29 + $0x68] sm:$0xff] }
 0xaf6   :  { %9566 = vmatprep.subr.mxu1 %v15444_v38  ;;  %9550 = vmatpush3.msra.mxu0 %v10039_v29  ;;  %v10087_v29 = vld [vmem:[%s15431_s29 + $0x60] sm:$0xff] }
 0xaf7   :  { %9567 = vmatpush3.msra.mxu1 %v10040_v2  ;;  %9551 = vmatprep.subr.mxu0 %v15444_v38  ;;  %v10088_v2 = vld [vmem:[%s15431_s29 + $0x58] sm:$0xff] }
 0xaf8   :  { %9568 = vmatprep.subr.mxu1 %v15444_v38  ;;  %9552 = vmatpush3.msra.mxu0 %v10041_v30  ;;  %v10089_v30 = vld [vmem:[%s15431_s29 + $0x50] sm:$0xff] }
 0xaf9   :  { %9569 = vmatpush3.msra.mxu1 %v10042_v15  ;;  %9553 = vmatprep.subr.mxu0 %v15444_v38  ;;  %v10090_v15 = vld [vmem:[%s15431_s29 + $0x48] sm:$0xff] }
 0xafa   :  { %9570 = vmatprep.subr.mxu1 %v15444_v38  ;;  %9554 = vmatpush3.msra.mxu0 %v10043_v26  ;;  %v10091_v26 = vld [vmem:[%s15431_s29 + $0x40] sm:$0xff] }
 0xafb   :  { %9571 = vmatpush3.msra.mxu1 %v10044_v25  ;;  %9555 = vmatprep.subr.mxu0 %v15444_v38  ;;  %v10092_v25 = vld [vmem:[%s15431_s29 + $0x38] sm:$0xff] }
 0xafc   :  { %9572 = vmatprep.subr.mxu1 %v15444_v38  ;;  %9556 = vmatpush3.msra.mxu0 %v10045_v24  ;;  %v10093_v24 = vld [vmem:[%s15431_s29 + $0x30] sm:$0xff] }
 0xafd   :  { %9573 = vmatpush3.msra.mxu1 %v10046_v3  ;;  %9557 = vmatprep.subr.mxu0 %v15444_v38  ;;  %v10094_v3 = vld [vmem:[%s15431_s29 + $0x28] sm:$0xff] }
 0xafe   :  { %9574 = vmatprep.subr.mxu1 %v15444_v38  ;;  %9558 = vmatpush3.msra.mxu0 %v10047_v27  ;;  %v10095_v27 = vld [vmem:[%s15431_s29 + $0x20] sm:$0xff] }
 0xaff   :  { %9575 = vmatpush3.msra.mxu1 %v10048_v18  ;;  %9559 = vmatprep.subr.mxu0 %v15444_v38  ;;  %v10096_v18 = vld [vmem:[%s15431_s29 + $0x18] sm:$0xff] }
 0xb00   :  { %9576 = vmatprep.subr.mxu1 %v15444_v38  ;;  %9560 = vmatpush3.msra.mxu0 %v10049_v33  ;;  %v10098_v33 = vld [vmem:[%s15431_s29 + $0x8] sm:$0xff] }
 0xb01   :  { %9561 = vmatprep.mubr.msk.f32.mxu0 %vm10364_vm1, %v15444_v38  ;;  %9577 = vmatpush3.msra.mxu1 %v10050_v35  ;;  %v10099_v35 = vld [vmem:[%s15431_s29] sm:$0xff] }
 0xb02   :  { %9562 = vmatmul.mubr.msk.f32.vlgmr.msra.gmra.mxu0 %vm488_vm6, %v3084_v31  ;;  %9578 = vmatprep.subr.mxu1 %v15444_v38  ;;  %v10097_v31 = vld [vmem:[%s15431_s29 + $0x10] sm:$0xff] }
 0xb03   :  { %9583 = vmatprep.subr.mxu0 %v15444_v38  ;;  %9579 = vmatpush3.msra.mxu1 %v10051_v47 }
 0xb04   :  { %9580 = vmatprep.mubr.msk.f32.mxu1 %vm10364_vm1, %v15444_v38  ;;  %9584 = vmatpush3.msra.mxu0 %v10052_v49 }
 0xb05   :  { %9581 = vmatmul.mubr.msk.f32.vlgmr.msra.gmra.mxu1 %vm488_vm6, %v3086_v36  ;;  %9585 = vmatprep.subr.mxu0 %v15444_v38 }
 0xb06   :  { %9602 = vmatprep.subr.mxu1 %v15444_v38  ;;  %9586 = vmatpush3.msra.mxu0 %v10053_v50 }
 0xb07   :  { %9603 = vmatpush3.msra.mxu1 %v10054_v51  ;;  %9587 = vmatprep.subr.mxu0 %v15444_v38 }
 0xb08   :  { %9604 = vmatprep.subr.mxu1 %v15444_v38  ;;  %9588 = vmatpush3.msra.mxu0 %v10055_v46 }
 0xb09   :  { %9605 = vmatpush3.msra.mxu1 %v10056_v28  ;;  %9589 = vmatprep.subr.mxu0 %v15444_v38 }
 0xb0a   :  { %9606 = vmatprep.subr.mxu1 %v15444_v38  ;;  %9590 = vmatpush3.msra.mxu0 %v10057_v40 }
 0xb0b   :  { %9607 = vmatpush3.msra.mxu1 %v10058_v43  ;;  %9591 = vmatprep.subr.mxu0 %v15444_v38 }
 0xb0c   :  { %9608 = vmatprep.subr.mxu1 %v15444_v38  ;;  %9592 = vmatpush3.msra.mxu0 %v10059_v37 }
 0xb0d   :  { %9609 = vmatpush3.msra.mxu1 %v10060_v52  ;;  %9593 = vmatprep.subr.mxu0 %v15444_v38 }
 0xb0e   :  { %9610 = vmatprep.subr.mxu1 %v15444_v38  ;;  %9594 = vmatpush3.msra.mxu0 %v10061_v53 }
 0xb0f   :  { %9611 = vmatpush3.msra.mxu1 %v10062_v41  ;;  %9595 = vmatprep.subr.mxu0 %v15444_v38 }
 0xb10   :  { %9612 = vmatprep.subr.mxu1 %v15444_v38  ;;  %9596 = vmatpush3.msra.mxu0 %v10063_v23 }
 0xb11   :  { %9613 = vmatpush3.msra.mxu1 %v10064_v10  ;;  %9597 = vmatprep.subr.mxu0 %v15444_v38 }
 0xb12   :  { %9614 = vmatprep.subr.mxu1 %v15444_v38  ;;  %9598 = vmatpush3.msra.mxu0 %v10065_v11 }
 0xb13   :  { %9599 = vmatprep.mubr.msk.f32.mxu0 %vm10364_vm1, %v15444_v38  ;;  %9615 = vmatpush3.msra.mxu1 %v10066_v56 }
 0xb14   :  { %9600 = vmatmul.mubr.msk.f32.vlgmr.msra.gmra.mxu0 %vm488_vm6, %v12213_v55  ;;  %9616 = vmatprep.subr.mxu1 %v15444_v38 }
 0xb15   :  { %9621 = vmatprep.subr.mxu0 %v15444_v38  ;;  %9617 = vmatpush3.msra.mxu1 %v10067_v13 }
 0xb16   :  { %9618 = vmatprep.mubr.msk.f32.mxu1 %vm10364_vm1, %v15444_v38  ;;  %9622 = vmatpush3.msra.mxu0 %v10068_v57 }
 0xb17   :  { %9619 = vmatmul.mubr.msk.f32.vlgmr.msra.gmra.mxu1 %vm488_vm6, %v3108_v12  ;;  %9623 = vmatprep.subr.mxu0 %v15444_v38 }
 0xb18   :  { %9640 = vmatprep.subr.mxu1 %v15444_v38  ;;  %9624 = vmatpush3.msra.mxu0 %v10069_v42 }
 0xb19   :  { %9641 = vmatpush3.msra.mxu1 %v10070_v14  ;;  %9625 = vmatprep.subr.mxu0 %v15444_v38 }
 0xb1a   :  { %9642 = vmatprep.subr.mxu1 %v15444_v38  ;;  %9626 = vmatpush3.msra.mxu0 %v10071_v58 }
 0xb1b   :  { %9643 = vmatpush3.msra.mxu1 %v10072_v59  ;;  %9627 = vmatprep.subr.mxu0 %v15444_v38 }
 0xb1c   :  { %9644 = vmatprep.subr.mxu1 %v15444_v38  ;;  %9628 = vmatpush3.msra.mxu0 %v10073_v60 }
 0xb1d   :  { %9645 = vmatpush3.msra.mxu1 %v10074_v61  ;;  %9629 = vmatprep.subr.mxu0 %v15444_v38 }
 0xb1e   :  { %9646 = vmatprep.subr.mxu1 %v15444_v38  ;;  %9630 = vmatpush3.msra.mxu0 %v10075_v62 }
 0xb1f   :  { %9647 = vmatpush3.msra.mxu1 %v10076_v0  ;;  %9631 = vmatprep.subr.mxu0 %v15444_v38 }
 0xb20   :  { %9648 = vmatprep.subr.mxu1 %v15444_v38  ;;  %9632 = vmatpush3.msra.mxu0 %v10077_v1 }
 0xb21   :  { %9649 = vmatpush3.msra.mxu1 %v10078_v4  ;;  %9633 = vmatprep.subr.mxu0 %v15444_v38 }
 0xb22   :  { %9650 = vmatprep.subr.mxu1 %v15444_v38  ;;  %9634 = vmatpush3.msra.mxu0 %v10079_v5 }
 0xb23   :  { %9651 = vmatpush3.msra.mxu1 %v10080_v6  ;;  %9635 = vmatprep.subr.mxu0 %v15444_v38 }
 0xb24   :  { %9652 = vmatprep.subr.mxu1 %v15444_v38  ;;  %9636 = vmatpush3.msra.mxu0 %v10081_v8 }
 0xb25   :  { %9637 = vmatprep.mubr.msk.f32.mxu0 %vm10364_vm1, %v15444_v38  ;;  %9653 = vmatpush3.msra.mxu1 %v10082_v9 }
 0xb26   :  { %9638 = vmatmul.mubr.msk.f32.vlgmr.msra.gmra.mxu0 %vm488_vm6, %v3109_v7  ;;  %9654 = vmatprep.subr.mxu1 %v15444_v38 }
 0xb27   :  { %9655 = vmatpush3.msra.mxu1 %v10083_v17  ;;  %9656 = vmatprep.mubr.msk.f32.mxu1 %vm10364_vm1, %v15444_v38 }
 0xb28   :  { %9657 = vmatmul.mubr.msk.f32.vlgmr.msra.gmra.mxu1 %vm488_vm6, %v3110_v16  ;;  %9659 = vmatprep.subr.mxu0 %v15444_v38 }
 0xb29   :  { %9663 = vmatprep.mubr.msk.f32.mxu0 %vm10364_vm1, %v15444_v38  ;;  %4100 = vmatprep.subr.mxu1 %v10084_v19 }
 0xb2a   :  { %4101 = vmatpush1.msra.mxu1 %v10085_v20  ;;  %4148 = vmatprep.mubr.f32.mxu1 %v15444_v38 }
 0xb2b   :  { %4102 = vmatprep.subr.mxu1 %v10086_v22 }
 0xb2c   :  { %4103 = vmatpush1.msra.mxu1 %v10087_v29 }
 0xb2d   :  { %4104 = vmatprep.subr.mxu1 %v10088_v2  ;;  %v10100_v2 = vld [vmem:[%s15445_s7 + $0x78] sm:$0xff] }
 0xb2e   :  { %4105 = vmatpush1.msra.mxu1 %v10089_v30  ;;  %v10101_v30 = vld [vmem:[%s15445_s7 + $0x70] sm:$0xff] }
 0xb2f   :  { %4106 = vmatprep.subr.mxu1 %v10090_v15  ;;  %v10102_v15 = vld [vmem:[%s15445_s7 + $0x68] sm:$0xff] }
 0xb30   :  { %4107 = vmatpush1.msra.mxu1 %v10091_v26  ;;  %v10104_v26 = vld [vmem:[%s15445_s7 + $0x58] sm:$0xff] }
 0xb31   :  { %4108 = vmatprep.subr.mxu1 %v10092_v25  ;;  %v10105_v25 = vld [vmem:[%s15445_s7 + $0x50] sm:$0xff] }
 0xb32   :  { %4109 = vmatpush1.msra.mxu1 %v10093_v24  ;;  %v10106_v24 = vld [vmem:[%s15445_s7 + $0x48] sm:$0xff] }
 0xb33   :  { %4110 = vmatprep.subr.mxu1 %v10094_v3  ;;  %v10107_v3 = vld [vmem:[%s15445_s7 + $0x40] sm:$0xff] }
 0xb34   :  { %4111 = vmatpush1.msra.mxu1 %v10095_v27  ;;  %v10108_v27 = vld [vmem:[%s15445_s7 + $0x38] sm:$0xff] }
 0xb35   :  { %4112 = vmatprep.subr.mxu1 %v10096_v18  ;;  %v10109_v18 = vld [vmem:[%s15445_s7 + $0x30] sm:$0xff] }
 0xb36   :  { %4113 = vmatpush1.msra.mxu1 %v10097_v31  ;;  %v10110_v31 = vld [vmem:[%s15445_s7 + $0x28] sm:$0xff] }
 0xb37   :  { %4114 = vmatprep.subr.mxu1 %v10098_v33  ;;  %v10111_v33 = vld [vmem:[%s15445_s7 + $0x20] sm:$0xff] }
 0xb38   :  { %4115 = vmatpush1.msra.mxu1 %v10099_v35  ;;  %v10112_v35 = vld [vmem:[%s15445_s7 + $0x18] sm:$0xff] }
 0xb8e   :  { %v3179_v36 = vpop.f32.mrf.mxu0 }
 0xb90   :  { %v3251_v47 = vpop.f32.mrf.mxu1  ;;  %v9449_v49 = vpop.f32.mrf.mxu0 }
 0xb91   :  { %v3987_v50 = vrot.slane %v3251_v47, 7  ;;  %v10114_v47 = vld [vmem:[%s15445_s7 + $0x8] sm:$0xff]  ;;  %v10115_v49 = vld [vmem:[%s15445_s7] sm:$0xff] }
 0xb92   :  { %v9468_v51 = vpop.f32.mrf.mxu1 }
 0xb93   :  { %v3988_v46 = vsel %vm1372_vm7, %v3987_v50, %v3179_v36  ;;  %v10113_v36 = vld [vmem:[%s15445_s7 + $0x10] sm:$0xff]  ;;  %v12427_v50 = vld [vmem:[%s15072_s12 + $0x78] sm:$0xff] }
 0xb94   :  { %4380 = vmatprep.subr.mxu1 %v12427_v50  ;;  %v12433_v51 = vld [vmem:[%s15071_s11 + $0x78] sm:$0xff] }
 0xb9e   :  { %v3323_v28 = vpop.f32.mrf.mxu0 }
 0xb9f   :  { %v3989_v40 = vrot.slane %v3323_v28, 6  ;;  %v12451_v28 = vld [vmem:[%s15071_s11 + $0x60] sm:$0xff] }
 0xba0   :  { %v9487_v43 = vpop.f32.mrf.mxu0 }
 0xba1   :  { %v3990_v37 = vsel %vm1375_vm8, %v3989_v40, %v3988_v46  ;;  %v3395_v44 = vpop.f32.mrf.mxu1  ;;  %v12445_v46 = vld [vmem:[%s15071_s11 + $0x68] sm:$0xff]  ;;  %v12457_v40 = vld [vmem:[%s15071_s11 + $0x58] sm:$0xff]  ;;  %v12463_v43 = vld [vmem:[%s15071_s11 + $0x50] sm:$0xff] }
 0xba2   :  { %v3991_v52 = vrot.slane %v3395_v44, 5  ;;  %v12475_v44 = vld [vmem:[%s15071_s11 + $0x40] sm:$0xff] }
 0xba3   :  { %v9506_v53 = vpop.f32.mrf.mxu1 }
 0xba4   :  { %v3992_v41 = vsel %vm1378_vm9, %v3991_v52, %v3990_v37  ;;  %v12469_v37 = vld [vmem:[%s15071_s11 + $0x48] sm:$0xff]  ;;  %v12481_v52 = vld [vmem:[%s15071_s11 + $0x38] sm:$0xff]  ;;  %v12487_v53 = vld [vmem:[%s15071_s11 + $0x30] sm:$0xff] }
 0xbb0   :  { %v3467_v23 = vpop.f32.mrf.mxu0 }
 0xbb1   :  { %v3993_v59 = vrot.slane %v3467_v23, 4  ;;  %v12499_v23 = vld [vmem:[%s15071_s11 + $0x20] sm:$0xff] }
 0xbb2   :  { %v9525_v54 = vpop.f32.mrf.mxu0 }
 0xbb3   :  { %v3539_v10 = vpop.f32.mrf.mxu1  ;;  %v3994_v62 = vsel %vm1381_vm10, %v3993_v59, %v3992_v41  ;;  %v12493_v41 = vld [vmem:[%s15071_s11 + $0x28] sm:$0xff]  ;;  %v12505_v54 = vld [vmem:[%s15071_s11 + $0x18] sm:$0xff]  ;;  %v12545_v59 = vld [vmem:[%s15072_s12 + $0x60] sm:$0xff] }
 0xbb4   :  { %v3995_v61 = vrot.slane %v3539_v10, 3  ;;  %v12511_v10 = vld [vmem:[%s15071_s11 + $0x10] sm:$0xff] }
 0xbb5   :  { %v9544_v55 = vpop.f32.mrf.mxu1 }
 0xbb6   :  { %v3996_v8 = vsel %vm1384_vm11, %v3995_v61, %v3994_v62  ;;  %v12517_v55 = vld [vmem:[%s15071_s11 + $0x8] sm:$0xff]  ;;  %v12558_v61 = vld [vmem:[%s15072_s12 + $0x50] sm:$0xff] }
 0xbb7   :  { %v12564_v62 = vld [vmem:[%s15072_s12 + $0x48] sm:$0xff] }
 0xbc2   :  { %v3611_v11 = vpop.f32.mrf.mxu0 }
 0xbc3   :  { %v3997_v0 = vrot.slane %v3611_v11, 2  ;;  %v12523_v11 = vld [vmem:[%s15071_s11] sm:$0xff] }
 0xbc4   :  { %v9563_v56 = vpop.f32.mrf.mxu0 }
 0xbc5   :  { %v3683_v12 = vpop.f32.mrf.mxu1  ;;  %v3998_v19 = vsel %vm1387_vm12, %v3997_v0, %v3996_v8  ;;  %v12570_v0 = vld [vmem:[%s15072_s12 + $0x40] sm:$0xff]  ;;  %v12606_v8 = vld [vmem:[%s15072_s12 + $0x10] sm:$0xff] }
 0xbc6   :  { %v3999_v9 = vrot.slane %v3683_v12, 1  ;;  %v10116_v12 = vld [vmem:[%s15457_s9] ss:$0 sm:$0xff]  ;;  %15539 = vst [vmem:[#allocation7_spill] sm:$0xff] %v12606_v8 }
 0xbc7   :  { %v9582_v13 = vpop.f32.mrf.mxu1 }
 0xbc8   :  { %v4000_v29 = vsel %vm1390_vm15, %v3999_v9, %v3998_v19  ;;  %v12612_v9 = vld [vmem:[%s15072_s12 + $0x8] sm:$0xff]  ;;  %v12630_v19 = vld [vmem:[%s15073_s13 + $0x70] sm:$0xff] }
 0xbc9   :  { %15540 = vst [vmem:[#allocation8_spill] sm:$0xff] %v12612_v9 }
 0xbd4   :  { %v3755_v57 = vpop.f32.mrf.mxu0 }
 0xbd6   :  { %v9601_v42 = vpop.f32.mrf.mxu0 }
 0xbd7   :  { %v3827_v14 = vpop.f32.mrf.mxu1 }
 0xbd8   :  { %v4001_v60 = vrot.slane %v3827_v14, 7  ;;  %v12534_v14 = vld [vmem:[%s15072_s12 + $0x70] sm:$0xff] }
 0xbd9   :  { %v9620_v58 = vpop.f32.mrf.mxu1 }
 0xbda   :  { %v4002_v5 = vsel %vm1372_vm7, %v4001_v60, %v3755_v57  ;;  %v12539_v58 = vld [vmem:[%s15072_s12 + $0x68] sm:$0xff]  ;;  %v12551_v60 = vld [vmem:[%s15072_s12 + $0x58] sm:$0xff] }
 0xbe6   :  { %v3899_v1 = vpop.f32.mrf.mxu0 }
 0xbe7   :  { %v4003_v4 = vrot.slane %v3899_v1, 6  ;;  %v12576_v1 = vld [vmem:[%s15072_s12 + $0x38] sm:$0xff] }
 0xbe8   :  { %v9639_v6 = vpop.f32.mrf.mxu0  ;;  %v3971_v7 = vpop.f32.mrf.mxu1 }
 0xbe9   :  { %v4004_v16 = vsel %vm1375_vm8, %v4003_v4, %v4002_v5  ;;  %v4005_v17 = vrot.slane %v3971_v7, 5  ;;  %v12582_v4 = vld [vmem:[%s15072_s12 + $0x30] sm:$0xff]  ;;  %v12588_v5 = vld [vmem:[%s15072_s12 + $0x28] sm:$0xff]  ;;  %v12594_v6 = vld [vmem:[%s15072_s12 + $0x20] sm:$0xff] }
 0xbea   :  { %v9658_v20 = vpop.f32.mrf.mxu1  ;;  %v12600_v7 = vld [vmem:[%s15072_s12 + $0x18] sm:$0xff] }
 0xbeb   :  { %v4006_v22 = vsel %vm1378_vm9, %v4005_v17, %v4004_v16  ;;  %v12618_v16 = vld [vmem:[%s15072_s12] sm:$0xff]  ;;  %v12624_v17 = vld [vmem:[%s15073_s13 + $0x78] sm:$0xff]  ;;  %v12636_v20 = vld [vmem:[%s15073_s13 + $0x68] sm:$0xff] }
 0xbec   :  { %9660 = vmatpush3.msk.msra.mxu0 %vm1403_vm13, %v4006_v22  ;;  %15541 = vst [vmem:[#allocation9_spill] sm:$0xff] %v12618_v16  ;;  %15542 = vst [vmem:[#allocation10_spill] sm:$0xff] %v12624_v17  ;;  %v12643_v22 = vld [vmem:[%s15073_s13 + $0x60] sm:$0xff] }
 0xbed   :  { %9661 = vmatprep.subr.mxu0 %v15444_v38 }
 0xbee   :  { %9662 = vmatpush3.msra.mxu0 %v4000_v29  ;;  %v12649_v29 = vld [vmem:[%s15073_s13 + $0x58] sm:$0xff] }
 0xbef   :  { %9664 = vmatmul.mubr.msk.f32.vlgmr.msra.gmra.mxu0 %vm1399_vm0, %v11351_v45  ;;  %4173 = vmatprep.subr.mxu0 %v10100_v2  ;;  %v10103_v45 = vld [vmem:[%s15445_s7 + $0x60] sm:$0xff]  ;;  %v12656_v2 = vld [vmem:[%s15073_s13 + $0x50] sm:$0xff] }
 0xbf0   :  { %4174 = vmatpush1.msra.mxu0 %v10101_v30  ;;  %4221 = vmatprep.mubr.f32.mxu0 %v15444_v38  ;;  %v12662_v30 = vld [vmem:[%s15073_s13 + $0x48] sm:$0xff] }
 0xbf1   :  { %4175 = vmatprep.subr.mxu0 %v10102_v15  ;;  %v12668_v15 = vld [vmem:[%s15073_s13 + $0x40] sm:$0xff] }
 0xbf2   :  { %4176 = vmatpush1.msra.mxu0 %v10103_v45  ;;  %15543 = vst [vmem:[#allocation11_spill] sm:$0xff] %v12668_v15  ;;  %v12674_v45 = vld [vmem:[%s15073_s13 + $0x38] sm:$0xff] }
 0xbf3   :  { %4177 = vmatprep.subr.mxu0 %v10104_v26  ;;  %15544 = vst [vmem:[#allocation12_spill] sm:$0xff] %v12674_v45  ;;  %v12680_v26 = vld [vmem:[%s15073_s13 + $0x30] sm:$0xff] }
 0xbf4   :  { %4178 = vmatpush1.msra.mxu0 %v10105_v25  ;;  %15545 = vst [vmem:[#allocation13_spill] sm:$0xff] %v12680_v26  ;;  %v12686_v25 = vld [vmem:[%s15073_s13 + $0x28] sm:$0xff] }
 0xbf5   :  { %4179 = vmatprep.subr.mxu0 %v10106_v24  ;;  %15546 = vst [vmem:[#allocation14_spill] sm:$0xff] %v12686_v25  ;;  %v12692_v24 = vld [vmem:[%s15073_s13 + $0x20] sm:$0xff] }
 0xbf6   :  { %4180 = vmatpush1.msra.mxu0 %v10107_v3  ;;  %15547 = vst [vmem:[#allocation15_spill] sm:$0xff] %v12692_v24  ;;  %v12698_v3 = vld [vmem:[%s15073_s13 + $0x18] sm:$0xff] }
 0xbf7   :  { %4181 = vmatprep.subr.mxu0 %v10108_v27  ;;  %15548 = vst [vmem:[#allocation16_spill] sm:$0xff] %v12698_v3  ;;  %v12704_v27 = vld [vmem:[%s15073_s13 + $0x10] sm:$0xff] }
 0xbf8   :  { %4182 = vmatpush1.msra.mxu0 %v10109_v18  ;;  %15549 = vst [vmem:[#allocation17_spill] sm:$0xff] %v12704_v27  ;;  %v12710_v18 = vld [vmem:[%s15073_s13 + $0x8] sm:$0xff] }
 0xbf9   :  { %4183 = vmatprep.subr.mxu0 %v10110_v31  ;;  %15550 = vst [vmem:[#allocation18_spill] sm:$0xff] %v12710_v18  ;;  %v12716_v31 = vld [vmem:[%s15073_s13] sm:$0xff] }
 0xbfa   :  { %4184 = vmatpush1.msra.mxu0 %v10111_v33  ;;  %15551 = vst [vmem:[#allocation19_spill] sm:$0xff] %v12716_v31 }
 0xbfb   :  { %4185 = vmatprep.subr.mxu0 %v10112_v35 }
 0xbfc   :  { %4186 = vmatpush1.msra.mxu0 %v10113_v36 }
 0xbfd   :  { %4187 = vmatprep.subr.mxu0 %v10114_v47 }
 0xbfe   :  { %4188 = vmatpush1.msra.mxu0 %v10115_v49 }
 0xbff   :  { %8483 = vmatmul.mubr.msk.f32.vlgmr.msra.gmra.mxu0 %vm488_vm6, %v11903_v39  ;;  %4451 = vmatprep.subr.mxu0 %v12433_v51  ;;  %v12439_v39 = vld [vmem:[%s15071_s11 + $0x70] sm:$0xff] }
 0xc00   :  { %4499 = vmatprep.mubr.f32.mxu0 %v15444_v38  ;;  %4452 = vmatpush1.msra.mxu0 %v12439_v39 }
 0xc01   :  { %4453 = vmatprep.subr.mxu0 %v12445_v46 }
 0xc02   :  { %4454 = vmatpush1.msra.mxu0 %v12451_v28 }
 0xc03   :  { %4455 = vmatprep.subr.mxu0 %v12457_v40 }
 0xc04   :  { %4456 = vmatpush1.msra.mxu0 %v12463_v43 }
 0xc05   :  { %4457 = vmatprep.subr.mxu0 %v12469_v37 }
 0xc06   :  { %4458 = vmatpush1.msra.mxu0 %v12475_v44 }
 0xc07   :  { %4459 = vmatprep.subr.mxu0 %v12481_v52 }
 0xc08   :  { %4460 = vmatpush1.msra.mxu0 %v12487_v53 }
 0xc09   :  { %4461 = vmatprep.subr.mxu0 %v12493_v41 }
 0xc0a   :  { %4462 = vmatpush1.msra.mxu0 %v12499_v23 }
 0xc0b   :  { %4463 = vmatprep.subr.mxu0 %v12505_v54 }
 0xc0c   :  { %4464 = vmatpush1.msra.mxu0 %v12511_v10 }
 0xc0d   :  { %4465 = vmatprep.subr.mxu0 %v12517_v55 }
 0xc0e   :  { %4466 = vmatpush1.msra.mxu0 %v12523_v11 }
 0xc0f   :  { %4500 = vmatmul.mubr.f32.vlgmr.msra.gmra.mxu0 %v15444_v38 }
 0xc10   :  { %4678 = vmatprep.mubr.f32.mxu0 %v15444_v38 }
 0xcaf   :  { %v4076_v56 = vpop.f32.mrf.mxu0 }
 0xcb0   :  { %v4077_v13 = vadd.f32 %v10116_v12, %v4076_v56 }
 0xcb1   :  { %v9665_v57 = vpop.f32.mrf.mxu0 }
 0xcb2   :  { %v4080_v42 = vmax.f32 %v4077_v13, 0.0 }
 0xcb4   :  { %8482 = vmatmul.mubr.msk.f32.vlgmr.msra.gmra.mxu1 %vm488_vm6, %v4080_v42 }
 0xcb5   :  { %4381 = vmatpush1.msra.mxu1 %v12534_v14  ;;  %4428 = vmatprep.mubr.f32.mxu1 %v15444_v38 }
 0xcb6   :  { %4382 = vmatprep.subr.mxu1 %v12539_v58 }
 0xcb7   :  { %4383 = vmatpush1.msra.mxu1 %v12545_v59 }
 0xcb8   :  { %4384 = vmatprep.subr.mxu1 %v12551_v60 }
 0xcb9   :  { %4385 = vmatpush1.msra.mxu1 %v12558_v61 }
 0xcba   :  { %4386 = vmatprep.subr.mxu1 %v12564_v62 }
 0xcbb   :  { %4387 = vmatpush1.msra.mxu1 %v12570_v0 }
 0xcbc   :  { %4388 = vmatprep.subr.mxu1 %v12576_v1 }
 0xcbd   :  { %4389 = vmatpush1.msra.mxu1 %v12582_v4 }
 0xcbe   :  { %4390 = vmatprep.subr.mxu1 %v12588_v5 }
 0xcbf   :  { %4391 = vmatpush1.msra.mxu1 %v12594_v6  ;;  %v4223_v33 = vpop.f32.mrf.mxu0 }
 0xcc0   :  { %4392 = vmatprep.subr.mxu1 %v12600_v7  ;;  %v4224_v36 = vadd.f32 %v4223_v33, %v11524_v32 }
 0xcc1   :  { %4393 = vmatpush1.msra.mxu1 %v12606_v8  ;;  %v4225_v42 = vpop.f32.mrf.mxu0 }
 0xcc2   :  { %4394 = vmatprep.subr.mxu1 %v12612_v9 }
 0xcc3   :  { %4395 = vmatpush1.msra.mxu1 %v12618_v16 }
 0xcc4   :  { %4522 = vmatprep.subr.mxu1 %v12624_v17  ;;  %4429 = vmatmul.mubr.f32.vlgmr.msra.gmra.mxu1 %v15444_v38 }
 0xcc5   :  { %4523 = vmatpush1.msra.mxu1 %v12630_v19  ;;  %4570 = vmatprep.mubr.f32.mxu1 %v15444_v38 }
 0xcc6   :  { %4524 = vmatprep.subr.mxu1 %v12636_v20 }
 0xcc7   :  { %4525 = vmatpush1.msra.mxu1 %v12643_v22 }
 0xcc8   :  { %4526 = vmatprep.subr.mxu1 %v12649_v29 }
 0xcc9   :  { %4527 = vmatpush1.msra.mxu1 %v12656_v2 }
 0xcca   :  { %4528 = vmatprep.subr.mxu1 %v12662_v30 }
 0xccb   :  { %4529 = vmatpush1.msra.mxu1 %v12668_v15  ;;  %v15554_v15 = vld [vmem:[#allocation83_spill] sm:$0xff] }
 0xccc   :  { %4530 = vmatprep.subr.mxu1 %v12674_v45 }
 0xccd   :  { %4531 = vmatpush1.msra.mxu1 %v12680_v26 }
 0xcce   :  { %4532 = vmatprep.subr.mxu1 %v12686_v25  ;;  %v15552_v25 = vld [vmem:[#allocation82_spill] sm:$0xff] }
 0xccf   :  { %4533 = vmatpush1.msra.mxu1 %v12692_v24 }
 0xcd0   :  { %4534 = vmatprep.subr.mxu1 %v12698_v3 }
 0xcd1   :  { %4535 = vmatpush1.msra.mxu1 %v12704_v27  ;;  %v4294_v27 = vld [vmem:[%s15074_s14] sm:$0x3] }
 0xcd2   :  { %4536 = vmatprep.subr.mxu1 %v12710_v18  ;;  %v12729_v32 = vrot.slane %v4294_v27, %v15552_v25 }
 0xcd3   :  { %4537 = vmatpush1.msra.mxu1 %v12716_v31  ;;  %v4501_v31 = vpop.f32.mrf.mxu0 }
 0xcd4   :  { %4571 = vmatmul.mubr.f32.vlgmr.msra.gmra.mxu1 %v15444_v38  ;;  %15553 = vst [vmem:[#allocation20_spill] sm:$0xff] %v12729_v32 }
 0xcd5   :  { %4754 = vmatprep.mubr.f32.mxu1 %v15444_v38 }
 0xd74   :  { %v4150_v35 = vpop.f32.mrf.mxu1 }
 0xd75   :  { %v4151_v47 = vadd.f32 %v4150_v35, %v11527_v34  ;;  %v4226_v35 = vadd.f32 %v4225_v42, %v11535_v21 }
 0xd76   :  { %v4152_v57 = vpop.f32.mrf.mxu1 }
 0xd77   :  { %v4228_v49 = vadd.f32 %v4224_v36, %v4151_v47 }
 0xd79   :  { %v8484_v56 = vmul.f32 -1.442695, %v4228_v49  ;;  %v4153_v49 = vadd.f32 %v4152_v57, %v11538_v48 }
 0xd7b   :  { %9742 = vpow2.f32 %v8484_v56 }
 0xd84   :  { %v4430_v18 = vpop.f32.mrf.mxu1 }
 0xd85   :  { %v4502_v24 = vadd.f32 %v4501_v31, %v4430_v18  ;;  %v4503_v18 = vpop.f32.mrf.mxu0 }
 0xd86   :  { %v4432_v3 = vpop.f32.mrf.mxu1 }
 0xd87   :  { %v4504_v26 = vadd.f32 %v4503_v18, %v4432_v3  ;;  %v12763_v3 = vld [vmem:[%s15076_s16 + $0x70] sm:$0xff]  ;;  %v12804_v18 = vld [vmem:[%s15075_s15 + $0x58] sm:$0xff] }
 0xd88   :  { %v9743_v12 = vpop.eup %9742  ;;  %15561 = vst [vmem:[#allocation27_spill] sm:$0xff] %v12804_v18 }
 0xd89   :  { %v4232_v13 = vadd.f32 1.0, %v9743_v12 }
 0xd8b   :  { %9744 = vrcp.f32 %v4232_v13 }
 0xd94   :  { %v4572_v34 = vpop.f32.mrf.mxu1 }
 0xd95   :  { %v4577_v33 = vadd.f32 %v4572_v34, %v4502_v24  ;;  %v12740_v24 = vrot.slane %v4294_v27, %v15554_v15  ;;  %v12770_v27 = vld [vmem:[%s15075_s15 + $0x70] sm:$0xff] }
 0xd96   :  { %v4574_v31 = vpop.f32.mrf.mxu1  ;;  %15557 = vst [vmem:[#allocation23_spill] sm:$0xff] %v12770_v27 }
 0xd97   :  { %v4590_v36 = vadd.f32 %v12729_v32, %v4577_v33  ;;  %v4578_v45 = vadd.f32 %v4574_v31, %v4504_v26  ;;  %15555 = vst [vmem:[#allocation21_spill] sm:$0xff] %v12740_v24  ;;  %v12753_v26 = vld [vmem:[%s15076_s16 + $0x78] sm:$0xff]  ;;  %v12809_v31 = vld [vmem:[%s15076_s16 + $0x50] sm:$0xff] }
 0xd98   :  { %v12733_v47 = vpop.eup %9744  ;;  %4630 = vmatprep.subr.mxu0 %v12753_v26  ;;  %15562 = vst [vmem:[#allocation28_spill] sm:$0xff] %v12809_v31  ;;  %v12845_v32 = vld [vmem:[%s15076_s16 + $0x38] sm:$0xff] }
 0xd99   :  { %v4235_v56 = vmul.f32 %v12733_v47, %v4226_v35  ;;  %v8485_v12 = vmul.f32 -1.442695, %v4590_v36  ;;  %v12743_v21 = vadd.f32 %v12740_v24, %v4578_v45  ;;  %v12758_v45 = vld [vmem:[%s15075_s15 + $0x78] sm:$0xff]  ;;  %v12775_v35 = vld [vmem:[%s15076_s16 + $0x68] sm:$0xff]  ;;  %4631 = vmatpush1.msra.mxu0 %v12763_v3  ;;  %v12838_v24 = vld [vmem:[%s15075_s15 + $0x40] sm:$0xff]  ;;  %15568 = vst [vmem:[#allocation34_spill] sm:$0xff] %v12845_v32 }
 0xd9a   :  { %15556 = vst [vmem:[#allocation22_spill] sm:$0xff] %v12758_v45  ;;  %4706 = vmatprep.subr.mxu1 %v12758_v45  ;;  %v12780_v36 = vld [vmem:[%s15075_s15 + $0x68] sm:$0xff]  ;;  %4632 = vmatprep.subr.mxu0 %v12775_v35  ;;  %15567 = vst [vmem:[#allocation33_spill] sm:$0xff] %v12838_v24  ;;  %v12893_v45 = vld [vmem:[%s15076_s16 + $0x18] sm:$0xff] }
 0xd9b   :  { %v12737_v13 = vadd.f32 %v4235_v56, %v4153_v49  ;;  %9746 = vpow2.f32 %v8485_v12  ;;  %15558 = vst [vmem:[#allocation24_spill] sm:$0xff] %v12780_v36  ;;  %4707 = vmatpush1.msra.mxu1 %v12770_v27  ;;  %v12787_v49 = vld [vmem:[%s15076_s16 + $0x60] sm:$0xff]  ;;  %v12797_v12 = vld [vmem:[%s15076_s16 + $0x58] sm:$0xff]  ;;  %15576 = vst [vmem:[#allocation42_spill] sm:$0xff] %v12893_v45 }
 0xd9c   :  { %9748 = vtanh.f32 %v12743_v21  ;;  %v12792_v56 = vld [vmem:[%s15075_s15 + $0x60] sm:$0xff]  ;;  %15560 = vst [vmem:[#allocation26_spill] sm:$0xff] %v12797_v12  ;;  %4708 = vmatprep.subr.mxu1 %v12780_v36  ;;  %4633 = vmatpush1.msra.mxu0 %v12787_v49  ;;  %v12869_v36 = vld [vmem:[%s15076_s16 + $0x28] sm:$0xff] }
 0xd9d   :  { %15559 = vst [vmem:[#allocation25_spill] sm:$0xff] %v12792_v56  ;;  %4709 = vmatpush1.msra.mxu1 %v12792_v56  ;;  %4634 = vmatprep.subr.mxu0 %v12797_v12  ;;  %v12857_v56 = vld [vmem:[%s15076_s16 + $0x30] sm:$0xff]  ;;  %15572 = vst [vmem:[#allocation38_spill] sm:$0xff] %v12869_v36  ;;  %v12881_v27 = vld [vmem:[%s15076_s16 + $0x20] sm:$0xff] }
 0xd9e   :  { %4710 = vmatprep.subr.mxu1 %v12804_v18  ;;  %4635 = vmatpush1.msra.mxu0 %v12809_v31  ;;  %v12850_v18 = vld [vmem:[%s15075_s15 + $0x38] sm:$0xff]  ;;  %15570 = vst [vmem:[#allocation36_spill] sm:$0xff] %v12857_v56  ;;  %15574 = vst [vmem:[#allocation40_spill] sm:$0xff] %v12881_v27 }
 0xd9f   :  { %15569 = vst [vmem:[#allocation35_spill] sm:$0xff] %v12850_v18 }
 0xda8   :  { %v9747_v42 = vpop.eup %9746 }
 0xda9   :  { %v4595_v34 = vadd.f32 1.0, %v9747_v42  ;;  %v9749_v48 = vpop.eup %9748  ;;  %v12814_v42 = vld [vmem:[%s15075_s15 + $0x50] sm:$0xff] }
 0xdaa   :  { %15563 = vst [vmem:[#allocation29_spill] sm:$0xff] %v12814_v42  ;;  %4711 = vmatpush1.msra.mxu1 %v12814_v42  ;;  %v12862_v42 = vld [vmem:[%s15075_s15 + $0x30] sm:$0xff] }
 0xdab   :  { %9750 = vrcp.f32 %v4595_v34  ;;  %v12821_v34 = vld [vmem:[%s15076_s16 + $0x48] sm:$0xff]  ;;  %15571 = vst [vmem:[#allocation37_spill] sm:$0xff] %v12862_v42 }
 0xdac   :  { %15564 = vst [vmem:[#allocation30_spill] sm:$0xff] %v12821_v34  ;;  %4636 = vmatprep.subr.mxu0 %v12821_v34 }
 0xdb8   :  { %v12746_v57 = vpop.eup %9750 }
 0xdb9   :  { %v4606_v33 = vmul.f32 %v12746_v57, %v9749_v48  ;;  %v12826_v48 = vld [vmem:[%s15075_s15 + $0x48] sm:$0xff] }
 0xdba   :  { %15565 = vst [vmem:[#allocation31_spill] sm:$0xff] %v12826_v48  ;;  %4712 = vmatprep.subr.mxu1 %v12826_v48  ;;  %v12874_v48 = vld [vmem:[%s15075_s15 + $0x28] sm:$0xff] }
 0xdbb   :  { %4608 = vrot.lane.b32.xlu1 %v4606_v33, %s10367_s1  ;;  %v12833_v33 = vld [vmem:[%s15076_s16 + $0x40] sm:$0xff]  ;;  %4713 = vmatpush1.msra.mxu1 %v12838_v24  ;;  %15573 = vst [vmem:[#allocation39_spill] sm:$0xff] %v12874_v48 }
 0xdbc   :  { %15566 = vst [vmem:[#allocation32_spill] sm:$0xff] %v12833_v33  ;;  %4637 = vmatpush1.msra.mxu0 %v12833_v33  ;;  %4714 = vmatprep.subr.mxu1 %v12850_v18  ;;  %v12886_v24 = vld [vmem:[%s15075_s15 + $0x20] sm:$0xff]  ;;  %v12898_v18 = vld [vmem:[%s15075_s15 + $0x18] sm:$0xff] }
 0xdbd   :  { %4638 = vmatprep.subr.mxu0 %v12845_v32  ;;  %15575 = vst [vmem:[#allocation41_spill] sm:$0xff] %v12886_v24  ;;  %4715 = vmatpush1.msra.mxu1 %v12862_v42  ;;  %15577 = vst [vmem:[#allocation43_spill] sm:$0xff] %v12898_v18  ;;  %v12910_v42 = vld [vmem:[%s15075_s15 + $0x10] sm:$0xff] }
 0xdbe   :  { %4639 = vmatpush1.msra.mxu0 %v12857_v56  ;;  %4716 = vmatprep.subr.mxu1 %v12874_v48  ;;  %v12905_v56 = vld [vmem:[%s15076_s16 + $0x10] sm:$0xff]  ;;  %15579 = vst [vmem:[#allocation45_spill] sm:$0xff] %v12910_v42  ;;  %v12922_v48 = vld [vmem:[%s15075_s15 + $0x8] sm:$0xff] }
 0xdbf   :  { %4640 = vmatprep.subr.mxu0 %v12869_v36  ;;  %15578 = vst [vmem:[#allocation44_spill] sm:$0xff] %v12905_v56  ;;  %4717 = vmatpush1.msra.mxu1 %v12886_v24  ;;  %v12917_v36 = vld [vmem:[%s15076_s16 + $0x8] sm:$0xff]  ;;  %15581 = vst [vmem:[#allocation47_spill] sm:$0xff] %v12922_v48  ;;  %v12934_v24 = vld [vmem:[%s15075_s15] sm:$0xff] }
 0xdc0   :  { %4641 = vmatpush1.msra.mxu0 %v12881_v27  ;;  %15580 = vst [vmem:[#allocation46_spill] sm:$0xff] %v12917_v36  ;;  %4718 = vmatprep.subr.mxu1 %v12898_v18  ;;  %v12929_v27 = vld [vmem:[%s15076_s16] sm:$0xff]  ;;  %15583 = vst [vmem:[#allocation49_spill] sm:$0xff] %v12934_v24  ;;  %v8486_v18 = vmul.f32 -1.442695, %v12743_v21 }
 0xdc1   :  { %4642 = vmatprep.subr.mxu0 %v12893_v45  ;;  %15582 = vst [vmem:[#allocation48_spill] sm:$0xff] %v12929_v27  ;;  %4719 = vmatpush1.msra.mxu1 %v12910_v42  ;;  %v4327_v21 = vld [vmem:[%s15077_s17] sm:$0x3] }
 0xdc2   :  { %4643 = vmatpush1.msra.mxu0 %v12905_v56  ;;  %4720 = vmatprep.subr.mxu1 %v12922_v48  ;;  %9752 = vpow2.f32 %v8486_v18  ;;  %v4605_v56 = vmul.f32 0.0, %v12746_v57 }
 0xdc3   :  { %4644 = vmatprep.subr.mxu0 %v12917_v36  ;;  %4721 = vmatpush1.msra.mxu1 %v12934_v24 }
 0xdc4   :  { %4645 = vmatpush1.msra.mxu0 %v12929_v27 }
 0xdc5   :  { %4679 = vmatmul.mubr.f32.vlgmr.msra.gmra.mxu0 %v15444_v38 }
 0xdc6   :  { %4860 = vmatprep.mubr.f32.mxu0 %v15444_v38 }
 0xdcf   :  { %v9753_v45 = vpop.eup %9752 }
 0xdd0   :  { %v4602_v32 = vadd.f32 1.0, %v9753_v45 }
 0xdd2   :  { %9754 = vrcp.f32 %v4602_v32  ;;  %v12959_v32 = vrot.slane %v4327_v21, %v15552_v25 }
 0xdd4   :  { %15586 = vst [vmem:[#allocation52_spill] sm:$0xff] %v12959_v32 }
 0xddf   :  { %v9755_v48 = vpop.eup %9754 }
 0xe2d   :  { %v4609_v42 = vpop.permute.xlu1 %4608 }
 0xe2e   :  { %v12946_v33 = vadd.f32 %v4609_v42, %v4605_v56 }
 0xe30   :  { %15584 = vst [vmem:[#allocation50_spill] sm:$0xff] %v12946_v33  ;;  %9756 = vtanh.f32 %v12946_v33  ;;  %v12963_v33 = vrot.slane %v4327_v21, %v15554_v15  ;;  %v12976_v21 = vld [vmem:[%s15079_s19 + $0x78] sm:$0xff] }
 0xe31   :  { %4812 = vmatprep.subr.mxu0 %v12976_v21 }
 0xe32   :  { %15587 = vst [vmem:[#allocation53_spill] sm:$0xff] %v12963_v33 }
 0xe3d   :  { %v9757_v27 = vpop.eup %9756 }
 0xe3e   :  { %v4613_v24 = vmul.f32 %v9757_v27, %v9755_v48 }
 0xe40   :  { %4686 = vrot.lane.b32.xlu0 %v4613_v24, %s10367_s1 }
 0xe85   :  { %v4680_v57 = vpop.f32.mrf.mxu0 }
 0xe87   :  { %v4682_v42 = vpop.f32.mrf.mxu0 }
 0xeb2   :  { %v12950_v36 = vpop.permute.xlu0 %4686 }
 0xeb3   :  { %15585 = vst [vmem:[#allocation51_spill] sm:$0xff] %v12950_v36  ;;  %8487 = vmatmul.mubr.msk.f32.vlgmr.msra.gmra.mxu1 %vm488_vm6, %v12950_v36 }
 0xeb4   :  { %4936 = vmatprep.mubr.f32.mxu1 %v15444_v38 }
 0xf73   :  { %v4756_v45 = vpop.f32.mrf.mxu1 }
 0xf74   :  { %v4757_v56 = vadd.f32 %v4756_v45, %v4680_v57 }
 0xf75   :  { %v4758_v18 = vpop.f32.mrf.mxu1 }
 0xf76   :  { %v4772_v27 = vadd.f32 %v12959_v32, %v4757_v56  ;;  %v4759_v48 = vadd.f32 %v4758_v18, %v4682_v42  ;;  %v12981_v56 = vld [vmem:[%s15078_s18 + $0x78] sm:$0xff]  ;;  %v13015_v18 = vld [vmem:[%s15078_s18 + $0x60] sm:$0xff]  ;;  %v13044_v32 = vld [vmem:[%s15079_s19 + $0x48] sm:$0xff] }
 0xf77   :  { %15588 = vst [vmem:[#allocation54_spill] sm:$0xff] %v12981_v56  ;;  %4888 = vmatprep.subr.mxu1 %v12981_v56  ;;  %15591 = vst [vmem:[#allocation57_spill] sm:$0xff] %v13015_v18  ;;  %v13020_v42 = vld [vmem:[%s15079_s19 + $0x58] sm:$0xff] }
 0xf78   :  { %v8488_v24 = vmul.f32 -1.442695, %v4772_v27  ;;  %v12966_v36 = vadd.f32 %v12963_v33, %v4759_v48  ;;  %v13003_v27 = vld [vmem:[%s15078_s18 + $0x68] sm:$0xff]  ;;  %v13027_v48 = vld [vmem:[%s15078_s18 + $0x58] sm:$0xff]  ;;  %v13037_v33 = vld [vmem:[%s15078_s18 + $0x50] sm:$0xff]  ;;  %15595 = vst [vmem:[#allocation61_spill] sm:$0xff] %v13044_v32 }
 0xf79   :  { %15590 = vst [vmem:[#allocation56_spill] sm:$0xff] %v13003_v27  ;;  %15592 = vst [vmem:[#allocation58_spill] sm:$0xff] %v13027_v48  ;;  %v13068_v56 = vld [vmem:[%s15079_s19 + $0x38] sm:$0xff] }
 0xf7a   :  { %9758 = vpow2.f32 %v8488_v24  ;;  %v13010_v24 = vld [vmem:[%s15079_s19 + $0x60] sm:$0xff]  ;;  %15594 = vst [vmem:[#allocation60_spill] sm:$0xff] %v13037_v33  ;;  %15599 = vst [vmem:[#allocation65_spill] sm:$0xff] %v13068_v56 }
 0xf7b   :  { %9760 = vtanh.f32 %v12966_v36 }
 0xf87   :  { %v9759_v34 = vpop.eup %9758 }
 0xf88   :  { %v4777_v31 = vadd.f32 1.0, %v9759_v34  ;;  %v9761_v12 = vpop.eup %9760  ;;  %v12998_v34 = vld [vmem:[%s15079_s19 + $0x68] sm:$0xff] }
 0xf8a   :  { %9762 = vrcp.f32 %v4777_v31  ;;  %v12986_v31 = vld [vmem:[%s15079_s19 + $0x70] sm:$0xff] }
 0xf8b   :  { %4813 = vmatpush1.msra.mxu0 %v12986_v31 }
 0xf8c   :  { %4814 = vmatprep.subr.mxu0 %v12998_v34 }
 0xf8d   :  { %4815 = vmatpush1.msra.mxu0 %v13010_v24 }
 0xf8e   :  { %4816 = vmatprep.subr.mxu0 %v13020_v42 }
 0xf97   :  { %v12969_v57 = vpop.eup %9762 }
 0xf98   :  { %v4788_v45 = vmul.f32 %v12969_v57, %v9761_v12  ;;  %v12993_v12 = vld [vmem:[%s15078_s18 + $0x70] sm:$0xff] }
 0xf99   :  { %15589 = vst [vmem:[#allocation55_spill] sm:$0xff] %v12993_v12  ;;  %4889 = vmatpush1.msra.mxu1 %v12993_v12  ;;  %v13056_v12 = vld [vmem:[%s15079_s19 + $0x40] sm:$0xff] }
 0xf9a   :  { %4790 = vrot.lane.b32.xlu1 %v4788_v45, %s10367_s1  ;;  %4890 = vmatprep.subr.mxu1 %v13003_v27  ;;  %v13032_v45 = vld [vmem:[%s15079_s19 + $0x50] sm:$0xff]  ;;  %v13049_v27 = vld [vmem:[%s15078_s18 + $0x48] sm:$0xff]  ;;  %15597 = vst [vmem:[#allocation63_spill] sm:$0xff] %v13056_v12 }
 0xf9b   :  { %15593 = vst [vmem:[#allocation59_spill] sm:$0xff] %v13032_v45  ;;  %4891 = vmatpush1.msra.mxu1 %v13015_v18  ;;  %15596 = vst [vmem:[#allocation62_spill] sm:$0xff] %v13049_v27  ;;  %v13061_v18 = vld [vmem:[%s15078_s18 + $0x40] sm:$0xff]  ;;  %4817 = vmatpush1.msra.mxu0 %v13032_v45  ;;  %v13080_v45 = vld [vmem:[%s15079_s19 + $0x30] sm:$0xff] }
 0xf9c   :  { %4892 = vmatprep.subr.mxu1 %v13027_v48  ;;  %15598 = vst [vmem:[#allocation64_spill] sm:$0xff] %v13061_v18  ;;  %v13073_v48 = vld [vmem:[%s15078_s18 + $0x38] sm:$0xff]  ;;  %4818 = vmatprep.subr.mxu0 %v13044_v32  ;;  %15601 = vst [vmem:[#allocation67_spill] sm:$0xff] %v13080_v45  ;;  %v13092_v32 = vld [vmem:[%s15079_s19 + $0x28] sm:$0xff] }
 0xf9d   :  { %4893 = vmatpush1.msra.mxu1 %v13037_v33  ;;  %15600 = vst [vmem:[#allocation66_spill] sm:$0xff] %v13073_v48  ;;  %v13085_v33 = vld [vmem:[%s15078_s18 + $0x30] sm:$0xff]  ;;  %4819 = vmatpush1.msra.mxu0 %v13056_v12  ;;  %15603 = vst [vmem:[#allocation69_spill] sm:$0xff] %v13092_v32  ;;  %v13104_v12 = vld [vmem:[%s15079_s19 + $0x20] sm:$0xff] }
 0xf9e   :  { %4894 = vmatprep.subr.mxu1 %v13049_v27  ;;  %15602 = vst [vmem:[#allocation68_spill] sm:$0xff] %v13085_v33  ;;  %v13097_v27 = vld [vmem:[%s15078_s18 + $0x28] sm:$0xff]  ;;  %4820 = vmatprep.subr.mxu0 %v13068_v56  ;;  %15605 = vst [vmem:[#allocation71_spill] sm:$0xff] %v13104_v12  ;;  %v13116_v56 = vld [vmem:[%s15079_s19 + $0x18] sm:$0xff] }
 0xf9f   :  { %4895 = vmatpush1.msra.mxu1 %v13061_v18  ;;  %15604 = vst [vmem:[#allocation70_spill] sm:$0xff] %v13097_v27  ;;  %v13109_v18 = vld [vmem:[%s15078_s18 + $0x20] sm:$0xff]  ;;  %4821 = vmatpush1.msra.mxu0 %v13080_v45  ;;  %v13128_v45 = vld [vmem:[%s15079_s19 + $0x10] sm:$0xff] }
 0xfa0   :  { %4896 = vmatprep.subr.mxu1 %v13073_v48  ;;  %15606 = vst [vmem:[#allocation72_spill] sm:$0xff] %v13109_v18  ;;  %v13121_v48 = vld [vmem:[%s15078_s18 + $0x18] sm:$0xff]  ;;  %4822 = vmatprep.subr.mxu0 %v13092_v32  ;;  %v13140_v32 = vld [vmem:[%s15079_s19 + $0x8] sm:$0xff] }
 0xfa1   :  { %4897 = vmatpush1.msra.mxu1 %v13085_v33  ;;  %15607 = vst [vmem:[#allocation73_spill] sm:$0xff] %v13121_v48  ;;  %v13133_v33 = vld [vmem:[%s15078_s18 + $0x10] sm:$0xff]  ;;  %4823 = vmatpush1.msra.mxu0 %v13104_v12  ;;  %v13152_v12 = vld [vmem:[%s15079_s19] sm:$0xff] }
 0xfa2   :  { %4898 = vmatprep.subr.mxu1 %v13097_v27  ;;  %15608 = vst [vmem:[#allocation74_spill] sm:$0xff] %v13133_v33  ;;  %v13145_v27 = vld [vmem:[%s15078_s18 + $0x8] sm:$0xff]  ;;  %4824 = vmatprep.subr.mxu0 %v13116_v56 }
 0xfa3   :  { %4899 = vmatpush1.msra.mxu1 %v13109_v18  ;;  %15609 = vst [vmem:[#allocation75_spill] sm:$0xff] %v13145_v27  ;;  %v13157_v18 = vld [vmem:[%s15078_s18] sm:$0xff]  ;;  %4825 = vmatpush1.msra.mxu0 %v13128_v45 }
 0xfa4   :  { %4900 = vmatprep.subr.mxu1 %v13121_v48  ;;  %15610 = vst [vmem:[#allocation76_spill] sm:$0xff] %v13157_v18  ;;  %4826 = vmatprep.subr.mxu0 %v13140_v32 }
 0xfa5   :  { %4901 = vmatpush1.msra.mxu1 %v13133_v33  ;;  %4827 = vmatpush1.msra.mxu0 %v13152_v12 }
 0xfa6   :  { %4902 = vmatprep.subr.mxu1 %v13145_v27  ;;  %4861 = vmatmul.mubr.f32.vlgmr.msra.gmra.mxu0 %v15444_v38  ;;  %v4787_v27 = vmul.f32 0.0, %v12969_v57 }
 0xfa7   :  { %4903 = vmatpush1.msra.mxu1 %v13157_v18  ;;  %5037 = vmatprep.subr.mxu0 %v12427_v50  ;;  %v8489_v50 = vmul.f32 -1.442695, %v12966_v36 }
 0xfa8   :  { %5038 = vmatpush1.msra.mxu0 %v12534_v14  ;;  %5113 = vmatprep.subr.mxu1 %v12433_v51 }
 0xfa9   :  { %5039 = vmatprep.subr.mxu0 %v12539_v58  ;;  %5085 = vmatprep.mubr.f32.mxu0 %v15444_v38  ;;  %9764 = vpow2.f32 %v8489_v50 }
 0xfaa   :  { %5040 = vmatpush1.msra.mxu0 %v12545_v59 }
 0xfab   :  { %5041 = vmatprep.subr.mxu0 %v12551_v60 }
 0xfac   :  { %5042 = vmatpush1.msra.mxu0 %v12558_v61 }
 0xfad   :  { %5043 = vmatprep.subr.mxu0 %v12564_v62 }
 0xfae   :  { %5044 = vmatpush1.msra.mxu0 %v12570_v0 }
 0xfaf   :  { %5045 = vmatprep.subr.mxu0 %v12576_v1 }
 0xfb0   :  { %5046 = vmatpush1.msra.mxu0 %v12582_v4 }
 0xfb1   :  { %5047 = vmatprep.subr.mxu0 %v12588_v5 }
 0xfb2   :  { %5048 = vmatpush1.msra.mxu0 %v12594_v6 }
 0xfb3   :  { %5049 = vmatprep.subr.mxu0 %v12600_v7 }
 0xfb4   :  { %5050 = vmatpush1.msra.mxu0 %v12606_v8 }
 0xfb5   :  { %5051 = vmatprep.subr.mxu0 %v12612_v9 }
 0xfb6   :  { %5052 = vmatpush1.msra.mxu0 %v12618_v16  ;;  %v9765_v51 = vpop.eup %9764 }
 0xfb7   :  { %5184 = vmatprep.subr.mxu0 %v12624_v17  ;;  %v4784_v18 = vadd.f32 1.0, %v9765_v51 }
 0xfb9   :  { %9766 = vrcp.f32 %v4784_v18  ;;  %v4238_v18 = vsub.f32 1.0, %v12733_v47 }
 0xfc6   :  { %v9767_v9 = vpop.eup %9766 }
0x100c   :  { %v4791_v33 = vpop.permute.xlu1 %4790 }
0x100d   :  { %v13187_v48 = vadd.f32 %v4791_v33, %v4787_v27 }
0x100f   :  { %9768 = vtanh.f32 %v13187_v48 }
0x1010   :  { %9770 = vtanh.f32 %v12737_v13 }
0x101c   :  { %v9769_v8 = vpop.eup %9768 }
0x101d   :  { %v4795_v16 = vmul.f32 %v9769_v8, %v9767_v9  ;;  %v9771_v17 = vpop.eup %9770 }
0x101f   :  { %4868 = vrot.lane.b32.xlu0 %v4795_v16, %s10367_s1 }
0x1023   :  { %4240 = vrot.lane.b32.xlu0 %v9771_v17, %s10367_s1 }
0x1091   :  { %v13193_v36 = vpop.permute.xlu0 %4868 }
0x1092   :  { %8490 = vmatmul.mubr.msk.f32.vlgmr.msra.gmra.mxu1 %vm488_vm6, %v13193_v36 }
0x1093   :  { %5114 = vmatpush1.msra.mxu1 %v12439_v39  ;;  %5161 = vmatprep.mubr.f32.mxu1 %v15444_v38  ;;  %v4360_v39 = vld [vmem:[%s15080_s20] sm:$0x3] }
0x1094   :  { %5115 = vmatprep.subr.mxu1 %v12445_v46  ;;  %v13218_v46 = vrot.slane %v4360_v39, %v15552_v25 }
0x1095   :  { %5116 = vmatpush1.msra.mxu1 %v12451_v28  ;;  %v4862_v28 = vpop.f32.mrf.mxu0 }
0x1096   :  { %5117 = vmatprep.subr.mxu1 %v12457_v40  ;;  %15611 = vst [vmem:[#allocation77_spill] sm:$0xff] %v13218_v46 }
0x1097   :  { %5118 = vmatpush1.msra.mxu1 %v12463_v43 }
0x1098   :  { %5119 = vmatprep.subr.mxu1 %v12469_v37 }
0x1099   :  { %5120 = vmatpush1.msra.mxu1 %v12475_v44 }
0x109a   :  { %5121 = vmatprep.subr.mxu1 %v12481_v52 }
0x109b   :  { %5122 = vmatpush1.msra.mxu1 %v12487_v53  ;;  %v4864_v53 = vpop.f32.mrf.mxu0 }
0x109c   :  { %5123 = vmatprep.subr.mxu1 %v12493_v41 }
0x109d   :  { %5124 = vmatpush1.msra.mxu1 %v12499_v23  ;;  %v13222_v23 = vrot.slane %v4360_v39, %v15554_v15  ;;  %v4241_v15 = vpop.permute.xlu0 %4240 }
0x109e   :  { %5125 = vmatprep.subr.mxu1 %v12505_v54  ;;  %v4243_v51 = vmul.f32 %v4241_v15, %v4238_v18 }
0x109f   :  { %5126 = vmatpush1.msra.mxu1 %v12511_v10  ;;  %15612 = vst [vmem:[#allocation78_spill] sm:$0xff] %v13222_v23 }
0x10a0   :  { %5127 = vmatprep.subr.mxu1 %v12517_v55 }
0x10a1   :  { %5128 = vmatpush1.msra.mxu1 %v12523_v11 }
0x10a2   :  { %5281 = vmatprep.subr.mxu1 %v12753_v26 }
0x1152   :  { %v4938_v40 = vpop.f32.mrf.mxu1 }
0x1153   :  { %v4939_v43 = vadd.f32 %v4938_v40, %v4862_v28  ;;  %v4244_v28 = vmul.f32 %v12733_v47, %v11899_v63 }
0x1154   :  { %v4940_v52 = vpop.f32.mrf.mxu1 }
0x1155   :  { %v4954_v37 = vadd.f32 %v13218_v46, %v4939_v43  ;;  %v4941_v41 = vadd.f32 %v4940_v52, %v4864_v53  ;;  %v13232_v43 = vadd.f32 %v4244_v28, %v4243_v51 }
0x1157   :  { %v8491_v44 = vmul.f32 -1.442695, %v4954_v37  ;;  %v4955_v54 = vadd.f32 %v13222_v23, %v4941_v41 }
0x1159   :  { %9772 = vpow2.f32 %v8491_v44  ;;  %v8492_v16 = vmul.f32 -1.442695, %v4955_v54 }
0x115a   :  { %9774 = vtanh.f32 %v4955_v54 }
0x1166   :  { %v9773_v10 = vpop.eup %9772 }
0x1167   :  { %v4959_v55 = vadd.f32 1.0, %v9773_v10  ;;  %v9775_v11 = vpop.eup %9774 }
0x1169   :  { %9776 = vrcp.f32 %v4959_v55 }
0x116a   :  { %9778 = vpow2.f32 %v8492_v16 }
0x1176   :  { %v9777_v8 = vpop.eup %9776 }
0x1177   :  { %v4970_v9 = vmul.f32 %v9777_v8, %v9775_v11  ;;  %v9779_v17 = vpop.eup %9778  ;;  %v4969_v33 = vmul.f32 0.0, %v9777_v8 }
0x1178   :  { %v4966_v13 = vadd.f32 1.0, %v9779_v17 }
0x1179   :  { %4972 = vrot.lane.b32.xlu1 %v4970_v9, %s10367_s1 }
0x117a   :  { %9780 = vrcp.f32 %v4966_v13 }
0x1187   :  { %v9781_v50 = vpop.eup %9780 }
0x11eb   :  { %v4973_v57 = vpop.permute.xlu1 %4972 }
0x11ec   :  { %v13226_v27 = vadd.f32 %v4973_v57, %v4969_v33 }
0x11ee   :  { %9782 = vtanh.f32 %v13226_v27 }
0x11fb   :  { %v9783_v39 = vpop.eup %9782 }
0x11fc   :  { %v4977_v40 = vmul.f32 %v9783_v39, %v9781_v50 }
0x11fe   :  { %v4981_v37 = vrot.slane %v4977_v40, %v15552_v25 }
0x1200   :  { %v4982_v44 = vmul.f32 %v4981_v37, %v13232_v43 }
0x1202   :  { %4984 = vrot.lane.b32.xlu1 %v4982_v44, %s10367_s1 }
0x1274   :  { %v4985_v52 = vpop.permute.xlu1 %4984 }
0x1275   :  { %v4987_v53 = vsel %vm488_vm6, %v4985_v52, 0.0 }
0x1276   :  { %4988 = vadd.xlane.f32.xlu0 %v4987_v53 }
0x12ff   :  { %v4989_v41 = vpop.xlane.xlu0 %4988 }
0x1300   :  { %v4990_v54 = vrot.slane %v4989_v41, 4 }
0x1302   :  { %v4991_v10 = vmax.f32 %v4989_v41, %v4990_v54 }
0x1304   :  { %v4992_v55 = vrot.slane %v4991_v10, 2 }
0x1306   :  { %v4993_v11 = vmax.f32 %v4991_v10, %v4992_v55 }
0x1308   :  { %v4994_v8 = vrot.slane %v4993_v11, 1 }
0x130a   :  { %v4995_v63 = vmax.f32 %v4993_v11, %v4994_v8  ;;  %v15618_v11 = vld [vmem:[#allocation14_spill] sm:$0xff] }
0x130b   :  { %v15623_v8 = vld [vmem:[#allocation34_spill] sm:$0xff] }
0x130c   :  { %v4996_v47 = vsub.f32 %v4989_v41, %v4995_v63  ;;  %v15625_v63 = vld [vmem:[#allocation36_spill] sm:$0xff] }
0x130e   :  { %v4997_v9 = vmul.f32 1.442695, %v4996_v47  ;;  %v15626_v47 = vld [vmem:[#allocation18_spill] sm:$0xff] }
0x1310   :  { %9784 = vpow2.f32 %v4997_v9  ;;  %v15627_v9 = vld [vmem:[#allocation38_spill] sm:$0xff] }
0x131d   :  { %v9785_v16 = vpop.eup %9784 }
0x131e   :  { %v4999_v17 = vrot.slane %v9785_v16, 4 }
0x1320   :  { %v5000_v13 = vadd.f32 %v9785_v16, %v4999_v17  ;;  %v15629_v17 = vld [vmem:[#allocation40_spill] sm:$0xff] }
0x1322   :  { %v5001_v33 = vrot.slane %v5000_v13, 2 }
0x1324   :  { %v5002_v57 = vadd.f32 %v5001_v33, %v5000_v13  ;;  %v15630_v13 = vld [vmem:[#allocation51_spill] sm:$0xff]  ;;  %v15631_v33 = vld [vmem:[#allocation42_spill] sm:$0xff] }
0x1326   :  { %v5003_v15 = vrot.slane %v5002_v57, 1 }
0x1328   :  { %v5004_v18 = vadd.f32 %v5003_v15, %v5002_v57  ;;  %v15632_v57 = vld [vmem:[#allocation44_spill] sm:$0xff]  ;;  %v15633_v15 = vld [vmem:[#allocation46_spill] sm:$0xff] }
0x132a   :  { %9786 = vrcp.f32 %v5004_v18  ;;  %v15634_v18 = vld [vmem:[#allocation22_spill] sm:$0xff] }
0x1337   :  { %v9787_v50 = vpop.eup %9786 }
0x1338   :  { %v5006_v51 = vmul.f32 %v9787_v50, %v9785_v16  ;;  %v15628_v16 = vld [vmem:[#allocation19_spill] sm:$0xff]  ;;  %v15635_v50 = vld [vmem:[#allocation48_spill] sm:$0xff] }
0x133a   :  { %v5007_v39 = vmul.f32 %v5006_v51, %v13232_v43  ;;  %v15636_v51 = vld [vmem:[#allocation23_spill] sm:$0xff] }
0x133c   :  { %v5009_v28 = vsel %vm5008_vm2, %v5007_v39, 0.0  ;;  %v15637_v39 = vld [vmem:[#allocation24_spill] sm:$0xff] }
0x133d   :  { %v5010_v37 = vrot.slane %v5009_v28, 4 }
0x133f   :  { %v5011_v44 = vadd.f32 %v5010_v37, %v5009_v28  ;;  %v15638_v28 = vld [vmem:[#allocation25_spill] sm:$0xff]  ;;  %v15639_v37 = vld [vmem:[#allocation27_spill] sm:$0xff] }
0x1341   :  { %v5012_v52 = vrot.slane %v5011_v44, 2 }
0x1343   :  { %v5013_v53 = vadd.f32 %v5012_v52, %v5011_v44  ;;  %v15640_v44 = vld [vmem:[#allocation59_spill] sm:$0xff]  ;;  %v15642_v52 = vld [vmem:[#allocation61_spill] sm:$0xff] }
0x1345   :  { %v5014_v41 = vrot.slane %v5013_v53, 1 }
0x1347   :  { %v5015_v54 = vadd.f32 %v5014_v41, %v5013_v53  ;;  %v15643_v53 = vld [vmem:[#allocation31_spill] sm:$0xff] }
0x1348   :  { %v15644_v41 = vld [vmem:[#allocation63_spill] sm:$0xff] }
0x1349   :  { %5017 = vrot.lane.b32.xlu1 %v5015_v54, %s10367_s1  ;;  %v15645_v54 = vld [vmem:[#allocation33_spill] sm:$0xff] }
0x134d   :  { %5093 = vrot.lane.b32.xlu1 %v4977_v40, %s10367_s1  ;;  %v15617_v40 = vld [vmem:[#allocation28_spill] sm:$0xff] }
0x13bb   :  { %v5018_v10 = vpop.permute.xlu1 %5017 }
0x13bc   :  { %8493 = vmatmul.mubr.msk.f32.vlgmr.msra.gmra.mxu0 %vm488_vm6, %v5018_v10  ;;  %v15646_v10 = vld [vmem:[#allocation65_spill] sm:$0xff] }
0x13bd   :  { %5185 = vmatpush1.msra.mxu0 %v12630_v19  ;;  %5232 = vmatprep.mubr.f32.mxu0 %v15444_v38  ;;  %v15613_v19 = vld [vmem:[#allocation11_spill] sm:$0xff] }
0x13be   :  { %5186 = vmatprep.subr.mxu0 %v12636_v20  ;;  %v15614_v20 = vld [vmem:[#allocation12_spill] sm:$0xff] }
0x13bf   :  { %5187 = vmatpush1.msra.mxu0 %v12643_v22  ;;  %v13247_v55 = vpop.permute.xlu1 %5093  ;;  %v15615_v22 = vld [vmem:[#allocation26_spill] sm:$0xff] }
0x13c0   :  { %5188 = vmatprep.subr.mxu0 %v12649_v29  ;;  %8494 = vmatmul.mubr.msk.f32.vlgmr.msra.gmra.mxu1 %vm488_vm6, %v13247_v55  ;;  %v15616_v29 = vld [vmem:[#allocation13_spill] sm:$0xff] }
0x13c1   :  { %5189 = vmatpush1.msra.mxu0 %v12656_v2  ;;  %5282 = vmatpush1.msra.mxu1 %v12763_v3  ;;  %v15619_v2 = vld [vmem:[#allocation30_spill] sm:$0xff]  ;;  %v15620_v3 = vld [vmem:[#allocation15_spill] sm:$0xff] }
0x13c2   :  { %5190 = vmatprep.subr.mxu0 %v12662_v30  ;;  %5283 = vmatprep.subr.mxu1 %v12775_v35  ;;  %v15621_v30 = vld [vmem:[#allocation32_spill] sm:$0xff] }
0x13c3   :  { %5191 = vmatpush1.msra.mxu0 %v15613_v19  ;;  %5284 = vmatpush1.msra.mxu1 %v12787_v49  ;;  %v15622_v35 = vld [vmem:[#allocation16_spill] sm:$0xff]  ;;  %v15624_v49 = vld [vmem:[#allocation17_spill] sm:$0xff]  ;;  %v15647_v19 = vld [vmem:[#allocation35_spill] sm:$0xff] }
0x13c4   :  { %5192 = vmatprep.subr.mxu0 %v15614_v20  ;;  %5285 = vmatprep.subr.mxu1 %v15615_v22  ;;  %v15648_v20 = vld [vmem:[#allocation67_spill] sm:$0xff]  ;;  %v15649_v22 = vld [vmem:[#allocation37_spill] sm:$0xff] }
0x13c5   :  { %5193 = vmatpush1.msra.mxu0 %v15616_v29  ;;  %5286 = vmatpush1.msra.mxu1 %v15617_v40  ;;  %v15650_v29 = vld [vmem:[#allocation69_spill] sm:$0xff]  ;;  %v15651_v40 = vld [vmem:[#allocation39_spill] sm:$0xff] }
0x13c6   :  { %5194 = vmatprep.subr.mxu0 %v15618_v11  ;;  %5287 = vmatprep.subr.mxu1 %v15619_v2  ;;  %v15652_v11 = vld [vmem:[#allocation71_spill] sm:$0xff]  ;;  %v15653_v2 = vld [vmem:[#allocation41_spill] sm:$0xff] }
0x13c7   :  { %5195 = vmatpush1.msra.mxu0 %v15620_v3  ;;  %5288 = vmatpush1.msra.mxu1 %v15621_v30  ;;  %v15654_v3 = vld [vmem:[#allocation43_spill] sm:$0xff]  ;;  %v15655_v30 = vld [vmem:[#allocation45_spill] sm:$0xff] }
0x13c8   :  { %5196 = vmatprep.subr.mxu0 %v15622_v35  ;;  %5289 = vmatprep.subr.mxu1 %v15623_v8  ;;  %v15656_v35 = vld [vmem:[#allocation47_spill] sm:$0xff]  ;;  %v15657_v8 = vld [vmem:[#allocation49_spill] sm:$0xff] }
0x13c9   :  { %5197 = vmatpush1.msra.mxu0 %v15624_v49  ;;  %5290 = vmatpush1.msra.mxu1 %v15625_v63  ;;  %v15658_v49 = vld [vmem:[#allocation54_spill] sm:$0xff]  ;;  %v13323_v63 = vld [vmem:[%s15072_s12 + $0x78] sm:$0xff] }
0x13ca   :  { %5198 = vmatprep.subr.mxu0 %v15626_v47  ;;  %5291 = vmatprep.subr.mxu1 %v15627_v9  ;;  %v15663_v47 = vld [vmem:[#allocation20_spill] sm:$0xff] }
0x13cb   :  { %5199 = vmatpush1.msra.mxu0 %v15628_v16  ;;  %5292 = vmatpush1.msra.mxu1 %v15629_v17 }
0x13cc   :  { %8495 = vmatmul.mubr.msk.f32.vlgmr.msra.gmra.mxu0 %vm488_vm6, %v15630_v13  ;;  %5293 = vmatprep.subr.mxu1 %v15631_v33  ;;  %v15664_v13 = vld [vmem:[#allocation21_spill] sm:$0xff] }
0x13cd   :  { %5294 = vmatpush1.msra.mxu1 %v15632_v57  ;;  %5329 = vmatprep.mubr.f32.mxu1 %v15444_v38 }
0x13ce   :  { %5295 = vmatprep.subr.mxu1 %v15633_v15  ;;  %5357 = vmatprep.subr.mxu0 %v15634_v18 }
0x13cf   :  { %5296 = vmatpush1.msra.mxu1 %v15635_v50  ;;  %5358 = vmatpush1.msra.mxu0 %v15636_v51 }
0x13d0   :  { %8498 = vmatmul.mubr.msk.f32.vlgmr.msra.gmra.mxu1 %vm488_vm6, %v13193_v36  ;;  %5452 = vmatprep.subr.mxu1 %v12976_v21  ;;  %v15641_v36 = vld [vmem:[#allocation29_spill] sm:$0xff] }
0x13d1   :  { %5453 = vmatpush1.msra.mxu1 %v12986_v31  ;;  %5500 = vmatprep.mubr.f32.mxu1 %v15444_v38 }
0x13d2   :  { %5454 = vmatprep.subr.mxu1 %v12998_v34  ;;  %5359 = vmatprep.subr.mxu0 %v15637_v39 }
0x13d3   :  { %5455 = vmatpush1.msra.mxu1 %v13010_v24  ;;  %5360 = vmatpush1.msra.mxu0 %v15638_v28 }
0x13d4   :  { %5456 = vmatprep.subr.mxu1 %v13020_v42  ;;  %5361 = vmatprep.subr.mxu0 %v15639_v37 }
0x13d5   :  { %5457 = vmatpush1.msra.mxu1 %v15640_v44  ;;  %5362 = vmatpush1.msra.mxu0 %v15641_v36 }
0x13d6   :  { %5458 = vmatprep.subr.mxu1 %v15642_v52  ;;  %5363 = vmatprep.subr.mxu0 %v15643_v53 }
0x13d7   :  { %5459 = vmatpush1.msra.mxu1 %v15644_v41  ;;  %5364 = vmatpush1.msra.mxu0 %v15645_v54 }
0x13d8   :  { %5460 = vmatprep.subr.mxu1 %v15646_v10  ;;  %5365 = vmatprep.subr.mxu0 %v15647_v19 }
0x13d9   :  { %5461 = vmatpush1.msra.mxu1 %v15648_v20  ;;  %5366 = vmatpush1.msra.mxu0 %v15649_v22  ;;  %v15665_v22 = vld [vmem:[#allocation50_spill] sm:$0xff] }
0x13da   :  { %5462 = vmatprep.subr.mxu1 %v15650_v29  ;;  %5367 = vmatprep.subr.mxu0 %v15651_v40 }
0x13db   :  { %5463 = vmatpush1.msra.mxu1 %v15652_v11  ;;  %5368 = vmatpush1.msra.mxu0 %v15653_v2 }
0x13dc   :  { %5464 = vmatprep.subr.mxu1 %v13116_v56  ;;  %5369 = vmatprep.subr.mxu0 %v15654_v3 }
0x13dd   :  { %5465 = vmatpush1.msra.mxu1 %v13128_v45  ;;  %5370 = vmatpush1.msra.mxu0 %v15655_v30 }
0x13de   :  { %5466 = vmatprep.subr.mxu1 %v13140_v32  ;;  %5371 = vmatprep.subr.mxu0 %v15656_v35 }
0x13df   :  { %5467 = vmatpush1.msra.mxu1 %v13152_v12  ;;  %5372 = vmatpush1.msra.mxu0 %v15657_v8 }
0x13e0   :  { %8502 = vmatmul.mubr.msk.f32.vlgmr.msra.gmra.mxu1 %vm488_vm6, %v13247_v55  ;;  %5405 = vmatprep.mubr.f32.mxu0 %v15444_v38 }
0x13e1   :  { %5528 = vmatprep.subr.mxu0 %v15658_v49  ;;  %5665 = vmatprep.subr.mxu1 %v13323_v63 }
0x13e2   :  { %5666 = vmatpush1.msra.mxu1 %v12534_v14  ;;  %5713 = vmatprep.mubr.f32.mxu1 %v15444_v38  ;;  %v15659_v14 = vld [vmem:[#allocation7_spill] sm:$0xff] }
0x13e3   :  { %5667 = vmatprep.subr.mxu1 %v12539_v58  ;;  %v15660_v58 = vld [vmem:[#allocation8_spill] sm:$0xff] }
0x13e4   :  { %5668 = vmatpush1.msra.mxu1 %v12545_v59  ;;  %v15661_v59 = vld [vmem:[#allocation9_spill] sm:$0xff] }
0x13e5   :  { %5669 = vmatprep.subr.mxu1 %v12551_v60  ;;  %v15662_v60 = vld [vmem:[#allocation10_spill] sm:$0xff] }
0x13e6   :  { %5670 = vmatpush1.msra.mxu1 %v12558_v61 }
0x13e7   :  { %5671 = vmatprep.subr.mxu1 %v12564_v62 }
0x13e8   :  { %5672 = vmatpush1.msra.mxu1 %v12570_v0 }
0x13e9   :  { %5673 = vmatprep.subr.mxu1 %v12576_v1 }
0x13ea   :  { %5674 = vmatpush1.msra.mxu1 %v12582_v4 }
0x13eb   :  { %5675 = vmatprep.subr.mxu1 %v12588_v5 }
0x13ec   :  { %5676 = vmatpush1.msra.mxu1 %v12594_v6 }
0x13ed   :  { %5677 = vmatprep.subr.mxu1 %v12600_v7 }
0x13ee   :  { %5678 = vmatpush1.msra.mxu1 %v15659_v14  ;;  %v15666_v14 = vld [vmem:[#allocation55_spill] sm:$0xff] }
0x13ef   :  { %5679 = vmatprep.subr.mxu1 %v15660_v58  ;;  %v15667_v58 = vld [vmem:[#allocation56_spill] sm:$0xff] }
0x13f0   :  { %5680 = vmatpush1.msra.mxu1 %v15661_v59  ;;  %v15668_v59 = vld [vmem:[#allocation57_spill] sm:$0xff] }
0x13f1   :  { %5812 = vmatprep.subr.mxu1 %v15662_v60  ;;  %v15669_v60 = vld [vmem:[#allocation58_spill] sm:$0xff] }
0x147c   :  { %v5087_v61 = vpop.f32.mrf.mxu0 }
0x147e   :  { %v5089_v0 = vpop.f32.mrf.mxu0 }
0x1480   :  { %v5163_v62 = vpop.f32.mrf.mxu1 }
0x1481   :  { %v5164_v1 = vadd.f32 %v5163_v62, %v5087_v61  ;;  %v15670_v61 = vld [vmem:[#allocation60_spill] sm:$0xff]  ;;  %v15671_v62 = vld [vmem:[#allocation62_spill] sm:$0xff] }
0x1482   :  { %v5165_v6 = vpop.f32.mrf.mxu1 }
0x1483   :  { %v5166_v16 = vadd.f32 %v5165_v6, %v5089_v0  ;;  %v15672_v0 = vld [vmem:[#allocation64_spill] sm:$0xff]  ;;  %v15678_v6 = vld [vmem:[#allocation74_spill] sm:$0xff] }
0x148c   :  { %v5234_v55 = vpop.f32.mrf.mxu0 }
0x148d   :  { %v5239_v4 = vadd.f32 %v5234_v55, %v5164_v1  ;;  %v15673_v1 = vld [vmem:[#allocation66_spill] sm:$0xff]  ;;  %v15674_v55 = vld [vmem:[#allocation68_spill] sm:$0xff] }
0x148e   :  { %v5236_v7 = vpop.f32.mrf.mxu0 }
0x148f   :  { %v5241_v5 = vadd.f32 %v5239_v4, %v15663_v47  ;;  %v5240_v17 = vadd.f32 %v5236_v7, %v5166_v16  ;;  %v15675_v4 = vld [vmem:[#allocation70_spill] sm:$0xff]  ;;  %v15679_v7 = vld [vmem:[#allocation75_spill] sm:$0xff]  ;;  %v15680_v16 = vld [vmem:[#allocation76_spill] sm:$0xff] }
0x1491   :  { %v8496_v9 = vmul.f32 -1.442695, %v5241_v5  ;;  %v5242_v18 = vadd.f32 %v5240_v17, %v15664_v13  ;;  %v15676_v5 = vld [vmem:[#allocation72_spill] sm:$0xff] }
0x1492   :  { %v13374_v17 = vld [vmem:[%s15071_s11 + $0x78] sm:$0xff] }
0x1493   :  { %9788 = vpow2.f32 %v8496_v9  ;;  %v8497_v53 = vmul.f32 -1.442695, %v5242_v18  ;;  %v15677_v9 = vld [vmem:[#allocation73_spill] sm:$0xff] }
0x1494   :  { %9790 = vtanh.f32 %v5242_v18  ;;  %v5331_v18 = vpop.f32.mrf.mxu1 }
0x14a0   :  { %v9789_v51 = vpop.eup %9788 }
0x14a1   :  { %v5246_v39 = vadd.f32 1.0, %v9789_v51  ;;  %v9791_v28 = vpop.eup %9790 }
0x14a3   :  { %9792 = vrcp.f32 %v5246_v39 }
0x14a4   :  { %9794 = vpow2.f32 %v8497_v53 }
0x14b0   :  { %v9793_v37 = vpop.eup %9792 }
0x14b1   :  { %v5257_v36 = vmul.f32 %v9793_v37, %v9791_v28  ;;  %v9795_v54 = vpop.eup %9794  ;;  %v5256_v40 = vmul.f32 %v9793_v37, %v15665_v22  ;;  %v15681_v28 = vld [vmem:[#allocation52_spill] sm:$0xff]  ;;  %v15682_v22 = vld [vmem:[#allocation53_spill] sm:$0xff] }
0x14b2   :  { %v5253_v19 = vadd.f32 1.0, %v9795_v54  ;;  %v5333_v54 = vpop.f32.mrf.mxu1 }
0x14b3   :  { %5259 = vrot.lane.b32.xlu1 %v5257_v36, %s10367_s1 }
0x14b4   :  { %9796 = vrcp.f32 %v5253_v19 }
0x14c1   :  { %v9797_v30 = vpop.eup %9796 }
0x1525   :  { %v5260_v2 = vpop.permute.xlu1 %5259 }
0x1526   :  { %v13347_v3 = vadd.f32 %v5260_v2, %v5256_v40 }
0x1528   :  { %9798 = vtanh.f32 %v13347_v3 }
0x1535   :  { %v9799_v35 = vpop.eup %9798 }
0x1536   :  { %v5264_v8 = vmul.f32 %v9799_v35, %v9797_v30 }
0x1538   :  { %5337 = vrot.lane.b32.xlu1 %v5264_v8, %s10367_s1 }
0x15aa   :  { %v13351_v49 = vpop.permute.xlu1 %5337 }
0x15ab   :  { %8499 = vmatmul.mubr.msk.f32.vlgmr.msra.gmra.mxu0 %vm488_vm6, %v13351_v49 }
0x15ac   :  { %5529 = vmatpush1.msra.mxu0 %v15666_v14  ;;  %5576 = vmatprep.mubr.f32.mxu0 %v15444_v38 }
0x15ad   :  { %5530 = vmatprep.subr.mxu0 %v15667_v58 }
0x15ae   :  { %5531 = vmatpush1.msra.mxu0 %v15668_v59 }
0x15af   :  { %5532 = vmatprep.subr.mxu0 %v15669_v60 }
0x15b0   :  { %5533 = vmatpush1.msra.mxu0 %v15670_v61 }
0x15b1   :  { %5534 = vmatprep.subr.mxu0 %v15671_v62 }
0x15b2   :  { %5535 = vmatpush1.msra.mxu0 %v15672_v0 }
0x15b3   :  { %5536 = vmatprep.subr.mxu0 %v15673_v1 }
0x15b4   :  { %5537 = vmatpush1.msra.mxu0 %v15674_v55 }
0x15b5   :  { %5538 = vmatprep.subr.mxu0 %v15675_v4 }
0x15b6   :  { %5539 = vmatpush1.msra.mxu0 %v15676_v5 }
0x15b7   :  { %5540 = vmatprep.subr.mxu0 %v15677_v9  ;;  %v13399_v9 = vld [vmem:[%s15071_s11 + $0x68] sm:$0xff] }
0x15b8   :  { %5541 = vmatpush1.msra.mxu0 %v15678_v6  ;;  %v13405_v6 = vld [vmem:[%s15071_s11 + $0x60] sm:$0xff] }
0x15b9   :  { %5542 = vmatprep.subr.mxu0 %v15679_v7  ;;  %v13411_v7 = vld [vmem:[%s15071_s11 + $0x58] sm:$0xff] }
0x15ba   :  { %5543 = vmatpush1.msra.mxu0 %v15680_v16  ;;  %v13417_v16 = vld [vmem:[%s15071_s11 + $0x50] sm:$0xff] }
0x15bb   :  { %5741 = vmatprep.subr.mxu0 %v13374_v17 }
0x166b   :  { %v5407_v51 = vpop.f32.mrf.mxu0 }
0x166c   :  { %v5408_v39 = vadd.f32 %v5407_v51, %v5331_v18  ;;  %v13423_v18 = vld [vmem:[%s15071_s11 + $0x48] sm:$0xff]  ;;  %v13429_v51 = vld [vmem:[%s15071_s11 + $0x40] sm:$0xff] }
0x166d   :  { %v5409_v53 = vpop.f32.mrf.mxu0 }
0x166e   :  { %v5412_v37 = vadd.f32 %v5408_v39, %v15681_v28  ;;  %v5410_v19 = vadd.f32 %v5409_v53, %v5333_v54  ;;  %v13435_v39 = vld [vmem:[%s15071_s11 + $0x38] sm:$0xff]  ;;  %v13453_v53 = vld [vmem:[%s15071_s11 + $0x20] sm:$0xff] }
0x166f   :  { %v13459_v54 = vld [vmem:[%s15071_s11 + $0x18] sm:$0xff] }
0x1670   :  { %v8500_v36 = vmul.f32 -1.442695, %v5412_v37  ;;  %v5413_v40 = vadd.f32 %v5410_v19, %v15682_v22  ;;  %v13441_v37 = vld [vmem:[%s15071_s11 + $0x30] sm:$0xff] }
0x1671   :  { %v13465_v19 = vld [vmem:[%s15071_s11 + $0x10] sm:$0xff] }
0x1672   :  { %9800 = vpow2.f32 %v8500_v36  ;;  %v8501_v58 = vmul.f32 -1.442695, %v5413_v40  ;;  %v13447_v36 = vld [vmem:[%s15071_s11 + $0x28] sm:$0xff] }
0x1673   :  { %9802 = vtanh.f32 %v5413_v40  ;;  %v13471_v40 = vld [vmem:[%s15071_s11 + $0x8] sm:$0xff] }
0x1674   :  { %15683 = vst [vmem:[#allocation79_spill] sm:$0xff] %v13471_v40 }
0x167f   :  { %v9801_v2 = vpop.eup %9800 }
0x1680   :  { %v5417_v30 = vadd.f32 1.0, %v9801_v2  ;;  %v9803_v35 = vpop.eup %9802  ;;  %v13477_v2 = vld [vmem:[%s15071_s11] sm:$0xff] }
0x1681   :  { %15684 = vst [vmem:[#allocation80_spill] sm:$0xff] %v13477_v2 }
0x1682   :  { %9804 = vrcp.f32 %v5417_v30  ;;  %v5502_v30 = vpop.f32.mrf.mxu1 }
0x1683   :  { %9806 = vpow2.f32 %v8501_v58 }
0x168f   :  { %v9805_v8 = vpop.eup %9804 }
0x1690   :  { %v5428_v14 = vmul.f32 %v9805_v8, %v9803_v35  ;;  %v9807_v59 = vpop.eup %9806  ;;  %v5427_v61 = vmul.f32 %v9805_v8, %v13187_v48  ;;  %v13392_v48 = vld [vmem:[%s15071_s11 + $0x70] sm:$0xff] }
0x1691   :  { %v5424_v60 = vadd.f32 1.0, %v9807_v59 }
0x1692   :  { %5430 = vrot.lane.b32.xlu1 %v5428_v14, %s10367_s1 }
0x1693   :  { %9808 = vrcp.f32 %v5424_v60  ;;  %v5504_v60 = vpop.f32.mrf.mxu1 }
0x16a0   :  { %v9809_v1 = vpop.eup %9808 }
0x1704   :  { %v5431_v62 = vpop.permute.xlu1 %5430 }
0x1705   :  { %v13381_v0 = vadd.f32 %v5431_v62, %v5427_v61 }
0x1707   :  { %9810 = vtanh.f32 %v13381_v0 }
0x1714   :  { %v9811_v55 = vpop.eup %9810 }
0x1715   :  { %v5435_v4 = vmul.f32 %v9811_v55, %v9809_v1 }
0x1717   :  { %5508 = vrot.lane.b32.xlu1 %v5435_v4, %s10367_s1 }
0x1789   :  { %v13385_v5 = vpop.permute.xlu1 %5508 }
0x178a   :  { %8503 = vmatmul.mubr.msk.f32.vlgmr.msra.gmra.mxu0 %vm488_vm6, %v13385_v5 }
0x178b   :  { %5742 = vmatpush1.msra.mxu0 %v13392_v48  ;;  %5789 = vmatprep.mubr.f32.mxu0 %v15444_v38 }
0x178c   :  { %5743 = vmatprep.subr.mxu0 %v13399_v9 }
0x178d   :  { %5744 = vmatpush1.msra.mxu0 %v13405_v6 }
0x178e   :  { %5745 = vmatprep.subr.mxu0 %v13411_v7 }
0x178f   :  { %5746 = vmatpush1.msra.mxu0 %v13417_v16 }
0x1790   :  { %5747 = vmatprep.subr.mxu0 %v13423_v18 }
0x1791   :  { %5748 = vmatpush1.msra.mxu0 %v13429_v51 }
0x1792   :  { %5749 = vmatprep.subr.mxu0 %v13435_v39 }
0x1793   :  { %5750 = vmatpush1.msra.mxu0 %v13441_v37 }
0x1794   :  { %5751 = vmatprep.subr.mxu0 %v13447_v36 }
0x1795   :  { %5752 = vmatpush1.msra.mxu0 %v13453_v53 }
0x1796   :  { %5753 = vmatprep.subr.mxu0 %v13459_v54 }
0x1797   :  { %5754 = vmatpush1.msra.mxu0 %v13465_v19 }
0x1798   :  { %5755 = vmatprep.subr.mxu0 %v13471_v40 }
0x1799   :  { %5756 = vmatpush1.msra.mxu0 %v13477_v2 }
0x179a   :  { %5909 = vmatprep.subr.mxu0 %v12753_v26 }
0x184a   :  { %v5578_v35 = vpop.f32.mrf.mxu0 }
0x184b   :  { %v5579_v8 = vadd.f32 %v5578_v35, %v5502_v30 }
0x184c   :  { %v5580_v59 = vpop.f32.mrf.mxu0 }
0x184d   :  { %v5583_v14 = vadd.f32 %v5579_v8, %v13218_v46  ;;  %v5581_v61 = vadd.f32 %v5580_v59, %v5504_v60 }
0x184f   :  { %v8504_v58 = vmul.f32 -1.442695, %v5583_v14  ;;  %v5584_v62 = vadd.f32 %v5581_v61, %v13222_v23 }
0x1851   :  { %9812 = vpow2.f32 %v8504_v58  ;;  %v8505_v26 = vmul.f32 -1.442695, %v5584_v62 }
0x1852   :  { %9814 = vtanh.f32 %v5584_v62 }
0x185e   :  { %v9813_v1 = vpop.eup %9812 }
0x185f   :  { %v5588_v55 = vadd.f32 1.0, %v9813_v1  ;;  %v9815_v4 = vpop.eup %9814 }
0x1861   :  { %9816 = vrcp.f32 %v5588_v55 }
0x1862   :  { %9818 = vpow2.f32 %v8505_v26 }
0x186e   :  { %v9817_v2 = vpop.eup %9816 }
0x186f   :  { %v5599_v40 = vmul.f32 %v9817_v2, %v9815_v4  ;;  %v9819_v30 = vpop.eup %9818  ;;  %v5598_v8 = vmul.f32 %v9817_v2, %v13226_v27 }
0x1870   :  { %v5595_v35 = vadd.f32 1.0, %v9819_v30 }
0x1871   :  { %5601 = vrot.lane.b32.xlu1 %v5599_v40, %s10367_s1 }
0x1872   :  { %9820 = vrcp.f32 %v5595_v35  ;;  %v13497_v35 = vld [vmem:[%s15076_s16 + $0x70] sm:$0xff] }
0x187f   :  { %v9821_v59 = vpop.eup %9820 }
0x18e3   :  { %v5602_v14 = vpop.permute.xlu1 %5601 }
0x18e4   :  { %v13485_v58 = vadd.f32 %v5602_v14, %v5598_v8  ;;  %v13504_v14 = vld [vmem:[%s15076_s16 + $0x68] sm:$0xff] }
0x18e6   :  { %9822 = vtanh.f32 %v13485_v58 }
0x18f3   :  { %v9823_v60 = vpop.eup %9822 }
0x18f4   :  { %v5606_v61 = vmul.f32 %v9823_v60, %v9821_v59  ;;  %v13510_v59 = vld [vmem:[%s15076_s16 + $0x60] sm:$0xff] }
0x18f6   :  { %v5610_v1 = vrot.slane %v5606_v61, %v15552_v25 }
0x18f8   :  { %v5611_v55 = vmul.f32 %v5610_v1, %v13232_v43  ;;  %v13522_v1 = vld [vmem:[%s15076_s16 + $0x50] sm:$0xff] }
0x18fa   :  { %5613 = vrot.lane.b32.xlu1 %v5611_v55, %s10367_s1 }
0x196c   :  { %v5614_v40 = vpop.permute.xlu1 %5613 }
0x196d   :  { %v5616_v62 = vsel %vm488_vm6, %v5614_v40, 0.0  ;;  %v13528_v40 = vld [vmem:[%s15076_s16 + $0x48] sm:$0xff] }
0x196e   :  { %5617 = vadd.xlane.f32.xlu0 %v5616_v62  ;;  %v13534_v62 = vld [vmem:[%s15076_s16 + $0x40] sm:$0xff] }
0x1984   :  { %5721 = vrot.lane.b32.xlu0 %v5606_v61, %s10367_s1  ;;  %v13516_v61 = vld [vmem:[%s15076_s16 + $0x58] sm:$0xff] }
0x19f7   :  { %v5618_v27 = vpop.xlane.xlu0 %5617 }
0x19f8   :  { %v5619_v2 = vrot.slane %v5618_v27, 4 }
0x19fa   :  { %v5620_v4 = vmax.f32 %v5618_v27, %v5619_v2 }
0x19fb   :  { %v5722_v26 = vpop.permute.xlu0 %5721 }
0x19fc   :  { %v5621_v30 = vrot.slane %v5620_v4, 2  ;;  %8507 = vmatmul.mubr.msk.f32.vlgmr.msra.gmra.mxu0 %vm488_vm6, %v5722_v26 }
0x19fd   :  { %5910 = vmatpush1.msra.mxu0 %v13497_v35  ;;  %5957 = vmatprep.mubr.f32.mxu0 %v15444_v38 }
0x19fe   :  { %v5622_v8 = vmax.f32 %v5620_v4, %v5621_v30  ;;  %5911 = vmatprep.subr.mxu0 %v13504_v14  ;;  %v13540_v4 = vld [vmem:[%s15076_s16 + $0x38] sm:$0xff]  ;;  %v13546_v30 = vld [vmem:[%s15076_s16 + $0x30] sm:$0xff] }
0x19ff   :  { %5912 = vmatpush1.msra.mxu0 %v13510_v59  ;;  %15685 = vst [vmem:[#allocation81_spill] sm:$0xff] %v13546_v30 }
0x1a00   :  { %v5623_v60 = vrot.slane %v5622_v8, 1  ;;  %5913 = vmatprep.subr.mxu0 %v13516_v61 }
0x1a01   :  { %5914 = vmatpush1.msra.mxu0 %v13522_v1 }
0x1a02   :  { %v5624_v55 = vmax.f32 %v5622_v8, %v5623_v60  ;;  %5915 = vmatprep.subr.mxu0 %v13528_v40  ;;  %v13552_v60 = vld [vmem:[%s15076_s16 + $0x28] sm:$0xff] }
0x1a03   :  { %5916 = vmatpush1.msra.mxu0 %v13534_v62  ;;  %15686 = vst [vmem:[#allocation6_spill] sm:$0xff] %v13552_v60 }
0x1a04   :  { %v5625_v2 = vsub.f32 %v5618_v27, %v5624_v55  ;;  %5917 = vmatprep.subr.mxu0 %v13540_v4  ;;  %v13558_v27 = vld [vmem:[%s15076_s16 + $0x20] sm:$0xff] }
0x1a05   :  { %5918 = vmatpush1.msra.mxu0 %v13546_v30  ;;  %15687 = vst [vmem:[#allocation83_spill] sm:$0xff] %v13558_v27 }
0x1a06   :  { %v5626_v8 = vmul.f32 1.442695, %v5625_v2  ;;  %5919 = vmatprep.subr.mxu0 %v13552_v60 }
0x1a07   :  { %5920 = vmatpush1.msra.mxu0 %v13558_v27 }
0x1a08   :  { %9824 = vpow2.f32 %v5626_v8  ;;  %5921 = vmatprep.subr.mxu0 %v15631_v33 }
0x1a09   :  { %5922 = vmatpush1.msra.mxu0 %v15632_v57  ;;  %v13608_v57 = vld [vmem:[%s15072_s12 + $0x58] sm:$0xff] }
0x1a0a   :  { %5923 = vmatprep.subr.mxu0 %v15633_v15  ;;  %15691 = vst [vmem:[#allocation13_spill] sm:$0xff] %v13608_v57  ;;  %v13614_v15 = vld [vmem:[%s15072_s12 + $0x50] sm:$0xff] }
0x1a0b   :  { %5924 = vmatpush1.msra.mxu0 %v15635_v50  ;;  %15692 = vst [vmem:[#allocation28_spill] sm:$0xff] %v13614_v15  ;;  %v13620_v50 = vld [vmem:[%s15072_s12 + $0x48] sm:$0xff] }
0x1a0c   :  { %8511 = vmatmul.mubr.msk.f32.vlgmr.msra.gmra.mxu0 %vm488_vm6, %v13385_v5  ;;  %6080 = vmatprep.subr.mxu0 %v12976_v21  ;;  %15693 = vst [vmem:[#allocation14_spill] sm:$0xff] %v13620_v50  ;;  %v13674_v5 = vld [vmem:[%s15072_s12] sm:$0xff] }
0x1a0d   :  { %6081 = vmatpush1.msra.mxu0 %v12986_v31  ;;  %6128 = vmatprep.mubr.f32.mxu0 %v15444_v38  ;;  %15702 = vst [vmem:[#allocation38_spill] sm:$0xff] %v13674_v5 }
0x1a0e   :  { %6082 = vmatprep.subr.mxu0 %v12998_v34 }
0x1a0f   :  { %6083 = vmatpush1.msra.mxu0 %v13010_v24 }
0x1a10   :  { %6084 = vmatprep.subr.mxu0 %v13020_v42  ;;  %v13589_v42 = vld [vmem:[%s15072_s12 + $0x70] sm:$0xff] }
0x1a11   :  { %6085 = vmatpush1.msra.mxu0 %v15640_v44  ;;  %15688 = vst [vmem:[#allocation11_spill] sm:$0xff] %v13589_v42  ;;  %v13626_v44 = vld [vmem:[%s15072_s12 + $0x40] sm:$0xff] }
0x1a12   :  { %6086 = vmatprep.subr.mxu0 %v15642_v52  ;;  %15694 = vst [vmem:[#allocation30_spill] sm:$0xff] %v13626_v44  ;;  %v13632_v52 = vld [vmem:[%s15072_s12 + $0x38] sm:$0xff] }
0x1a13   :  { %6087 = vmatpush1.msra.mxu0 %v15644_v41  ;;  %15695 = vst [vmem:[#allocation15_spill] sm:$0xff] %v13632_v52  ;;  %v13638_v41 = vld [vmem:[%s15072_s12 + $0x30] sm:$0xff] }
0x1a14   :  { %6088 = vmatprep.subr.mxu0 %v15646_v10  ;;  %15696 = vst [vmem:[#allocation32_spill] sm:$0xff] %v13638_v41  ;;  %v13644_v10 = vld [vmem:[%s15072_s12 + $0x28] sm:$0xff] }
0x1a15   :  { %v9825_v33 = vpop.eup %9824  ;;  %6089 = vmatpush1.msra.mxu0 %v15648_v20  ;;  %15697 = vst [vmem:[#allocation16_spill] sm:$0xff] %v13644_v10  ;;  %v13650_v20 = vld [vmem:[%s15072_s12 + $0x20] sm:$0xff] }
0x1a16   :  { %6090 = vmatprep.subr.mxu0 %v15650_v29  ;;  %v5628_v21 = vrot.slane %v9825_v33, 4  ;;  %15698 = vst [vmem:[#allocation34_spill] sm:$0xff] %v13650_v20  ;;  %v13656_v29 = vld [vmem:[%s15072_s12 + $0x18] sm:$0xff] }
0x1a17   :  { %6091 = vmatpush1.msra.mxu0 %v15652_v11  ;;  %15699 = vst [vmem:[#allocation17_spill] sm:$0xff] %v13656_v29  ;;  %v13662_v11 = vld [vmem:[%s15072_s12 + $0x10] sm:$0xff] }
0x1a18   :  { %6092 = vmatprep.subr.mxu0 %v13116_v56  ;;  %v5629_v31 = vadd.f32 %v9825_v33, %v5628_v21  ;;  %15700 = vst [vmem:[#allocation36_spill] sm:$0xff] %v13662_v11 }
0x1a19   :  { %6093 = vmatpush1.msra.mxu0 %v13128_v45 }
0x1a1a   :  { %6094 = vmatprep.subr.mxu0 %v13140_v32  ;;  %v5630_v34 = vrot.slane %v5629_v31, 2  ;;  %v13596_v32 = vld [vmem:[%s15072_s12 + $0x68] sm:$0xff] }
0x1a1b   :  { %6095 = vmatpush1.msra.mxu0 %v13152_v12  ;;  %15689 = vst [vmem:[#allocation12_spill] sm:$0xff] %v13596_v32  ;;  %v13602_v12 = vld [vmem:[%s15072_s12 + $0x60] sm:$0xff] }
0x1a1c   :  { %8515 = vmatmul.mubr.msk.f32.vlgmr.msra.gmra.mxu0 %vm488_vm6, %v5722_v26  ;;  %v5631_v24 = vadd.f32 %v5630_v34, %v5629_v31  ;;  %6293 = vmatprep.subr.mxu0 %v13323_v63  ;;  %15690 = vst [vmem:[#allocation26_spill] sm:$0xff] %v13602_v12  ;;  %v13668_v63 = vld [vmem:[%s15072_s12 + $0x8] sm:$0xff]  ;;  %v13680_v26 = vld [vmem:[%s15073_s13 + $0x78] sm:$0xff] }
0x1a1d   :  { %6294 = vmatpush1.msra.mxu0 %v13589_v42  ;;  %6341 = vmatprep.mubr.f32.mxu0 %v15444_v38  ;;  %15701 = vst [vmem:[#allocation18_spill] sm:$0xff] %v13668_v63  ;;  %15703 = vst [vmem:[#allocation19_spill] sm:$0xff] %v13680_v26  ;;  %v13850_v42 = vld [vmem:[%s15075_s15 + $0x20] sm:$0xff] }
0x1a1e   :  { %v5632_v56 = vrot.slane %v5631_v24, 1  ;;  %6295 = vmatprep.subr.mxu0 %v13596_v32  ;;  %v13844_v32 = vld [vmem:[%s15075_s15 + $0x28] sm:$0xff]  ;;  %15718 = vst [vmem:[#allocation31_spill] sm:$0xff] %v13850_v42 }
0x1a1f   :  { %6296 = vmatpush1.msra.mxu0 %v13602_v12  ;;  %v13838_v12 = vld [vmem:[%s15075_s15 + $0x30] sm:$0xff]  ;;  %15717 = vst [vmem:[#allocation61_spill] sm:$0xff] %v13844_v32 }
0x1a20   :  { %v5633_v45 = vadd.f32 %v5632_v56, %v5631_v24  ;;  %6297 = vmatprep.subr.mxu0 %v13608_v57  ;;  %v13832_v57 = vld [vmem:[%s15075_s15 + $0x38] sm:$0xff]  ;;  %15716 = vst [vmem:[#allocation29_spill] sm:$0xff] %v13838_v12 }
0x1a21   :  { %6298 = vmatpush1.msra.mxu0 %v13614_v15  ;;  %v13826_v15 = vld [vmem:[%s15075_s15 + $0x40] sm:$0xff]  ;;  %15715 = vst [vmem:[#allocation59_spill] sm:$0xff] %v13832_v57 }
0x1a22   :  { %9826 = vrcp.f32 %v5633_v45  ;;  %6299 = vmatprep.subr.mxu0 %v13620_v50  ;;  %v13820_v50 = vld [vmem:[%s15075_s15 + $0x48] sm:$0xff]  ;;  %15714 = vst [vmem:[#allocation27_spill] sm:$0xff] %v13826_v15 }
0x1a23   :  { %6300 = vmatpush1.msra.mxu0 %v13626_v44  ;;  %v13814_v44 = vld [vmem:[%s15075_s15 + $0x50] sm:$0xff]  ;;  %15713 = vst [vmem:[#allocation25_spill] sm:$0xff] %v13820_v50 }
0x1a24   :  { %6301 = vmatprep.subr.mxu0 %v13632_v52  ;;  %v13808_v52 = vld [vmem:[%s15075_s15 + $0x58] sm:$0xff]  ;;  %15712 = vst [vmem:[#allocation24_spill] sm:$0xff] %v13814_v44 }
0x1a25   :  { %6302 = vmatpush1.msra.mxu0 %v13638_v41  ;;  %v13802_v41 = vld [vmem:[%s15075_s15 + $0x60] sm:$0xff]  ;;  %15711 = vst [vmem:[#allocation23_spill] sm:$0xff] %v13808_v52 }
0x1a26   :  { %6303 = vmatprep.subr.mxu0 %v13644_v10  ;;  %v13789_v10 = vld [vmem:[%s15075_s15 + $0x70] sm:$0xff]  ;;  %15710 = vst [vmem:[#allocation48_spill] sm:$0xff] %v13802_v41 }
0x1a27   :  { %6304 = vmatpush1.msra.mxu0 %v13650_v20  ;;  %v13783_v20 = vld [vmem:[%s15075_s15 + $0x78] sm:$0xff]  ;;  %15708 = vst [vmem:[#allocation46_spill] sm:$0xff] %v13789_v10 }
0x1a28   :  { %6305 = vmatprep.subr.mxu0 %v13656_v29  ;;  %v13775_v29 = vld [vmem:[%s15073_s13] sm:$0xff]  ;;  %15707 = vst [vmem:[#allocation44_spill] sm:$0xff] %v13783_v20 }
0x1a29   :  { %6306 = vmatpush1.msra.mxu0 %v13662_v11  ;;  %v13769_v11 = vld [vmem:[%s15073_s13 + $0x8] sm:$0xff]  ;;  %15706 = vst [vmem:[#allocation42_spill] sm:$0xff] %v13775_v29 }
0x1a2a   :  { %6307 = vmatprep.subr.mxu0 %v13668_v63  ;;  %15705 = vst [vmem:[#allocation51_spill] sm:$0xff] %v13769_v11 }
0x1a2b   :  { %6308 = vmatpush1.msra.mxu0 %v13674_v5 }
0x1a2c   :  { %6440 = vmatprep.subr.mxu0 %v13680_v26  ;;  %v13690_v26 = vld [vmem:[%s15073_s13 + $0x70] sm:$0xff] }
0x1a2f   :  { %v9827_v55 = vpop.eup %9826 }
0x1a30   :  { %v5635_v2 = vmul.f32 %v9827_v55, %v9825_v33  ;;  %v13697_v33 = vld [vmem:[%s15073_s13 + $0x68] sm:$0xff]  ;;  %v13715_v55 = vld [vmem:[%s15073_s13 + $0x50] sm:$0xff] }
0x1a32   :  { %v5636_v8 = vmul.f32 %v5635_v2, %v13232_v43  ;;  %v13721_v2 = vld [vmem:[%s15073_s13 + $0x48] sm:$0xff] }
0x1a34   :  { %v5637_v21 = vsel %vm5008_vm2, %v5636_v8, 0.0  ;;  %v13727_v8 = vld [vmem:[%s15073_s13 + $0x40] sm:$0xff] }
0x1a35   :  { %v5638_v31 = vrot.slane %v5637_v21, 4 }
0x1a37   :  { %v5639_v34 = vadd.f32 %v5638_v31, %v5637_v21  ;;  %v13733_v21 = vld [vmem:[%s15073_s13 + $0x38] sm:$0xff]  ;;  %v13739_v31 = vld [vmem:[%s15073_s13 + $0x30] sm:$0xff] }
0x1a39   :  { %v5640_v24 = vrot.slane %v5639_v34, 2 }
0x1a3b   :  { %v5641_v56 = vadd.f32 %v5640_v24, %v5639_v34  ;;  %v13745_v34 = vld [vmem:[%s15073_s13 + $0x28] sm:$0xff]  ;;  %v13751_v24 = vld [vmem:[%s15073_s13 + $0x20] sm:$0xff] }
0x1a3d   :  { %v5642_v45 = vrot.slane %v5641_v56, 1 }
0x1a3f   :  { %v5643_v63 = vadd.f32 %v5642_v45, %v5641_v56  ;;  %v13757_v56 = vld [vmem:[%s15073_s13 + $0x18] sm:$0xff]  ;;  %v13763_v45 = vld [vmem:[%s15073_s13 + $0x10] sm:$0xff] }
0x1a40   :  { %15704 = vst [vmem:[#allocation40_spill] sm:$0xff] %v13763_v45 }
0x1a41   :  { %5645 = vrot.lane.b32.xlu1 %v5643_v63, %s10367_s1  ;;  %v13703_v63 = vld [vmem:[%s15073_s13 + $0x60] sm:$0xff] }
0x1ab3   :  { %v5646_v5 = vpop.permute.xlu1 %5645 }
0x1ab4   :  { %8506 = vmatmul.mubr.msk.f32.vlgmr.msra.gmra.mxu1 %vm488_vm6, %v5646_v5  ;;  %v13709_v5 = vld [vmem:[%s15073_s13 + $0x58] sm:$0xff] }
0x1ab5   :  { %5813 = vmatpush1.msra.mxu1 %v13690_v26  ;;  %5860 = vmatprep.mubr.f32.mxu1 %v15444_v38 }
0x1ab6   :  { %5814 = vmatprep.subr.mxu1 %v13697_v33 }
0x1ab7   :  { %5815 = vmatpush1.msra.mxu1 %v13703_v63 }
0x1ab8   :  { %5816 = vmatprep.subr.mxu1 %v13709_v5 }
0x1ab9   :  { %5817 = vmatpush1.msra.mxu1 %v13715_v55 }
0x1aba   :  { %5818 = vmatprep.subr.mxu1 %v13721_v2 }
0x1abb   :  { %5819 = vmatpush1.msra.mxu1 %v13727_v8 }
0x1abc   :  { %5820 = vmatprep.subr.mxu1 %v13733_v21 }
0x1abd   :  { %5821 = vmatpush1.msra.mxu1 %v13739_v31 }
0x1abe   :  { %5822 = vmatprep.subr.mxu1 %v13745_v34 }
0x1abf   :  { %5823 = vmatpush1.msra.mxu1 %v13751_v24 }
0x1ac0   :  { %5824 = vmatprep.subr.mxu1 %v13757_v56 }
0x1ac1   :  { %5825 = vmatpush1.msra.mxu1 %v13763_v45 }
0x1ac2   :  { %5826 = vmatprep.subr.mxu1 %v13769_v11 }
0x1ac3   :  { %5827 = vmatpush1.msra.mxu1 %v13775_v29 }
0x1ac4   :  { %8508 = vmatmul.mubr.msk.f32.vlgmr.msra.gmra.mxu1 %vm488_vm6, %v13351_v49  ;;  %5985 = vmatprep.subr.mxu1 %v13783_v20  ;;  %v13796_v49 = vld [vmem:[%s15075_s15 + $0x68] sm:$0xff] }
0x1ac5   :  { %5986 = vmatpush1.msra.mxu1 %v13789_v10  ;;  %6033 = vmatprep.mubr.f32.mxu1 %v15444_v38  ;;  %15709 = vst [vmem:[#allocation22_spill] sm:$0xff] %v13796_v49 }
0x1ac6   :  { %5987 = vmatprep.subr.mxu1 %v13796_v49 }
0x1ac7   :  { %5988 = vmatpush1.msra.mxu1 %v13802_v41 }
0x1ac8   :  { %5989 = vmatprep.subr.mxu1 %v13808_v52 }
0x1ac9   :  { %5990 = vmatpush1.msra.mxu1 %v13814_v44 }
0x1aca   :  { %5991 = vmatprep.subr.mxu1 %v13820_v50 }
0x1acb   :  { %5992 = vmatpush1.msra.mxu1 %v13826_v15  ;;  %v5791_v15 = vpop.f32.mrf.mxu0 }
0x1acc   :  { %5993 = vmatprep.subr.mxu1 %v13832_v57  ;;  %v13856_v57 = vld [vmem:[%s15075_s15 + $0x18] sm:$0xff] }
0x1acd   :  { %5994 = vmatpush1.msra.mxu1 %v13838_v12  ;;  %15719 = vst [vmem:[#allocation63_spill] sm:$0xff] %v13856_v57  ;;  %v13862_v12 = vld [vmem:[%s15075_s15 + $0x10] sm:$0xff]  ;;  %v5793_v10 = vpop.f32.mrf.mxu0 }
0x1ace   :  { %5995 = vmatprep.subr.mxu1 %v13844_v32  ;;  %15720 = vst [vmem:[#allocation33_spill] sm:$0xff] %v13862_v12  ;;  %v13868_v32 = vld [vmem:[%s15075_s15 + $0x8] sm:$0xff] }
0x1acf   :  { %5996 = vmatpush1.msra.mxu1 %v13850_v42  ;;  %15721 = vst [vmem:[#allocation65_spill] sm:$0xff] %v13868_v32  ;;  %v13874_v42 = vld [vmem:[%s15075_s15] sm:$0xff] }
0x1ad0   :  { %5997 = vmatprep.subr.mxu1 %v13856_v57  ;;  %15722 = vst [vmem:[#allocation35_spill] sm:$0xff] %v13874_v42  ;;  %v13880_v57 = vld [vmem:[%s15078_s18 + $0x78] sm:$0xff] }
0x1ad1   :  { %5998 = vmatpush1.msra.mxu1 %v13862_v12  ;;  %15723 = vst [vmem:[#allocation67_spill] sm:$0xff] %v13880_v57 }
0x1ad2   :  { %5999 = vmatprep.subr.mxu1 %v13868_v32 }
0x1ad3   :  { %6000 = vmatpush1.msra.mxu1 %v13874_v42 }
0x1ad4   :  { %6156 = vmatprep.subr.mxu1 %v13880_v57 }
0x1b74   :  { %v5715_v12 = vpop.f32.mrf.mxu1 }
0x1b75   :  { %v5792_v44 = vadd.f32 %v5791_v15, %v5715_v12 }
0x1b76   :  { %v5717_v50 = vpop.f32.mrf.mxu1 }
0x1b77   :  { %v5794_v42 = vadd.f32 %v5793_v10, %v5717_v50  ;;  %v13917_v10 = vld [vmem:[%s15078_s18 + $0x58] sm:$0xff] }
0x1b78   :  { %15724 = vst [vmem:[#allocation37_spill] sm:$0xff] %v13917_v10 }
0x1b84   :  { %v5862_v52 = vpop.f32.mrf.mxu1 }
0x1b85   :  { %v5867_v32 = vadd.f32 %v5862_v52, %v5792_v44 }
0x1b86   :  { %v5864_v20 = vpop.f32.mrf.mxu1 }
0x1b87   :  { %v5869_v41 = vadd.f32 %v5867_v32, %v15663_v47  ;;  %v5868_v27 = vadd.f32 %v5864_v20, %v5794_v42  ;;  %v13923_v20 = vld [vmem:[%s15078_s18 + $0x50] sm:$0xff] }
0x1b88   :  { %15725 = vst [vmem:[#allocation69_spill] sm:$0xff] %v13923_v20 }
0x1b89   :  { %v8509_v49 = vmul.f32 -1.442695, %v5869_v41  ;;  %v5870_v29 = vadd.f32 %v5868_v27, %v15664_v13  ;;  %v13911_v41 = vld [vmem:[%s15078_s18 + $0x60] sm:$0xff] }
0x1b8b   :  { %9828 = vpow2.f32 %v8509_v49  ;;  %v8510_v12 = vmul.f32 -1.442695, %v5870_v29  ;;  %v13947_v49 = vld [vmem:[%s15078_s18 + $0x30] sm:$0xff] }
0x1b8c   :  { %9830 = vtanh.f32 %v5870_v29  ;;  %v13929_v29 = vld [vmem:[%s15078_s18 + $0x48] sm:$0xff]  ;;  %15729 = vst [vmem:[#allocation43_spill] sm:$0xff] %v13947_v49 }
0x1b8d   :  { %15726 = vst [vmem:[#allocation39_spill] sm:$0xff] %v13929_v29 }
0x1b98   :  { %v9829_v60 = vpop.eup %9828 }
0x1b99   :  { %v5874_v11 = vadd.f32 1.0, %v9829_v60  ;;  %v9831_v57 = vpop.eup %9830 }
0x1b9b   :  { %9832 = vrcp.f32 %v5874_v11  ;;  %v13935_v11 = vld [vmem:[%s15078_s18 + $0x40] sm:$0xff] }
0x1b9c   :  { %9834 = vpow2.f32 %v8510_v12  ;;  %15727 = vst [vmem:[#allocation71_spill] sm:$0xff] %v13935_v11  ;;  %v13953_v12 = vld [vmem:[%s15078_s18 + $0x28] sm:$0xff] }
0x1b9d   :  { %15730 = vst [vmem:[#allocation45_spill] sm:$0xff] %v13953_v12 }
0x1ba8   :  { %v9833_v30 = vpop.eup %9832 }
0x1ba9   :  { %v5885_v45 = vmul.f32 %v9833_v30, %v9831_v57  ;;  %v9835_v32 = vpop.eup %9834  ;;  %v5884_v44 = vmul.f32 %v9833_v30, %v13347_v3  ;;  %v13898_v3 = vld [vmem:[%s15078_s18 + $0x70] sm:$0xff]  ;;  %v13905_v30 = vld [vmem:[%s15078_s18 + $0x68] sm:$0xff] }
0x1baa   :  { %v5881_v15 = vadd.f32 1.0, %v9835_v32  ;;  %v13959_v32 = vld [vmem:[%s15078_s18 + $0x20] sm:$0xff] }
0x1bab   :  { %5887 = vrot.lane.b32.xlu1 %v5885_v45, %s10367_s1  ;;  %v13941_v45 = vld [vmem:[%s15078_s18 + $0x38] sm:$0xff]  ;;  %15731 = vst [vmem:[#allocation47_spill] sm:$0xff] %v13959_v32 }
0x1bac   :  { %9836 = vrcp.f32 %v5881_v15  ;;  %15728 = vst [vmem:[#allocation41_spill] sm:$0xff] %v13941_v45  ;;  %v13965_v15 = vld [vmem:[%s15078_s18 + $0x18] sm:$0xff] }
0x1bad   :  { %15732 = vst [vmem:[#allocation49_spill] sm:$0xff] %v13965_v15 }
0x1bb9   :  { %v9837_v60 = vpop.eup %9836 }
0x1c1d   :  { %v5888_v52 = vpop.permute.xlu1 %5887 }
0x1c1e   :  { %v13887_v50 = vadd.f32 %v5888_v52, %v5884_v44  ;;  %v13971_v44 = vld [vmem:[%s15078_s18 + $0x10] sm:$0xff]  ;;  %v13977_v52 = vld [vmem:[%s15078_s18 + $0x8] sm:$0xff] }
0x1c1f   :  { %15733 = vst [vmem:[#allocation54_spill] sm:$0xff] %v13971_v44  ;;  %15734 = vst [vmem:[#allocation7_spill] sm:$0xff] %v13977_v52 }
0x1c20   :  { %9838 = vtanh.f32 %v13887_v50 }
0x1c2d   :  { %v9839_v27 = vpop.eup %9838 }
0x1c2e   :  { %v5892_v42 = vmul.f32 %v9839_v27, %v9837_v60  ;;  %v13983_v60 = vld [vmem:[%s15078_s18] sm:$0xff]  ;;  %v5959_v27 = vpop.f32.mrf.mxu0 }
0x1c2f   :  { %15735 = vst [vmem:[#allocation8_spill] sm:$0xff] %v13983_v60 }
0x1c30   :  { %5965 = vrot.lane.b32.xlu1 %v5892_v42, %s10367_s1 }
0x1ca2   :  { %v13891_v57 = vpop.permute.xlu1 %5965 }
0x1ca3   :  { %8512 = vmatmul.mubr.msk.f32.vlgmr.msra.gmra.mxu1 %vm488_vm6, %v13891_v57 }
0x1ca4   :  { %6157 = vmatpush1.msra.mxu1 %v13898_v3  ;;  %6204 = vmatprep.mubr.f32.mxu1 %v15444_v38 }
0x1ca5   :  { %6158 = vmatprep.subr.mxu1 %v13905_v30 }
0x1ca6   :  { %6159 = vmatpush1.msra.mxu1 %v13911_v41 }
0x1ca7   :  { %6160 = vmatprep.subr.mxu1 %v13917_v10 }
0x1ca8   :  { %6161 = vmatpush1.msra.mxu1 %v13923_v20 }
0x1ca9   :  { %6162 = vmatprep.subr.mxu1 %v13929_v29 }
0x1caa   :  { %6163 = vmatpush1.msra.mxu1 %v13935_v11 }
0x1cab   :  { %6164 = vmatprep.subr.mxu1 %v13941_v45 }
0x1cac   :  { %6165 = vmatpush1.msra.mxu1 %v13947_v49  ;;  %v5961_v49 = vpop.f32.mrf.mxu0 }
0x1cad   :  { %6166 = vmatprep.subr.mxu1 %v13953_v12 }
0x1cae   :  { %6167 = vmatpush1.msra.mxu1 %v13959_v32 }
0x1caf   :  { %6168 = vmatprep.subr.mxu1 %v13965_v15 }
0x1cb0   :  { %6169 = vmatpush1.msra.mxu1 %v13971_v44 }
0x1cb1   :  { %6170 = vmatprep.subr.mxu1 %v13977_v52 }
0x1cb2   :  { %6171 = vmatpush1.msra.mxu1 %v13983_v60 }
0x1cb3   :  { %6369 = vmatprep.subr.mxu1 %v13374_v17 }
0x1d63   :  { %v6035_v42 = vpop.f32.mrf.mxu1 }
0x1d64   :  { %v6036_v15 = vadd.f32 %v6035_v42, %v5959_v27 }
0x1d65   :  { %v6037_v12 = vpop.f32.mrf.mxu1 }
0x1d66   :  { %v6040_v44 = vadd.f32 %v6036_v15, %v15681_v28  ;;  %v6038_v45 = vadd.f32 %v6037_v12, %v5961_v49 }
0x1d68   :  { %v8513_v32 = vmul.f32 -1.442695, %v6040_v44  ;;  %v6041_v52 = vadd.f32 %v6038_v45, %v15682_v22 }
0x1d6a   :  { %9840 = vpow2.f32 %v8513_v32  ;;  %v8514_v17 = vmul.f32 -1.442695, %v6041_v52 }
0x1d6b   :  { %9842 = vtanh.f32 %v6041_v52 }
0x1d77   :  { %v9841_v11 = vpop.eup %9840 }
0x1d78   :  { %v6045_v29 = vadd.f32 1.0, %v9841_v11  ;;  %v9843_v20 = vpop.eup %9842 }
0x1d7a   :  { %9844 = vrcp.f32 %v6045_v29 }
0x1d7b   :  { %9846 = vpow2.f32 %v8514_v17 }
0x1d87   :  { %v9845_v60 = vpop.eup %9844 }
0x1d88   :  { %v6056_v10 = vmul.f32 %v9845_v60, %v9843_v20  ;;  %v9847_v27 = vpop.eup %9846  ;;  %v6055_v32 = vmul.f32 %v9845_v60, %v13381_v0  ;;  %v15736_v0 = vld [vmem:[#allocation79_spill] sm:$0xff] }
0x1d89   :  { %v6052_v15 = vadd.f32 1.0, %v9847_v27 }
0x1d8a   :  { %6058 = vrot.lane.b32.xlu1 %v6056_v10, %s10367_s1 }
0x1d8b   :  { %9848 = vrcp.f32 %v6052_v15 }
0x1d98   :  { %v9849_v11 = vpop.eup %9848 }
0x1dfc   :  { %v6059_v44 = vpop.permute.xlu1 %6058 }
0x1dfd   :  { %v13991_v42 = vadd.f32 %v6059_v44, %v6055_v32 }
0x1dff   :  { %9850 = vtanh.f32 %v13991_v42 }
0x1e0c   :  { %v9851_v45 = vpop.eup %9850 }
0x1e0d   :  { %v6063_v29 = vmul.f32 %v9851_v45, %v9849_v11 }
0x1e0f   :  { %6136 = vrot.lane.b32.xlu1 %v6063_v29, %s10367_s1 }
0x1e81   :  { %v13995_v20 = vpop.permute.xlu1 %6136 }
0x1e82   :  { %8516 = vmatmul.mubr.msk.f32.vlgmr.msra.gmra.mxu1 %vm488_vm6, %v13995_v20 }
0x1e83   :  { %6370 = vmatpush1.msra.mxu1 %v13392_v48  ;;  %6417 = vmatprep.mubr.f32.mxu1 %v15444_v38  ;;  %v15737_v48 = vld [vmem:[#allocation80_spill] sm:$0xff] }
0x1e84   :  { %6371 = vmatprep.subr.mxu1 %v13399_v9  ;;  %v14018_v9 = vld [vmem:[%s15076_s16 + $0x78] sm:$0xff] }
0x1e85   :  { %6372 = vmatpush1.msra.mxu1 %v13405_v6  ;;  %v6130_v6 = vpop.f32.mrf.mxu0 }
0x1e86   :  { %6373 = vmatprep.subr.mxu1 %v13411_v7 }
0x1e87   :  { %6374 = vmatpush1.msra.mxu1 %v13417_v16 }
0x1e88   :  { %6375 = vmatprep.subr.mxu1 %v13423_v18 }
0x1e89   :  { %6376 = vmatpush1.msra.mxu1 %v13429_v51 }
0x1e8a   :  { %6377 = vmatprep.subr.mxu1 %v13435_v39 }
0x1e8b   :  { %6378 = vmatpush1.msra.mxu1 %v13441_v37  ;;  %v6132_v37 = vpop.f32.mrf.mxu0 }
0x1e8c   :  { %6379 = vmatprep.subr.mxu1 %v13447_v36 }
0x1e8d   :  { %6380 = vmatpush1.msra.mxu1 %v13453_v53 }
0x1e8e   :  { %6381 = vmatprep.subr.mxu1 %v13459_v54 }
0x1e8f   :  { %6382 = vmatpush1.msra.mxu1 %v13465_v19 }
0x1e90   :  { %6383 = vmatprep.subr.mxu1 %v15736_v0 }
0x1e91   :  { %6384 = vmatpush1.msra.mxu1 %v15737_v48 }
0x1e92   :  { %6537 = vmatprep.subr.mxu1 %v14018_v9 }
0x1f42   :  { %v6206_v7 = vpop.f32.mrf.mxu1 }
0x1f43   :  { %v6207_v16 = vadd.f32 %v6206_v7, %v6130_v6 }
0x1f44   :  { %v6208_v39 = vpop.f32.mrf.mxu1 }
0x1f45   :  { %v6211_v18 = vadd.f32 %v6207_v16, %v13218_v46  ;;  %v6209_v36 = vadd.f32 %v6208_v39, %v6132_v37 }
0x1f47   :  { %v8517_v51 = vmul.f32 -1.442695, %v6211_v18  ;;  %v6212_v53 = vadd.f32 %v6209_v36, %v13222_v23 }
0x1f49   :  { %9852 = vpow2.f32 %v8517_v51  ;;  %v8518_v52 = vmul.f32 -1.442695, %v6212_v53 }
0x1f4a   :  { %9854 = vtanh.f32 %v6212_v53 }
0x1f56   :  { %v9853_v54 = vpop.eup %9852 }
0x1f57   :  { %v6216_v19 = vadd.f32 1.0, %v9853_v54  ;;  %v9855_v10 = vpop.eup %9854 }
0x1f59   :  { %9856 = vrcp.f32 %v6216_v19 }
0x1f5a   :  { %9858 = vpow2.f32 %v8518_v52 }
0x1f66   :  { %v9857_v49 = vpop.eup %9856 }
0x1f67   :  { %v6227_v12 = vmul.f32 %v9857_v49, %v9855_v10  ;;  %v9859_v60 = vpop.eup %9858  ;;  %v6226_v27 = vmul.f32 %v9857_v49, %v13485_v58 }
0x1f68   :  { %v6223_v17 = vadd.f32 1.0, %v9859_v60 }
0x1f69   :  { %6229 = vrot.lane.b32.xlu1 %v6227_v12, %s10367_s1 }
0x1f6a   :  { %9860 = vrcp.f32 %v6223_v17 }
0x1f77   :  { %v9861_v44 = vpop.eup %9860 }
0x1fdb   :  { %v6230_v15 = vpop.permute.xlu1 %6229 }
0x1fdc   :  { %v14025_v32 = vadd.f32 %v6230_v15, %v6226_v27 }
0x1fde   :  { %9862 = vtanh.f32 %v14025_v32 }
0x1feb   :  { %v9863_v11 = vpop.eup %9862 }
0x1fec   :  { %v6234_v45 = vmul.f32 %v9863_v11, %v9861_v44 }
0x1fee   :  { %v6238_v29 = vrot.slane %v6234_v45, %v15552_v25 }
0x1ff0   :  { %v6239_v0 = vmul.f32 %v6238_v29, %v13232_v43 }
0x1ff2   :  { %6241 = vrot.lane.b32.xlu1 %v6239_v0, %s10367_s1 }
0x2064   :  { %v6242_v48 = vpop.permute.xlu1 %6241 }
0x2065   :  { %v6244_v6 = vsel %vm488_vm6, %v6242_v48, 0.0 }
0x2066   :  { %6245 = vadd.xlane.f32.xlu0 %v6244_v6 }
0x20ef   :  { %v6246_v58 = vpop.xlane.xlu0 %6245 }
0x20f0   :  { %v6247_v7 = vrot.slane %v6246_v58, 4 }
0x20f2   :  { %v6248_v16 = vmax.f32 %v6246_v58, %v6247_v7 }
0x20f4   :  { %v6249_v18 = vrot.slane %v6248_v16, 2 }
0x20f6   :  { %v6250_v51 = vmax.f32 %v6248_v16, %v6249_v18  ;;  %v14093_v18 = vld [vmem:[%s15076_s16] sm:$0xff] }
0x20f8   :  { %v6251_v39 = vrot.slane %v6250_v51, 1 }
0x20fa   :  { %v6252_v37 = vmax.f32 %v6250_v51, %v6251_v39  ;;  %v15745_v51 = vld [vmem:[#allocation46_spill] sm:$0xff]  ;;  %v14102_v39 = vld [vmem:[%s15079_s19 + $0x78] sm:$0xff] }
0x20fc   :  { %v6253_v36 = vsub.f32 %v6246_v58, %v6252_v37  ;;  %v14108_v37 = vld [vmem:[%s15079_s19 + $0x70] sm:$0xff] }
0x20fe   :  { %v6254_v53 = vmul.f32 1.442695, %v6253_v36  ;;  %v15746_v36 = vld [vmem:[#allocation22_spill] sm:$0xff] }
0x2100   :  { %9864 = vpow2.f32 %v6254_v53  ;;  %v14122_v53 = vld [vmem:[%s15079_s19 + $0x60] sm:$0xff] }
0x210d   :  { %v9865_v54 = vpop.eup %9864 }
0x210e   :  { %v6256_v19 = vrot.slane %v9865_v54, 4 }
0x2110   :  { %v6257_v10 = vadd.f32 %v9865_v54, %v6256_v19  ;;  %v14129_v19 = vld [vmem:[%s15079_s19 + $0x58] sm:$0xff] }
0x2112   :  { %v6258_v49 = vrot.slane %v6257_v10, 2 }
0x2114   :  { %v6259_v12 = vadd.f32 %v6258_v49, %v6257_v10  ;;  %v15748_v10 = vld [vmem:[#allocation23_spill] sm:$0xff] }
0x2115   :  { %v14136_v49 = vld [vmem:[%s15079_s19 + $0x50] sm:$0xff] }
0x2116   :  { %v6260_v52 = vrot.slane %v6259_v12, 1 }
0x2118   :  { %v6261_v60 = vadd.f32 %v6260_v52, %v6259_v12  ;;  %v15749_v12 = vld [vmem:[#allocation24_spill] sm:$0xff]  ;;  %v14143_v52 = vld [vmem:[%s15079_s19 + $0x48] sm:$0xff] }
0x2119   :  { %15750 = vst [vmem:[#allocation9_spill] sm:$0xff] %v14143_v52 }
0x211a   :  { %9866 = vrcp.f32 %v6261_v60  ;;  %v15751_v60 = vld [vmem:[#allocation25_spill] sm:$0xff] }
0x2127   :  { %v9867_v17 = vpop.eup %9866 }
0x2128   :  { %v6263_v27 = vmul.f32 %v9867_v17, %v9865_v54  ;;  %v15747_v54 = vld [vmem:[#allocation48_spill] sm:$0xff]  ;;  %v14150_v17 = vld [vmem:[%s15079_s19 + $0x40] sm:$0xff] }
0x2129   :  { %15752 = vst [vmem:[#allocation10_spill] sm:$0xff] %v14150_v17 }
0x212a   :  { %v6264_v15 = vmul.f32 %v6263_v27, %v13232_v43  ;;  %v15753_v27 = vld [vmem:[#allocation27_spill] sm:$0xff] }
0x212c   :  { %v6265_v44 = vsel %vm5008_vm2, %v6264_v15, 0.0  ;;  %v14157_v15 = vld [vmem:[%s15079_s19 + $0x38] sm:$0xff] }
0x212d   :  { %v6266_v11 = vrot.slane %v6265_v44, 4  ;;  %15754 = vst [vmem:[#allocation20_spill] sm:$0xff] %v14157_v15 }
0x212f   :  { %v6267_v29 = vadd.f32 %v6266_v11, %v6265_v44  ;;  %v15755_v44 = vld [vmem:[#allocation59_spill] sm:$0xff] }
0x2130   :  { %v14164_v11 = vld [vmem:[%s15079_s19 + $0x30] sm:$0xff] }
0x2131   :  { %v6268_v0 = vrot.slane %v6267_v29, 2  ;;  %15756 = vst [vmem:[#allocation21_spill] sm:$0xff] %v14164_v11 }
0x2133   :  { %v6269_v48 = vadd.f32 %v6268_v0, %v6267_v29  ;;  %v15757_v29 = vld [vmem:[#allocation29_spill] sm:$0xff]  ;;  %v14171_v0 = vld [vmem:[%s15079_s19 + $0x28] sm:$0xff] }
0x2134   :  { %15758 = vst [vmem:[#allocation50_spill] sm:$0xff] %v14171_v0 }
0x2135   :  { %v6270_v6 = vrot.slane %v6269_v48, 1 }
0x2137   :  { %v6271_v58 = vadd.f32 %v6270_v6, %v6269_v48  ;;  %v15759_v48 = vld [vmem:[#allocation61_spill] sm:$0xff] }
0x2138   :  { %v14178_v6 = vld [vmem:[%s15079_s19 + $0x20] sm:$0xff] }
0x2139   :  { %6273 = vrot.lane.b32.xlu1 %v6271_v58, %s10367_s1  ;;  %15760 = vst [vmem:[#allocation55_spill] sm:$0xff] %v14178_v6  ;;  %v15761_v58 = vld [vmem:[#allocation31_spill] sm:$0xff] }
0x213d   :  { %6349 = vrot.lane.b32.xlu1 %v6234_v45, %s10367_s1  ;;  %v15743_v45 = vld [vmem:[#allocation83_spill] sm:$0xff] }
0x21ab   :  { %v6274_v7 = vpop.permute.xlu1 %6273 }
0x21ac   :  { %8519 = vmatmul.mubr.msk.f32.vlgmr.msra.gmra.mxu0 %vm488_vm6, %v6274_v7  ;;  %v14185_v7 = vld [vmem:[%s15079_s19 + $0x18] sm:$0xff] }
0x21ad   :  { %6441 = vmatpush1.msra.mxu0 %v13690_v26  ;;  %6488 = vmatprep.mubr.f32.mxu0 %v15444_v38  ;;  %15762 = vst [vmem:[#allocation56_spill] sm:$0xff] %v14185_v7 }
0x21ae   :  { %6442 = vmatprep.subr.mxu0 %v13697_v33 }
0x21af   :  { %6443 = vmatpush1.msra.mxu0 %v13703_v63  ;;  %v14041_v16 = vpop.permute.xlu1 %6349 }
0x21b0   :  { %6444 = vmatprep.subr.mxu0 %v13709_v5  ;;  %8520 = vmatmul.mubr.msk.f32.vlgmr.msra.gmra.mxu1 %vm488_vm6, %v14041_v16 }
0x21b1   :  { %6445 = vmatpush1.msra.mxu0 %v13715_v55  ;;  %6538 = vmatpush1.msra.mxu1 %v13497_v35  ;;  %v15738_v35 = vld [vmem:[#allocation40_spill] sm:$0xff] }
0x21b2   :  { %6446 = vmatprep.subr.mxu0 %v13721_v2  ;;  %6539 = vmatprep.subr.mxu1 %v13504_v14  ;;  %v15739_v14 = vld [vmem:[#allocation81_spill] sm:$0xff] }
0x21b3   :  { %6447 = vmatpush1.msra.mxu0 %v13727_v8  ;;  %6540 = vmatpush1.msra.mxu1 %v13510_v59  ;;  %v15740_v59 = vld [vmem:[#allocation51_spill] sm:$0xff] }
0x21b4   :  { %6448 = vmatprep.subr.mxu0 %v13733_v21  ;;  %6541 = vmatprep.subr.mxu1 %v13516_v61  ;;  %v15741_v61 = vld [vmem:[#allocation6_spill] sm:$0xff] }
0x21b5   :  { %6449 = vmatpush1.msra.mxu0 %v13739_v31  ;;  %6542 = vmatpush1.msra.mxu1 %v13522_v1  ;;  %v15742_v1 = vld [vmem:[#allocation42_spill] sm:$0xff] }
0x21b6   :  { %6450 = vmatprep.subr.mxu0 %v13745_v34  ;;  %6543 = vmatprep.subr.mxu1 %v13528_v40  ;;  %v14073_v40 = vld [vmem:[%s15076_s16 + $0x18] sm:$0xff] }
0x21b7   :  { %6451 = vmatpush1.msra.mxu0 %v13751_v24  ;;  %6544 = vmatpush1.msra.mxu1 %v13534_v62  ;;  %v14079_v62 = vld [vmem:[%s15076_s16 + $0x10] sm:$0xff] }
0x21b8   :  { %6452 = vmatprep.subr.mxu0 %v13757_v56  ;;  %6545 = vmatprep.subr.mxu1 %v13540_v4  ;;  %v14086_v4 = vld [vmem:[%s15076_s16 + $0x8] sm:$0xff] }
0x21b9   :  { %6453 = vmatpush1.msra.mxu0 %v15738_v35  ;;  %6546 = vmatpush1.msra.mxu1 %v15739_v14  ;;  %v15763_v14 = vld [vmem:[#allocation63_spill] sm:$0xff] }
0x21ba   :  { %6454 = vmatprep.subr.mxu0 %v15740_v59  ;;  %6547 = vmatprep.subr.mxu1 %v15741_v61  ;;  %v14192_v61 = vld [vmem:[%s15079_s19 + $0x10] sm:$0xff] }
0x21bb   :  { %6455 = vmatpush1.msra.mxu0 %v15742_v1  ;;  %6548 = vmatpush1.msra.mxu1 %v15743_v45  ;;  %15764 = vst [vmem:[#allocation57_spill] sm:$0xff] %v14192_v61  ;;  %v15765_v45 = vld [vmem:[#allocation33_spill] sm:$0xff] }
0x21bc   :  { %8521 = vmatmul.mubr.msk.f32.vlgmr.msra.gmra.mxu0 %vm488_vm6, %v13891_v57  ;;  %6549 = vmatprep.subr.mxu1 %v14073_v40  ;;  %v15744_v57 = vld [vmem:[#allocation44_spill] sm:$0xff] }
0x21bd   :  { %6550 = vmatpush1.msra.mxu1 %v14079_v62  ;;  %6585 = vmatprep.mubr.f32.mxu1 %v15444_v38 }
0x21be   :  { %6551 = vmatprep.subr.mxu1 %v14086_v4  ;;  %6613 = vmatprep.subr.mxu0 %v15744_v57 }
0x21bf   :  { %6552 = vmatpush1.msra.mxu1 %v14093_v18  ;;  %6614 = vmatpush1.msra.mxu0 %v15745_v51 }
0x21c0   :  { %8524 = vmatmul.mubr.msk.f32.vlgmr.msra.gmra.mxu1 %vm488_vm6, %v13995_v20  ;;  %6708 = vmatprep.subr.mxu1 %v14102_v39  ;;  %v14115_v20 = vld [vmem:[%s15079_s19 + $0x68] sm:$0xff] }
0x21c1   :  { %6709 = vmatpush1.msra.mxu1 %v14108_v37  ;;  %6756 = vmatprep.mubr.f32.mxu1 %v15444_v38 }
0x21c2   :  { %6710 = vmatprep.subr.mxu1 %v14115_v20  ;;  %6615 = vmatprep.subr.mxu0 %v15746_v36 }
0x21c3   :  { %6711 = vmatpush1.msra.mxu1 %v14122_v53  ;;  %6616 = vmatpush1.msra.mxu0 %v15747_v54 }
0x21c4   :  { %6712 = vmatprep.subr.mxu1 %v14129_v19  ;;  %6617 = vmatprep.subr.mxu0 %v15748_v10 }
0x21c5   :  { %6713 = vmatpush1.msra.mxu1 %v14136_v49  ;;  %6618 = vmatpush1.msra.mxu0 %v15749_v12 }
0x21c6   :  { %6714 = vmatprep.subr.mxu1 %v14143_v52  ;;  %6619 = vmatprep.subr.mxu0 %v15751_v60 }
0x21c7   :  { %6715 = vmatpush1.msra.mxu1 %v14150_v17  ;;  %6620 = vmatpush1.msra.mxu0 %v15753_v27 }
0x21c8   :  { %6716 = vmatprep.subr.mxu1 %v14157_v15  ;;  %6621 = vmatprep.subr.mxu0 %v15755_v44 }
0x21c9   :  { %6717 = vmatpush1.msra.mxu1 %v14164_v11  ;;  %6622 = vmatpush1.msra.mxu0 %v15757_v29  ;;  %v15780_v29 = vld [vmem:[#allocation32_spill] sm:$0xff]  ;;  %v15783_v11 = vld [vmem:[#allocation17_spill] sm:$0xff] }
0x21ca   :  { %6718 = vmatprep.subr.mxu1 %v14171_v0  ;;  %6623 = vmatprep.subr.mxu0 %v15759_v48  ;;  %v15778_v48 = vld [vmem:[#allocation30_spill] sm:$0xff]  ;;  %v15779_v0 = vld [vmem:[#allocation15_spill] sm:$0xff] }
0x21cb   :  { %6719 = vmatpush1.msra.mxu1 %v14178_v6  ;;  %6624 = vmatpush1.msra.mxu0 %v15761_v58  ;;  %v14199_v58 = vld [vmem:[%s15079_s19 + $0x8] sm:$0xff]  ;;  %v15767_v6 = vld [vmem:[#allocation65_spill] sm:$0xff] }
0x21cc   :  { %6720 = vmatprep.subr.mxu1 %v14185_v7  ;;  %6625 = vmatprep.subr.mxu0 %v15763_v14  ;;  %15766 = vst [vmem:[#allocation58_spill] sm:$0xff] %v14199_v58  ;;  %v14206_v14 = vld [vmem:[%s15079_s19] sm:$0xff]  ;;  %v15769_v7 = vld [vmem:[#allocation35_spill] sm:$0xff] }
0x21cd   :  { %6721 = vmatpush1.msra.mxu1 %v14192_v61  ;;  %6626 = vmatpush1.msra.mxu0 %v15765_v45  ;;  %15768 = vst [vmem:[#allocation60_spill] sm:$0xff] %v14206_v14  ;;  %v15770_v45 = vld [vmem:[#allocation67_spill] sm:$0xff]  ;;  %v15776_v61 = vld [vmem:[#allocation28_spill] sm:$0xff] }
0x21ce   :  { %6722 = vmatprep.subr.mxu1 %v14199_v58  ;;  %6627 = vmatprep.subr.mxu0 %v15767_v6  ;;  %v14217_v6 = vld [vmem:[%s15072_s12 + $0x78] sm:$0xff]  ;;  %v15772_v58 = vld [vmem:[#allocation11_spill] sm:$0xff] }
0x21cf   :  { %6723 = vmatpush1.msra.mxu1 %v14206_v14  ;;  %6628 = vmatpush1.msra.mxu0 %v15769_v7  ;;  %15771 = vst [vmem:[#allocation62_spill] sm:$0xff] %v14217_v6  ;;  %v15773_v14 = vld [vmem:[#allocation12_spill] sm:$0xff]  ;;  %v15774_v7 = vld [vmem:[#allocation26_spill] sm:$0xff] }
0x21d0   :  { %8528 = vmatmul.mubr.msk.f32.vlgmr.msra.gmra.mxu1 %vm488_vm6, %v14041_v16  ;;  %6661 = vmatprep.mubr.f32.mxu0 %v15444_v38  ;;  %v15775_v16 = vld [vmem:[#allocation13_spill] sm:$0xff] }
0x21d1   :  { %6784 = vmatprep.subr.mxu0 %v15770_v45  ;;  %6921 = vmatprep.subr.mxu1 %v14217_v6  ;;  %v15777_v45 = vld [vmem:[#allocation14_spill] sm:$0xff]  ;;  %v15781_v6 = vld [vmem:[#allocation16_spill] sm:$0xff] }
0x21d2   :  { %6922 = vmatpush1.msra.mxu1 %v15772_v58  ;;  %6969 = vmatprep.mubr.f32.mxu1 %v15444_v38  ;;  %v15782_v58 = vld [vmem:[#allocation34_spill] sm:$0xff] }
0x21d3   :  { %6923 = vmatprep.subr.mxu1 %v15773_v14  ;;  %v15784_v14 = vld [vmem:[#allocation36_spill] sm:$0xff] }
0x21d4   :  { %6924 = vmatpush1.msra.mxu1 %v15774_v7  ;;  %v15785_v7 = vld [vmem:[#allocation18_spill] sm:$0xff] }
0x21d5   :  { %6925 = vmatprep.subr.mxu1 %v15775_v16  ;;  %v15786_v16 = vld [vmem:[#allocation38_spill] sm:$0xff] }
0x21d6   :  { %6926 = vmatpush1.msra.mxu1 %v15776_v61  ;;  %v15787_v61 = vld [vmem:[#allocation19_spill] sm:$0xff] }
0x21d7   :  { %6927 = vmatprep.subr.mxu1 %v15777_v45 }
0x21d8   :  { %6928 = vmatpush1.msra.mxu1 %v15778_v48 }
0x21d9   :  { %6929 = vmatprep.subr.mxu1 %v15779_v0 }
0x21da   :  { %6930 = vmatpush1.msra.mxu1 %v15780_v29 }
0x21db   :  { %6931 = vmatprep.subr.mxu1 %v15781_v6 }
0x21dc   :  { %6932 = vmatpush1.msra.mxu1 %v15782_v58 }
0x21dd   :  { %6933 = vmatprep.subr.mxu1 %v15783_v11 }
0x21de   :  { %6934 = vmatpush1.msra.mxu1 %v15784_v14 }
0x21df   :  { %6935 = vmatprep.subr.mxu1 %v15785_v7 }
0x21e0   :  { %6936 = vmatpush1.msra.mxu1 %v15786_v16 }
0x21e1   :  { %7068 = vmatprep.subr.mxu1 %v15787_v61 }
0x226c   :  { %v6343_v45 = vpop.f32.mrf.mxu0 }
0x226e   :  { %v6345_v44 = vpop.f32.mrf.mxu0 }
0x2270   :  { %v6419_v48 = vpop.f32.mrf.mxu1 }
0x2271   :  { %v6420_v0 = vadd.f32 %v6419_v48, %v6343_v45 }
0x2272   :  { %v6421_v58 = vpop.f32.mrf.mxu1 }
0x2273   :  { %v6422_v17 = vadd.f32 %v6421_v58, %v6345_v44  ;;  %v15791_v58 = vld [vmem:[#allocation71_spill] sm:$0xff] }
0x227c   :  { %v6490_v15 = vpop.f32.mrf.mxu0 }
0x227d   :  { %v6495_v29 = vadd.f32 %v6490_v15, %v6420_v0 }
0x227e   :  { %v6492_v11 = vpop.f32.mrf.mxu0 }
0x227f   :  { %v6497_v6 = vadd.f32 %v6495_v29, %v15663_v47  ;;  %v6496_v14 = vadd.f32 %v6492_v11, %v6422_v17  ;;  %v15792_v11 = vld [vmem:[#allocation41_spill] sm:$0xff] }
0x2281   :  { %v8522_v27 = vmul.f32 -1.442695, %v6497_v6  ;;  %v6498_v7 = vadd.f32 %v6496_v14, %v15664_v13  ;;  %v15793_v14 = vld [vmem:[#allocation43_spill] sm:$0xff] }
0x2283   :  { %9868 = vpow2.f32 %v8522_v27  ;;  %v8523_v15 = vmul.f32 -1.442695, %v6498_v7 }
0x2284   :  { %9870 = vtanh.f32 %v6498_v7  ;;  %v15794_v7 = vld [vmem:[#allocation45_spill] sm:$0xff] }
0x2290   :  { %v9869_v60 = vpop.eup %9868 }
0x2291   :  { %v6502_v16 = vadd.f32 1.0, %v9869_v60  ;;  %v9871_v61 = vpop.eup %9870 }
0x2293   :  { %9872 = vrcp.f32 %v6502_v16  ;;  %v15796_v16 = vld [vmem:[#allocation49_spill] sm:$0xff] }
0x2294   :  { %9874 = vpow2.f32 %v8523_v15  ;;  %v14268_v15 = vld [vmem:[%s15071_s11 + $0x78] sm:$0xff] }
0x22a0   :  { %v9873_v52 = vpop.eup %9872 }
0x22a1   :  { %v6513_v12 = vmul.f32 %v9873_v52, %v9871_v61  ;;  %v9875_v45 = vpop.eup %9874  ;;  %v6512_v27 = vmul.f32 %v9873_v52, %v13887_v50  ;;  %v15788_v50 = vld [vmem:[#allocation37_spill] sm:$0xff]  ;;  %v15790_v52 = vld [vmem:[#allocation39_spill] sm:$0xff]  ;;  %v15799_v61 = vld [vmem:[#allocation8_spill] sm:$0xff] }
0x22a2   :  { %v6509_v48 = vadd.f32 1.0, %v9875_v45  ;;  %v6587_v45 = vpop.f32.mrf.mxu1 }
0x22a3   :  { %6515 = vrot.lane.b32.xlu1 %v6513_v12, %s10367_s1  ;;  %v15789_v12 = vld [vmem:[#allocation69_spill] sm:$0xff] }
0x22a4   :  { %9876 = vrcp.f32 %v6509_v48 }
0x22b1   :  { %v9877_v60 = vpop.eup %9876 }
0x2315   :  { %v6516_v0 = vpop.permute.xlu1 %6515 }
0x2316   :  { %v14241_v44 = vadd.f32 %v6516_v0, %v6512_v27 }
0x2318   :  { %9878 = vtanh.f32 %v14241_v44 }
0x2325   :  { %v9879_v17 = vpop.eup %9878 }
0x2326   :  { %v6520_v29 = vmul.f32 %v9879_v17, %v9877_v60 }
0x2328   :  { %6593 = vrot.lane.b32.xlu1 %v6520_v29, %s10367_s1  ;;  %v6589_v29 = vpop.f32.mrf.mxu1 }
0x239a   :  { %v14245_v6 = vpop.permute.xlu1 %6593 }
0x239b   :  { %8525 = vmatmul.mubr.msk.f32.vlgmr.msra.gmra.mxu0 %vm488_vm6, %v14245_v6 }
0x239c   :  { %6785 = vmatpush1.msra.mxu0 %v13898_v3  ;;  %6832 = vmatprep.mubr.f32.mxu0 %v15444_v38  ;;  %v15795_v3 = vld [vmem:[#allocation47_spill] sm:$0xff] }
0x239d   :  { %6786 = vmatprep.subr.mxu0 %v13905_v30  ;;  %v15797_v30 = vld [vmem:[#allocation54_spill] sm:$0xff] }
0x239e   :  { %6787 = vmatpush1.msra.mxu0 %v13911_v41  ;;  %v15798_v41 = vld [vmem:[#allocation7_spill] sm:$0xff] }
0x239f   :  { %6788 = vmatprep.subr.mxu0 %v15788_v50 }
0x23a0   :  { %6789 = vmatpush1.msra.mxu0 %v15789_v12 }
0x23a1   :  { %6790 = vmatprep.subr.mxu0 %v15790_v52 }
0x23a2   :  { %6791 = vmatpush1.msra.mxu0 %v15791_v58 }
0x23a3   :  { %6792 = vmatprep.subr.mxu0 %v15792_v11 }
0x23a4   :  { %6793 = vmatpush1.msra.mxu0 %v15793_v14 }
0x23a5   :  { %6794 = vmatprep.subr.mxu0 %v15794_v7 }
0x23a6   :  { %6795 = vmatpush1.msra.mxu0 %v15795_v3 }
0x23a7   :  { %6796 = vmatprep.subr.mxu0 %v15796_v16 }
0x23a8   :  { %6797 = vmatpush1.msra.mxu0 %v15797_v30 }
0x23a9   :  { %6798 = vmatprep.subr.mxu0 %v15798_v41 }
0x23aa   :  { %6799 = vmatpush1.msra.mxu0 %v15799_v61 }
0x23ab   :  { %6997 = vmatprep.subr.mxu0 %v14268_v15 }
0x245b   :  { %v6663_v48 = vpop.f32.mrf.mxu0 }
0x245c   :  { %v6664_v27 = vadd.f32 %v6663_v48, %v6587_v45 }
0x245d   :  { %v6665_v17 = vpop.f32.mrf.mxu0 }
0x245e   :  { %v6668_v0 = vadd.f32 %v6664_v27, %v15681_v28  ;;  %v6666_v50 = vadd.f32 %v6665_v17, %v6589_v29  ;;  %v14293_v17 = vld [vmem:[%s15071_s11 + $0x68] sm:$0xff]  ;;  %v14299_v29 = vld [vmem:[%s15071_s11 + $0x60] sm:$0xff] }
0x2460   :  { %v8526_v60 = vmul.f32 -1.442695, %v6668_v0  ;;  %v6669_v12 = vadd.f32 %v6666_v50, %v15682_v22  ;;  %v14305_v50 = vld [vmem:[%s15071_s11 + $0x58] sm:$0xff] }
0x2461   :  { %15800 = vst [vmem:[#allocation64_spill] sm:$0xff] %v14305_v50 }
0x2462   :  { %9880 = vpow2.f32 %v8526_v60  ;;  %v8527_v3 = vmul.f32 -1.442695, %v6669_v12 }
0x2463   :  { %9882 = vtanh.f32 %v6669_v12  ;;  %v14311_v12 = vld [vmem:[%s15071_s11 + $0x50] sm:$0xff] }
0x2464   :  { %15801 = vst [vmem:[#allocation66_spill] sm:$0xff] %v14311_v12 }
0x246f   :  { %v9881_v52 = vpop.eup %9880 }
0x2470   :  { %v6673_v58 = vadd.f32 1.0, %v9881_v52  ;;  %v9883_v11 = vpop.eup %9882  ;;  %v14317_v52 = vld [vmem:[%s15071_s11 + $0x48] sm:$0xff] }
0x2471   :  { %15802 = vst [vmem:[#allocation68_spill] sm:$0xff] %v14317_v52 }
0x2472   :  { %9884 = vrcp.f32 %v6673_v58  ;;  %v14323_v58 = vld [vmem:[%s15071_s11 + $0x40] sm:$0xff] }
0x2473   :  { %9886 = vpow2.f32 %v8527_v3  ;;  %15803 = vst [vmem:[#allocation70_spill] sm:$0xff] %v14323_v58  ;;  %v14347_v3 = vld [vmem:[%s15071_s11 + $0x20] sm:$0xff] }
0x2474   :  { %15807 = vst [vmem:[#allocation75_spill] sm:$0xff] %v14347_v3 }
0x247f   :  { %v9885_v14 = vpop.eup %9884 }
0x2480   :  { %v6684_v7 = vmul.f32 %v9885_v14, %v9883_v11  ;;  %v9887_v16 = vpop.eup %9886  ;;  %v6683_v41 = vmul.f32 %v9885_v14, %v13991_v42  ;;  %v14286_v42 = vld [vmem:[%s15071_s11 + $0x70] sm:$0xff]  ;;  %v14329_v11 = vld [vmem:[%s15071_s11 + $0x38] sm:$0xff] }
0x2481   :  { %v6680_v30 = vadd.f32 1.0, %v9887_v16  ;;  %15804 = vst [vmem:[#allocation72_spill] sm:$0xff] %v14329_v11  ;;  %v14335_v14 = vld [vmem:[%s15071_s11 + $0x30] sm:$0xff]  ;;  %v14353_v16 = vld [vmem:[%s15071_s11 + $0x18] sm:$0xff] }
0x2482   :  { %6686 = vrot.lane.b32.xlu1 %v6684_v7, %s10367_s1  ;;  %15805 = vst [vmem:[#allocation73_spill] sm:$0xff] %v14335_v14  ;;  %v14341_v7 = vld [vmem:[%s15071_s11 + $0x28] sm:$0xff]  ;;  %15808 = vst [vmem:[#allocation76_spill] sm:$0xff] %v14353_v16 }
0x2483   :  { %9888 = vrcp.f32 %v6680_v30  ;;  %15806 = vst [vmem:[#allocation74_spill] sm:$0xff] %v14341_v7  ;;  %v14359_v30 = vld [vmem:[%s15071_s11 + $0x10] sm:$0xff] }
0x2484   :  { %15809 = vst [vmem:[#allocation52_spill] sm:$0xff] %v14359_v30 }
0x2490   :  { %v9889_v48 = vpop.eup %9888 }
0x24f4   :  { %v6687_v61 = vpop.permute.xlu1 %6686 }
0x24f5   :  { %v14275_v45 = vadd.f32 %v6687_v61, %v6683_v41  ;;  %v14365_v41 = vld [vmem:[%s15071_s11 + $0x8] sm:$0xff]  ;;  %v14371_v61 = vld [vmem:[%s15071_s11] sm:$0xff] }
0x24f6   :  { %15810 = vst [vmem:[#allocation53_spill] sm:$0xff] %v14365_v41  ;;  %15811 = vst [vmem:[#allocation79_spill] sm:$0xff] %v14371_v61 }
0x24f7   :  { %9890 = vtanh.f32 %v14275_v45 }
0x2504   :  { %v9891_v27 = vpop.eup %9890 }
0x2505   :  { %v6691_v0 = vmul.f32 %v9891_v27, %v9889_v48  ;;  %v6758_v48 = vpop.f32.mrf.mxu1 }
0x2507   :  { %6764 = vrot.lane.b32.xlu1 %v6691_v0, %s10367_s1 }
0x2579   :  { %v14279_v60 = vpop.permute.xlu1 %6764 }
0x257a   :  { %8529 = vmatmul.mubr.msk.f32.vlgmr.msra.gmra.mxu0 %vm488_vm6, %v14279_v60 }
0x257b   :  { %6998 = vmatpush1.msra.mxu0 %v14286_v42  ;;  %7045 = vmatprep.mubr.f32.mxu0 %v15444_v38 }
0x257c   :  { %6999 = vmatprep.subr.mxu0 %v14293_v17 }
0x257d   :  { %7000 = vmatpush1.msra.mxu0 %v14299_v29 }
0x257e   :  { %7001 = vmatprep.subr.mxu0 %v14305_v50 }
0x257f   :  { %7002 = vmatpush1.msra.mxu0 %v14311_v12 }
0x2580   :  { %7003 = vmatprep.subr.mxu0 %v14317_v52 }
0x2581   :  { %7004 = vmatpush1.msra.mxu0 %v14323_v58 }
0x2582   :  { %7005 = vmatprep.subr.mxu0 %v14329_v11 }
0x2583   :  { %7006 = vmatpush1.msra.mxu0 %v14335_v14 }
0x2584   :  { %7007 = vmatprep.subr.mxu0 %v14341_v7  ;;  %v6760_v7 = vpop.f32.mrf.mxu1 }
0x2585   :  { %7008 = vmatpush1.msra.mxu0 %v14347_v3 }
0x2586   :  { %7009 = vmatprep.subr.mxu0 %v14353_v16 }
0x2587   :  { %7010 = vmatpush1.msra.mxu0 %v14359_v30 }
0x2588   :  { %7011 = vmatprep.subr.mxu0 %v14365_v41 }
0x2589   :  { %7012 = vmatpush1.msra.mxu0 %v14371_v61 }
0x258a   :  { %7165 = vmatprep.subr.mxu0 %v14018_v9 }
0x263a   :  { %v6834_v27 = vpop.f32.mrf.mxu0 }
0x263b   :  { %v6835_v0 = vadd.f32 %v6834_v27, %v6758_v48 }
0x263c   :  { %v6836_v3 = vpop.f32.mrf.mxu0 }
0x263d   :  { %v6839_v30 = vadd.f32 %v6835_v0, %v13218_v46  ;;  %v6837_v14 = vadd.f32 %v6836_v3, %v6760_v7 }
0x263f   :  { %v8530_v16 = vmul.f32 -1.442695, %v6839_v30  ;;  %v6840_v41 = vadd.f32 %v6837_v14, %v13222_v23 }
0x2641   :  { %9892 = vpow2.f32 %v8530_v16  ;;  %v8531_v9 = vmul.f32 -1.442695, %v6840_v41 }
0x2642   :  { %9894 = vtanh.f32 %v6840_v41 }
0x264e   :  { %v9893_v11 = vpop.eup %9892 }
0x264f   :  { %v6844_v58 = vadd.f32 1.0, %v9893_v11  ;;  %v9895_v52 = vpop.eup %9894 }
0x2651   :  { %9896 = vrcp.f32 %v6844_v58 }
0x2652   :  { %9898 = vpow2.f32 %v8531_v9 }
0x265e   :  { %v9897_v61 = vpop.eup %9896 }
0x265f   :  { %v6855_v12 = vmul.f32 %v9897_v61, %v9895_v52  ;;  %v9899_v48 = vpop.eup %9898  ;;  %v6854_v16 = vmul.f32 %v9897_v61, %v14025_v32 }
0x2660   :  { %v6851_v27 = vadd.f32 1.0, %v9899_v48 }
0x2661   :  { %6857 = vrot.lane.b32.xlu1 %v6855_v12, %s10367_s1 }
0x2662   :  { %9900 = vrcp.f32 %v6851_v27 }
0x266f   :  { %v9901_v11 = vpop.eup %9900 }
0x26d3   :  { %v6858_v30 = vpop.permute.xlu1 %6857 }
0x26d4   :  { %v14379_v0 = vadd.f32 %v6858_v30, %v6854_v16 }
0x26d6   :  { %15812 = vst [vmem:[#allocation80_spill] sm:$0xff] %v14379_v0  ;;  %9902 = vtanh.f32 %v14379_v0 }
0x26e3   :  { %v9903_v14 = vpop.eup %9902 }
0x26e4   :  { %v6862_v58 = vmul.f32 %v9903_v14, %v9901_v11 }
0x26e6   :  { %v6866_v7 = vrot.slane %v6862_v58, %v15552_v25 }
0x26e8   :  { %v6867_v52 = vmul.f32 %v6866_v7, %v13232_v43 }
0x26ea   :  { %6869 = vrot.lane.b32.xlu0 %v6867_v52, %s10367_s1 }
0x275c   :  { %v6870_v12 = vpop.permute.xlu0 %6869 }
0x275d   :  { %v6872_v3 = vsel %vm488_vm6, %v6870_v12, 0.0 }
0x275e   :  { %6873 = vadd.xlane.f32.xlu1 %v6872_v3 }
0x27e7   :  { %v6874_v32 = vpop.xlane.xlu1 %6873 }
0x27e8   :  { %v6875_v41 = vrot.slane %v6874_v32, 4 }
0x27ea   :  { %v6876_v61 = vmax.f32 %v6874_v32, %v6875_v41 }
0x27ec   :  { %v6877_v9 = vrot.slane %v6876_v61, 2 }
0x27ee   :  { %v6878_v48 = vmax.f32 %v6876_v61, %v6877_v9 }
0x27f0   :  { %v6879_v27 = vrot.slane %v6878_v48, 1 }
0x27f2   :  { %v6880_v16 = vmax.f32 %v6878_v48, %v6879_v27 }
0x27f4   :  { %v6881_v30 = vsub.f32 %v6874_v32, %v6880_v16  ;;  %v10258_v16 = vld [vmem:[%s15072_s12 + $0x68] sm:$0xff] }
0x27f6   :  { %v6882_v0 = vmul.f32 1.442695, %v6881_v30  ;;  %v10259_v30 = vld [vmem:[%s15072_s12 + $0x60] sm:$0xff] }
0x27f8   :  { %9904 = vpow2.f32 %v6882_v0 }
0x2805   :  { %v9905_v11 = vpop.eup %9904 }
0x2806   :  { %v6884_v14 = vrot.slane %v9905_v11, 4 }
0x2808   :  { %v6885_v25 = vadd.f32 %v9905_v11, %v6884_v14  ;;  %v10261_v14 = vld [vmem:[%s15072_s12 + $0x50] sm:$0xff] }
0x280a   :  { %v6886_v7 = vrot.slane %v6885_v25, 2 }
0x280c   :  { %v6887_v23 = vadd.f32 %v6886_v7, %v6885_v25  ;;  %v10262_v7 = vld [vmem:[%s15072_s12 + $0x48] sm:$0xff] }
0x280e   :  { %v6888_v52 = vrot.slane %v6887_v23, 1 }
0x2810   :  { %v6889_v46 = vadd.f32 %v6888_v52, %v6887_v23  ;;  %v14404_v23 = vld [vmem:[%s15076_s16 + $0x70] sm:$0xff]  ;;  %v10263_v52 = vld [vmem:[%s15072_s12 + $0x40] sm:$0xff] }
0x2812   :  { %9906 = vrcp.f32 %v6889_v46 }
0x281f   :  { %v9907_v12 = vpop.eup %9906 }
0x2820   :  { %v6891_v3 = vmul.f32 %v9907_v12, %v9905_v11  ;;  %v10260_v11 = vld [vmem:[%s15072_s12 + $0x58] sm:$0xff] }
0x2821   :  { %v10264_v12 = vld [vmem:[%s15072_s12 + $0x38] sm:$0xff] }
0x2822   :  { %v6892_v50 = vmul.f32 %v6891_v3, %v13232_v43  ;;  %v10265_v3 = vld [vmem:[%s15072_s12 + $0x30] sm:$0xff] }
0x2824   :  { %v6893_v41 = vsel %vm5008_vm2, %v6892_v50, 0.0  ;;  %v15835_v50 = vld [vmem:[#allocation62_spill] sm:$0xff] }
0x2825   :  { %v6894_v61 = vrot.slane %v6893_v41, 4 }
0x2827   :  { %v6895_v9 = vadd.f32 %v6894_v61, %v6893_v41  ;;  %v10266_v41 = vld [vmem:[%s15072_s12 + $0x28] sm:$0xff]  ;;  %v10267_v61 = vld [vmem:[%s15072_s12 + $0x20] sm:$0xff] }
0x2829   :  { %v6896_v48 = vrot.slane %v6895_v9, 2 }
0x282b   :  { %v6897_v32 = vadd.f32 %v6896_v48, %v6895_v9  ;;  %v10268_v9 = vld [vmem:[%s15072_s12 + $0x18] sm:$0xff]  ;;  %v10269_v48 = vld [vmem:[%s15072_s12 + $0x10] sm:$0xff] }
0x282d   :  { %v6898_v27 = vrot.slane %v6897_v32, 1 }
0x282f   :  { %v6899_v0 = vadd.f32 %v6898_v27, %v6897_v32  ;;  %v10270_v32 = vld [vmem:[%s15072_s12 + $0x8] sm:$0xff]  ;;  %v10271_v27 = vld [vmem:[%s15072_s12] sm:$0xff] }
0x2831   :  { %6901 = vrot.lane.b32.xlu0 %v6899_v0, %s10367_s1  ;;  %v10272_v0 = vld [vmem:[%s15073_s13 + $0x78] sm:$0xff] }
0x2835   :  { %6977 = vrot.lane.b32.xlu0 %v6862_v58, %s10367_s1  ;;  %v10257_v58 = vld [vmem:[%s15072_s12 + $0x70] sm:$0xff] }
0x28a3   :  { %v6902_v25 = vpop.permute.xlu0 %6901 }
0x28a4   :  { %8532 = vmatmul.mubr.msk.f32.vlgmr.msra.gmra.mxu1 %vm488_vm6, %v6902_v25 }
0x28a5   :  { %7069 = vmatpush1.msra.mxu1 %v13690_v26  ;;  %7116 = vmatprep.mubr.f32.mxu1 %v15444_v38  ;;  %v14411_v26 = vld [vmem:[%s15076_s16 + $0x68] sm:$0xff] }
0x28a6   :  { %7070 = vmatprep.subr.mxu1 %v13697_v33  ;;  %v14418_v33 = vld [vmem:[%s15076_s16 + $0x60] sm:$0xff] }
0x28a7   :  { %7071 = vmatpush1.msra.mxu1 %v13703_v63  ;;  %v14395_v46 = vpop.permute.xlu0 %6977  ;;  %v14425_v63 = vld [vmem:[%s15076_s16 + $0x58] sm:$0xff] }
0x28a8   :  { %7072 = vmatprep.subr.mxu1 %v13709_v5  ;;  %8533 = vmatmul.mubr.msk.f32.vlgmr.msra.gmra.mxu0 %vm488_vm6, %v14395_v46  ;;  %v14432_v5 = vld [vmem:[%s15076_s16 + $0x50] sm:$0xff] }
0x28a9   :  { %7073 = vmatpush1.msra.mxu1 %v13715_v55  ;;  %7166 = vmatpush1.msra.mxu0 %v14404_v23  ;;  %v14439_v55 = vld [vmem:[%s15076_s16 + $0x48] sm:$0xff] }
0x28aa   :  { %7074 = vmatprep.subr.mxu1 %v13721_v2  ;;  %7167 = vmatprep.subr.mxu0 %v14411_v26  ;;  %v14446_v2 = vld [vmem:[%s15076_s16 + $0x40] sm:$0xff] }
0x28ab   :  { %7075 = vmatpush1.msra.mxu1 %v13727_v8  ;;  %7168 = vmatpush1.msra.mxu0 %v14418_v33  ;;  %v14453_v8 = vld [vmem:[%s15076_s16 + $0x38] sm:$0xff] }
0x28ac   :  { %7076 = vmatprep.subr.mxu1 %v13733_v21  ;;  %7169 = vmatprep.subr.mxu0 %v14425_v63  ;;  %v14460_v21 = vld [vmem:[%s15076_s16 + $0x30] sm:$0xff] }
0x28ad   :  { %7077 = vmatpush1.msra.mxu1 %v13739_v31  ;;  %7170 = vmatpush1.msra.mxu0 %v14432_v5  ;;  %v14467_v31 = vld [vmem:[%s15076_s16 + $0x28] sm:$0xff] }
0x28ae   :  { %7078 = vmatprep.subr.mxu1 %v13745_v34  ;;  %7171 = vmatprep.subr.mxu0 %v14439_v55  ;;  %v14474_v34 = vld [vmem:[%s15076_s16 + $0x20] sm:$0xff] }
0x28af   :  { %7079 = vmatpush1.msra.mxu1 %v13751_v24  ;;  %7172 = vmatpush1.msra.mxu0 %v14446_v2  ;;  %v15813_v24 = vld [vmem:[#allocation24_spill] sm:$0xff] }
0x28b0   :  { %7080 = vmatprep.subr.mxu1 %v13757_v56  ;;  %7173 = vmatprep.subr.mxu0 %v14453_v8  ;;  %v15814_v56 = vld [vmem:[#allocation9_spill] sm:$0xff] }
0x28b1   :  { %7081 = vmatpush1.msra.mxu1 %v15738_v35  ;;  %7174 = vmatpush1.msra.mxu0 %v14460_v21  ;;  %v15815_v35 = vld [vmem:[#allocation25_spill] sm:$0xff] }
0x28b2   :  { %7082 = vmatprep.subr.mxu1 %v15740_v59  ;;  %7175 = vmatprep.subr.mxu0 %v14467_v31  ;;  %v15816_v59 = vld [vmem:[#allocation10_spill] sm:$0xff] }
0x28b3   :  { %7083 = vmatpush1.msra.mxu1 %v15742_v1  ;;  %7176 = vmatpush1.msra.mxu0 %v14474_v34  ;;  %v15817_v1 = vld [vmem:[#allocation27_spill] sm:$0xff] }
0x28b4   :  { %8534 = vmatmul.mubr.msk.f32.vlgmr.msra.gmra.mxu1 %vm488_vm6, %v14245_v6  ;;  %7177 = vmatprep.subr.mxu0 %v14073_v40  ;;  %v15818_v40 = vld [vmem:[#allocation20_spill] sm:$0xff]  ;;  %v15833_v6 = vld [vmem:[#allocation35_spill] sm:$0xff] }
0x28b5   :  { %7178 = vmatpush1.msra.mxu0 %v14079_v62  ;;  %7213 = vmatprep.mubr.f32.mxu0 %v15444_v38  ;;  %v15819_v62 = vld [vmem:[#allocation59_spill] sm:$0xff] }
0x28b6   :  { %7179 = vmatprep.subr.mxu0 %v14086_v4  ;;  %7241 = vmatprep.subr.mxu1 %v15744_v57  ;;  %v15820_v4 = vld [vmem:[#allocation21_spill] sm:$0xff] }
0x28b7   :  { %7180 = vmatpush1.msra.mxu0 %v14093_v18  ;;  %7242 = vmatpush1.msra.mxu1 %v15745_v51  ;;  %v15821_v57 = vld [vmem:[#allocation29_spill] sm:$0xff]  ;;  %v15822_v18 = vld [vmem:[#allocation50_spill] sm:$0xff] }
0x28b8   :  { %8537 = vmatmul.mubr.msk.f32.vlgmr.msra.gmra.mxu0 %vm488_vm6, %v14279_v60  ;;  %7336 = vmatprep.subr.mxu0 %v14102_v39  ;;  %v15823_v51 = vld [vmem:[#allocation61_spill] sm:$0xff]  ;;  %v15824_v39 = vld [vmem:[#allocation55_spill] sm:$0xff] }
0x28b9   :  { %7337 = vmatpush1.msra.mxu0 %v14108_v37  ;;  %7384 = vmatprep.mubr.f32.mxu0 %v15444_v38  ;;  %v15825_v37 = vld [vmem:[#allocation31_spill] sm:$0xff] }
0x28ba   :  { %7338 = vmatprep.subr.mxu0 %v14115_v20  ;;  %7243 = vmatprep.subr.mxu1 %v15746_v36  ;;  %v15826_v20 = vld [vmem:[#allocation56_spill] sm:$0xff]  ;;  %v15827_v36 = vld [vmem:[#allocation63_spill] sm:$0xff] }
0x28bb   :  { %7339 = vmatpush1.msra.mxu0 %v14122_v53  ;;  %7244 = vmatpush1.msra.mxu1 %v15747_v54  ;;  %v15828_v53 = vld [vmem:[#allocation57_spill] sm:$0xff]  ;;  %v15834_v60 = vld [vmem:[#allocation67_spill] sm:$0xff] }
0x28bc   :  { %7340 = vmatprep.subr.mxu0 %v14129_v19  ;;  %7245 = vmatprep.subr.mxu1 %v15748_v10  ;;  %v15829_v54 = vld [vmem:[#allocation33_spill] sm:$0xff]  ;;  %v15830_v19 = vld [vmem:[#allocation58_spill] sm:$0xff] }
0x28bd   :  { %7341 = vmatpush1.msra.mxu0 %v14136_v49  ;;  %7246 = vmatpush1.msra.mxu1 %v15813_v24  ;;  %v15831_v10 = vld [vmem:[#allocation65_spill] sm:$0xff]  ;;  %v15832_v49 = vld [vmem:[#allocation60_spill] sm:$0xff] }
0x28be   :  { %7342 = vmatprep.subr.mxu0 %v15814_v56  ;;  %7247 = vmatprep.subr.mxu1 %v15815_v35 }
0x28bf   :  { %7343 = vmatpush1.msra.mxu0 %v15816_v59  ;;  %7248 = vmatpush1.msra.mxu1 %v15817_v1 }
0x28c0   :  { %7344 = vmatprep.subr.mxu0 %v15818_v40  ;;  %7249 = vmatprep.subr.mxu1 %v15819_v62 }
0x28c1   :  { %7345 = vmatpush1.msra.mxu0 %v15820_v4  ;;  %7250 = vmatpush1.msra.mxu1 %v15821_v57 }
0x28c2   :  { %7346 = vmatprep.subr.mxu0 %v15822_v18  ;;  %7251 = vmatprep.subr.mxu1 %v15823_v51 }
0x28c3   :  { %7347 = vmatpush1.msra.mxu0 %v15824_v39  ;;  %7252 = vmatpush1.msra.mxu1 %v15825_v37 }
0x28c4   :  { %7348 = vmatprep.subr.mxu0 %v15826_v20  ;;  %7253 = vmatprep.subr.mxu1 %v15827_v36 }
0x28c5   :  { %7349 = vmatpush1.msra.mxu0 %v15828_v53  ;;  %7254 = vmatpush1.msra.mxu1 %v15829_v54 }
0x28c6   :  { %7350 = vmatprep.subr.mxu0 %v15830_v19  ;;  %7255 = vmatprep.subr.mxu1 %v15831_v10 }
0x28c7   :  { %7351 = vmatpush1.msra.mxu0 %v15832_v49  ;;  %7256 = vmatpush1.msra.mxu1 %v15833_v6 }
0x28c8   :  { %8541 = vmatmul.mubr.msk.f32.vlgmr.msra.gmra.mxu0 %vm488_vm6, %v14395_v46  ;;  %7289 = vmatprep.mubr.f32.mxu1 %v15444_v38 }
0x28c9   :  { %7412 = vmatprep.subr.mxu1 %v15834_v60  ;;  %7549 = vmatprep.subr.mxu0 %v15835_v50 }
0x28ca   :  { %7550 = vmatpush1.msra.mxu0 %v10257_v58  ;;  %7597 = vmatprep.mubr.f32.mxu0 %v15444_v38 }
0x28cb   :  { %7551 = vmatprep.subr.mxu0 %v10258_v16 }
0x28cc   :  { %7552 = vmatpush1.msra.mxu0 %v10259_v30 }
0x28cd   :  { %7553 = vmatprep.subr.mxu0 %v10260_v11  ;;  %v14595_v11 = vld [vmem:[%s15078_s18 + $0x68] sm:$0xff] }
0x28ce   :  { %7554 = vmatpush1.msra.mxu0 %v10261_v14  ;;  %v14601_v14 = vld [vmem:[%s15078_s18 + $0x60] sm:$0xff] }
0x28cf   :  { %7555 = vmatprep.subr.mxu0 %v10262_v7  ;;  %v14607_v7 = vld [vmem:[%s15078_s18 + $0x58] sm:$0xff] }
0x28d0   :  { %7556 = vmatpush1.msra.mxu0 %v10263_v52  ;;  %v14613_v52 = vld [vmem:[%s15078_s18 + $0x50] sm:$0xff] }
0x28d1   :  { %7557 = vmatprep.subr.mxu0 %v10264_v12  ;;  %v14619_v12 = vld [vmem:[%s15078_s18 + $0x48] sm:$0xff] }
0x28d2   :  { %7558 = vmatpush1.msra.mxu0 %v10265_v3  ;;  %v14625_v3 = vld [vmem:[%s15078_s18 + $0x40] sm:$0xff] }
0x28d3   :  { %7559 = vmatprep.subr.mxu0 %v10266_v41  ;;  %v14631_v41 = vld [vmem:[%s15078_s18 + $0x38] sm:$0xff] }
0x28d4   :  { %7560 = vmatpush1.msra.mxu0 %v10267_v61  ;;  %v14637_v61 = vld [vmem:[%s15078_s18 + $0x30] sm:$0xff] }
0x28d5   :  { %7561 = vmatprep.subr.mxu0 %v10268_v9  ;;  %v14643_v9 = vld [vmem:[%s15078_s18 + $0x28] sm:$0xff] }
0x28d6   :  { %7562 = vmatpush1.msra.mxu0 %v10269_v48  ;;  %v14649_v48 = vld [vmem:[%s15078_s18 + $0x20] sm:$0xff] }
0x28d7   :  { %7563 = vmatprep.subr.mxu0 %v10270_v32  ;;  %v14655_v32 = vld [vmem:[%s15078_s18 + $0x18] sm:$0xff] }
0x28d8   :  { %7564 = vmatpush1.msra.mxu0 %v10271_v27  ;;  %v14661_v27 = vld [vmem:[%s15078_s18 + $0x10] sm:$0xff] }
0x28d9   :  { %7696 = vmatprep.subr.mxu0 %v10272_v0  ;;  %v14667_v0 = vld [vmem:[%s15078_s18 + $0x8] sm:$0xff] }
0x2964   :  { %v6971_v25 = vpop.f32.mrf.mxu1 }
0x2966   :  { %v6973_v24 = vpop.f32.mrf.mxu1 }
0x2968   :  { %v7047_v46 = vpop.f32.mrf.mxu0 }
0x2969   :  { %v7048_v56 = vadd.f32 %v7047_v46, %v6971_v25  ;;  %v14673_v25 = vld [vmem:[%s15078_s18] sm:$0xff] }
0x296a   :  { %v7049_v62 = vpop.f32.mrf.mxu0 }
0x296b   :  { %v7050_v57 = vadd.f32 %v7049_v62, %v6973_v24 }
0x2974   :  { %v7118_v35 = vpop.f32.mrf.mxu1 }
0x2975   :  { %v7123_v59 = vadd.f32 %v7118_v35, %v7048_v56 }
0x2976   :  { %v7120_v4 = vpop.f32.mrf.mxu1 }
0x2977   :  { %v7125_v1 = vadd.f32 %v7123_v59, %v15663_v47  ;;  %v7124_v18 = vadd.f32 %v7120_v4, %v7050_v57 }
0x2978   :  { %v7215_v46 = vpop.f32.mrf.mxu0 }
0x2979   :  { %v8535_v40 = vmul.f32 -1.442695, %v7125_v1  ;;  %v7126_v51 = vadd.f32 %v7124_v18, %v15664_v13 }
0x297b   :  { %9908 = vpow2.f32 %v8535_v40  ;;  %v8536_v54 = vmul.f32 -1.442695, %v7126_v51  ;;  %v7217_v40 = vpop.f32.mrf.mxu0 }
0x297c   :  { %9910 = vtanh.f32 %v7126_v51 }
0x2988   :  { %v9909_v39 = vpop.eup %9908 }
0x2989   :  { %v7130_v37 = vadd.f32 1.0, %v9909_v39  ;;  %v9911_v20 = vpop.eup %9910 }
0x298b   :  { %9912 = vrcp.f32 %v7130_v37 }
0x298c   :  { %9914 = vpow2.f32 %v8536_v54 }
0x2998   :  { %v9913_v36 = vpop.eup %9912 }
0x2999   :  { %v7141_v53 = vmul.f32 %v9913_v36, %v9911_v20  ;;  %v9915_v19 = vpop.eup %9914  ;;  %v7140_v49 = vmul.f32 %v9913_v36, %v14241_v44  ;;  %v14588_v44 = vld [vmem:[%s15078_s18 + $0x70] sm:$0xff] }
0x299a   :  { %v7137_v10 = vadd.f32 1.0, %v9915_v19 }
0x299b   :  { %7143 = vrot.lane.b32.xlu0 %v7141_v53, %s10367_s1 }
0x299c   :  { %9916 = vrcp.f32 %v7137_v10 }
0x29a9   :  { %v9917_v50 = vpop.eup %9916 }
0x2a0d   :  { %v7144_v6 = vpop.permute.xlu0 %7143 }
0x2a0e   :  { %v14577_v60 = vadd.f32 %v7144_v6, %v7140_v49 }
0x2a10   :  { %9918 = vtanh.f32 %v14577_v60 }
0x2a1d   :  { %v9919_v58 = vpop.eup %9918 }
0x2a1e   :  { %v7148_v16 = vmul.f32 %v9919_v58, %v9917_v50  ;;  %v15837_v58 = vld [vmem:[#allocation66_spill] sm:$0xff] }
0x2a20   :  { %7221 = vrot.lane.b32.xlu0 %v7148_v16, %s10367_s1  ;;  %v15838_v16 = vld [vmem:[#allocation68_spill] sm:$0xff] }
0x2a92   :  { %v14581_v30 = vpop.permute.xlu0 %7221 }
0x2a93   :  { %8538 = vmatmul.mubr.msk.f32.vlgmr.msra.gmra.mxu1 %vm488_vm6, %v14581_v30 }
0x2a94   :  { %7413 = vmatpush1.msra.mxu1 %v14588_v44  ;;  %7460 = vmatprep.mubr.f32.mxu1 %v15444_v38 }
0x2a95   :  { %7414 = vmatprep.subr.mxu1 %v14595_v11 }
0x2a96   :  { %7415 = vmatpush1.msra.mxu1 %v14601_v14 }
0x2a97   :  { %7416 = vmatprep.subr.mxu1 %v14607_v7 }
0x2a98   :  { %7417 = vmatpush1.msra.mxu1 %v14613_v52 }
0x2a99   :  { %7418 = vmatprep.subr.mxu1 %v14619_v12 }
0x2a9a   :  { %7419 = vmatpush1.msra.mxu1 %v14625_v3 }
0x2a9b   :  { %7420 = vmatprep.subr.mxu1 %v14631_v41 }
0x2a9c   :  { %7421 = vmatpush1.msra.mxu1 %v14637_v61 }
0x2a9d   :  { %7422 = vmatprep.subr.mxu1 %v14643_v9 }
0x2a9e   :  { %7423 = vmatpush1.msra.mxu1 %v14649_v48 }
0x2a9f   :  { %7424 = vmatprep.subr.mxu1 %v14655_v32 }
0x2aa0   :  { %7425 = vmatpush1.msra.mxu1 %v14661_v27 }
0x2aa1   :  { %7426 = vmatprep.subr.mxu1 %v14667_v0 }
0x2aa2   :  { %7427 = vmatpush1.msra.mxu1 %v14673_v25 }
0x2aa3   :  { %7625 = vmatprep.subr.mxu1 %v14268_v15 }
0x2b53   :  { %v7291_v24 = vpop.f32.mrf.mxu1 }
0x2b54   :  { %v7292_v56 = vadd.f32 %v7291_v24, %v7215_v46  ;;  %v15839_v46 = vld [vmem:[#allocation70_spill] sm:$0xff]  ;;  %v15840_v24 = vld [vmem:[#allocation72_spill] sm:$0xff] }
0x2b55   :  { %v7293_v1 = vpop.f32.mrf.mxu1 }
0x2b56   :  { %v7296_v35 = vadd.f32 %v7292_v56, %v15681_v28  ;;  %v7294_v62 = vadd.f32 %v7293_v1, %v7217_v40  ;;  %v15841_v56 = vld [vmem:[#allocation73_spill] sm:$0xff]  ;;  %v15847_v1 = vld [vmem:[#allocation79_spill] sm:$0xff] }
0x2b57   :  { %v10288_v40 = vld [vmem:[%s15076_s16 + $0x78] sm:$0xff] }
0x2b58   :  { %v8539_v59 = vmul.f32 -1.442695, %v7296_v35  ;;  %v7297_v4 = vadd.f32 %v7294_v62, %v15682_v22  ;;  %v15842_v35 = vld [vmem:[#allocation74_spill] sm:$0xff]  ;;  %v7386_v62 = vpop.f32.mrf.mxu0 }
0x2b5a   :  { %9920 = vpow2.f32 %v8539_v59  ;;  %v8540_v15 = vmul.f32 -1.442695, %v7297_v4  ;;  %v15844_v59 = vld [vmem:[#allocation76_spill] sm:$0xff] }
0x2b5b   :  { %9922 = vtanh.f32 %v7297_v4 }
0x2b67   :  { %v9921_v57 = vpop.eup %9920 }
0x2b68   :  { %v7301_v18 = vadd.f32 1.0, %v9921_v57  ;;  %v9923_v51 = vpop.eup %9922 }
0x2b6a   :  { %9924 = vrcp.f32 %v7301_v18  ;;  %v15848_v18 = vld [vmem:[#allocation77_spill] sm:$0xff] }
0x2b6b   :  { %9926 = vpow2.f32 %v8540_v15  ;;  %v7388_v15 = vpop.f32.mrf.mxu0 }
0x2b77   :  { %v9925_v39 = vpop.eup %9924 }
0x2b78   :  { %v7312_v37 = vmul.f32 %v9925_v39, %v9923_v51  ;;  %v9927_v20 = vpop.eup %9926  ;;  %v7311_v53 = vmul.f32 %v9925_v39, %v14275_v45  ;;  %v15836_v45 = vld [vmem:[#allocation64_spill] sm:$0xff] }
0x2b79   :  { %v7308_v36 = vadd.f32 1.0, %v9927_v20 }
0x2b7a   :  { %7314 = vrot.lane.b32.xlu1 %v7312_v37, %s10367_s1 }
0x2b7b   :  { %9928 = vrcp.f32 %v7308_v36  ;;  %v15849_v36 = vld [vmem:[#allocation78_spill] sm:$0xff] }
0x2b88   :  { %v9929_v10 = vpop.eup %9928 }
0x2bec   :  { %v7315_v54 = vpop.permute.xlu1 %7314 }
0x2bed   :  { %v14681_v19 = vadd.f32 %v7315_v54, %v7311_v53 }
0x2bef   :  { %9930 = vtanh.f32 %v14681_v19 }
0x2bfc   :  { %v9931_v49 = vpop.eup %9930 }
0x2bfd   :  { %v7319_v6 = vmul.f32 %v9931_v49, %v9929_v10 }
0x2bff   :  { %7392 = vrot.lane.b32.xlu0 %v7319_v6, %s10367_s1 }
0x2c71   :  { %v14685_v50 = vpop.permute.xlu0 %7392 }
0x2c72   :  { %8542 = vmatmul.mubr.msk.f32.vlgmr.msra.gmra.mxu1 %vm488_vm6, %v14685_v50 }
0x2c73   :  { %7626 = vmatpush1.msra.mxu1 %v14286_v42  ;;  %7673 = vmatprep.mubr.f32.mxu1 %v15444_v38  ;;  %v15843_v42 = vld [vmem:[#allocation75_spill] sm:$0xff] }
0x2c74   :  { %7627 = vmatprep.subr.mxu1 %v14293_v17  ;;  %v15845_v17 = vld [vmem:[#allocation52_spill] sm:$0xff] }
0x2c75   :  { %7628 = vmatpush1.msra.mxu1 %v14299_v29  ;;  %v15846_v29 = vld [vmem:[#allocation53_spill] sm:$0xff] }
0x2c76   :  { %7629 = vmatprep.subr.mxu1 %v15836_v45 }
0x2c77   :  { %7630 = vmatpush1.msra.mxu1 %v15837_v58 }
0x2c78   :  { %7631 = vmatprep.subr.mxu1 %v15838_v16 }
0x2c79   :  { %7632 = vmatpush1.msra.mxu1 %v15839_v46 }
0x2c7a   :  { %7633 = vmatprep.subr.mxu1 %v15840_v24  ;;  %v15850_v24 = vld [vmem:[#allocation80_spill] sm:$0xff] }
0x2c7b   :  { %7634 = vmatpush1.msra.mxu1 %v15841_v56 }
0x2c7c   :  { %7635 = vmatprep.subr.mxu1 %v15842_v35 }
0x2c7d   :  { %7636 = vmatpush1.msra.mxu1 %v15843_v42 }
0x2c7e   :  { %7637 = vmatprep.subr.mxu1 %v15844_v59 }
0x2c7f   :  { %7638 = vmatpush1.msra.mxu1 %v15845_v17 }
0x2c80   :  { %7639 = vmatprep.subr.mxu1 %v15846_v29 }
0x2c81   :  { %7640 = vmatpush1.msra.mxu1 %v15847_v1  ;;  %v15851_v1 = vld [vmem:[#allocation82_spill] sm:$0xff] }
0x2c82   :  { %7793 = vmatprep.subr.mxu1 %v10288_v40 }
0x2d32   :  { %v7462_v4 = vpop.f32.mrf.mxu1 }
0x2d33   :  { %v7463_v57 = vadd.f32 %v7462_v4, %v7386_v62 }
0x2d34   :  { %v7464_v37 = vpop.f32.mrf.mxu1 }
0x2d35   :  { %v7467_v51 = vadd.f32 %v7463_v57, %v15848_v18  ;;  %v7465_v20 = vadd.f32 %v7464_v37, %v7388_v15 }
0x2d37   :  { %v8543_v39 = vmul.f32 -1.442695, %v7467_v51  ;;  %v7468_v53 = vadd.f32 %v7465_v20, %v15849_v36 }
0x2d39   :  { %9932 = vpow2.f32 %v8543_v39  ;;  %v8544_v58 = vmul.f32 -1.442695, %v7468_v53 }
0x2d3a   :  { %9934 = vtanh.f32 %v7468_v53 }
0x2d46   :  { %v9933_v54 = vpop.eup %9932 }
0x2d47   :  { %v7472_v10 = vadd.f32 1.0, %v9933_v54  ;;  %v9935_v49 = vpop.eup %9934 }
0x2d49   :  { %9936 = vrcp.f32 %v7472_v10 }
0x2d4a   :  { %9938 = vpow2.f32 %v8544_v58 }
0x2d56   :  { %v9937_v6 = vpop.eup %9936 }
0x2d57   :  { %v7483_v45 = vmul.f32 %v9937_v6, %v9935_v49  ;;  %v9939_v16 = vpop.eup %9938  ;;  %v7482_v56 = vmul.f32 %v9937_v6, %v15850_v24 }
0x2d58   :  { %v7479_v46 = vadd.f32 1.0, %v9939_v16 }
0x2d59   :  { %7485 = vrot.lane.b32.xlu0 %v7483_v45, %s10367_s1 }
0x2d5a   :  { %9940 = vrcp.f32 %v7479_v46 }
0x2d67   :  { %v9941_v59 = vpop.eup %9940 }
0x2dcb   :  { %v7486_v35 = vpop.permute.xlu0 %7485 }
0x2dcc   :  { %v14712_v42 = vadd.f32 %v7486_v35, %v7482_v56 }
0x2dce   :  { %9942 = vtanh.f32 %v14712_v42 }
0x2ddb   :  { %v9943_v17 = vpop.eup %9942 }
0x2ddc   :  { %v7490_v29 = vmul.f32 %v9943_v17, %v9941_v59 }
0x2dde   :  { %v7494_v40 = vrot.slane %v7490_v29, %v15851_v1 }
0x2de0   :  { %v7495_v62 = vmul.f32 %v7494_v40, %v13232_v43 }
0x2de2   :  { %7497 = vrot.lane.b32.xlu0 %v7495_v62, %s10367_s1 }
0x2e54   :  { %v7498_v4 = vpop.permute.xlu0 %7497 }
0x2e55   :  { %v7500_v57 = vsel %vm488_vm6, %v7498_v4, 0.0 }
0x2e56   :  { %7501 = vadd.xlane.f32.xlu0 %v7500_v57 }
0x2edf   :  { %v7502_v51 = vpop.xlane.xlu0 %7501 }
0x2ee0   :  { %v7503_v39 = vrot.slane %v7502_v51, 4 }
0x2ee2   :  { %v7504_v37 = vmax.f32 %v7502_v51, %v7503_v39 }
0x2ee4   :  { %v7505_v15 = vrot.slane %v7504_v37, 2 }
0x2ee6   :  { %v7506_v20 = vmax.f32 %v7504_v37, %v7505_v15 }
0x2ee8   :  { %v7507_v53 = vrot.slane %v7506_v20, 1 }
0x2eea   :  { %v7508_v54 = vmax.f32 %v7506_v20, %v7507_v53  ;;  %v10289_v20 = vld [vmem:[%s15073_s13 + $0x70] sm:$0xff]  ;;  %v10290_v53 = vld [vmem:[%s15073_s13 + $0x68] sm:$0xff] }
0x2eec   :  { %v7509_v10 = vsub.f32 %v7502_v51, %v7508_v54  ;;  %v10291_v54 = vld [vmem:[%s15073_s13 + $0x60] sm:$0xff] }
0x2eee   :  { %v7510_v49 = vmul.f32 1.442695, %v7509_v10  ;;  %v10292_v10 = vld [vmem:[%s15073_s13 + $0x58] sm:$0xff] }
0x2ef0   :  { %9944 = vpow2.f32 %v7510_v49  ;;  %v10293_v49 = vld [vmem:[%s15073_s13 + $0x50] sm:$0xff] }
0x2efd   :  { %v9945_v6 = vpop.eup %9944 }
0x2efe   :  { %v7512_v45 = vrot.slane %v9945_v6, 4 }
0x2f00   :  { %v7513_v58 = vadd.f32 %v9945_v6, %v7512_v45  ;;  %v10295_v45 = vld [vmem:[%s15073_s13 + $0x40] sm:$0xff] }
0x2f02   :  { %v7514_v16 = vrot.slane %v7513_v58, 2 }
0x2f04   :  { %v7515_v46 = vadd.f32 %v7514_v16, %v7513_v58  ;;  %v10296_v58 = vld [vmem:[%s15073_s13 + $0x38] sm:$0xff]  ;;  %v10309_v16 = vld [vmem:[%s15075_s15 + $0x70] sm:$0xff] }
0x2f06   :  { %v7516_v24 = vrot.slane %v7515_v46, 1 }
0x2f08   :  { %v7517_v56 = vadd.f32 %v7516_v24, %v7515_v46  ;;  %v10310_v46 = vld [vmem:[%s15079_s19 + $0x78] sm:$0xff]  ;;  %v10311_v24 = vld [vmem:[%s15079_s19 + $0x70] sm:$0xff] }
0x2f0a   :  { %9946 = vrcp.f32 %v7517_v56  ;;  %v10312_v56 = vld [vmem:[%s15079_s19 + $0x68] sm:$0xff] }
0x2f17   :  { %v9947_v35 = vpop.eup %9946 }
0x2f18   :  { %v7519_v59 = vmul.f32 %v9947_v35, %v9945_v6  ;;  %v10294_v6 = vld [vmem:[%s15073_s13 + $0x48] sm:$0xff]  ;;  %v10314_v35 = vld [vmem:[%s15079_s19 + $0x60] sm:$0xff] }
0x2f1a   :  { %v7520_v17 = vmul.f32 %v7519_v59, %v13232_v43  ;;  %v10315_v59 = vld [vmem:[%s15075_s15 + $0x60] sm:$0xff] }
0x2f1c   :  { %v7521_v40 = vsel %vm5008_vm2, %v7520_v17, 0.0  ;;  %v10316_v17 = vld [vmem:[%s15079_s19 + $0x58] sm:$0xff] }
0x2f1d   :  { %v7522_v62 = vrot.slane %v7521_v40, 4 }
0x2f1f   :  { %v7523_v4 = vadd.f32 %v7522_v62, %v7521_v40  ;;  %v10317_v40 = vld [vmem:[%s15075_s15 + $0x58] sm:$0xff]  ;;  %v10318_v62 = vld [vmem:[%s15079_s19 + $0x50] sm:$0xff] }
0x2f21   :  { %v7524_v57 = vrot.slane %v7523_v4, 2 }
0x2f23   :  { %v7525_v51 = vadd.f32 %v7524_v57, %v7523_v4  ;;  %v10319_v4 = vld [vmem:[%s15075_s15 + $0x50] sm:$0xff]  ;;  %v10320_v57 = vld [vmem:[%s15079_s19 + $0x48] sm:$0xff] }
0x2f25   :  { %v7526_v39 = vrot.slane %v7525_v51, 1 }
0x2f27   :  { %v7527_v37 = vadd.f32 %v7526_v39, %v7525_v51  ;;  %v10321_v51 = vld [vmem:[%s15075_s15 + $0x48] sm:$0xff]  ;;  %v10322_v39 = vld [vmem:[%s15079_s19 + $0x40] sm:$0xff] }
0x2f29   :  { %7529 = vrot.lane.b32.xlu1 %v7527_v37, %s10367_s1  ;;  %v10323_v37 = vld [vmem:[%s15075_s15 + $0x40] sm:$0xff] }
0x2f2d   :  { %7605 = vrot.lane.b32.xlu1 %v7490_v29, %s10367_s1 }
0x2f9b   :  { %v7530_v15 = vpop.permute.xlu1 %7529 }
0x2f9c   :  { %8545 = vmatmul.mubr.msk.f32.vlgmr.msra.gmra.mxu0 %vm488_vm6, %v7530_v15  ;;  %v10324_v15 = vld [vmem:[%s15079_s19 + $0x38] sm:$0xff] }
0x2f9d   :  { %7697 = vmatpush1.msra.mxu0 %v10289_v20  ;;  %7744 = vmatprep.mubr.f32.mxu0 %v15444_v38  ;;  %v10325_v20 = vld [vmem:[%s15075_s15 + $0x38] sm:$0xff] }
0x2f9e   :  { %7698 = vmatprep.subr.mxu0 %v10290_v53  ;;  %v10326_v53 = vld [vmem:[%s15079_s19 + $0x30] sm:$0xff] }
0x2f9f   :  { %7699 = vmatpush1.msra.mxu0 %v10291_v54  ;;  %v14734_v29 = vpop.permute.xlu1 %7605  ;;  %v10327_v54 = vld [vmem:[%s15075_s15 + $0x30] sm:$0xff] }
0x2fa0   :  { %7700 = vmatprep.subr.mxu0 %v10292_v10  ;;  %8546 = vmatmul.mubr.msk.f32.vlgmr.msra.gmra.mxu1 %vm488_vm6, %v14734_v29  ;;  %v10328_v10 = vld [vmem:[%s15079_s19 + $0x28] sm:$0xff] }
0x2fa1   :  { %7701 = vmatpush1.msra.mxu0 %v10293_v49  ;;  %7794 = vmatpush1.msra.mxu1 %v14404_v23  ;;  %v10297_v23 = vld [vmem:[%s15073_s13 + $0x30] sm:$0xff]  ;;  %v10329_v49 = vld [vmem:[%s15075_s15 + $0x28] sm:$0xff] }
0x2fa2   :  { %7702 = vmatprep.subr.mxu0 %v10294_v6  ;;  %7795 = vmatprep.subr.mxu1 %v14411_v26  ;;  %v10298_v26 = vld [vmem:[%s15073_s13 + $0x28] sm:$0xff]  ;;  %v10330_v6 = vld [vmem:[%s15079_s19 + $0x20] sm:$0xff] }
0x2fa3   :  { %7703 = vmatpush1.msra.mxu0 %v10295_v45  ;;  %7796 = vmatpush1.msra.mxu1 %v14418_v33  ;;  %v10299_v33 = vld [vmem:[%s15073_s13 + $0x20] sm:$0xff] }
0x2fa4   :  { %7704 = vmatprep.subr.mxu0 %v10296_v58  ;;  %7797 = vmatprep.subr.mxu1 %v14425_v63  ;;  %v10300_v63 = vld [vmem:[%s15073_s13 + $0x18] sm:$0xff]  ;;  %v10331_v45 = vld [vmem:[%s15075_s15 + $0x20] sm:$0xff] }
0x2fa5   :  { %7705 = vmatpush1.msra.mxu0 %v10297_v23  ;;  %7798 = vmatpush1.msra.mxu1 %v14432_v5  ;;  %v10301_v5 = vld [vmem:[%s15073_s13 + $0x10] sm:$0xff]  ;;  %v10332_v58 = vld [vmem:[%s15079_s19 + $0x18] sm:$0xff] }
0x2fa6   :  { %7706 = vmatprep.subr.mxu0 %v10298_v26  ;;  %7799 = vmatprep.subr.mxu1 %v14439_v55  ;;  %v10302_v55 = vld [vmem:[%s15073_s13 + $0x8] sm:$0xff]  ;;  %v10333_v23 = vld [vmem:[%s15075_s15 + $0x18] sm:$0xff]  ;;  %v10334_v26 = vld [vmem:[%s15079_s19 + $0x10] sm:$0xff] }
0x2fa7   :  { %7707 = vmatpush1.msra.mxu0 %v10299_v33  ;;  %7800 = vmatpush1.msra.mxu1 %v14446_v2  ;;  %v10303_v2 = vld [vmem:[%s15073_s13] sm:$0xff]  ;;  %v10335_v33 = vld [vmem:[%s15075_s15 + $0x10] sm:$0xff]  ;;  %s10368_s13 = smov [#allocation3]  }
0x2fa8   :  { %7708 = vmatprep.subr.mxu0 %v10300_v63  ;;  %7801 = vmatprep.subr.mxu1 %v14453_v8  ;;  %v10304_v8 = vld [vmem:[%s15076_s16 + $0x18] sm:$0xff]  ;;  %v10336_v63 = vld [vmem:[%s15079_s19 + $0x8] sm:$0xff]  ;;  %s8415_s5 = sshll.u32 %s10368_s13, 4  ;;  %s8416_s5 = int_to_ptr.vmem [resolvable:$true] %s8415_s5 }
0x2fa9   :  { %7709 = vmatpush1.msra.mxu0 %v10301_v5  ;;  %7802 = vmatpush1.msra.mxu1 %v14460_v21  ;;  %v10305_v21 = vld [vmem:[%s15076_s16 + $0x10] sm:$0xff]  ;;  %v10337_v5 = vld [vmem:[%s15075_s15 + $0x8] sm:$0xff]  ;;  %s10345_s4 = scalar_lea.vmem %s8416_s5, 32  ;;  %p10346_p1 = scmp.lt.s32.totalorder %s8416_s5, %s8416_s5 }
0x2faa   :  { %7710 = vmatprep.subr.mxu0 %v10302_v55  ;;  %7803 = vmatprep.subr.mxu1 %v14467_v31  ;;  %v10306_v31 = vld [vmem:[%s15076_s16 + $0x8] sm:$0xff]  ;;  %v10338_v55 = vld [vmem:[%s15079_s19] sm:$0xff] }
0x2fab   :  { %7711 = vmatpush1.msra.mxu0 %v10303_v2  ;;  %7804 = vmatpush1.msra.mxu1 %v14474_v34  ;;  %v10307_v34 = vld [vmem:[%s15075_s15 + $0x78] sm:$0xff]  ;;  %v10339_v2 = vld [vmem:[%s15075_s15] sm:$0xff] }
0x2fac   :  { %8547 = vmatmul.mubr.msk.f32.vlgmr.msra.gmra.mxu0 %vm488_vm6, %v14581_v30  ;;  %7805 = vmatprep.subr.mxu1 %v10304_v8  ;;  %v10308_v30 = vld [vmem:[%s15076_s16] sm:$0xff]  ;;  %v10340_v8 = vld [vmem:[%s15078_s18 + $0x78] sm:$0xff] }
0x2fad   :  { %7806 = vmatpush1.msra.mxu1 %v10305_v21  ;;  %7841 = vmatprep.mubr.f32.mxu1 %v15444_v38 }
0x2fae   :  { %7807 = vmatprep.subr.mxu1 %v10306_v31  ;;  %7869 = vmatprep.subr.mxu0 %v10307_v34 }
0x2faf   :  { %7808 = vmatpush1.msra.mxu1 %v10308_v30  ;;  %7870 = vmatpush1.msra.mxu0 %v10309_v16 }
0x2fb0   :  { %8550 = vmatmul.mubr.msk.f32.vlgmr.msra.gmra.mxu1 %vm488_vm6, %v14685_v50  ;;  %7964 = vmatprep.subr.mxu1 %v10310_v46  ;;  %v10313_v50 = vld [vmem:[%s15075_s15 + $0x68] sm:$0xff] }
0x2fb1   :  { %7965 = vmatpush1.msra.mxu1 %v10311_v24  ;;  %8012 = vmatprep.mubr.f32.mxu1 %v15444_v38 }
0x2fb2   :  { %7966 = vmatprep.subr.mxu1 %v10312_v56  ;;  %7871 = vmatprep.subr.mxu0 %v10313_v50 }
0x2fb3   :  { %7967 = vmatpush1.msra.mxu1 %v10314_v35  ;;  %7872 = vmatpush1.msra.mxu0 %v10315_v59 }
0x2fb4   :  { %7968 = vmatprep.subr.mxu1 %v10316_v17  ;;  %7873 = vmatprep.subr.mxu0 %v10317_v40 }
0x2fb5   :  { %7969 = vmatpush1.msra.mxu1 %v10318_v62  ;;  %7874 = vmatpush1.msra.mxu0 %v10319_v4 }
0x2fb6   :  { %7970 = vmatprep.subr.mxu1 %v10320_v57  ;;  %7875 = vmatprep.subr.mxu0 %v10321_v51 }
0x2fb7   :  { %7971 = vmatpush1.msra.mxu1 %v10322_v39  ;;  %7876 = vmatpush1.msra.mxu0 %v10323_v37 }
0x2fb8   :  { %7972 = vmatprep.subr.mxu1 %v10324_v15  ;;  %7877 = vmatprep.subr.mxu0 %v10325_v20 }
0x2fb9   :  { %7973 = vmatpush1.msra.mxu1 %v10326_v53  ;;  %7878 = vmatpush1.msra.mxu0 %v10327_v54 }
0x2fba   :  { %7974 = vmatprep.subr.mxu1 %v10328_v10  ;;  %7879 = vmatprep.subr.mxu0 %v10329_v49 }
0x2fbb   :  { %7975 = vmatpush1.msra.mxu1 %v10330_v6  ;;  %7880 = vmatpush1.msra.mxu0 %v10331_v45 }
0x2fbc   :  { %7976 = vmatprep.subr.mxu1 %v10332_v58  ;;  %7881 = vmatprep.subr.mxu0 %v10333_v23 }
0x2fbd   :  { %7977 = vmatpush1.msra.mxu1 %v10334_v26  ;;  %7882 = vmatpush1.msra.mxu0 %v10335_v33 }
0x2fbe   :  { %7978 = vmatprep.subr.mxu1 %v10336_v63  ;;  %7883 = vmatprep.subr.mxu0 %v10337_v5 }
0x2fbf   :  { %7979 = vmatpush1.msra.mxu1 %v10338_v55  ;;  %7884 = vmatpush1.msra.mxu0 %v10339_v2 }
0x2fc0   :  { %8554 = vmatmul.mubr.msk.f32.vlgmr.msra.gmra.mxu1 %vm488_vm6, %v14734_v29  ;;  %7917 = vmatprep.mubr.f32.mxu0 %v15444_v38 }
0x2fc1   :  { %8040 = vmatprep.subr.mxu0 %v10340_v8  ;;  %9666 = vmatprep.subr.mxu1 %v15444_v38 }
0x2fc2   :  { %9682 = vmatprep.mubr.msk.f32.mxu1 %vm10364_vm1, %v15444_v38 }
0x305c   :  { %v7599_v21 = vpop.f32.mrf.mxu0 }
0x305e   :  { %v7601_v34 = vpop.f32.mrf.mxu0 }
0x3060   :  { %v7675_v31 = vpop.f32.mrf.mxu1 }
0x3061   :  { %v7676_v30 = vadd.f32 %v7675_v31, %v7599_v21 }
0x3062   :  { %v7677_v56 = vpop.f32.mrf.mxu1 }
0x3063   :  { %v7678_v35 = vadd.f32 %v7677_v56, %v7601_v34 }
0x306c   :  { %v7746_v16 = vpop.f32.mrf.mxu0 }
0x306d   :  { %v7751_v46 = vadd.f32 %v7746_v16, %v7676_v30 }
0x306e   :  { %v7748_v50 = vpop.f32.mrf.mxu0 }
0x306f   :  { %v7753_v29 = vadd.f32 %v7751_v46, %v15663_v47  ;;  %v7752_v59 = vadd.f32 %v7748_v50, %v7678_v35 }
0x3071   :  { %v8548_v24 = vmul.f32 -1.442695, %v7753_v29  ;;  %v7754_v17 = vadd.f32 %v7752_v59, %v15664_v13 }
0x3073   :  { %9948 = vpow2.f32 %v8548_v24  ;;  %v8549_v39 = vmul.f32 -1.442695, %v7754_v17 }
0x3074   :  { %9950 = vtanh.f32 %v7754_v17 }
0x3080   :  { %v9949_v40 = vpop.eup %9948 }
0x3081   :  { %v7758_v62 = vadd.f32 1.0, %v9949_v40  ;;  %v9951_v4 = vpop.eup %9950 }
0x3083   :  { %9952 = vrcp.f32 %v7758_v62 }
0x3084   :  { %9954 = vpow2.f32 %v8549_v39 }
0x3090   :  { %v9953_v57 = vpop.eup %9952 }
0x3091   :  { %v7769_v51 = vmul.f32 %v9953_v57, %v9951_v4  ;;  %v9955_v47 = vpop.eup %9954  ;;  %v7768_v15 = vmul.f32 %v9953_v57, %v14577_v60  ;;  %v7843_v60 = vpop.f32.mrf.mxu1 }
0x3092   :  { %v7765_v37 = vadd.f32 1.0, %v9955_v47  ;;  %v8170_v47 = vld [vmem:[%s15082_s22 + $0x30] sm:$0xff] }
0x3093   :  { %7771 = vrot.lane.b32.xlu1 %v7769_v51, %s10367_s1 }
0x3094   :  { %9956 = vrcp.f32 %v7765_v37  ;;  %v8162_v37 = vld [vmem:[%s15081_s21 + $0x30] sm:$0xff] }
0x30a1   :  { %v9957_v13 = vpop.eup %9956 }
0x3105   :  { %v7772_v20 = vpop.permute.xlu1 %7771 }
0x3106   :  { %v7774_v53 = vadd.f32 %v7772_v20, %v7768_v15  ;;  %v8169_v15 = vld [vmem:[%s15082_s22 + $0x28] sm:$0xff] }
0x3107   :  { %v8161_v20 = vld [vmem:[%s15081_s21 + $0x28] sm:$0xff] }
0x3108   :  { %9958 = vtanh.f32 %v7774_v53  ;;  %v8168_v53 = vld [vmem:[%s15082_s22 + $0x20] sm:$0xff] }
0x3115   :  { %v9959_v54 = vpop.eup %9958 }
0x3116   :  { %v7776_v10 = vmul.f32 %v9959_v54, %v9957_v13  ;;  %v8160_v13 = vld [vmem:[%s15081_s21 + $0x20] sm:$0xff]  ;;  %v8167_v54 = vld [vmem:[%s15082_s22 + $0x18] sm:$0xff] }
0x3118   :  { %7849 = vrot.lane.b32.xlu1 %v7776_v10, %s10367_s1  ;;  %v8159_v10 = vld [vmem:[%s15081_s21 + $0x18] sm:$0xff] }
0x318a   :  { %v7850_v49 = vpop.permute.xlu1 %7849 }
0x318b   :  { %8551 = vmatmul.mubr.msk.f32.vlgmr.msra.gmra.mxu0 %vm488_vm6, %v7850_v49  ;;  %v8166_v49 = vld [vmem:[%s15082_s22 + $0x10] sm:$0xff] }
0x318c   :  { %8041 = vmatpush1.msra.mxu0 %v14588_v44  ;;  %8088 = vmatprep.mubr.f32.mxu0 %v15444_v38 }
0x318d   :  { %8042 = vmatprep.subr.mxu0 %v14595_v11 }
0x318e   :  { %8043 = vmatpush1.msra.mxu0 %v14601_v14 }
0x318f   :  { %8044 = vmatprep.subr.mxu0 %v14607_v7 }
0x3190   :  { %8045 = vmatpush1.msra.mxu0 %v14613_v52 }
0x3191   :  { %8046 = vmatprep.subr.mxu0 %v14619_v12  ;;  %v7845_v12 = vpop.f32.mrf.mxu1 }
0x3192   :  { %8047 = vmatpush1.msra.mxu0 %v14625_v3 }
0x3193   :  { %8048 = vmatprep.subr.mxu0 %v14631_v41  ;;  %v8014_v63 = vpop.f32.mrf.mxu1 }
0x3194   :  { %8049 = vmatpush1.msra.mxu0 %v14637_v61 }
0x3195   :  { %8050 = vmatprep.subr.mxu0 %v14643_v9  ;;  %v8016_v21 = vpop.f32.mrf.mxu1 }
0x3196   :  { %8051 = vmatpush1.msra.mxu0 %v14649_v48 }
0x3197   :  { %8052 = vmatprep.subr.mxu0 %v14655_v32 }
0x3198   :  { %8053 = vmatpush1.msra.mxu0 %v14661_v27 }
0x3199   :  { %8054 = vmatprep.subr.mxu0 %v14667_v0 }
0x319a   :  { %8055 = vmatpush1.msra.mxu0 %v14673_v25 }
0x319b   :  { %9685 = vmatprep.subr.mxu0 %v15444_v38 }
0x324b   :  { %v7919_v44 = vpop.f32.mrf.mxu0 }
0x324c   :  { %v7920_v11 = vadd.f32 %v7919_v44, %v7843_v60  ;;  %v8158_v60 = vld [vmem:[%s15081_s21 + $0x10] sm:$0xff]  ;;  %v8165_v44 = vld [vmem:[%s15082_s22 + $0x8] sm:$0xff] }
0x324d   :  { %v7921_v52 = vpop.f32.mrf.mxu0 }
0x324e   :  { %v7924_v14 = vadd.f32 %v7920_v11, %v15681_v28  ;;  %v7922_v3 = vadd.f32 %v7921_v52, %v7845_v12  ;;  %v8164_v11 = vld [vmem:[%s15082_s22] sm:$0xff] }
0x3250   :  { %v8552_v7 = vmul.f32 -1.442695, %v7924_v14  ;;  %v7925_v41 = vadd.f32 %v7922_v3, %v15682_v22 }
0x3252   :  { %9960 = vpow2.f32 %v8552_v7  ;;  %v8553_v0 = vmul.f32 -1.442695, %v7925_v41 }
0x3253   :  { %9962 = vtanh.f32 %v7925_v41 }
0x325f   :  { %v9961_v61 = vpop.eup %9960 }
0x3260   :  { %v7929_v9 = vadd.f32 1.0, %v9961_v61  ;;  %v9963_v48 = vpop.eup %9962 }
0x3262   :  { %9964 = vrcp.f32 %v7929_v9 }
0x3263   :  { %9966 = vpow2.f32 %v8553_v0 }
0x326f   :  { %v9965_v32 = vpop.eup %9964 }
0x3270   :  { %v7940_v27 = vmul.f32 %v9965_v32, %v9963_v48  ;;  %v9967_v25 = vpop.eup %9966  ;;  %v7939_v6 = vmul.f32 %v9965_v32, %v14681_v19 }
0x3271   :  { %v7936_v28 = vadd.f32 1.0, %v9967_v25 }
0x3272   :  { %7942 = vrot.lane.b32.xlu1 %v7940_v27, %s10367_s1 }
0x3273   :  { %9968 = vrcp.f32 %v7936_v28 }
0x3280   :  { %v9969_v22 = vpop.eup %9968 }
0x32e4   :  { %v7943_v45 = vpop.permute.xlu1 %7942 }
0x32e5   :  { %v7945_v58 = vadd.f32 %v7943_v45, %v7939_v6 }
0x32e7   :  { %9970 = vtanh.f32 %v7945_v58 }
0x32f4   :  { %v9971_v23 = vpop.eup %9970 }
0x32f5   :  { %v7947_v26 = vmul.f32 %v9971_v23, %v9969_v22 }
0x32f7   :  { %8020 = vrot.lane.b32.xlu1 %v7947_v26, %s10367_s1 }
0x3369   :  { %v8021_v33 = vpop.permute.xlu1 %8020 }
0x336a   :  { %8555 = vmatmul.mubr.msk.f32.vlgmr.msra.gmra.mxu0 %vm488_vm6, %v8021_v33  ;;  %v8157_v33 = vld [vmem:[%s15081_s21 + $0x8] sm:$0xff] }
0x336b   :  { %9701 = vmatprep.mubr.msk.f32.mxu0 %vm10364_vm1, %v15444_v38 }
0x342a   :  { %v8090_v5 = vpop.f32.mrf.mxu0 }
0x342b   :  { %v8091_v55 = vadd.f32 %v8090_v5, %v8014_v63  ;;  %v8156_v63 = vld [vmem:[%s15081_s21] sm:$0xff] }
0x342c   :  { %v8092_v8 = vpop.f32.mrf.mxu0 }
0x342d   :  { %v8095_v19 = vadd.f32 %v8091_v55, %v15848_v18  ;;  %v8093_v31 = vadd.f32 %v8092_v8, %v8016_v21  ;;  %v8332_v21 = vld [vmem:[%s15084_s24 + $0x38] sm:$0xff] }
0x342f   :  { %v8556_v2 = vmul.f32 -1.442695, %v8095_v19  ;;  %v8096_v34 = vadd.f32 %v8093_v31, %v15849_v36 }
0x3431   :  { %9972 = vpow2.f32 %v8556_v2  ;;  %v8557_v56 = vmul.f32 -1.442695, %v8096_v34 }
0x3432   :  { %9974 = vtanh.f32 %v8096_v34  ;;  %v8331_v34 = vld [vmem:[%s15084_s24 + $0x30] sm:$0xff] }
0x343e   :  { %v9973_v30 = vpop.eup %9972 }
0x343f   :  { %v8100_v16 = vadd.f32 1.0, %v9973_v30  ;;  %v9975_v46 = vpop.eup %9974 }
0x3441   :  { %9976 = vrcp.f32 %v8100_v16  ;;  %v8330_v16 = vld [vmem:[%s15084_s24 + $0x28] sm:$0xff] }
0x3442   :  { %9978 = vpow2.f32 %v8557_v56  ;;  %v8326_v56 = vld [vmem:[%s15084_s24 + $0x8] sm:$0xff] }
0x344e   :  { %v9977_v29 = vpop.eup %9976 }
0x344f   :  { %v8111_v24 = vmul.f32 %v9977_v29, %v9975_v46  ;;  %v9979_v50 = vpop.eup %9978  ;;  %v8110_v35 = vmul.f32 %v9977_v29, %v14712_v42  ;;  %v8171_v42 = vld [vmem:[%s15082_s22 + $0x38] sm:$0xff]  ;;  %v8329_v46 = vld [vmem:[%s15084_s24 + $0x20] sm:$0xff] }
0x3450   :  { %v8107_v18 = vadd.f32 1.0, %v9979_v50  ;;  %9667 = vmatpush3.msra.mxu1 %v8171_v42  ;;  %v8328_v29 = vld [vmem:[%s15084_s24 + $0x18] sm:$0xff]  ;;  %v8325_v50 = vld [vmem:[%s15084_s24] sm:$0xff] }
0x3451   :  { %8113 = vrot.lane.b32.xlu1 %v8111_v24, %s10367_s1  ;;  %9668 = vmatprep.subr.mxu1 %v15444_v38  ;;  %v8327_v24 = vld [vmem:[%s15084_s24 + $0x10] sm:$0xff]  ;;  %s10341_s24 = scalar_lea.vmem %s8416_s5, 16 }
0x3452   :  { %9980 = vrcp.f32 %v8107_v18  ;;  %9669 = vmatpush3.msra.mxu1 %v8170_v47  ;;  %p10342_p0 = scmp.ne.s32.totalorder %s8416_s5, %s10341_s24  ;;  %p10347_p2 = scmp.lt.s32.totalorder %s10345_s4, %s10341_s24 }
0x3453   :  { %9670 = vmatprep.subr.mxu1 %v15444_v38 }
0x3454   :  { %9671 = vmatpush3.msra.mxu1 %v8169_v15  ;;  %p10348_p3 = por %p10347_p2, %p10346_p1 }
0x3455   :  { %9672 = vmatprep.subr.mxu1 %v15444_v38 }
0x3456   :  { %9673 = vmatpush3.msra.mxu1 %v8168_v53  ;;  %p10349_p4 = pnand %p10348_p3, %p10342_p0 }
0x3457   :  { %9674 = vmatprep.subr.mxu1 %v15444_v38 }
0x3458   :  { %9675 = vmatpush3.msra.mxu1 %v8167_v54 }
0x3459   :  { %9676 = vmatprep.subr.mxu1 %v15444_v38 }
0x345a   :  { %9677 = vmatpush3.msra.mxu1 %v8166_v49 }
0x345b   :  { %9678 = vmatprep.subr.mxu1 %v15444_v38 }
0x345c   :  { %9679 = vmatpush3.msra.mxu1 %v8165_v44 }
0x345d   :  { %9680 = vmatprep.subr.mxu1 %v15444_v38 }
0x345e   :  { %9681 = vmatpush3.msra.mxu1 %v8164_v11 }
0x345f   :  { %v9981_v36 = vpop.eup %9980  ;;  %9704 = vmatprep.subr.mxu1 %v15444_v38 }
0x34c3   :  { %v8114_v59 = vpop.permute.xlu1 %8113 }
0x34c4   :  { %v8116_v17 = vadd.f32 %v8114_v59, %v8110_v35 }
0x34c6   :  { %9982 = vtanh.f32 %v8116_v17  ;;  %v8322_v17 = vld [vmem:[%s15083_s23] sm:$0x1] }
0x34d3   :  { %v9983_v40 = vpop.eup %9982 }
0x34d4   :  { %v14943_v62 = vmul.f32 %v9983_v40, %v9981_v36 }
0x34d6   :  { %v8122_v4 = vrot.slane %v14943_v62, %v15851_v1  ;;  %v8163_v1 = vld [vmem:[%s15081_s21 + $0x38] sm:$0xff] }
0x34d7   :  { %9686 = vmatpush3.msra.mxu0 %v8163_v1 }
0x34d8   :  { %v8123_v57 = vmul.f32 %v8122_v4, %v13232_v43  ;;  %9687 = vmatprep.subr.mxu0 %v15444_v38 }
0x34d9   :  { %9688 = vmatpush3.msra.mxu0 %v8162_v37 }
0x34da   :  { %8125 = vrot.lane.b32.xlu0 %v8123_v57, %s10367_s1  ;;  %9689 = vmatprep.subr.mxu0 %v15444_v38  ;;  %v8333_v57 = vld [vmem:[#allocation2] sm:$0x1] }
0x34db   :  { %9690 = vmatpush3.msra.mxu0 %v8161_v20 }
0x34dc   :  { %9691 = vmatprep.subr.mxu0 %v15444_v38 }
0x34dd   :  { %9692 = vmatpush3.msra.mxu0 %v8160_v13 }
0x34de   :  { %9693 = vmatprep.subr.mxu0 %v15444_v38 }
0x34df   :  { %9694 = vmatpush3.msra.mxu0 %v8159_v10 }
0x34e0   :  { %9695 = vmatprep.subr.mxu0 %v15444_v38 }
0x34e1   :  { %9696 = vmatpush3.msra.mxu0 %v8158_v60 }
0x34e2   :  { %9697 = vmatprep.subr.mxu0 %v15444_v38 }
0x34e3   :  { %9698 = vmatpush3.msra.mxu0 %v8157_v33 }
0x34e4   :  { %9699 = vmatprep.subr.mxu0 %v15444_v38 }
0x34e5   :  { %9700 = vmatpush3.msra.mxu0 %v8156_v63 }
0x354c   :  { %v8126_v51 = vpop.permute.xlu0 %8125 }
0x354d   :  { %v8128_v39 = vsel %vm488_vm6, %v8126_v51, 0.0 }
0x354e   :  { %8129 = vadd.xlane.f32.xlu1 %v8128_v39 }
0x35d7   :  { %v8130_v14 = vpop.xlane.xlu1 %8129 }
0x35d8   :  { %v8131_v7 = vrot.slane %v8130_v14, 4 }
0x35da   :  { %v8132_v52 = vmax.f32 %v8130_v14, %v8131_v7 }
0x35dc   :  { %v8133_v12 = vrot.slane %v8132_v52, 2 }
0x35de   :  { %v8134_v3 = vmax.f32 %v8132_v52, %v8133_v12 }
0x35e0   :  { %v8135_v41 = vrot.slane %v8134_v3, 1 }
0x35e2   :  { %v8136_v61 = vmax.f32 %v8134_v3, %v8135_v41 }
0x35e4   :  { %v8137_v9 = vsub.f32 %v8130_v14, %v8136_v61 }
0x35e6   :  { %v8138_v48 = vmul.f32 1.442695, %v8137_v9 }
0x35e8   :  { %9984 = vpow2.f32 %v8138_v48 }
0x35f5   :  { %v9985_v32 = vpop.eup %9984 }
0x35f6   :  { %v8140_v27 = vrot.slane %v9985_v32, 4 }
0x35f8   :  { %v8141_v0 = vadd.f32 %v9985_v32, %v8140_v27 }
0x35fa   :  { %v8142_v25 = vrot.slane %v8141_v0, 2 }
0x35fc   :  { %v8143_v28 = vadd.f32 %v8142_v25, %v8141_v0 }
0x35fe   :  { %v8144_v6 = vrot.slane %v8143_v28, 1 }
0x3600   :  { %v8145_v45 = vadd.f32 %v8144_v6, %v8143_v28 }
0x3602   :  { %9986 = vrcp.f32 %v8145_v45 }
0x360f   :  { %v9987_v58 = vpop.eup %9986 }
0x3610   :  { %v8147_v22 = vmul.f32 %v9987_v58, %v9985_v32 }
0x3612   :  { %v8148_v23 = vmul.f32 %v8147_v22, %v13232_v43 }
0x3614   :  { %v8149_v26 = vsel %vm5008_vm2, %v8148_v23, 0.0 }
0x3615   :  { %v8150_v5 = vrot.slane %v8149_v26, 4 }
0x3617   :  { %v8151_v55 = vadd.f32 %v8150_v5, %v8149_v26 }
0x3619   :  { %v8152_v19 = vrot.slane %v8151_v55, 2 }
0x361b   :  { %v8153_v2 = vadd.f32 %v8152_v19, %v8151_v55 }
0x361d   :  { %v8154_v8 = vrot.slane %v8153_v2, 1 }
0x361f   :  { %v8155_v43 = vadd.f32 %v8154_v8, %v8153_v2 }
0x3621   :  { %8173 = vrot.lane.b32.xlu0 %v8155_v43, %s10367_s1 }
0x3625   :  { %8248 = vrot.lane.b32.xlu0 %v14943_v62, %s10367_s1 }
0x3693   :  { %v8174_v31 = vpop.permute.xlu0 %8173 }
0x3694   :  { %9683 = vmatmul.mubr.msk.f32.vlgmr.msra.gmra.mxu1 %vm488_vm6, %v8174_v31 }
0x3695   :  { %9705 = vmatpush3.msra.mxu1 %v8332_v21  ;;  %9720 = vmatprep.mubr.msk.f32.mxu1 %vm10364_vm1, %v15444_v38  ;;  %vm8407_vm1 = vcmask 0  }
0x3696   :  { %9706 = vmatprep.subr.mxu1 %v15444_v38 }
0x3697   :  { %v8249_v30 = vpop.permute.xlu0 %8248  ;;  %9707 = vmatpush3.msra.mxu1 %v8331_v34 }
0x3698   :  { %9702 = vmatmul.mubr.msk.f32.vlgmr.msra.gmra.mxu0 %vm488_vm6, %v8249_v30  ;;  %9708 = vmatprep.subr.mxu1 %v15444_v38 }
0x3699   :  { %9709 = vmatpush3.msra.mxu1 %v8330_v16 }
0x369a   :  { %9710 = vmatprep.subr.mxu1 %v15444_v38 }
0x369b   :  { %9711 = vmatpush3.msra.mxu1 %v8329_v46 }
0x369c   :  { %9712 = vmatprep.subr.mxu1 %v15444_v38 }
0x369d   :  { %9713 = vmatpush3.msra.mxu1 %v8328_v29 }
0x369e   :  { %9714 = vmatprep.subr.mxu1 %v15444_v38 }
0x369f   :  { %9715 = vmatpush3.msra.mxu1 %v8327_v24 }
0x36a0   :  { %9716 = vmatprep.subr.mxu1 %v15444_v38 }
0x36a1   :  { %9717 = vmatpush3.msra.mxu1 %v8326_v56 }
0x36a2   :  { %9718 = vmatprep.subr.mxu1 %v15444_v38 }
0x36a3   :  { %9719 = vmatpush3.msra.mxu1 %v8325_v50 }
0x3754   :  { %v8243_v18 = vpop.f32.mrf.mxu1 }
0x3756   :  { %v9684_v35 = vpop.f32.mrf.mxu1 }
0x3758   :  { %v8318_v59 = vpop.f32.mrf.mxu0 }
0x3759   :  { %v8319_v36 = vadd.f32 %v8318_v59, %v8243_v18 }
0x375a   :  { %v9703_v40 = vpop.f32.mrf.mxu0 }
0x375b   :  { %v8323_v62 = vadd.f32 %v8322_v17, %v8319_v36 }
0x375d   :  { %v8324_v4 = vmax.f32 %v8323_v62, 0.0 }
0x375f   :  { %9721 = vmatmul.mubr.msk.f32.vlgmr.msra.gmra.mxu1 %vm488_vm6, %v8324_v4 }
0x381f   :  { %v8403_v51 = vpop.f32.mrf.mxu1 }
0x3820   :  { %v8404_v38 = vadd.f32 %v8403_v51, %v8333_v57 }
0x3821   :  { %v9722_v39 = vpop.f32.mrf.mxu1 }
0x3822   :  { %8408 = vst.msk [vmem:[#allocation3] sm:$0x1] %vm8407_vm1, %v8404_v38 }
0x3823   :  { %10352 = shalt.err (!%p10349_p4)
}
0x3824   :  { %8418 = dma.vmem_to_hbm [thread:$0]  %s8416_s5, 16, %s15086_s26, [#allocation4]  }
0x3825   :  { %10361 = dma.done.wait [#allocation4], 16  }
0x3826   :  { %10362 = vsyncadd [#allocation4], 4294967280 }
0x3827   :  { %8422 = vsyncpa [#allocation4], 1 }

</bundles_post_ra>
